<compile_context>
chip_gen: v7x
topology: tpu7x:2x2x1
jax: 0.10.0
libtpu: 0.0.40
codegen_flags: <defaults>
</compile_context>

<pallas_src>
import jax
import jax.numpy as jnp
from jax import lax
from jax.experimental import pallas as pl
from jax.experimental.pallas import tpu as pltpu

BN_EPS = 1e-5                       # nn.BatchNorm2d default
OUT_CHANNELS = 2048
_VMEM_TILE_BUDGET = 22 * 1024 * 1024   # per-step buffer budget (safe on v7x 64 MiB VMEM)
_VMEM_LIMIT_BYTES = 40 * 1024 * 1024   # explicit scoped-VMEM limit (v5e default is only 16 MiB)


def _fused_conv_bn_relu_kernel(xa_ref, xb_ref, wa_ref, wb_ref, b_ref, o_ref):
    """out = relu(wa @ xa + wb @ xb + b); f32 accumulate, cast only at the store.

    xa_ref/xb_ref: (C, tile_m)      channels-first pixel slabs (pixels lane-dense)
    wa_ref/wb_ref: (Cout, C)        BN-folded 1x1-conv weights (contraction = last dim)
    b_ref:         (Cout, 1)        BN-folded per-channel bias (f32)
    o_ref:         (Cout, tile_m)   output block, natively NCHW layout
    """
    dn = (((1,), (0,)), ((), ()))   # canonical matmul: LHS last dim x RHS first dim
    y = lax.dot_general(wa_ref[...], xa_ref[...], dn,
                        preferred_element_type=jnp.float32)
    y = y + lax.dot_general(wb_ref[...], xb_ref[...], dn,
                            preferred_element_type=jnp.float32)
    y = y + b_ref[...]                                  # broadcast (Cout, 1), f32
    o_ref[...] = jnp.maximum(y, 0.0).astype(o_ref.dtype)


def _pick_tile_m(hw_padded, c_in, in_bytes, out_bytes):
    """Largest lane-dense pixel tile whose double-buffered working set fits VMEM."""
    for tm in (4096, 2048, 1024, 512, 256, 128):
        if tm > hw_padded or hw_padded % tm != 0:
            continue
        out_buf = 2 * OUT_CHANNELS * tm * out_bytes          # output tile, 2x buffered
        acc_buf = 2 * OUT_CHANNELS * tm * 4                  # f32 dot results / epilogue
        in_buf = 2 * 2 * c_in * tm * in_bytes                # A + B slabs, 2x buffered
        w_buf = 2 * 2 * OUT_CHANNELS * max(c_in, 128) * in_bytes  # resident weights (lane-padded)
        if out_buf + acc_buf + in_buf + w_buf <= _VMEM_TILE_BUDGET:
            return tm
    return 128


def fused_concat_conv_bn_relu(xa3, xb3, wa_t, wb_t, b_fold, *, out_dtype=jnp.float32):
    """xa3/xb3: (N, C, HWp); wa_t/wb_t: (Cout, C); b_fold: (Cout, 1) -> (N, Cout, HWp)."""
    N, C, HWp = xa3.shape
    assert HWp % 128 == 0, "pixel axis must be padded to a multiple of 128"
    in_bytes = jnp.dtype(xa3.dtype).itemsize
    out_bytes = jnp.dtype(out_dtype).itemsize
    tile_m = _pick_tile_m(HWp, C, in_bytes, out_bytes)
    grid = (N, HWp // tile_m)

    return pl.pallas_call(
        _fused_conv_bn_relu_kernel,
        out_shape=jax.ShapeDtypeStruct((N, OUT_CHANNELS, HWp), out_dtype),
        grid_spec=pltpu.PrefetchScalarGridSpec(
            num_scalar_prefetch=0,
            grid=grid,
            in_specs=[
                # per-image pixel slabs (N dim squeezed); streamed exactly once
                pl.BlockSpec((None, C, tile_m), lambda n, m: (n, 0, m)),
                pl.BlockSpec((None, C, tile_m), lambda n, m: (n, 0, m)),
                # BN-folded weights/bias: constant block index -> resident in VMEM
                pl.BlockSpec((OUT_CHANNELS, C), lambda n, m: (0, 0)),
                pl.BlockSpec((OUT_CHANNELS, C), lambda n, m: (0, 0)),
                pl.BlockSpec((OUT_CHANNELS, 1), lambda n, m: (0, 0)),
            ],
            out_specs=pl.BlockSpec((None, OUT_CHANNELS, tile_m),
                                   lambda n, m: (n, 0, m)),
        ),
        compiler_params=pltpu.CompilerParams(
            dimension_semantics=("parallel", "parallel"),
            vmem_limit_bytes=_VMEM_LIMIT_BYTES,
        ),
    )(xa3, xb3, wa_t, wb_t, b_fold)


class MSFPallas:
    """JAX/Pallas port of MSF(input_dim, fusion_style='concat', input_transform=None)."""

    def __init__(self, input_dim, in_index=3, fusion_style='concat',
                 compute_dtype=jnp.float32, out_dtype=jnp.float32,
                 key=jax.random.PRNGKey(0)):
        self.input_dim = input_dim
        self.in_index = in_index
        self.fusion_style = fusion_style
        self.compute_dtype = compute_dtype
        self.out_dtype = out_dtype
        k_w, k_b, k_g, k_be = jax.random.split(key, 4)
        cin = 2 * input_dim
        cout = OUT_CHANNELS
        # Deterministic synthetic parameters (Conv2d 1x1 weight stored as (2*C_in, Cout)).
        self.w = jax.random.normal(k_w, (cin, cout), jnp.float32) * 0.05
        # Conv bias kept for module parity; mathematically cancelled by the
        # train-mode BN mean subtraction, so the fused path never reads it.
        self.b = jax.random.normal(k_b, (cout,), jnp.float32) * 0.01
        self.gamma = 1.0 + 0.1 * jax.random.normal(k_g, (cout,), jnp.float32)
        self.beta = 0.1 * jax.random.normal(k_be, (cout,), jnp.float32)

    def _transform_inputs(self, inputs):
        # input_transform=None -> select a single level
        return inputs[self.in_index]

    def __call__(self, fea_A_list, fea_B_list, mask=None):
        fea_A = self._transform_inputs(fea_A_list)   # (N, C, H, W)
        fea_B = self._transform_inputs(fea_B_list)   # (N, C, H, W)

        if self.fusion_style == 'add':
            return fea_A + fea_B

        N, C, H, W = fea_A.shape
        HW = H * W
        M = N * HW
        a3 = fea_A.reshape(N, C, HW).astype(jnp.float32)   # free reshape, channels-first
        b3 = fea_B.reshape(N, C, HW).astype(jnp.float32)

        # --- Fold train-mode BatchNorm analytically into (w, b), without the concat. ---
        # y = [A;B]^T @ [wA;wB]:  mean(y_c) = mean_a@wA[:,c] + mean_b@wB[:,c]
        #                         var(y_c)  = [wA;wB]_c^T Cov([A;B]) [wA;wB]_c  (biased, as PyTorch)
        # Cov assembled from centered per-branch Grams (robust vs E[xx^T]-mu*mu^T cancellation).
        mean_a = jnp.mean(a3, axis=(0, 2))                           # (C,)
        mean_b = jnp.mean(b3, axis=(0, 2))                           # (C,)
        ac = a3 - mean_a[None, :, None]
        bc = b3 - mean_b[None, :, None]
        cov_aa = jnp.einsum('ncm,ndm->cd', ac, ac) / M               # (C, C)
        cov_ab = jnp.einsum('ncm,ndm->cd', ac, bc) / M
        cov_bb = jnp.einsum('ncm,ndm->cd', bc, bc) / M
        # TODO(synk): for production-sized C this stats pass could itself be a small
        # Pallas reduction fused with the main pass; negligible at small C.

        wA = self.w[:C, :]                                           # (C, Cout)
        wB = self.w[C:, :]
        var_y = (jnp.einsum('kc,kl,lc->c', wA, cov_aa, wA)
                 + 2.0 * jnp.einsum('kc,kl,lc->c', wA, cov_ab, wB)
                 + jnp.einsum('kc,kl,lc->c', wB, cov_bb, wB))        # (Cout,)
        mean_y = mean_a @ wA + mean_b @ wB                           # conv bias cancels
        scale = self.gamma * lax.rsqrt(var_y + BN_EPS)               # (Cout,)

        # Transposed (Cout, C) layout + compute-dtype cast (once, in the wrapper).
        wa_t = (wA * scale[None, :]).T.astype(self.compute_dtype)    # (Cout, C)
        wb_t = (wB * scale[None, :]).T.astype(self.compute_dtype)
        b_fold = (self.beta - scale * mean_y).reshape(-1, 1)         # (Cout, 1) f32

        # Lane-dense pixel axis: pad HW to a multiple of 128 (unmasked vst blocks).
        HWp = ((HW + 127) // 128) * 128
        a_k = a3.astype(self.compute_dtype)
        b_k = b3.astype(self.compute_dtype)
        if HWp != HW:
            pad = ((0, 0), (0, 0), (0, HWp - HW))
            a_k = jnp.pad(a_k, pad)
            b_k = jnp.pad(b_k, pad)

        out3 = fused_concat_conv_bn_relu(a_k, b_k, wa_t, wb_t, b_fold,
                                         out_dtype=self.out_dtype)
        if HWp != HW:
            out3 = out3[:, :, :HW]
        return out3.reshape(N, OUT_CHANNELS, H, W)                   # natively NCHW


def _reference_forward(fea_A, fea_B, w, b, gamma, beta):
    """Pure-JAX reference: concat -> 1x1 conv -> BN(train, batch stats) -> ReLU."""
    x = jnp.concatenate([fea_A, fea_B], axis=1)
    N, K, H, W = x.shape
    xm = jnp.transpose(x, (0, 2, 3, 1)).reshape(-1, K)
    y = xm @ w + b[None, :]
    mu = jnp.mean(y, axis=0)
    var = jnp.mean((y - mu[None, :]) ** 2, axis=0)
    z = (y - mu[None, :]) * lax.rsqrt(var + BN_EPS)[None, :] * gamma[None, :] + beta[None, :]
    z = jnp.maximum(z, 0.0)
    return z.reshape(N, H, W, -1).transpose(0, 3, 1, 2)


if __name__ == "__main__":
    key = jax.random.PRNGKey(0)
    N, C, H, W = 2, 4, 16, 16
    n_levels = 4

    kA, kB, kP = jax.random.split(key, 3)
    # Multi-level feature lists (only level in_index=3 is used by _transform_inputs).
    fea_A_list = [jax.random.normal(jax.random.fold_in(kA, i), (N, C, H, W), jnp.float32)
                  for i in range(n_levels)]
    fea_B_list = [jax.random.normal(jax.random.fold_in(kB, i), (N, C, H, W), jnp.float32)
                  for i in range(n_levels)]

    # Exact-parity path (f32 operands, f32 output).
    model = MSFPallas(input_dim=C, in_index=3, key=kP)
    out = jax.block_until_ready(model(fea_A_list, fea_B_list))
    assert out.shape == (N, OUT_CHANNELS, H, W), out.shape
    assert out.dtype == jnp.float32
    assert bool(jnp.all(out >= 0.0)), "ReLU output must be non-negative"

    ref = _reference_forward(fea_A_list[3], fea_B_list[3],
                             model.w, model.b, model.gamma, model.beta)
    ref = jax.block_until_ready(ref)
    assert jnp.allclose(out, ref, atol=1e-3, rtol=1e-3), (
        float(jnp.max(jnp.abs(out - ref))))

    # Fast path: bf16 operands + bf16 stores (f32 accumulate/epilogue in-kernel).
    model_bf16 = MSFPallas(input_dim=C, in_index=3, key=kP,
                           compute_dtype=jnp.bfloat16, out_dtype=jnp.bfloat16)
    out_bf16 = jax.block_until_ready(model_bf16(fea_A_list, fea_B_list))
    assert out_bf16.shape == (N, OUT_CHANNELS, H, W)
    assert out_bf16.dtype == jnp.bfloat16
    assert bool(jnp.all(out_bf16.astype(jnp.float32) >= 0.0))
    bf16_err = float(jnp.max(jnp.abs(out_bf16.astype(jnp.float32) - ref)))
    assert bf16_err < 0.15, bf16_err

    print("KERNEL_OK")
</pallas_src>

<mosaic_0001>
module attributes {stable_mosaic.version = 11 : i64} {
  func.func @_fused_conv_bn_relu_kernel(%arg0: i32, %arg1: i32, %arg2: memref<1x4x256xf32, #tpu.memory_space<vmem>>, %arg3: memref<1x4x256xf32, #tpu.memory_space<vmem>>, %arg4: memref<2048x4xf32, #tpu.memory_space<vmem>>, %arg5: memref<2048x4xf32, #tpu.memory_space<vmem>>, %arg6: memref<2048x1xf32, #tpu.memory_space<vmem>>, %arg7: memref<1x2048x256xf32, #tpu.memory_space<vmem>>) attributes {dimension_semantics = [#tpu.dimension_semantics<parallel>, #tpu.dimension_semantics<parallel>], iteration_bounds = array<i64: 2, 1>, scalar_prefetch = 0 : i64, scratch_operands = 0 : i64, tpu.core_type = #tpu.core_type<tc>, window_params = [{transform_indices = @transform_0, window_bounds = array<i64: 1, 4, 256>}, {transform_indices = @transform_1, window_bounds = array<i64: 1, 4, 256>}, {pipeline_mode = #tpu.pipeline_mode<synchronous>, transform_indices = @transform_2, window_bounds = array<i64: 2048, 4>}, {pipeline_mode = #tpu.pipeline_mode<synchronous>, transform_indices = @transform_3, window_bounds = array<i64: 2048, 4>}, {pipeline_mode = #tpu.pipeline_mode<synchronous>, transform_indices = @transform_4, window_bounds = array<i64: 2048, 1>}, {transform_indices = @transform_5, window_bounds = array<i64: 1, 2048, 256>}]} {
    %c0 = arith.constant 0 : index
    %c0_0 = arith.constant 0 : index
    %0 = vector.load %arg4[%c0, %c0_0] : memref<2048x4xf32, #tpu.memory_space<vmem>>, vector<2048x4xf32>
    %c0_1 = arith.constant 0 : index
    %c0_2 = arith.constant 0 : index
    %c0_3 = arith.constant 0 : index
    %1 = vector.load %arg2[%c0_1, %c0_2, %c0_3] : memref<1x4x256xf32, #tpu.memory_space<vmem>>, vector<1x4x256xf32>
    %2 = vector.shape_cast %1 : vector<1x4x256xf32> to vector<4x256xf32>
    %cst = arith.constant dense<0.000000e+00> : vector<2048x256xf32>
    %3 = tpu.matmul %0, %2, %cst {dimension_numbers = #tpu.dot_dimension_numbers<[1], [0], [0], [1], [0, 0, 1, 1], [], []>} : vector<2048x4xf32>, vector<4x256xf32>, vector<2048x256xf32> -> vector<2048x256xf32>
    %c0_4 = arith.constant 0 : index
    %c0_5 = arith.constant 0 : index
    %4 = vector.load %arg5[%c0_4, %c0_5] : memref<2048x4xf32, #tpu.memory_space<vmem>>, vector<2048x4xf32>
    %c0_6 = arith.constant 0 : index
    %c0_7 = arith.constant 0 : index
    %c0_8 = arith.constant 0 : index
    %5 = vector.load %arg3[%c0_6, %c0_7, %c0_8] : memref<1x4x256xf32, #tpu.memory_space<vmem>>, vector<1x4x256xf32>
    %6 = vector.shape_cast %5 : vector<1x4x256xf32> to vector<4x256xf32>
    %cst_9 = arith.constant dense<0.000000e+00> : vector<2048x256xf32>
    %7 = tpu.matmul %4, %6, %cst_9 {dimension_numbers = #tpu.dot_dimension_numbers<[1], [0], [0], [1], [0, 0, 1, 1], [], []>} : vector<2048x4xf32>, vector<4x256xf32>, vector<2048x256xf32> -> vector<2048x256xf32>
    %8 = arith.addf %3, %7 : vector<2048x256xf32>
    %c0_10 = arith.constant 0 : index
    %c0_11 = arith.constant 0 : index
    %9 = vector.load %arg6[%c0_10, %c0_11] : memref<2048x1xf32, #tpu.memory_space<vmem>>, vector<2048x1xf32>
    %10 = vector.broadcast %9 : vector<2048x1xf32> to vector<2048x256xf32>
    %11 = arith.addf %8, %10 : vector<2048x256xf32>
    %cst_12 = arith.constant 0.000000e+00 : f32
    %12 = vector.broadcast %cst_12 : f32 to vector<2048x256xf32>
    %13 = arith.maximumf %11, %12 : vector<2048x256xf32>
    %c0_13 = arith.constant 0 : index
    %c0_14 = arith.constant 0 : index
    %c0_15 = arith.constant 0 : index
    %14 = vector.load %arg7[%c0_13, %c0_14, %c0_15] : memref<1x2048x256xf32, #tpu.memory_space<vmem>>, vector<1x2048x256xf32>
    %15 = vector.shape_cast %14 : vector<1x2048x256xf32> to vector<2048x256xf32>
    %16 = vector.shape_cast %13 : vector<2048x256xf32> to vector<1x2048x256xf32>
    tpu.vector_store %arg7[%c0_13, %c0_14, %c0_15], %16 {strides = array<i32>} : memref<1x2048x256xf32, #tpu.memory_space<vmem>>, vector<1x2048x256xf32>,
    return
  }
  func.func @transform_0(%arg0: i32, %arg1: i32) -> (i32, i32, i32) {
    %c0_i32 = arith.constant 0 : i32
    %c0_i32_0 = arith.constant 0 : i32
    return %arg0, %c0_i32, %arg1 : i32, i32, i32
  }
  func.func @transform_1(%arg0: i32, %arg1: i32) -> (i32, i32, i32) {
    %c0_i32 = arith.constant 0 : i32
    %c0_i32_0 = arith.constant 0 : i32
    return %arg0, %c0_i32, %arg1 : i32, i32, i32
  }
  func.func @transform_2(%arg0: i32, %arg1: i32) -> (i32, i32) {
    %c0_i32 = arith.constant 0 : i32
    %c0_i32_0 = arith.constant 0 : i32
    %c0_i32_1 = arith.constant 0 : i32
    return %c0_i32, %c0_i32_0 : i32, i32
  }
  func.func @transform_3(%arg0: i32, %arg1: i32) -> (i32, i32) {
    %c0_i32 = arith.constant 0 : i32
    %c0_i32_0 = arith.constant 0 : i32
    %c0_i32_1 = arith.constant 0 : i32
    return %c0_i32, %c0_i32_0 : i32, i32
  }
  func.func @transform_4(%arg0: i32, %arg1: i32) -> (i32, i32) {
    %c0_i32 = arith.constant 0 : i32
    %c0_i32_0 = arith.constant 0 : i32
    %c0_i32_1 = arith.constant 0 : i32
    return %c0_i32, %c0_i32_0 : i32, i32
  }
  func.func @transform_5(%arg0: i32, %arg1: i32) -> (i32, i32, i32) {
    %c0_i32 = arith.constant 0 : i32
    %c0_i32_0 = arith.constant 0 : i32
    return %arg0, %c0_i32, %arg1 : i32, i32, i32
  }
}

</mosaic_0001>

<bundles_post_ra>
// kernel: tpu_custom_call.1
= control target key start
LH: loop header
LB: loop body
LE: loop exit
PB: predicated region body
PF: predicated region fallthrough
CT: control target
= control target key end

     0   :  { %10 = vsyncpa [#allocation3], 0  ;;  %s14779_s0 = inlined_call_operand.hbm [shape: f32[2,4,256], index: 0, kind: input, shape index: {}]   ;;  %s14780_s1 = inlined_call_operand.hbm [shape: f32[2,4,256], index: 1, kind: input, shape index: {}]   ;;  %s14781_s2 = inlined_call_operand.vmem [shape: f32[2048,4], index: 2, kind: input, shape index: {}]   ;;  %s14782_s3 = inlined_call_operand.vmem [shape: f32[2048,4], index: 3, kind: input, shape index: {}]   ;;  %s14783_s4 = inlined_call_operand.vmem [shape: f32[2048,1], index: 4, kind: input, shape index: {}]   ;;  %s14784_s5 = inlined_call_operand.hbm [shape: f32[2,2048,256], index: 5, kind: output, shape index: {}]  }
   0x1   :  { %12 = vsyncpa [#allocation3 + $0x1], 0 }
   0x2   :  { %13 = vsyncpa [#allocation6], 0 }
   0x3   :  { %15 = vsyncpa [#allocation6 + $0x1], 0 }
   0x4   :  { %16 = vsyncpa [#allocation4], 0 }
   0x5   :  { %18 = vsyncpa [#allocation4 + $0x1], 0  ;;  %s10081_s18 = smov 0   ;;  %s10083_s19 = smov 0  }
   0x6   :  { %s10085_s20 = smov 0   ;;  %s10087_s21 = smov 0  }
   0x7   :  { %s10089_s22 = smov 0   ;;  %s10091_s23 = smov 0  }
   0x8 LB: > { %s8771_s24 = sadd.s32 4294967295, %s10042_s23   ;;  %s8772_s25 = sadd.s32 4294967294, %s10042_s23   ;;  %s10042_s23 = sphi %s10091_s23, %s24_s23   ;;  %s10038_s22 = sphi %s10089_s22, %s14942_s22   ;;  %s10034_s21 = sphi %s10087_s21, %s14941_s21   ;;  %s10030_s20 = sphi %s10085_s20, %s14940_s20   ;;  %s10026_s19 = sphi %s10083_s19, %s14939_s19   ;;  %s10022_s18 = sphi %s10081_s18, %s14938_s18  }
   0x9   : > { %s36_s26 = sadd.s32 1, %s10038_s22  ;;  %s45_s27 = sadd.s32 1, %s10030_s20 }
   0xa   : > { %p38_p0 = scmp.ge.s32.totalorder %s36_s26, 2  ;;  %p52_p1 = scmp.ne.s32.totalorder %s10030_s20, %s10026_s19 }
   0xb   : > { %p53_p2 = scmp.eq.s32.totalorder %s10042_s23, 0  ;;  %p58_p3 = scmp.ne.s32.totalorder %s10026_s19, %s10022_s18 }
   0xc   : > { %s14944_s26 = smov (%p38_p0, %s36_s26), 0  ;;  %p59_p5 = scmp.eq.s32.totalorder %s8771_s24, 0 }
   0xd   : > { %p10122_p4 = por %p53_p2, %p52_p1  ;;  %s40_s29 = ssub.s32 %s10038_s22, %s14944_s26 }
   0xe   : > { %p175_p6 = scmp.eq.s32.totalorder %s8771_s24, 1  ;;  %p43_p7 = scmp.eq.s32.totalorder %s40_s29, 0 }
   0xf   : > { %p10128_p8 = por %p59_p5, %p58_p3  ;;  %p181_p10 = scmp.eq.s32.totalorder %s8772_s25, 1 }
  0x10   : > { %p10132_p9 = por %p175_p6, %p52_p1  ;;  %p9838_p13 = scmp.lt.s32.totalorder %s10042_s23, 2 }
  0x11   : > { %s14835_s30 = scalar_select %p10128_p8, 1, 0 }
  0x12   : > { %s14836_s6 = scalar_select %p10132_p9, 1, 0 }
  0x13   : > { %s10137_s7 = scalar_select %p43_p7, %s10030_s20, %s45_s27  }
  0x14   : > { %p10139_p11 = por %p181_p10, %p58_p3  ;;  %s10146_s9 = sand.u32 1, %s10030_s20  }
  0x15   : > { %s8775_s10 = sshll.u32 %s10146_s9, 3  ;;  %s9306_s11 = sshll.u32 %s10038_s22, 7 }
  0x16   : > { %s14837_s8 = scalar_select %p10139_p11, 1, 0 }
  0x17   : > { %s10155_s14 = scalar_lea.hbm %s14779_s0, %s9306_s11  ;;  %s214_s15 = scalar_lea.vmem [#allocation2], %s8775_s10 }
  0x18   : > { %s224_s16 = sshll.u32 %s214_s15, 4  ;;  %p10163_p0 = pnand %p9838_p13, %p10122_p4  ;;  %s10159_s16 = int_to_ptr.vmem [resolvable:$true] %s224_s16 }
  0x19   : > { %s211_s24 = scalar_lea.sflag [#allocation3], %s10146_s9  ;;  %s9896_s25 = scalar_lea.hbm %s10155_s14, 128 }
  0x1a   : > { %p9897_p3 = scmp.ne.s32.totalorder %s10155_s14, %s9896_s25  ;;  %p9898_p5 = pneg %p10163_p0 }
  0x1b   : > { %s9901_s28 = scalar_lea.hbm %s14779_s0, 256  ;;  %p9902_p4 = scmp.lt.u32.totalorder %s10155_s14, %s14779_s0 }
  0x1c   : > { %p9899_p6 = pnand %p9898_p5, %p9897_p3  ;;  %p9903_p10 = scmp.lt.u32.totalorder %s9901_s28, %s9896_s25 }
  0x1d   : > { %p9905_p12 = scmp.lt.u32.totalorder %s9896_s25, %s10155_s14 }
  0x1e   : > { %p9900_p7 = pneg %p9899_p6  ;;  %p9904_p13 = por %p9903_p10, %p9902_p4 }
  0x20   : > { %p9906_p1 = por %p9905_p12, %p9904_p13 }
  0x22   : > { %p9907_p2 = pnand %p9906_p1, %p9900_p7 }
  0x24   : > { %9910 = shalt.err (!%p9907_p2)
}
  0x25   : > { %s9911_s15 = scalar_lea.vmem %s10159_s16, 128  ;;  %s10044_s27 = smov [#allocation2]  }
  0x26   : > { %p9912_p3 = scmp.ne.s32.totalorder %s10159_s16, %s9911_s15  ;;  %s9916_s29 = sshll.u32 %s10044_s27, 4  ;;  %s9917_s29 = int_to_ptr.vmem [resolvable:$false] %s9916_s29 }
  0x27   : > { %s9918_s12 = scalar_lea.vmem %s9917_s29, 256  ;;  %p9919_p9 = scmp.lt.s32.totalorder %s10159_s16, %s9917_s29 }
  0x28   : > { %p9914_p6 = pnand %p9912_p3, %p9898_p5  ;;  %p9920_p4 = scmp.lt.s32.totalorder %s9918_s12, %s9911_s15 }
  0x2a   : > { %p9915_p11 = pneg %p9914_p6  ;;  %p9921_p10 = por %p9920_p4, %p9919_p9 }
  0x2c   : > { %p9922_p12 = pnand %p9921_p10, %p9915_p11 }
  0x2e   : > { %9925 = shalt.err (!%p9922_p12)
}
  0x2f   : > { %9830 = dma.hbm_to_vmem [thread:$0]  (!%p10163_p0), %s10155_s14, 128, %s10159_s16, %s211_s24  }
  0x30   : > { %p14839_p1 = scmp.lt.s32.totalorder %s10042_s23, 3  ;;  %p14840_p2 = scmp.ge.s32.totalorder %s10042_s23, 1 }
  0x31   : > { %s10208_s15 = scalar_lea.hbm %s14780_s1, %s9306_s11  ;;  %s235_s27 = scalar_lea.vmem [#allocation5], %s8775_s10 }
  0x32   : > { %p10199_p7 = pnand %p14840_p2, %p14839_p1  ;;  %s245_s29 = sshll.u32 %s235_s27, 4  ;;  %s246_s29 = int_to_ptr.vmem [resolvable:$true] %s245_s29 }
  0x33   : > { %s232_s14 = scalar_lea.sflag [#allocation6], %s10146_s9  ;;  %s9926_s16 = scalar_lea.hbm %s10208_s15, 128 }
  0x34   : > { %s14841_s25 = scalar_select %p10199_p7, 1, 0 }
  0x35   : > { %p9927_p9 = scmp.ne.s32.totalorder %s10208_s15, %s9926_s16  ;;  %s9931_s11 = scalar_lea.hbm %s14780_s1, 256 }
  0x36   : > { %p9932_p3 = scmp.lt.u32.totalorder %s10208_s15, %s14780_s1  ;;  %p9933_p6 = scmp.lt.u32.totalorder %s9931_s11, %s9926_s16 }
  0x37   : > { %p9929_p11 = pnand %p9927_p9, %p9898_p5  ;;  %p9935_p10 = scmp.lt.u32.totalorder %s9926_s16, %s10208_s15 }
  0x38   : > { %p9934_p4 = por %p9933_p6, %p9932_p3 }
  0x39   : > { %p9930_p13 = pneg %p9929_p11 }
  0x3a   : > { %p9936_p12 = por %p9935_p10, %p9934_p4 }
  0x3c   : > { %p9937_p1 = pnand %p9936_p12, %p9930_p13 }
  0x3e   : > { %9940 = shalt.err (!%p9937_p1)
}
  0x3f   : > { %s9941_s9 = scalar_lea.vmem %s246_s29, 128  ;;  %s10045_s10 = smov [#allocation5]  }
  0x40   : > { %p9942_p2 = scmp.ne.s32.totalorder %s246_s29, %s9941_s9  ;;  %s9946_s27 = sshll.u32 %s10045_s10, 4  ;;  %s9947_s27 = int_to_ptr.vmem [resolvable:$false] %s9946_s27 }
  0x41   : > { %s9948_s24 = scalar_lea.vmem %s9947_s27, 256  ;;  %p9949_p8 = scmp.lt.s32.totalorder %s246_s29, %s9947_s27 }
  0x42   : > { %p9944_p9 = pnand %p9942_p2, %p9898_p5  ;;  %p9950_p7 = scmp.lt.s32.totalorder %s9948_s24, %s9941_s9 }
  0x44   : > { %p9945_p11 = pneg %p9944_p9  ;;  %p9951_p3 = por %p9950_p7, %p9949_p8 }
  0x46   : > { %p9952_p6 = pnand %p9951_p3, %p9945_p11 }
  0x48   : > { %9955 = shalt.err (!%p9952_p6)
}
  0x49   : > { %9833 = dma.hbm_to_vmem [thread:$0]  (!%p10163_p0), %s10208_s15, 128, %s246_s29, %s232_s14  }
  0x4a   : > { %p14842_p13 = scmp.ne.s32.totalorder %s14841_s25, 0 }
  0x4c   : > { %254 = sbr.rel (%p14842_p13) target bundleno = 1348 (0x544), region = 40 }
  0x53   : > { %s10235_s16 = sand.u32 1, %s10026_s19   ;;  %p14843_p5 = scmp.ne.s32.totalorder %s14835_s30, 0 }
  0x54   : > { %s8782_s12 = sshll.u32 %s10235_s16, 3  ;;  %s257_s11 = scalar_lea.sflag [#allocation3], %s10235_s16 }
  0x55   : > { %s260_s28 = scalar_lea.vmem [#allocation2], %s8782_s12 }
  0x56   : > { %10009 = dma.done.wait (%p14843_p5), %s257_s11, 128  }
  0x57   : > { %10011 = vsyncadd (%p14843_p5), %s257_s11, 4294967168  ;;  %s266_s17 = scalar_lea.sflag [#allocation6], %s10235_s16  ;;  %s269_s15 = scalar_lea.vmem [#allocation5], %s8782_s12 }
  0x58   : > { %10013 = dma.done.wait (%p14843_p5), %s266_s17, 128  }
  0x59   : > { %10015 = vsyncadd (%p14843_p5), %s266_s17, 4294967168  ;;  %v14787_v0 = vmov 0.0   ;;  %v10047_v1 = vmov 0   ;;  %v817_v2 = vld [vmem:[%s269_s15] sm:$0xff]  ;;  %vm1589_vm0 = vcmask 1043456   ;;  %v560_v3 = vld [vmem:[%s260_s28] sm:$0xff] }
  0x5a   : > { %1658 = vmatprep.mubr.f32.mxu1 %v14787_v0  ;;  %4033 = vmatprep.mubr.f32.mxu0 %v14787_v0  ;;  %v819_v4 = vcombine.high %v817_v2, %v817_v2  ;;  %v3196_v5 = vcombine.high %v560_v3, %v560_v3  ;;  %v561_v6 = vld [vmem:[%s14782_s3] sm:$0xff]  ;;  %vm820_vm1 = vcmask 31744   ;;  %v562_v8 = vld [vmem:[%s14782_s3 + $0x8] sm:$0xff]  ;;  %v563_v10 = vld [vmem:[%s14782_s3 + $0x10] sm:$0xff]  ;;  %s8784_s25 = sshll.u32 %s10235_s16, 12  ;;  %s9308_s17 = sshll.u32 %s10034_s21, 16 }
  0x5b   : > { %9892 = vset.pattern.permute.xlu0 %v10047_v1  ;;  %9893 = vset.pattern.permute.xlu1 %v10047_v1  ;;  %v304_v7 = vld [vmem:[%s14781_s2] sm:$0xff]  ;;  %v305_v9 = vld [vmem:[%s14781_s2 + $0x8] sm:$0xff]  ;;  %v306_v11 = vld [vmem:[%s14781_s2 + $0x10] sm:$0xff]  ;;  %s11204_s30 = scalar_lea.vmem [#allocation7], %s8784_s25  ;;  %s14726_s13 = scalar_lea.hbm %s14784_s5, %s9308_s17 }
  0x5c   : > { %8785 = vmatprep.subr.msk.mxu1 %vm1589_vm0, %v819_v4  ;;  %9043 = vmatprep.subr.msk.mxu0 %vm1589_vm0, %v3196_v5  ;;  %v564_v12 = vld [vmem:[%s14782_s3 + $0x18] sm:$0xff]  ;;  %v5570_v14 = vld [vmem:[%s14783_s4] sm:$0xff]  ;;  %v5572_v15 = vld [vmem:[%s14783_s4 + $0x10] sm:$0xff]  ;;  %s8658_s15 = sshll.u32 %s11204_s30, 4  ;;  %s8643_s21 = scalar_lea.sflag [#allocation4], %s10235_s16  ;;  %s14728_s15 = int_to_ptr.vmem [resolvable:$true] %s8658_s15 }
  0x5d   : > { %8786 = vmatpush1.msk.msra.mxu1 %vm1589_vm0, %v817_v2  ;;  %9044 = vmatpush1.msk.msra.mxu0 %vm1589_vm0, %v560_v3  ;;  %v307_v13 = vld [vmem:[%s14781_s2 + $0x18] sm:$0xff]  ;;  %v5571_v16 = vld [vmem:[%s14783_s4 + $0x8] sm:$0xff]  ;;  %v565_v17 = vld [vmem:[%s14782_s3 + $0x20] sm:$0xff]  ;;  %s9956_s25 = scalar_lea.vmem %s14728_s15, 65536  ;;  %p14935_p0 = scmp.ne.s32.totalorder %s14836_s6, 0 }
  0x5e   : > { %8787 = vmatmul.mubr.msk.f32.vlgmr.msra.gmra.mrb[0].mxu1 %vm820_vm1, %v561_v6  ;;  %9045 = vmatmul.mubr.msk.f32.vlgmr.msra.gmra.mrb[0].mxu0 %vm820_vm1, %v304_v7  ;;  %v308_v18 = vld [vmem:[%s14781_s2 + $0x20] sm:$0xff]  ;;  %v5573_v19 = vld [vmem:[%s14783_s4 + $0x18] sm:$0xff]  ;;  %v566_v21 = vld [vmem:[%s14782_s3 + $0x28] sm:$0xff]  ;;  %p9957_p8 = scmp.ne.s32.totalorder %s14728_s15, %s9956_s25  ;;  %s10048_s9 = smov [#allocation7]  }
  0x5f   : > { %1664 = vmatprep.mubr.f32.mxu1 %v14787_v0  ;;  %4039 = vmatprep.mubr.f32.mxu0 %v14787_v0  ;;  %v5574_v20 = vld [vmem:[%s14783_s4 + $0x20] sm:$0xff]  ;;  %v309_v22 = vld [vmem:[%s14781_s2 + $0x28] sm:$0xff]  ;;  %v5576_v24 = vld [vmem:[%s14783_s4 + $0x30] sm:$0xff]  ;;  %s9960_s10 = sshll.u32 %s10048_s9, 4  ;;  %s9961_s10 = int_to_ptr.vmem [resolvable:$false] %s9960_s10 }
  0x60   : > { %5828 = vperm.xlu0 %9892, %v5570_v14   ;;  %5838 = vperm.xlu1 %9893, %v5572_v15   ;;  %v5575_v23 = vld [vmem:[%s14783_s4 + $0x28] sm:$0xff]  ;;  %v567_v25 = vld [vmem:[%s14782_s3 + $0x30] sm:$0xff]  ;;  %v5577_v27 = vld [vmem:[%s14783_s4 + $0x38] sm:$0xff]  ;;  %p9958_p7 = pnand %p9957_p8, %p14935_p0  ;;  %s9962_s27 = scalar_lea.vmem %s9961_s10, 131072 }
  0x61   : > { %v310_v26 = vld [vmem:[%s14781_s2 + $0x30] sm:$0xff]  ;;  %v5578_v28 = vld [vmem:[%s14783_s4 + $0x40] sm:$0xff]  ;;  %v568_v29 = vld [vmem:[%s14782_s3 + $0x38] sm:$0xff]  ;;  %p9963_p10 = scmp.lt.s32.totalorder %s14728_s15, %s9961_s10  ;;  %p9964_p12 = scmp.lt.s32.totalorder %s9962_s27, %s9956_s25 }
  0x62   : > { %8788 = vmatmul.mubr.msk.f32.gmra.mrb[2].mxu1 %vm820_vm1, %v562_v8  ;;  %9046 = vmatmul.mubr.msk.f32.gmra.mrb[2].mxu0 %vm820_vm1, %v305_v9  ;;  %v311_v30 = vld [vmem:[%s14781_s2 + $0x38] sm:$0xff]  ;;  %v5579_v31 = vld [vmem:[%s14783_s4 + $0x48] sm:$0xff]  ;;  %v5580_v32 = vld [vmem:[%s14783_s4 + $0x50] sm:$0xff]  ;;  %p9959_p4 = pneg %p9958_p7 }
  0x63   : > { %1670 = vmatprep.mubr.f32.mxu1 %v14787_v0  ;;  %4045 = vmatprep.mubr.f32.mxu0 %v14787_v0  ;;  %v569_v33 = vld [vmem:[%s14782_s3 + $0x40] sm:$0xff]  ;;  %v5581_v35 = vld [vmem:[%s14783_s4 + $0x58] sm:$0xff]  ;;  %v570_v37 = vld [vmem:[%s14782_s3 + $0x48] sm:$0xff]  ;;  %p9965_p1 = por %p9964_p12, %p9963_p10 }
  0x64   : > { %5833 = vperm.xlu0 %9892, %v5571_v16   ;;  %5843 = vperm.xlu1 %9893, %v5573_v19   ;;  %v312_v34 = vld [vmem:[%s14781_s2 + $0x40] sm:$0xff]  ;;  %v313_v38 = vld [vmem:[%s14781_s2 + $0x48] sm:$0xff]  ;;  %v5584_v40 = vld [vmem:[%s14783_s4 + $0x70] sm:$0xff] }
  0x65   : > { %v5582_v36 = vld [vmem:[%s14783_s4 + $0x60] sm:$0xff]  ;;  %v5583_v39 = vld [vmem:[%s14783_s4 + $0x68] sm:$0xff]  ;;  %v571_v41 = vld [vmem:[%s14782_s3 + $0x50] sm:$0xff]  ;;  %p9966_p2 = pnand %p9965_p1, %p9959_p4 }
  0x66   : > { %8789 = vmatmul.mubr.msk.f32.gmra.mrb[4].mxu1 %vm820_vm1, %v563_v10  ;;  %9047 = vmatmul.mubr.msk.f32.gmra.mrb[4].mxu0 %vm820_vm1, %v306_v11  ;;  %v314_v42 = vld [vmem:[%s14781_s2 + $0x50] sm:$0xff]  ;;  %v5585_v43 = vld [vmem:[%s14783_s4 + $0x78] sm:$0xff]  ;;  %v5586_v44 = vld [vmem:[%s14783_s4 + $0x80] sm:$0xff] }
  0x67   : > { %1676 = vmatprep.mubr.f32.mxu1 %v14787_v0  ;;  %4051 = vmatprep.mubr.f32.mxu0 %v14787_v0  ;;  %v572_v45 = vld [vmem:[%s14782_s3 + $0x58] sm:$0xff]  ;;  %v5587_v47 = vld [vmem:[%s14783_s4 + $0x88] sm:$0xff]  ;;  %v5588_v48 = vld [vmem:[%s14783_s4 + $0x90] sm:$0xff] }
  0x68   : > { %5848 = vperm.xlu0 %9892, %v5574_v20   ;;  %5853 = vperm.xlu1 %9893, %v5575_v23   ;;  %v315_v46 = vld [vmem:[%s14781_s2 + $0x58] sm:$0xff]  ;;  %v573_v49 = vld [vmem:[%s14782_s3 + $0x60] sm:$0xff]  ;;  %v574_v53 = vld [vmem:[%s14782_s3 + $0x68] sm:$0xff] }
  0x69   : > { %v316_v50 = vld [vmem:[%s14781_s2 + $0x60] sm:$0xff]  ;;  %v5589_v51 = vld [vmem:[%s14783_s4 + $0x98] sm:$0xff]  ;;  %v317_v54 = vld [vmem:[%s14781_s2 + $0x68] sm:$0xff] }
  0x6a   : > { %8790 = vmatmul.mubr.msk.f32.gmra.mrb[6].mxu1 %vm820_vm1, %v564_v12  ;;  %9048 = vmatmul.mubr.msk.f32.gmra.mrb[6].mxu0 %vm820_vm1, %v307_v13  ;;  %v5590_v52 = vld [vmem:[%s14783_s4 + $0xa0] sm:$0xff]  ;;  %v5591_v55 = vld [vmem:[%s14783_s4 + $0xa8] sm:$0xff]  ;;  %v5592_v56 = vld [vmem:[%s14783_s4 + $0xb0] sm:$0xff] }
  0x6b   : > { %1682 = vmatprep.mubr.f32.mxu1 %v14787_v0  ;;  %4057 = vmatprep.mubr.f32.mxu0 %v14787_v0  ;;  %v575_v57 = vld [vmem:[%s14782_s3 + $0x70] sm:$0xff]  ;;  %v5593_v59 = vld [vmem:[%s14783_s4 + $0xb8] sm:$0xff]  ;;  %v5594_v60 = vld [vmem:[%s14783_s4 + $0xc0] sm:$0xff] }
  0x6c   : > { %5858 = vperm.xlu0 %9892, %v5576_v24   ;;  %5863 = vperm.xlu1 %9893, %v5577_v27   ;;  %v318_v58 = vld [vmem:[%s14781_s2 + $0x70] sm:$0xff]  ;;  %v576_v61 = vld [vmem:[%s14782_s3 + $0x78] sm:$0xff]  ;;  %v5595_v63 = vld [vmem:[%s14783_s4 + $0xc8] sm:$0xff] }
  0x6d   : > { %v319_v62 = vld [vmem:[%s14781_s2 + $0x78] sm:$0xff]  ;;  %v5596_v1 = vld [vmem:[%s14783_s4 + $0xd0] sm:$0xff]  ;;  %v577_v2 = vld [vmem:[%s14782_s3 + $0x80] sm:$0xff] }
  0x6e   : > { %8791 = vmatmul.mubr.msk.f32.gmra.mrb[8].mxu1 %vm820_vm1, %v565_v17  ;;  %9049 = vmatmul.mubr.msk.f32.gmra.mrb[8].mxu0 %vm820_vm1, %v308_v18  ;;  %v320_v3 = vld [vmem:[%s14781_s2 + $0x80] sm:$0xff]  ;;  %v5597_v4 = vld [vmem:[%s14783_s4 + $0xd8] sm:$0xff]  ;;  %v578_v6 = vld [vmem:[%s14782_s3 + $0x88] sm:$0xff] }
  0x6f   : > { %1688 = vmatprep.mubr.f32.mxu1 %v14787_v0  ;;  %4063 = vmatprep.mubr.f32.mxu0 %v14787_v0  ;;  %v5598_v5 = vld [vmem:[%s14783_s4 + $0xe0] sm:$0xff]  ;;  %v321_v7 = vld [vmem:[%s14781_s2 + $0x88] sm:$0xff]  ;;  %v5600_v9 = vld [vmem:[%s14783_s4 + $0xf0] sm:$0xff] }
  0x70   : > { %5868 = vperm.xlu0 %9892, %v5578_v28   ;;  %5873 = vperm.xlu1 %9893, %v5579_v31   ;;  %v5599_v8 = vld [vmem:[%s14783_s4 + $0xe8] sm:$0xff]  ;;  %v579_v10 = vld [vmem:[%s14782_s3 + $0x90] sm:$0xff]  ;;  %v5601_v12 = vld [vmem:[%s14783_s4 + $0xf8] sm:$0xff] }
  0x71   : > { %v322_v11 = vld [vmem:[%s14781_s2 + $0x90] sm:$0xff]  ;;  %v5602_v13 = vld [vmem:[%s14783_s4 + $0x100] sm:$0xff]  ;;  %v580_v14 = vld [vmem:[%s14782_s3 + $0x98] sm:$0xff] }
  0x72   : > { %8792 = vmatmul.mubr.msk.f32.gmra.mrb[10].mxu1 %vm820_vm1, %v566_v21  ;;  %9050 = vmatmul.mubr.msk.f32.gmra.mrb[10].mxu0 %vm820_vm1, %v309_v22  ;;  %v323_v15 = vld [vmem:[%s14781_s2 + $0x98] sm:$0xff]  ;;  %v5603_v16 = vld [vmem:[%s14783_s4 + $0x108] sm:$0xff]  ;;  %v5604_v17 = vld [vmem:[%s14783_s4 + $0x110] sm:$0xff] }
  0x73   : > { %1694 = vmatprep.mubr.f32.mxu1 %v14787_v0  ;;  %4069 = vmatprep.mubr.f32.mxu0 %v14787_v0  ;;  %v581_v18 = vld [vmem:[%s14782_s3 + $0xa0] sm:$0xff]  ;;  %v5605_v20 = vld [vmem:[%s14783_s4 + $0x118] sm:$0xff]  ;;  %v582_v22 = vld [vmem:[%s14782_s3 + $0xa8] sm:$0xff] }
  0x74   : > { %5878 = vperm.xlu0 %9892, %v5580_v32   ;;  %5883 = vperm.xlu1 %9893, %v5581_v35   ;;  %v324_v19 = vld [vmem:[%s14781_s2 + $0xa0] sm:$0xff]  ;;  %v325_v23 = vld [vmem:[%s14781_s2 + $0xa8] sm:$0xff]  ;;  %v326_v27 = vld [vmem:[%s14781_s2 + $0xb0] sm:$0xff] }
  0x75   : > { %v5606_v21 = vld [vmem:[%s14783_s4 + $0x120] sm:$0xff]  ;;  %v5607_v24 = vld [vmem:[%s14783_s4 + $0x128] sm:$0xff]  ;;  %v5609_v28 = vld [vmem:[%s14783_s4 + $0x138] sm:$0xff] }
  0x76   : > { %8793 = vmatmul.mubr.msk.f32.gmra.mrb[12].mxu1 %vm820_vm1, %v567_v25  ;;  %9051 = vmatmul.mubr.msk.f32.gmra.mrb[12].mxu0 %vm820_vm1, %v310_v26  ;;  %v5608_v25 = vld [vmem:[%s14783_s4 + $0x130] sm:$0xff]  ;;  %v327_v31 = vld [vmem:[%s14781_s2 + $0xb8] sm:$0xff]  ;;  %v5611_v32 = vld [vmem:[%s14783_s4 + $0x148] sm:$0xff] }
  0x77   : > { %1700 = vmatprep.mubr.f32.mxu1 %v14787_v0  ;;  %4075 = vmatprep.mubr.f32.mxu0 %v14787_v0  ;;  %v583_v26 = vld [vmem:[%s14782_s3 + $0xb0] sm:$0xff]  ;;  %v328_v35 = vld [vmem:[%s14781_s2 + $0xc0] sm:$0xff] }
  0x78   : > { %5888 = vperm.xlu0 %9892, %v5582_v36   ;;  %5893 = vperm.xlu1 %9893, %v5583_v39   ;;  %v5613_v36 = vld [vmem:[%s14783_s4 + $0x158] sm:$0xff]  ;;  %v329_v39 = vld [vmem:[%s14781_s2 + $0xc8] sm:$0xff] }
  0x7a   : > { %8794 = vmatmul.mubr.msk.f32.gmra.mrb[14].mxu1 %vm820_vm1, %v568_v29  ;;  %9052 = vmatmul.mubr.msk.f32.gmra.mrb[14].mxu0 %vm820_vm1, %v311_v30  ;;  %v5610_v29 = vld [vmem:[%s14783_s4 + $0x140] sm:$0xff]  ;;  %v584_v30 = vld [vmem:[%s14782_s3 + $0xb8] sm:$0xff] }
  0x7b   : > { %1706 = vmatprep.mubr.f32.mxu1 %v14787_v0  ;;  %4081 = vmatprep.mubr.f32.mxu0 %v14787_v0 }
  0x7c   : > { %5898 = vperm.xlu0 %9892, %v5584_v40   ;;  %5903 = vperm.xlu1 %9893, %v5585_v43   ;;  %v5615_v40 = vld [vmem:[%s14783_s4 + $0x168] sm:$0xff]  ;;  %v330_v43 = vld [vmem:[%s14781_s2 + $0xd0] sm:$0xff] }
  0x7e   : > { %8795 = vmatmul.mubr.msk.f32.gmra.mrb[16].mxu1 %vm820_vm1, %v569_v33  ;;  %9053 = vmatmul.mubr.msk.f32.gmra.mrb[16].mxu0 %vm820_vm1, %v312_v34  ;;  %v5612_v33 = vld [vmem:[%s14783_s4 + $0x150] sm:$0xff]  ;;  %v585_v34 = vld [vmem:[%s14782_s3 + $0xc0] sm:$0xff] }
  0x7f   : > { %1712 = vmatprep.mubr.f32.mxu1 %v14787_v0  ;;  %4087 = vmatprep.mubr.f32.mxu0 %v14787_v0 }
  0x80   : > { %5908 = vperm.xlu0 %9892, %v5586_v44   ;;  %5913 = vperm.xlu1 %9893, %v5587_v47   ;;  %v5617_v44 = vld [vmem:[%s14783_s4 + $0x178] sm:$0xff] }
  0x81   : > { %v331_v47 = vld [vmem:[%s14781_s2 + $0xd8] sm:$0xff] }
  0x82   : > { %8796 = vmatmul.mubr.msk.f32.gmra.mrb[18].mxu1 %vm820_vm1, %v570_v37  ;;  %9054 = vmatmul.mubr.msk.f32.gmra.mrb[18].mxu0 %vm820_vm1, %v313_v38  ;;  %v5614_v37 = vld [vmem:[%s14783_s4 + $0x160] sm:$0xff]  ;;  %v586_v38 = vld [vmem:[%s14782_s3 + $0xc8] sm:$0xff] }
  0x83   : > { %1718 = vmatprep.mubr.f32.mxu1 %v14787_v0  ;;  %4093 = vmatprep.mubr.f32.mxu0 %v14787_v0 }
  0x84   : > { %5918 = vperm.xlu0 %9892, %v5588_v48   ;;  %5923 = vperm.xlu1 %9893, %v5589_v51   ;;  %v5619_v48 = vld [vmem:[%s14783_s4 + $0x188] sm:$0xff]  ;;  %v332_v51 = vld [vmem:[%s14781_s2 + $0xe0] sm:$0xff] }
  0x86   : > { %8797 = vmatmul.mubr.msk.f32.gmra.mrb[20].mxu1 %vm820_vm1, %v571_v41  ;;  %9055 = vmatmul.mubr.msk.f32.gmra.mrb[20].mxu0 %vm820_vm1, %v314_v42  ;;  %v5616_v41 = vld [vmem:[%s14783_s4 + $0x170] sm:$0xff] }
  0x87   : > { %1724 = vmatprep.mubr.f32.mxu1 %v14787_v0  ;;  %4099 = vmatprep.mubr.f32.mxu0 %v14787_v0  ;;  %v587_v42 = vld [vmem:[%s14782_s3 + $0xd0] sm:$0xff] }
  0x88   : > { %5928 = vperm.xlu0 %9892, %v5590_v52   ;;  %5933 = vperm.xlu1 %9893, %v5591_v55   ;;  %v5621_v52 = vld [vmem:[%s14783_s4 + $0x198] sm:$0xff]  ;;  %v333_v55 = vld [vmem:[%s14781_s2 + $0xe8] sm:$0xff] }
  0x8a   : > { %8798 = vmatmul.mubr.msk.f32.gmra.mrb[22].mxu1 %vm820_vm1, %v572_v45  ;;  %9056 = vmatmul.mubr.msk.f32.gmra.mrb[22].mxu0 %vm820_vm1, %v315_v46  ;;  %v5618_v45 = vld [vmem:[%s14783_s4 + $0x180] sm:$0xff]  ;;  %v588_v46 = vld [vmem:[%s14782_s3 + $0xd8] sm:$0xff] }
  0x8b   : > { %1730 = vmatprep.mubr.f32.mxu1 %v14787_v0  ;;  %4105 = vmatprep.mubr.f32.mxu0 %v14787_v0 }
  0x8c   : > { %5938 = vperm.xlu0 %9892, %v5592_v56   ;;  %5943 = vperm.xlu1 %9893, %v5593_v59   ;;  %v5623_v56 = vld [vmem:[%s14783_s4 + $0x1a8] sm:$0xff]  ;;  %v334_v59 = vld [vmem:[%s14781_s2 + $0xf0] sm:$0xff] }
  0x8e   : > { %8799 = vmatmul.mubr.msk.f32.gmra.mrb[24].mxu1 %vm820_vm1, %v573_v49  ;;  %9057 = vmatmul.mubr.msk.f32.gmra.mrb[24].mxu0 %vm820_vm1, %v316_v50  ;;  %v5620_v49 = vld [vmem:[%s14783_s4 + $0x190] sm:$0xff]  ;;  %v589_v50 = vld [vmem:[%s14782_s3 + $0xe0] sm:$0xff] }
  0x8f   : > { %1736 = vmatprep.mubr.f32.mxu1 %v14787_v0  ;;  %4111 = vmatprep.mubr.f32.mxu0 %v14787_v0 }
  0x90   : > { %5948 = vperm.xlu0 %9892, %v5594_v60   ;;  %5953 = vperm.xlu1 %9893, %v5595_v63   ;;  %v5625_v60 = vld [vmem:[%s14783_s4 + $0x1b8] sm:$0xff] }
  0x91   : > { %v335_v63 = vld [vmem:[%s14781_s2 + $0xf8] sm:$0xff] }
  0x92   : > { %8800 = vmatmul.mubr.msk.f32.gmra.mrb[26].mxu1 %vm820_vm1, %v574_v53  ;;  %9058 = vmatmul.mubr.msk.f32.gmra.mrb[26].mxu0 %vm820_vm1, %v317_v54  ;;  %v5622_v53 = vld [vmem:[%s14783_s4 + $0x1a0] sm:$0xff]  ;;  %v590_v54 = vld [vmem:[%s14782_s3 + $0xe8] sm:$0xff] }
  0x93   : > { %1742 = vmatprep.mubr.f32.mxu1 %v14787_v0  ;;  %4117 = vmatprep.mubr.f32.mxu0 %v14787_v0 }
  0x94   : > { %5958 = vperm.xlu0 %9892, %v5596_v1   ;;  %5963 = vperm.xlu1 %9893, %v5597_v4   ;;  %v5627_v1 = vld [vmem:[%s14783_s4 + $0x1c8] sm:$0xff]  ;;  %v336_v4 = vld [vmem:[%s14781_s2 + $0x100] sm:$0xff] }
  0x96   : > { %8801 = vmatmul.mubr.msk.f32.gmra.mrb[28].mxu1 %vm820_vm1, %v575_v57  ;;  %9059 = vmatmul.mubr.msk.f32.gmra.mrb[28].mxu0 %vm820_vm1, %v318_v58  ;;  %v5624_v57 = vld [vmem:[%s14783_s4 + $0x1b0] sm:$0xff] }
  0x97   : > { %1748 = vmatprep.mubr.f32.mxu1 %v14787_v0  ;;  %4123 = vmatprep.mubr.f32.mxu0 %v14787_v0  ;;  %v591_v58 = vld [vmem:[%s14782_s3 + $0xf0] sm:$0xff] }
  0x98   : > { %5968 = vperm.xlu0 %9892, %v5598_v5   ;;  %5973 = vperm.xlu1 %9893, %v5599_v8   ;;  %v5629_v5 = vld [vmem:[%s14783_s4 + $0x1d8] sm:$0xff]  ;;  %v337_v8 = vld [vmem:[%s14781_s2 + $0x108] sm:$0xff] }
  0x9a   : > { %8802 = vmatmul.mubr.msk.f32.gmra.mrb[30].mxu1 %vm820_vm1, %v576_v61  ;;  %9060 = vmatmul.mubr.msk.f32.gmra.mrb[30].mxu0 %vm820_vm1, %v319_v62  ;;  %v5626_v61 = vld [vmem:[%s14783_s4 + $0x1c0] sm:$0xff]  ;;  %v592_v62 = vld [vmem:[%s14782_s3 + $0xf8] sm:$0xff] }
  0x9b   : > { %1754 = vmatprep.mubr.f32.mxu1 %v14787_v0  ;;  %4129 = vmatprep.mubr.f32.mxu0 %v14787_v0 }
  0x9c   : > { %5978 = vperm.xlu0 %9892, %v5600_v9   ;;  %5983 = vperm.xlu1 %9893, %v5601_v12   ;;  %v5631_v9 = vld [vmem:[%s14783_s4 + $0x1e8] sm:$0xff]  ;;  %v338_v12 = vld [vmem:[%s14781_s2 + $0x110] sm:$0xff] }
  0x9e   : > { %8803 = vmatmul.mubr.msk.f32.gmra.mrb[32].mxu1 %vm820_vm1, %v577_v2  ;;  %9061 = vmatmul.mubr.msk.f32.gmra.mrb[32].mxu0 %vm820_vm1, %v320_v3  ;;  %v5628_v2 = vld [vmem:[%s14783_s4 + $0x1d0] sm:$0xff]  ;;  %v593_v3 = vld [vmem:[%s14782_s3 + $0x100] sm:$0xff] }
  0x9f   : > { %1760 = vmatprep.mubr.f32.mxu1 %v14787_v0  ;;  %4135 = vmatprep.mubr.f32.mxu0 %v14787_v0 }
  0xa0   : > { %5988 = vperm.xlu0 %9892, %v5602_v13   ;;  %5993 = vperm.xlu1 %9893, %v5603_v16   ;;  %v5633_v13 = vld [vmem:[%s14783_s4 + $0x1f8] sm:$0xff] }
  0xa1   : > { %v339_v16 = vld [vmem:[%s14781_s2 + $0x118] sm:$0xff] }
  0xa2   : > { %8804 = vmatmul.mubr.msk.f32.gmra.mrb[34].mxu1 %vm820_vm1, %v578_v6  ;;  %9062 = vmatmul.mubr.msk.f32.gmra.mrb[34].mxu0 %vm820_vm1, %v321_v7  ;;  %v5630_v6 = vld [vmem:[%s14783_s4 + $0x1e0] sm:$0xff]  ;;  %v594_v7 = vld [vmem:[%s14782_s3 + $0x108] sm:$0xff] }
  0xa3   : > { %1766 = vmatprep.mubr.f32.mxu1 %v14787_v0  ;;  %4141 = vmatprep.mubr.f32.mxu0 %v14787_v0 }
  0xa4   : > { %5998 = vperm.xlu0 %9892, %v5604_v17   ;;  %6003 = vperm.xlu1 %9893, %v5605_v20   ;;  %v597_v20 = vld [vmem:[%s14782_s3 + $0x120] sm:$0xff] }
  0xa6   : > { %8805 = vmatmul.mubr.msk.f32.gmra.mrb[36].mxu1 %vm820_vm1, %v579_v10  ;;  %9063 = vmatmul.mubr.msk.f32.gmra.mrb[36].mxu0 %vm820_vm1, %v322_v11  ;;  %v5632_v10 = vld [vmem:[%s14783_s4 + $0x1f0] sm:$0xff] }
  0xa7   : > { %1772 = vmatprep.mubr.f32.mxu1 %v14787_v0  ;;  %4147 = vmatprep.mubr.f32.mxu0 %v14787_v0  ;;  %v595_v11 = vld [vmem:[%s14782_s3 + $0x110] sm:$0xff] }
  0xa8   : > { %6008 = vperm.xlu0 %9892, %v5606_v21   ;;  %6013 = vperm.xlu1 %9893, %v5607_v24   ;;  %v340_v21 = vld [vmem:[%s14781_s2 + $0x120] sm:$0xff]  ;;  %v5637_v24 = vld [vmem:[%s14783_s4 + $0x218] sm:$0xff] }
  0xaa   : > { %8806 = vmatmul.mubr.msk.f32.gmra.mrb[38].mxu1 %vm820_vm1, %v580_v14  ;;  %9064 = vmatmul.mubr.msk.f32.gmra.mrb[38].mxu0 %vm820_vm1, %v323_v15  ;;  %v5634_v14 = vld [vmem:[%s14783_s4 + $0x200] sm:$0xff]  ;;  %v596_v15 = vld [vmem:[%s14782_s3 + $0x118] sm:$0xff] }
  0xab   : > { %1778 = vmatprep.mubr.f32.mxu1 %v14787_v0  ;;  %4153 = vmatprep.mubr.f32.mxu0 %v14787_v0 }
  0xac   : > { %6018 = vperm.xlu0 %9892, %v5608_v25   ;;  %6023 = vperm.xlu1 %9893, %v5609_v28   ;;  %v5638_v25 = vld [vmem:[%s14783_s4 + $0x220] sm:$0xff] }
  0xae   : > { %8807 = vmatmul.mubr.msk.f32.gmra.mrb[40].mxu1 %vm820_vm1, %v581_v18  ;;  %9065 = vmatmul.mubr.msk.f32.gmra.mrb[40].mxu0 %vm820_vm1, %v324_v19  ;;  %v5635_v18 = vld [vmem:[%s14783_s4 + $0x208] sm:$0xff]  ;;  %v5636_v19 = vld [vmem:[%s14783_s4 + $0x210] sm:$0xff] }
  0xaf   : > { %1784 = vmatprep.mubr.f32.mxu1 %v14787_v0  ;;  %4159 = vmatprep.mubr.f32.mxu0 %v14787_v0 }
  0xb0   : > { %6028 = vperm.xlu0 %9892, %v5610_v29   ;;  %6033 = vperm.xlu1 %9893, %v5611_v32   ;;  %v599_v32 = vld [vmem:[%s14782_s3 + $0x130] sm:$0xff] }
  0xb2   : > { %8808 = vmatmul.mubr.msk.f32.gmra.mrb[42].mxu1 %vm820_vm1, %v582_v22  ;;  %9066 = vmatmul.mubr.msk.f32.gmra.mrb[42].mxu0 %vm820_vm1, %v325_v23 }
  0xb3   : > { %1790 = vmatprep.mubr.f32.mxu1 %v14787_v0  ;;  %4165 = vmatprep.mubr.f32.mxu0 %v14787_v0 }
  0xb4   : > { %6038 = vperm.xlu0 %9892, %v5612_v33   ;;  %6043 = vperm.xlu1 %9893, %v5613_v36   ;;  %v342_v33 = vld [vmem:[%s14781_s2 + $0x130] sm:$0xff]  ;;  %v5641_v36 = vld [vmem:[%s14783_s4 + $0x238] sm:$0xff] }
  0xb6   : > { %8809 = vmatmul.mubr.msk.f32.gmra.mrb[44].mxu1 %vm820_vm1, %v583_v26  ;;  %9067 = vmatmul.mubr.msk.f32.gmra.mrb[44].mxu0 %vm820_vm1, %v326_v27  ;;  %v598_v26 = vld [vmem:[%s14782_s3 + $0x128] sm:$0xff] }
  0xb7   : > { %1796 = vmatprep.mubr.f32.mxu1 %v14787_v0  ;;  %4171 = vmatprep.mubr.f32.mxu0 %v14787_v0  ;;  %v341_v27 = vld [vmem:[%s14781_s2 + $0x128] sm:$0xff] }
  0xb8   : > { %6048 = vperm.xlu0 %9892, %v5614_v37   ;;  %6053 = vperm.xlu1 %9893, %v5615_v40   ;;  %v5642_v37 = vld [vmem:[%s14783_s4 + $0x240] sm:$0xff] }
  0xba   : > { %8810 = vmatmul.mubr.msk.f32.gmra.mrb[46].mxu1 %vm820_vm1, %v584_v30  ;;  %9068 = vmatmul.mubr.msk.f32.gmra.mrb[46].mxu0 %vm820_vm1, %v327_v31  ;;  %v5639_v30 = vld [vmem:[%s14783_s4 + $0x228] sm:$0xff]  ;;  %v5640_v31 = vld [vmem:[%s14783_s4 + $0x230] sm:$0xff] }
  0xbb   : > { %1802 = vmatprep.mubr.f32.mxu1 %v14787_v0  ;;  %4177 = vmatprep.mubr.f32.mxu0 %v14787_v0 }
  0xbc   : > { %6058 = vperm.xlu0 %9892, %v5616_v41   ;;  %6063 = vperm.xlu1 %9893, %v5617_v44   ;;  %v601_v44 = vld [vmem:[%s14782_s3 + $0x140] sm:$0xff] }
  0xbe   : > { %8811 = vmatmul.mubr.msk.f32.gmra.mrb[48].mxu1 %vm820_vm1, %v585_v34  ;;  %9069 = vmatmul.mubr.msk.f32.gmra.mrb[48].mxu0 %vm820_vm1, %v328_v35 }
  0xbf   : > { %1808 = vmatprep.mubr.f32.mxu1 %v14787_v0  ;;  %4183 = vmatprep.mubr.f32.mxu0 %v14787_v0 }
  0xc0   : > { %6068 = vperm.xlu0 %9892, %v5618_v45   ;;  %6073 = vperm.xlu1 %9893, %v5619_v48   ;;  %v344_v45 = vld [vmem:[%s14781_s2 + $0x140] sm:$0xff]  ;;  %v5645_v48 = vld [vmem:[%s14783_s4 + $0x258] sm:$0xff] }
  0xc2   : > { %8812 = vmatmul.mubr.msk.f32.gmra.mrb[50].mxu1 %vm820_vm1, %v586_v38  ;;  %9070 = vmatmul.mubr.msk.f32.gmra.mrb[50].mxu0 %vm820_vm1, %v329_v39  ;;  %v600_v38 = vld [vmem:[%s14782_s3 + $0x138] sm:$0xff] }
  0xc3   : > { %1814 = vmatprep.mubr.f32.mxu1 %v14787_v0  ;;  %4189 = vmatprep.mubr.f32.mxu0 %v14787_v0  ;;  %v343_v39 = vld [vmem:[%s14781_s2 + $0x138] sm:$0xff] }
  0xc4   : > { %6078 = vperm.xlu0 %9892, %v5620_v49   ;;  %6083 = vperm.xlu1 %9893, %v5621_v52   ;;  %v5646_v49 = vld [vmem:[%s14783_s4 + $0x260] sm:$0xff] }
  0xc6   : > { %8813 = vmatmul.mubr.msk.f32.gmra.mrb[52].mxu1 %vm820_vm1, %v587_v42  ;;  %9071 = vmatmul.mubr.msk.f32.gmra.mrb[52].mxu0 %vm820_vm1, %v330_v43  ;;  %v5643_v42 = vld [vmem:[%s14783_s4 + $0x248] sm:$0xff]  ;;  %v5644_v43 = vld [vmem:[%s14783_s4 + $0x250] sm:$0xff] }
  0xc7   : > { %1820 = vmatprep.mubr.f32.mxu1 %v14787_v0  ;;  %4195 = vmatprep.mubr.f32.mxu0 %v14787_v0 }
  0xc8   : > { %6088 = vperm.xlu0 %9892, %v5622_v53   ;;  %6093 = vperm.xlu1 %9893, %v5623_v56   ;;  %v603_v56 = vld [vmem:[%s14782_s3 + $0x150] sm:$0xff] }
  0xca   : > { %8814 = vmatmul.mubr.msk.f32.gmra.mrb[54].mxu1 %vm820_vm1, %v588_v46  ;;  %9072 = vmatmul.mubr.msk.f32.gmra.mrb[54].mxu0 %vm820_vm1, %v331_v47 }
  0xcb   : > { %1826 = vmatprep.mubr.f32.mxu1 %v14787_v0  ;;  %4201 = vmatprep.mubr.f32.mxu0 %v14787_v0 }
  0xcc   : > { %6098 = vperm.xlu0 %9892, %v5624_v57   ;;  %6103 = vperm.xlu1 %9893, %v5625_v60   ;;  %v346_v57 = vld [vmem:[%s14781_s2 + $0x150] sm:$0xff]  ;;  %v5649_v60 = vld [vmem:[%s14783_s4 + $0x278] sm:$0xff] }
  0xce   : > { %8815 = vmatmul.mubr.msk.f32.gmra.mrb[56].mxu1 %vm820_vm1, %v589_v50  ;;  %9073 = vmatmul.mubr.msk.f32.gmra.mrb[56].mxu0 %vm820_vm1, %v332_v51  ;;  %v602_v50 = vld [vmem:[%s14782_s3 + $0x148] sm:$0xff] }
  0xcf   : > { %1832 = vmatprep.mubr.f32.mxu1 %v14787_v0  ;;  %4207 = vmatprep.mubr.f32.mxu0 %v14787_v0  ;;  %v345_v51 = vld [vmem:[%s14781_s2 + $0x148] sm:$0xff] }
  0xd0   : > { %6108 = vperm.xlu0 %9892, %v5626_v61   ;;  %6113 = vperm.xlu1 %9893, %v5627_v1   ;;  %v5650_v61 = vld [vmem:[%s14783_s4 + $0x280] sm:$0xff] }
  0xd2   : > { %8816 = vmatmul.mubr.msk.f32.gmra.mrb[58].mxu1 %vm820_vm1, %v590_v54  ;;  %9074 = vmatmul.mubr.msk.f32.gmra.mrb[58].mxu0 %vm820_vm1, %v333_v55  ;;  %v5647_v54 = vld [vmem:[%s14783_s4 + $0x268] sm:$0xff]  ;;  %v5648_v55 = vld [vmem:[%s14783_s4 + $0x270] sm:$0xff] }
  0xd3   : > { %1838 = vmatprep.mubr.f32.mxu1 %v14787_v0  ;;  %4213 = vmatprep.mubr.f32.mxu0 %v14787_v0 }
  0xd4   : > { %6118 = vperm.xlu0 %9892, %v5628_v2   ;;  %6123 = vperm.xlu1 %9893, %v5629_v5   ;;  %v605_v5 = vld [vmem:[%s14782_s3 + $0x160] sm:$0xff] }
  0xd6   : > { %8817 = vmatmul.mubr.msk.f32.gmra.mrb[60].mxu1 %vm820_vm1, %v591_v58  ;;  %9075 = vmatmul.mubr.msk.f32.gmra.mrb[60].mxu0 %vm820_vm1, %v334_v59 }
  0xd7   : > { %1844 = vmatprep.mubr.f32.mxu1 %v14787_v0  ;;  %4219 = vmatprep.mubr.f32.mxu0 %v14787_v0 }
  0xd8   : > { %6128 = vperm.xlu0 %9892, %v5630_v6   ;;  %6133 = vperm.xlu1 %9893, %v5631_v9   ;;  %v348_v6 = vld [vmem:[%s14781_s2 + $0x160] sm:$0xff]  ;;  %v5653_v9 = vld [vmem:[%s14783_s4 + $0x298] sm:$0xff] }
  0xda   : > { %8818 = vmatmul.mubr.msk.f32.gmra.mrb[62].mxu1 %vm820_vm1, %v592_v62  ;;  %9076 = vmatmul.mubr.msk.f32.gmra.mrb[62].mxu0 %vm820_vm1, %v335_v63  ;;  %v604_v62 = vld [vmem:[%s14782_s3 + $0x158] sm:$0xff] }
  0xdb   : > { %1850 = vmatprep.mubr.f32.mxu1 %v14787_v0  ;;  %4225 = vmatprep.mubr.f32.mxu0 %v14787_v0  ;;  %v347_v63 = vld [vmem:[%s14781_s2 + $0x158] sm:$0xff] }
  0xdc   : > { %6138 = vperm.xlu0 %9892, %v5632_v10   ;;  %6143 = vperm.xlu1 %9893, %v5633_v13   ;;  %v5654_v10 = vld [vmem:[%s14783_s4 + $0x2a0] sm:$0xff] }
  0xde   : > { %8819 = vmatmul.mubr.msk.f32.gmra.mrb[64].mxu1 %vm820_vm1, %v593_v3  ;;  %9077 = vmatmul.mubr.msk.f32.gmra.mrb[64].mxu0 %vm820_vm1, %v336_v4  ;;  %v5651_v3 = vld [vmem:[%s14783_s4 + $0x288] sm:$0xff]  ;;  %v5652_v4 = vld [vmem:[%s14783_s4 + $0x290] sm:$0xff] }
  0xdf   : > { %1856 = vmatprep.mubr.f32.mxu1 %v14787_v0  ;;  %4231 = vmatprep.mubr.f32.mxu0 %v14787_v0  ;;  %v10801_v17 = vpop.permute.xlu0 %5828  ;;  %v10819_v22 = vpop.permute.xlu1 %5838 }
  0xe0   : > { %6148 = vperm.xlu0 %9892, %v5634_v14   ;;  %6153 = vperm.xlu1 %9893, %v5635_v18   ;;  %v607_v18 = vld [vmem:[%s14782_s3 + $0x170] sm:$0xff] }
  0xe2   : > { %8820 = vmatmul.mubr.msk.f32.gmra.mrb[66].mxu1 %vm820_vm1, %v594_v7  ;;  %9078 = vmatmul.mubr.msk.f32.gmra.mrb[66].mxu0 %vm820_vm1, %v337_v8 }
  0xe3   : > { %1862 = vmatprep.mubr.f32.mxu1 %v14787_v0  ;;  %4237 = vmatprep.mubr.f32.mxu0 %v14787_v0  ;;  %v10821_v23 = vpop.permute.xlu0 %5833  ;;  %v10839_v28 = vpop.permute.xlu1 %5843 }
  0xe4   : > { %6158 = vperm.xlu0 %9892, %v5636_v19   ;;  %6163 = vperm.xlu1 %9893, %v5637_v24   ;;  %v350_v19 = vld [vmem:[%s14781_s2 + $0x170] sm:$0xff]  ;;  %v5657_v24 = vld [vmem:[%s14783_s4 + $0x2b8] sm:$0xff] }
  0xe6   : > { %8821 = vmatmul.mubr.msk.f32.gmra.mrb[68].mxu1 %vm820_vm1, %v595_v11  ;;  %9079 = vmatmul.mubr.msk.f32.gmra.mrb[68].mxu0 %vm820_vm1, %v338_v12  ;;  %v606_v11 = vld [vmem:[%s14782_s3 + $0x168] sm:$0xff] }
  0xe7   : > { %1868 = vmatprep.mubr.f32.mxu1 %v14787_v0  ;;  %4243 = vmatprep.mubr.f32.mxu0 %v14787_v0  ;;  %v10841_v29 = vpop.permute.xlu0 %5848  ;;  %v10859_v34 = vpop.permute.xlu1 %5853  ;;  %v349_v12 = vld [vmem:[%s14781_s2 + $0x168] sm:$0xff] }
  0xe8   : > { %6168 = vperm.xlu0 %9892, %v5638_v25   ;;  %6173 = vperm.xlu1 %9893, %v5639_v30   ;;  %v5658_v25 = vld [vmem:[%s14783_s4 + $0x2c0] sm:$0xff] }
  0xea   : > { %8822 = vmatmul.mubr.msk.f32.gmra.mrb[70].mxu1 %vm820_vm1, %v596_v15  ;;  %9080 = vmatmul.mubr.msk.f32.gmra.mrb[70].mxu0 %vm820_vm1, %v339_v16  ;;  %v5655_v15 = vld [vmem:[%s14783_s4 + $0x2a8] sm:$0xff]  ;;  %v5656_v16 = vld [vmem:[%s14783_s4 + $0x2b0] sm:$0xff] }
  0xeb   : > { %1874 = vmatprep.mubr.f32.mxu1 %v14787_v0  ;;  %4249 = vmatprep.mubr.f32.mxu0 %v14787_v0  ;;  %v10861_v35 = vpop.permute.xlu0 %5858  ;;  %v10879_v40 = vpop.permute.xlu1 %5863 }
  0xec   : > { %6178 = vperm.xlu0 %9892, %v5640_v31   ;;  %6183 = vperm.xlu1 %9893, %v5641_v36   ;;  %v609_v36 = vld [vmem:[%s14782_s3 + $0x180] sm:$0xff] }
  0xee   : > { %8823 = vmatmul.mubr.msk.f32.gmra.mrb[72].mxu1 %vm820_vm1, %v597_v20  ;;  %9081 = vmatmul.mubr.msk.f32.gmra.mrb[72].mxu0 %vm820_vm1, %v340_v21 }
  0xef   : > { %1880 = vmatprep.mubr.f32.mxu1 %v14787_v0  ;;  %4255 = vmatprep.mubr.f32.mxu0 %v14787_v0  ;;  %v10881_v41 = vpop.permute.xlu0 %5868  ;;  %v10899_v46 = vpop.permute.xlu1 %5873 }
  0xf0   : > { %6188 = vperm.xlu0 %9892, %v5642_v37   ;;  %6193 = vperm.xlu1 %9893, %v5643_v42   ;;  %v352_v37 = vld [vmem:[%s14781_s2 + $0x180] sm:$0xff]  ;;  %v5661_v42 = vld [vmem:[%s14783_s4 + $0x2d8] sm:$0xff] }
  0xf2   : > { %8824 = vmatmul.mubr.msk.f32.gmra.mrb[74].mxu1 %vm820_vm1, %v598_v26  ;;  %9082 = vmatmul.mubr.msk.f32.gmra.mrb[74].mxu0 %vm820_vm1, %v341_v27  ;;  %v608_v26 = vld [vmem:[%s14782_s3 + $0x178] sm:$0xff] }
  0xf3   : > { %1886 = vmatprep.mubr.f32.mxu1 %v14787_v0  ;;  %4261 = vmatprep.mubr.f32.mxu0 %v14787_v0  ;;  %v10901_v47 = vpop.permute.xlu0 %5878  ;;  %v10919_v52 = vpop.permute.xlu1 %5883  ;;  %v351_v27 = vld [vmem:[%s14781_s2 + $0x178] sm:$0xff] }
  0xf4   : > { %6198 = vperm.xlu0 %9892, %v5644_v43   ;;  %6203 = vperm.xlu1 %9893, %v5645_v48   ;;  %v5662_v43 = vld [vmem:[%s14783_s4 + $0x2e0] sm:$0xff] }
  0xf6   : > { %8825 = vmatmul.mubr.msk.f32.gmra.mrb[76].mxu1 %vm820_vm1, %v599_v32  ;;  %9083 = vmatmul.mubr.msk.f32.gmra.mrb[76].mxu0 %vm820_vm1, %v342_v33  ;;  %v5659_v32 = vld [vmem:[%s14783_s4 + $0x2c8] sm:$0xff]  ;;  %v5660_v33 = vld [vmem:[%s14783_s4 + $0x2d0] sm:$0xff] }
  0xf7   : > { %1892 = vmatprep.mubr.f32.mxu1 %v14787_v0  ;;  %4267 = vmatprep.mubr.f32.mxu0 %v14787_v0  ;;  %v10921_v53 = vpop.permute.xlu0 %5888  ;;  %v10939_v58 = vpop.permute.xlu1 %5893 }
  0xf8   : > { %6208 = vperm.xlu0 %9892, %v5646_v49   ;;  %6213 = vperm.xlu1 %9893, %v5647_v54   ;;  %v611_v54 = vld [vmem:[%s14782_s3 + $0x190] sm:$0xff] }
  0xfa   : > { %8826 = vmatmul.mubr.msk.f32.gmra.mrb[78].mxu1 %vm820_vm1, %v600_v38  ;;  %9084 = vmatmul.mubr.msk.f32.gmra.mrb[78].mxu0 %vm820_vm1, %v343_v39 }
  0xfb   : > { %1898 = vmatprep.mubr.f32.mxu1 %v14787_v0  ;;  %4273 = vmatprep.mubr.f32.mxu0 %v14787_v0  ;;  %v10941_v59 = vpop.permute.xlu0 %5898  ;;  %v10959_v1 = vpop.permute.xlu1 %5903 }
  0xfc   : > { %6218 = vperm.xlu0 %9892, %v5648_v55   ;;  %6223 = vperm.xlu1 %9893, %v5649_v60   ;;  %v354_v55 = vld [vmem:[%s14781_s2 + $0x190] sm:$0xff]  ;;  %v5665_v60 = vld [vmem:[%s14783_s4 + $0x2f8] sm:$0xff] }
  0xfe   : > { %8827 = vmatmul.mubr.msk.f32.gmra.mrb[80].mxu1 %vm820_vm1, %v601_v44  ;;  %9085 = vmatmul.mubr.msk.f32.gmra.mrb[80].mxu0 %vm820_vm1, %v344_v45  ;;  %v610_v44 = vld [vmem:[%s14782_s3 + $0x188] sm:$0xff] }
  0xff   : > { %1904 = vmatprep.mubr.f32.mxu1 %v14787_v0  ;;  %4279 = vmatprep.mubr.f32.mxu0 %v14787_v0  ;;  %v10961_v2 = vpop.permute.xlu0 %5908  ;;  %v10979_v7 = vpop.permute.xlu1 %5913  ;;  %v353_v45 = vld [vmem:[%s14781_s2 + $0x188] sm:$0xff] }
 0x100   : > { %6228 = vperm.xlu0 %9892, %v5650_v61   ;;  %6233 = vperm.xlu1 %9893, %v5651_v3   ;;  %v5666_v61 = vld [vmem:[%s14783_s4 + $0x300] sm:$0xff] }
 0x102   : > { %8828 = vmatmul.mubr.msk.f32.gmra.mrb[82].mxu1 %vm820_vm1, %v602_v50  ;;  %9086 = vmatmul.mubr.msk.f32.gmra.mrb[82].mxu0 %vm820_vm1, %v345_v51  ;;  %v5663_v50 = vld [vmem:[%s14783_s4 + $0x2e8] sm:$0xff]  ;;  %v5664_v51 = vld [vmem:[%s14783_s4 + $0x2f0] sm:$0xff] }
 0x103   : > { %1910 = vmatprep.mubr.f32.mxu1 %v14787_v0  ;;  %4285 = vmatprep.mubr.f32.mxu0 %v14787_v0  ;;  %v10981_v8 = vpop.permute.xlu0 %5918  ;;  %v10999_v13 = vpop.permute.xlu1 %5923 }
 0x104   : > { %6238 = vperm.xlu0 %9892, %v5652_v4   ;;  %6243 = vperm.xlu1 %9893, %v5653_v9   ;;  %v613_v9 = vld [vmem:[%s14782_s3 + $0x1a0] sm:$0xff] }
 0x106   : > { %8829 = vmatmul.mubr.msk.f32.gmra.mrb[84].mxu1 %vm820_vm1, %v603_v56  ;;  %9087 = vmatmul.mubr.msk.f32.gmra.mrb[84].mxu0 %vm820_vm1, %v346_v57 }
 0x107   : > { %1916 = vmatprep.mubr.f32.mxu1 %v14787_v0  ;;  %4291 = vmatprep.mubr.f32.mxu0 %v14787_v0  ;;  %v11001_v14 = vpop.permute.xlu0 %5928  ;;  %v11019_v20 = vpop.permute.xlu1 %5933 }
 0x108   : > { %6248 = vperm.xlu0 %9892, %v5654_v10   ;;  %6253 = vperm.xlu1 %9893, %v5655_v15   ;;  %v356_v10 = vld [vmem:[%s14781_s2 + $0x1a0] sm:$0xff]  ;;  %v5669_v15 = vld [vmem:[%s14783_s4 + $0x318] sm:$0xff] }
 0x10a   : > { %8830 = vmatmul.mubr.msk.f32.gmra.mrb[86].mxu1 %vm820_vm1, %v604_v62  ;;  %9088 = vmatmul.mubr.msk.f32.gmra.mrb[86].mxu0 %vm820_vm1, %v347_v63  ;;  %v612_v62 = vld [vmem:[%s14782_s3 + $0x198] sm:$0xff] }
 0x10b   : > { %1922 = vmatprep.mubr.f32.mxu1 %v14787_v0  ;;  %4297 = vmatprep.mubr.f32.mxu0 %v14787_v0  ;;  %v11021_v21 = vpop.permute.xlu0 %5938  ;;  %v11039_v30 = vpop.permute.xlu1 %5943  ;;  %v355_v63 = vld [vmem:[%s14781_s2 + $0x198] sm:$0xff] }
 0x10c   : > { %6258 = vperm.xlu0 %9892, %v5656_v16   ;;  %6263 = vperm.xlu1 %9893, %v5657_v24   ;;  %v5670_v16 = vld [vmem:[%s14783_s4 + $0x320] sm:$0xff] }
 0x10e   : > { %8831 = vmatmul.mubr.msk.f32.gmra.mrb[88].mxu1 %vm820_vm1, %v605_v5  ;;  %9089 = vmatmul.mubr.msk.f32.gmra.mrb[88].mxu0 %vm820_vm1, %v348_v6  ;;  %v5667_v5 = vld [vmem:[%s14783_s4 + $0x308] sm:$0xff]  ;;  %v5668_v6 = vld [vmem:[%s14783_s4 + $0x310] sm:$0xff] }
 0x10f   : > { %1928 = vmatprep.mubr.f32.mxu1 %v14787_v0  ;;  %4303 = vmatprep.mubr.f32.mxu0 %v14787_v0  ;;  %v11041_v31 = vpop.permute.xlu0 %5948  ;;  %v11059_v38 = vpop.permute.xlu1 %5953 }
 0x110   : > { %6268 = vperm.xlu0 %9892, %v5658_v25   ;;  %6273 = vperm.xlu1 %9893, %v5659_v32   ;;  %v5671_v32 = vld [vmem:[%s14783_s4 + $0x328] sm:$0xff] }
 0x112   : > { %8832 = vmatmul.mubr.msk.f32.gmra.mrb[90].mxu1 %vm820_vm1, %v606_v11  ;;  %9090 = vmatmul.mubr.msk.f32.gmra.mrb[90].mxu0 %vm820_vm1, %v349_v12 }
 0x113   : > { %1934 = vmatprep.mubr.f32.mxu1 %v14787_v0  ;;  %4309 = vmatprep.mubr.f32.mxu0 %v14787_v0  ;;  %v11061_v39 = vpop.permute.xlu0 %5958  ;;  %v11079_v48 = vpop.permute.xlu1 %5963 }
 0x114   : > { %6278 = vperm.xlu0 %9892, %v5660_v33   ;;  %6283 = vperm.xlu1 %9893, %v5661_v42   ;;  %v5672_v42 = vld [vmem:[%s14783_s4 + $0x330] sm:$0xff] }
 0x116   : > { %8833 = vmatmul.mubr.msk.f32.gmra.mrb[92].mxu1 %vm820_vm1, %v607_v18  ;;  %9091 = vmatmul.mubr.msk.f32.gmra.mrb[92].mxu0 %vm820_vm1, %v350_v19  ;;  %v614_v18 = vld [vmem:[%s14782_s3 + $0x1a8] sm:$0xff] }
 0x117   : > { %1940 = vmatprep.mubr.f32.mxu1 %v14787_v0  ;;  %4315 = vmatprep.mubr.f32.mxu0 %v14787_v0  ;;  %v11081_v49 = vpop.permute.xlu0 %5968  ;;  %v11099_v56 = vpop.permute.xlu1 %5973  ;;  %v357_v19 = vld [vmem:[%s14781_s2 + $0x1a8] sm:$0xff] }
 0x118   : > { %6288 = vperm.xlu0 %9892, %v5662_v43   ;;  %6293 = vperm.xlu1 %9893, %v5663_v50  }
 0x11a   : > { %8834 = vmatmul.mubr.msk.f32.gmra.mrb[94].mxu1 %vm820_vm1, %v608_v26  ;;  %9092 = vmatmul.mubr.msk.f32.gmra.mrb[94].mxu0 %vm820_vm1, %v351_v27 }
 0x11b   : > { %1946 = vmatprep.mubr.f32.mxu1 %v14787_v0  ;;  %4321 = vmatprep.mubr.f32.mxu0 %v14787_v0  ;;  %v11101_v57 = vpop.permute.xlu0 %5978  ;;  %v11119_v3 = vpop.permute.xlu1 %5983 }
 0x11c   : > { %6298 = vperm.xlu0 %9892, %v5664_v51   ;;  %6303 = vperm.xlu1 %9893, %v5665_v60  }
 0x11e   : > { %8835 = vmatmul.mubr.msk.f32.gmra.mrb[96].mxu1 %vm820_vm1, %v609_v36  ;;  %9093 = vmatmul.mubr.msk.f32.gmra.mrb[96].mxu0 %vm820_vm1, %v352_v37 }
 0x11f   : > { %1952 = vmatprep.mubr.f32.mxu1 %v14787_v0  ;;  %4327 = vmatprep.mubr.f32.mxu0 %v14787_v0  ;;  %v11121_v4 = vpop.permute.xlu0 %5988  ;;  %v11139_v11 = vpop.permute.xlu1 %5993 }
 0x120   : > { %6308 = vperm.xlu0 %9892, %v5666_v61   ;;  %6313 = vperm.xlu1 %9893, %v5667_v5  }
 0x122   : > { %8836 = vmatmul.mubr.msk.f32.gmra.mrb[98].mxu1 %vm820_vm1, %v610_v44  ;;  %9094 = vmatmul.mubr.msk.f32.gmra.mrb[98].mxu0 %vm820_vm1, %v353_v45  ;;  %v615_v44 = vld [vmem:[%s14782_s3 + $0x1b0] sm:$0xff] }
 0x123   : > { %1958 = vmatprep.mubr.f32.mxu1 %v14787_v0  ;;  %4333 = vmatprep.mubr.f32.mxu0 %v14787_v0  ;;  %v11141_v12 = vpop.permute.xlu0 %5998  ;;  %v11159_v24 = vpop.permute.xlu1 %6003  ;;  %v358_v45 = vld [vmem:[%s14781_s2 + $0x1b0] sm:$0xff] }
 0x124   : > { %6318 = vperm.xlu0 %9892, %v5668_v6   ;;  %6323 = vperm.xlu1 %9893, %v5669_v15  }
 0x126   : > { %8837 = vmatmul.mubr.msk.f32.gmra.mrb[100].mxu1 %vm820_vm1, %v611_v54  ;;  %9095 = vmatmul.mubr.msk.f32.gmra.mrb[100].mxu0 %vm820_vm1, %v354_v55 }
 0x127   : > { %1964 = vmatprep.mubr.f32.mxu1 %v14787_v0  ;;  %4339 = vmatprep.mubr.f32.mxu0 %v14787_v0  ;;  %v11161_v25 = vpop.permute.xlu0 %6008  ;;  %v11180_v50 = vpop.permute.xlu1 %6013 }
 0x128   : > { %6328 = vperm.xlu0 %9892, %v5670_v16   ;;  %6333 = vperm.xlu1 %9893, %v5671_v32   ;;  %v616_v16 = vld [vmem:[%s14782_s3 + $0x1b8] sm:$0xff] }
 0x12a   : > { %8838 = vmatmul.mubr.msk.f32.gmra.mrb[102].mxu1 %vm820_vm1, %v612_v62  ;;  %9096 = vmatmul.mubr.msk.f32.gmra.mrb[102].mxu0 %vm820_vm1, %v355_v63  ;;  %v5673_v62 = vld [vmem:[%s14783_s4 + $0x338] sm:$0xff] }
 0x12b   : > { %1970 = vmatprep.mubr.f32.mxu1 %v14787_v0  ;;  %4345 = vmatprep.mubr.f32.mxu0 %v14787_v0  ;;  %v11183_v54 = vpop.permute.xlu0 %6018 }
 0x12c   : > { %6338 = vperm.xlu0 %9892, %v5672_v42   ;;  %6343 = vperm.xlu1 %9893, %v5673_v62  }
 0x12e   : > { %8839 = vmatmul.mubr.msk.f32.gmra.mrb[104].mxu1 %vm820_vm1, %v613_v9  ;;  %9097 = vmatmul.mubr.msk.f32.gmra.mrb[104].mxu0 %vm820_vm1, %v356_v10  ;;  %v5674_v10 = vld [vmem:[%s14783_s4 + $0x340] sm:$0xff] }
 0x12f   : > { %1976 = vmatprep.mubr.f32.mxu1 %v14787_v0  ;;  %4351 = vmatprep.mubr.f32.mxu0 %v14787_v0 }
 0x130   : > { %6348 = vperm.xlu0 %9892, %v5674_v10  }
 0x131   : > { %v1660_v26 = vpop.f32.mrb[0].mxu1  ;;  %v4035_v27 = vpop.f32.mrb[0].mxu0 }
 0x132   : > { %v4036_v33 = vadd.f32 %v4035_v27, %v1660_v26  ;;  %v1662_v36 = vpop.f32.mrb[1].mxu1  ;;  %8840 = vmatmul.mubr.msk.f32.gmra.mrb[106].mxu1 %vm820_vm1, %v614_v18  ;;  %v4037_v37 = vpop.f32.mrb[1].mxu0  ;;  %9098 = vmatmul.mubr.msk.f32.gmra.mrb[106].mxu0 %vm820_vm1, %v357_v19  ;;  %v359_v18 = vld [vmem:[%s14781_s2 + $0x1b8] sm:$0xff] }
 0x133   : > { %v4038_v43 = vadd.f32 %v4037_v37, %v1662_v36  ;;  %1982 = vmatprep.mubr.f32.mxu1 %v14787_v0  ;;  %4357 = vmatprep.mubr.f32.mxu0 %v14787_v0  ;;  %v11202_v19 = vpop.permute.xlu1 %6023  ;;  %v11208_v27 = vpop.permute.xlu0 %6028  ;;  %v5675_v37 = vld [vmem:[%s14783_s4 + $0x348] sm:$0xff] }
 0x134   : > { %v7106_v51 = vadd.f32 %v10801_v17, %v4036_v33  ;;  %6353 = vperm.xlu1 %9893, %v5675_v37   ;;  %v361_v37 = vld [vmem:[%s14781_s2 + $0x1c8] sm:$0xff] }
 0x135   : > { %v7107_v55 = vadd.f32 %v10801_v17, %v4038_v43  ;;  %v1666_v60 = vpop.f32.mrb[2].mxu1  ;;  %v4041_v61 = vpop.f32.mrb[2].mxu0 }
 0x136   : > { %v7618_v63 = vmax.f32 %v7106_v51, 0.0  ;;  %v4042_v5 = vadd.f32 %v4041_v61, %v1666_v60  ;;  %v1668_v6 = vpop.f32.mrb[3].mxu1  ;;  %8841 = vmatmul.mubr.msk.f32.gmra.mrb[108].mxu1 %vm820_vm1, %v615_v44  ;;  %v4043_v9 = vpop.f32.mrb[3].mxu0  ;;  %9099 = vmatmul.mubr.msk.f32.gmra.mrb[108].mxu0 %vm820_vm1, %v358_v45  ;;  %v617_v60 = vld [vmem:[%s14782_s3 + $0x1c0] sm:$0xff] }
 0x137   : > { %v7619_v17 = vmax.f32 %v7107_v55, 0.0  ;;  %v4044_v15 = vadd.f32 %v4043_v9, %v1668_v6  ;;  %1988 = vmatprep.mubr.f32.mxu1 %v14787_v0  ;;  %4363 = vmatprep.mubr.f32.mxu0 %v14787_v0  ;;  %v360_v61 = vld [vmem:[%s14781_s2 + $0x1c0] sm:$0xff]  ;;  %v11228_v62 = vpop.permute.xlu1 %6033 }
 0x138   : > { %8130 = vst [vmem:[%s11204_s30] sm:$0xff] %v7618_v63  ;;  %v7108_v26 = vadd.f32 %v10821_v23, %v4042_v5  ;;  %v11232_v5 = vpop.permute.xlu0 %6038 }
 0x139   : > { %8131 = vst [vmem:[%s11204_s30 + $0x8] sm:$0xff] %v7619_v17  ;;  %v7109_v32 = vadd.f32 %v10821_v23, %v4044_v15  ;;  %v1672_v33 = vpop.f32.mrb[4].mxu1  ;;  %v4047_v36 = vpop.f32.mrb[4].mxu0  ;;  %v5676_v23 = vld [vmem:[%s14783_s4 + $0x350] sm:$0xff]  ;;  %v5677_v17 = vld [vmem:[%s14783_s4 + $0x358] sm:$0xff] }
 0x13a   : > { %v7620_v42 = vmax.f32 %v7108_v26, 0.0  ;;  %v4048_v43 = vadd.f32 %v4047_v36, %v1672_v33  ;;  %v1674_v44 = vpop.f32.mrb[5].mxu1  ;;  %8842 = vmatmul.mubr.msk.f32.gmra.mrb[110].mxu1 %vm820_vm1, %v616_v16  ;;  %v4049_v45 = vpop.f32.mrb[5].mxu0  ;;  %9100 = vmatmul.mubr.msk.f32.gmra.mrb[110].mxu0 %vm820_vm1, %v359_v18  ;;  %v618_v36 = vld [vmem:[%s14782_s3 + $0x1c8] sm:$0xff] }
 0x13b   : > { %v7621_v51 = vmax.f32 %v7109_v32, 0.0  ;;  %v4050_v55 = vadd.f32 %v4049_v45, %v1674_v44  ;;  %1994 = vmatprep.mubr.f32.mxu1 %v14787_v0  ;;  %4369 = vmatprep.mubr.f32.mxu0 %v14787_v0 }
 0x13c   : > { %8132 = vst [vmem:[%s11204_s30 + $0x10] sm:$0xff] %v7620_v42  ;;  %v7110_v63 = vadd.f32 %v10819_v22, %v4048_v43  ;;  %6358 = vperm.xlu0 %9892, %v5676_v23   ;;  %v11252_v42 = vpop.permute.xlu1 %6043  ;;  %6363 = vperm.xlu1 %9893, %v5677_v17   ;;  %v11256_v44 = vpop.permute.xlu0 %6048  ;;  %v619_v17 = vld [vmem:[%s14782_s3 + $0x1d0] sm:$0xff] }
 0x13d   : > { %8133 = vst [vmem:[%s11204_s30 + $0x18] sm:$0xff] %v7621_v51  ;;  %v7111_v6 = vadd.f32 %v10819_v22, %v4050_v55  ;;  %v1678_v9 = vpop.f32.mrb[6].mxu1  ;;  %v4053_v10 = vpop.f32.mrb[6].mxu0  ;;  %v5678_v22 = vld [vmem:[%s14783_s4 + $0x360] sm:$0xff]  ;;  %v5679_v55 = vld [vmem:[%s14783_s4 + $0x368] sm:$0xff] }
 0x13e   : > { %v7622_v15 = vmax.f32 %v7110_v63, 0.0  ;;  %v4054_v16 = vadd.f32 %v4053_v10, %v1678_v9  ;;  %v1680_v18 = vpop.f32.mrb[7].mxu1  ;;  %8843 = vmatmul.mubr.msk.f32.gmra.mrb[112].mxu1 %vm820_vm1, %v617_v60  ;;  %v4055_v26 = vpop.f32.mrb[7].mxu0  ;;  %9101 = vmatmul.mubr.msk.f32.gmra.mrb[112].mxu0 %vm820_vm1, %v360_v61 }
 0x13f   : > { %v7623_v32 = vmax.f32 %v7111_v6, 0.0  ;;  %v4056_v33 = vadd.f32 %v4055_v26, %v1680_v18  ;;  %2000 = vmatprep.mubr.f32.mxu1 %v14787_v0  ;;  %4375 = vmatprep.mubr.f32.mxu0 %v14787_v0 }
 0x140   : > { %8134 = vst [vmem:[%s11204_s30 + $0x20] sm:$0xff] %v7622_v15  ;;  %v7112_v43 = vadd.f32 %v10839_v28, %v4054_v16  ;;  %6368 = vperm.xlu0 %9892, %v5678_v22   ;;  %v362_v15 = vld [vmem:[%s14781_s2 + $0x1d0] sm:$0xff]  ;;  %v11276_v16 = vpop.permute.xlu1 %6053  ;;  %6373 = vperm.xlu1 %9893, %v5679_v55   ;;  %v11280_v26 = vpop.permute.xlu0 %6058 }
 0x141   : > { %8135 = vst [vmem:[%s11204_s30 + $0x28] sm:$0xff] %v7623_v32  ;;  %v7113_v45 = vadd.f32 %v10839_v28, %v4056_v33  ;;  %v1684_v23 = vpop.f32.mrb[8].mxu1  ;;  %v4059_v51 = vpop.f32.mrb[8].mxu0  ;;  %v5680_v28 = vld [vmem:[%s14783_s4 + $0x370] sm:$0xff] }
 0x142   : > { %v7624_v60 = vmax.f32 %v7112_v43, 0.0  ;;  %v4060_v61 = vadd.f32 %v4059_v51, %v1684_v23  ;;  %v1686_v63 = vpop.f32.mrb[9].mxu1  ;;  %8844 = vmatmul.mubr.msk.f32.gmra.mrb[114].mxu1 %vm820_vm1, %v618_v36  ;;  %v4061_v6 = vpop.f32.mrb[9].mxu0  ;;  %9102 = vmatmul.mubr.msk.f32.gmra.mrb[114].mxu0 %vm820_vm1, %v361_v37  ;;  %v5681_v36 = vld [vmem:[%s14783_s4 + $0x378] sm:$0xff] }
 0x143   : > { %v7625_v9 = vmax.f32 %v7113_v45, 0.0  ;;  %v4062_v10 = vadd.f32 %v4061_v6, %v1686_v63  ;;  %2006 = vmatprep.mubr.f32.mxu1 %v14787_v0  ;;  %4381 = vmatprep.mubr.f32.mxu0 %v14787_v0 }
 0x144   : > { %8136 = vst [vmem:[%s11204_s30 + $0x30] sm:$0xff] %v7624_v60  ;;  %v7114_v18 = vadd.f32 %v10841_v29, %v4060_v61  ;;  %6378 = vperm.xlu0 %9892, %v5680_v28   ;;  %v620_v60 = vld [vmem:[%s14782_s3 + $0x1d8] sm:$0xff]  ;;  %v11300_v63 = vpop.permute.xlu1 %6063  ;;  %6383 = vperm.xlu1 %9893, %v5681_v36   ;;  %v11304_v28 = vpop.permute.xlu0 %6068 }
 0x145   : > { %8137 = vst [vmem:[%s11204_s30 + $0x38] sm:$0xff] %v7625_v9  ;;  %v7115_v22 = vadd.f32 %v10841_v29, %v4062_v10  ;;  %v1690_v32 = vpop.f32.mrb[10].mxu1  ;;  %v4065_v33 = vpop.f32.mrb[10].mxu0  ;;  %v5682_v29 = vld [vmem:[%s14783_s4 + $0x380] sm:$0xff]  ;;  %v363_v61 = vld [vmem:[%s14781_s2 + $0x1d8] sm:$0xff] }
 0x146   : > { %v7626_v37 = vmax.f32 %v7114_v18, 0.0  ;;  %v4066_v43 = vadd.f32 %v4065_v33, %v1690_v32  ;;  %v1692_v45 = vpop.f32.mrb[11].mxu1  ;;  %8845 = vmatmul.mubr.msk.f32.gmra.mrb[116].mxu1 %vm820_vm1, %v619_v17  ;;  %v4067_v23 = vpop.f32.mrb[11].mxu0  ;;  %9103 = vmatmul.mubr.msk.f32.gmra.mrb[116].mxu0 %vm820_vm1, %v362_v15  ;;  %v5683_v15 = vld [vmem:[%s14783_s4 + $0x388] sm:$0xff] }
 0x147   : > { %v7627_v51 = vmax.f32 %v7115_v22, 0.0  ;;  %v4068_v55 = vadd.f32 %v4067_v23, %v1692_v45  ;;  %2012 = vmatprep.mubr.f32.mxu1 %v14787_v0  ;;  %4387 = vmatprep.mubr.f32.mxu0 %v14787_v0  ;;  %v364_v45 = vld [vmem:[%s14781_s2 + $0x1e0] sm:$0xff] }
 0x148   : > { %8138 = vst [vmem:[%s11204_s30 + $0x40] sm:$0xff] %v7626_v37  ;;  %v7116_v6 = vadd.f32 %v10859_v34, %v4066_v43  ;;  %6388 = vperm.xlu0 %9892, %v5682_v29   ;;  %v621_v43 = vld [vmem:[%s14782_s3 + $0x1e0] sm:$0xff]  ;;  %v11324_v23 = vpop.permute.xlu1 %6073  ;;  %6393 = vperm.xlu1 %9893, %v5683_v15  }
 0x149   : > { %8139 = vst [vmem:[%s11204_s30 + $0x48] sm:$0xff] %v7627_v51  ;;  %v7117_v9 = vadd.f32 %v10859_v34, %v4068_v55  ;;  %v1696_v10 = vpop.f32.mrb[12].mxu1  ;;  %v4071_v17 = vpop.f32.mrb[12].mxu0  ;;  %v5684_v34 = vld [vmem:[%s14783_s4 + $0x390] sm:$0xff] }
 0x14a   : > { %v7628_v18 = vmax.f32 %v7116_v6, 0.0  ;;  %v4072_v22 = vadd.f32 %v4071_v17, %v1696_v10  ;;  %v1698_v32 = vpop.f32.mrb[13].mxu1  ;;  %8846 = vmatmul.mubr.msk.f32.gmra.mrb[118].mxu1 %vm820_vm1, %v620_v60  ;;  %v4073_v33 = vpop.f32.mrb[13].mxu0  ;;  %9104 = vmatmul.mubr.msk.f32.gmra.mrb[118].mxu0 %vm820_vm1, %v363_v61  ;;  %v5685_v6 = vld [vmem:[%s14783_s4 + $0x398] sm:$0xff] }
 0x14b   : > { %v7629_v36 = vmax.f32 %v7117_v9, 0.0  ;;  %v4074_v37 = vadd.f32 %v4073_v33, %v1698_v32  ;;  %2018 = vmatprep.mubr.f32.mxu1 %v14787_v0  ;;  %4393 = vmatprep.mubr.f32.mxu0 %v14787_v0  ;;  %v11328_v51 = vpop.permute.xlu0 %6078  ;;  %v622_v32 = vld [vmem:[%s14782_s3 + $0x1e8] sm:$0xff] }
 0x14c   : > { %8140 = vst [vmem:[%s11204_s30 + $0x50] sm:$0xff] %v7628_v18  ;;  %v7118_v29 = vadd.f32 %v10861_v35, %v4072_v22  ;;  %6398 = vperm.xlu0 %9892, %v5684_v34   ;;  %v365_v33 = vld [vmem:[%s14781_s2 + $0x1e8] sm:$0xff]  ;;  %v11348_v34 = vpop.permute.xlu1 %6083  ;;  %6403 = vperm.xlu1 %9893, %v5685_v6  }
 0x14d   : > { %8141 = vst [vmem:[%s11204_s30 + $0x58] sm:$0xff] %v7629_v36  ;;  %v7119_v55 = vadd.f32 %v10861_v35, %v4074_v37  ;;  %v1702_v60 = vpop.f32.mrb[14].mxu1  ;;  %v4077_v61 = vpop.f32.mrb[14].mxu0  ;;  %v5686_v35 = vld [vmem:[%s14783_s4 + $0x3a0] sm:$0xff] }
 0x14e   : > { %v7630_v9 = vmax.f32 %v7118_v29, 0.0  ;;  %v4078_v10 = vadd.f32 %v4077_v61, %v1702_v60  ;;  %v1704_v17 = vpop.f32.mrb[15].mxu1  ;;  %8847 = vmatmul.mubr.msk.f32.gmra.mrb[120].mxu1 %vm820_vm1, %v621_v43  ;;  %v4079_v15 = vpop.f32.mrb[15].mxu0  ;;  %9105 = vmatmul.mubr.msk.f32.gmra.mrb[120].mxu0 %vm820_vm1, %v364_v45 }
 0x14f   : > { %v7631_v18 = vmax.f32 %v7119_v55, 0.0  ;;  %v4080_v22 = vadd.f32 %v4079_v15, %v1704_v17  ;;  %2024 = vmatprep.mubr.f32.mxu1 %v14787_v0  ;;  %4399 = vmatprep.mubr.f32.mxu0 %v14787_v0  ;;  %v11352_v37 = vpop.permute.xlu0 %6088  ;;  %v5687_v55 = vld [vmem:[%s14783_s4 + $0x3a8] sm:$0xff]  ;;  %v623_v15 = vld [vmem:[%s14782_s3 + $0x1f0] sm:$0xff] }
 0x150   : > { %8142 = vst [vmem:[%s11204_s30 + $0x60] sm:$0xff] %v7630_v9  ;;  %v7120_v36 = vadd.f32 %v10879_v40, %v4078_v10  ;;  %6408 = vperm.xlu0 %9892, %v5686_v35   ;;  %v366_v35 = vld [vmem:[%s14781_s2 + $0x1f0] sm:$0xff]  ;;  %6413 = vperm.xlu1 %9893, %v5687_v55  }
 0x151   : > { %8143 = vst [vmem:[%s11204_s30 + $0x68] sm:$0xff] %v7631_v18  ;;  %v7121_v43 = vadd.f32 %v10879_v40, %v4080_v22  ;;  %v1708_v45 = vpop.f32.mrb[16].mxu1  ;;  %v4083_v29 = vpop.f32.mrb[16].mxu0  ;;  %v5688_v40 = vld [vmem:[%s14783_s4 + $0x3b0] sm:$0xff] }
 0x152   : > { %v7632_v60 = vmax.f32 %v7120_v36, 0.0  ;;  %v4084_v61 = vadd.f32 %v4083_v29, %v1708_v45  ;;  %v1710_v17 = vpop.f32.mrb[17].mxu1  ;;  %8848 = vmatmul.mubr.msk.f32.gmra.mrb[122].mxu1 %vm820_vm1, %v622_v32  ;;  %v4085_v6 = vpop.f32.mrb[17].mxu0  ;;  %9106 = vmatmul.mubr.msk.f32.gmra.mrb[122].mxu0 %vm820_vm1, %v365_v33  ;;  %v5689_v45 = vld [vmem:[%s14783_s4 + $0x3b8] sm:$0xff] }
 0x153   : > { %v7633_v9 = vmax.f32 %v7121_v43, 0.0  ;;  %v4086_v10 = vadd.f32 %v4085_v6, %v1710_v17  ;;  %2030 = vmatprep.mubr.f32.mxu1 %v14787_v0  ;;  %4405 = vmatprep.mubr.f32.mxu0 %v14787_v0  ;;  %v11372_v18 = vpop.permute.xlu1 %6093  ;;  %v11376_v32 = vpop.permute.xlu0 %6098 }
 0x154   : > { %8144 = vst [vmem:[%s11204_s30 + $0x70] sm:$0xff] %v7632_v60  ;;  %v7122_v22 = vadd.f32 %v10881_v41, %v4084_v61  ;;  %6418 = vperm.xlu0 %9892, %v5688_v40   ;;  %v624_v40 = vld [vmem:[%s14782_s3 + $0x1f8] sm:$0xff]  ;;  %6423 = vperm.xlu1 %9893, %v5689_v45  }
 0x155   : > { %8145 = vst [vmem:[%s11204_s30 + $0x78] sm:$0xff] %v7633_v9  ;;  %v7123_v33 = vadd.f32 %v10881_v41, %v4086_v10  ;;  %v1714_v36 = vpop.f32.mrb[18].mxu1  ;;  %v4089_v43 = vpop.f32.mrb[18].mxu0  ;;  %v5690_v41 = vld [vmem:[%s14783_s4 + $0x3c0] sm:$0xff]  ;;  %v367_v9 = vld [vmem:[%s14781_s2 + $0x1f8] sm:$0xff] }
 0x156   : > { %v7634_v29 = vmax.f32 %v7122_v22, 0.0  ;;  %v4090_v17 = vadd.f32 %v4089_v43, %v1714_v36  ;;  %v1716_v6 = vpop.f32.mrb[19].mxu1  ;;  %8849 = vmatmul.mubr.msk.f32.gmra.mrb[124].mxu1 %vm820_vm1, %v623_v15  ;;  %v4091_v55 = vpop.f32.mrb[19].mxu0  ;;  %9107 = vmatmul.mubr.msk.f32.gmra.mrb[124].mxu0 %vm820_vm1, %v366_v35  ;;  %v5691_v43 = vld [vmem:[%s14783_s4 + $0x3c8] sm:$0xff] }
 0x157   : > { %v7635_v60 = vmax.f32 %v7123_v33, 0.0  ;;  %v4092_v61 = vadd.f32 %v4091_v55, %v1716_v6  ;;  %2036 = vmatprep.mubr.f32.mxu1 %v14787_v0  ;;  %4411 = vmatprep.mubr.f32.mxu0 %v14787_v0  ;;  %v11396_v10 = vpop.permute.xlu1 %6103  ;;  %v11400_v35 = vpop.permute.xlu0 %6108 }
 0x158   : > { %8146 = vst [vmem:[%s11204_s30 + $0x80] sm:$0xff] %v7634_v29  ;;  %v7124_v15 = vadd.f32 %v10899_v46, %v4090_v17  ;;  %14844 = vst [vmem:[#allocation11_spill] sm:$0xff] %v11400_v35  ;;  %6428 = vperm.xlu0 %9892, %v5690_v41   ;;  %v625_v41 = vld [vmem:[%s14782_s3 + $0x200] sm:$0xff]  ;;  %6433 = vperm.xlu1 %9893, %v5691_v43  }
 0x159   : > { %8147 = vst [vmem:[%s11204_s30 + $0x88] sm:$0xff] %v7635_v60  ;;  %v7125_v22 = vadd.f32 %v10899_v46, %v4092_v61  ;;  %v1720_v33 = vpop.f32.mrb[20].mxu1  ;;  %v4095_v36 = vpop.f32.mrb[20].mxu0  ;;  %v5692_v46 = vld [vmem:[%s14783_s4 + $0x3d0] sm:$0xff]  ;;  %v14845_v60 = vmov 0.0   ;;  %v368_v61 = vld [vmem:[%s14781_s2 + $0x200] sm:$0xff] }
 0x15a   : > { %v7636_v6 = vmax.f32 %v7124_v15, 0.0  ;;  %v4096_v55 = vadd.f32 %v4095_v36, %v1720_v33  ;;  %v1722_v0 = vpop.f32.mrb[21].mxu1  ;;  %8850 = vmatmul.mubr.msk.f32.gmra.mrb[126].mxu1 %vm820_vm1, %v624_v40  ;;  %v4097_v45 = vpop.f32.mrb[21].mxu0  ;;  %9108 = vmatmul.mubr.msk.f32.gmra.mrb[126].mxu0 %vm820_vm1, %v367_v9  ;;  %v5693_v36 = vld [vmem:[%s14783_s4 + $0x3d8] sm:$0xff] }
 0x15b   : > { %v7637_v29 = vmax.f32 %v7125_v22, 0.0  ;;  %v4098_v17 = vadd.f32 %v4097_v45, %v1722_v0  ;;  %2042 = vmatprep.mubr.f32.mxu1 %v14845_v60  ;;  %4417 = vmatprep.mubr.f32.mxu0 %v14845_v60  ;;  %v11420_v40 = vpop.permute.xlu1 %6113  ;;  %v11424_v15 = vpop.permute.xlu0 %6118 }
 0x15c   : > { %14846 = vst [vmem:[#allocation12_spill] sm:$0xff] %v11420_v40  ;;  %8148 = vst [vmem:[%s11204_s30 + $0x90] sm:$0xff] %v7636_v6  ;;  %v7126_v9 = vadd.f32 %v10901_v47, %v4096_v55  ;;  %6438 = vperm.xlu0 %9892, %v5692_v46   ;;  %v626_v46 = vld [vmem:[%s14782_s3 + $0x208] sm:$0xff]  ;;  %6443 = vperm.xlu1 %9893, %v5693_v36  }
 0x15d   : > { %8149 = vst [vmem:[%s11204_s30 + $0x98] sm:$0xff] %v7637_v29  ;;  %v7127_v0 = vadd.f32 %v10901_v47, %v4098_v17  ;;  %v1726_v22 = vpop.f32.mrb[22].mxu1  ;;  %v4101_v33 = vpop.f32.mrb[22].mxu0  ;;  %v5694_v47 = vld [vmem:[%s14783_s4 + $0x3e0] sm:$0xff]  ;;  %v369_v29 = vld [vmem:[%s14781_s2 + $0x208] sm:$0xff] }
 0x15e   : > { %v7638_v45 = vmax.f32 %v7126_v9, 0.0  ;;  %v4102_v35 = vadd.f32 %v4101_v33, %v1726_v22  ;;  %v1728_v40 = vpop.f32.mrb[23].mxu1  ;;  %8851 = vmatmul.mubr.msk.f32.gmra.mrb[128].mxu1 %vm820_vm1, %v625_v41  ;;  %v4103_v43 = vpop.f32.mrb[23].mxu0  ;;  %9109 = vmatmul.mubr.msk.f32.gmra.mrb[128].mxu0 %vm820_vm1, %v368_v61  ;;  %v5695_v22 = vld [vmem:[%s14783_s4 + $0x3e8] sm:$0xff] }
 0x15f   : > { %v7639_v6 = vmax.f32 %v7127_v0, 0.0  ;;  %v4104_v55 = vadd.f32 %v4103_v43, %v1728_v40  ;;  %2048 = vmatprep.mubr.f32.mxu1 %v14845_v60  ;;  %4423 = vmatprep.mubr.f32.mxu0 %v14845_v60  ;;  %v11444_v17 = vpop.permute.xlu1 %6123  ;;  %v11448_v61 = vpop.permute.xlu0 %6128 }
 0x160   : > { %14847 = vst [vmem:[#allocation13_spill] sm:$0xff] %v11444_v17  ;;  %8150 = vst [vmem:[%s11204_s30 + $0xa0] sm:$0xff] %v7638_v45  ;;  %v7128_v41 = vadd.f32 %v10919_v52, %v4102_v35  ;;  %6448 = vperm.xlu0 %9892, %v5694_v47   ;;  %v627_v47 = vld [vmem:[%s14782_s3 + $0x210] sm:$0xff]  ;;  %6453 = vperm.xlu1 %9893, %v5695_v22  }
 0x161   : > { %8151 = vst [vmem:[%s11204_s30 + $0xa8] sm:$0xff] %v7639_v6  ;;  %v7129_v40 = vadd.f32 %v10919_v52, %v4104_v55  ;;  %v1732_v9 = vpop.f32.mrb[24].mxu1  ;;  %v4107_v0 = vpop.f32.mrb[24].mxu0  ;;  %v5696_v52 = vld [vmem:[%s14783_s4 + $0x3f0] sm:$0xff] }
 0x162   : > { %v7640_v33 = vmax.f32 %v7128_v41, 0.0  ;;  %v4108_v43 = vadd.f32 %v4107_v0, %v1732_v9  ;;  %v1734_v17 = vpop.f32.mrb[25].mxu1  ;;  %8852 = vmatmul.mubr.msk.f32.gmra.mrb[130].mxu1 %vm820_vm1, %v626_v46  ;;  %v4109_v35 = vpop.f32.mrb[25].mxu0  ;;  %9110 = vmatmul.mubr.msk.f32.gmra.mrb[130].mxu0 %vm820_vm1, %v369_v29  ;;  %v370_v6 = vld [vmem:[%s14781_s2 + $0x210] sm:$0xff]  ;;  %v5697_v9 = vld [vmem:[%s14783_s4 + $0x3f8] sm:$0xff] }
 0x163   : > { %v7641_v36 = vmax.f32 %v7129_v40, 0.0  ;;  %v4110_v45 = vadd.f32 %v4109_v35, %v1734_v17  ;;  %2054 = vmatprep.mubr.f32.mxu1 %v14845_v60  ;;  %4429 = vmatprep.mubr.f32.mxu0 %v14845_v60  ;;  %v11468_v55 = vpop.permute.xlu1 %6133  ;;  %v11472_v29 = vpop.permute.xlu0 %6138 }
 0x164   : > { %14848 = vst [vmem:[#allocation14_spill] sm:$0xff] %v11468_v55  ;;  %8152 = vst [vmem:[%s11204_s30 + $0xb0] sm:$0xff] %v7640_v33  ;;  %v7130_v46 = vadd.f32 %v10921_v53, %v4108_v43  ;;  %6458 = vperm.xlu0 %9892, %v5696_v52   ;;  %v628_v52 = vld [vmem:[%s14782_s3 + $0x218] sm:$0xff]  ;;  %6463 = vperm.xlu1 %9893, %v5697_v9  }
 0x165   : > { %8153 = vst [vmem:[%s11204_s30 + $0xb8] sm:$0xff] %v7641_v36  ;;  %v7131_v17 = vadd.f32 %v10921_v53, %v4110_v45  ;;  %v1738_v41 = vpop.f32.mrb[26].mxu1  ;;  %v4113_v40 = vpop.f32.mrb[26].mxu0  ;;  %v5698_v53 = vld [vmem:[%s14783_s4 + $0x400] sm:$0xff]  ;;  %v371_v36 = vld [vmem:[%s14781_s2 + $0x218] sm:$0xff] }
 0x166   : > { %v7642_v0 = vmax.f32 %v7130_v46, 0.0  ;;  %v4114_v35 = vadd.f32 %v4113_v40, %v1738_v41  ;;  %v1740_v55 = vpop.f32.mrb[27].mxu1  ;;  %8853 = vmatmul.mubr.msk.f32.gmra.mrb[132].mxu1 %vm820_vm1, %v627_v47  ;;  %v4115_v22 = vpop.f32.mrb[27].mxu0  ;;  %9111 = vmatmul.mubr.msk.f32.gmra.mrb[132].mxu0 %vm820_vm1, %v370_v6  ;;  %v5699_v41 = vld [vmem:[%s14783_s4 + $0x408] sm:$0xff] }
 0x167   : > { %v7643_v33 = vmax.f32 %v7131_v17, 0.0  ;;  %v4116_v43 = vadd.f32 %v4115_v22, %v1740_v55  ;;  %2060 = vmatprep.mubr.f32.mxu1 %v14845_v60  ;;  %4435 = vmatprep.mubr.f32.mxu0 %v14845_v60  ;;  %v11492_v45 = vpop.permute.xlu1 %6143  ;;  %v11496_v6 = vpop.permute.xlu0 %6148 }
 0x168   : > { %14849 = vst [vmem:[#allocation15_spill] sm:$0xff] %v11492_v45  ;;  %8154 = vst [vmem:[%s11204_s30 + $0xc0] sm:$0xff] %v7642_v0  ;;  %v7132_v47 = vadd.f32 %v10939_v58, %v4114_v35  ;;  %6468 = vperm.xlu0 %9892, %v5698_v53   ;;  %v629_v53 = vld [vmem:[%s14782_s3 + $0x220] sm:$0xff]  ;;  %6473 = vperm.xlu1 %9893, %v5699_v41  }
 0x169   : > { %8155 = vst [vmem:[%s11204_s30 + $0xc8] sm:$0xff] %v7643_v33  ;;  %v7133_v55 = vadd.f32 %v10939_v58, %v4116_v43  ;;  %v1744_v46 = vpop.f32.mrb[28].mxu1  ;;  %v4119_v17 = vpop.f32.mrb[28].mxu0  ;;  %v5700_v58 = vld [vmem:[%s14783_s4 + $0x410] sm:$0xff]  ;;  %v372_v33 = vld [vmem:[%s14781_s2 + $0x220] sm:$0xff] }
 0x16a   : > { %v7644_v40 = vmax.f32 %v7132_v47, 0.0  ;;  %v4120_v22 = vadd.f32 %v4119_v17, %v1744_v46  ;;  %v1746_v45 = vpop.f32.mrb[29].mxu1  ;;  %8854 = vmatmul.mubr.msk.f32.gmra.mrb[134].mxu1 %vm820_vm1, %v628_v52  ;;  %v4121_v9 = vpop.f32.mrb[29].mxu0  ;;  %9112 = vmatmul.mubr.msk.f32.gmra.mrb[134].mxu0 %vm820_vm1, %v371_v36  ;;  %v5701_v46 = vld [vmem:[%s14783_s4 + $0x418] sm:$0xff] }
 0x16b   : > { %v7645_v0 = vmax.f32 %v7133_v55, 0.0  ;;  %v4122_v35 = vadd.f32 %v4121_v9, %v1746_v45  ;;  %2066 = vmatprep.mubr.f32.mxu1 %v14845_v60  ;;  %4441 = vmatprep.mubr.f32.mxu0 %v14845_v60  ;;  %v11516_v43 = vpop.permute.xlu1 %6153  ;;  %v11520_v36 = vpop.permute.xlu0 %6158 }
 0x16c   : > { %14850 = vst [vmem:[#allocation16_spill] sm:$0xff] %v11516_v43  ;;  %8156 = vst [vmem:[%s11204_s30 + $0xd0] sm:$0xff] %v7644_v40  ;;  %v7134_v52 = vadd.f32 %v10941_v59, %v4120_v22  ;;  %6478 = vperm.xlu0 %9892, %v5700_v58   ;;  %v630_v58 = vld [vmem:[%s14782_s3 + $0x228] sm:$0xff]  ;;  %6483 = vperm.xlu1 %9893, %v5701_v46  }
 0x16d   : > { %8157 = vst [vmem:[%s11204_s30 + $0xd8] sm:$0xff] %v7645_v0  ;;  %v7135_v45 = vadd.f32 %v10941_v59, %v4122_v35  ;;  %v1750_v47 = vpop.f32.mrb[30].mxu1  ;;  %v4125_v55 = vpop.f32.mrb[30].mxu0  ;;  %v5702_v59 = vld [vmem:[%s14783_s4 + $0x420] sm:$0xff]  ;;  %v373_v0 = vld [vmem:[%s14781_s2 + $0x228] sm:$0xff] }
 0x16e   : > { %v7646_v17 = vmax.f32 %v7134_v52, 0.0  ;;  %v4126_v9 = vadd.f32 %v4125_v55, %v1750_v47  ;;  %v1752_v43 = vpop.f32.mrb[31].mxu1  ;;  %8855 = vmatmul.mubr.msk.f32.gmra.mrb[136].mxu1 %vm820_vm1, %v629_v53  ;;  %v4127_v41 = vpop.f32.mrb[31].mxu0  ;;  %9113 = vmatmul.mubr.msk.f32.gmra.mrb[136].mxu0 %vm820_vm1, %v372_v33  ;;  %v5703_v47 = vld [vmem:[%s14783_s4 + $0x428] sm:$0xff] }
 0x16f   : > { %v7647_v40 = vmax.f32 %v7135_v45, 0.0  ;;  %v4128_v22 = vadd.f32 %v4127_v41, %v1752_v43  ;;  %2072 = vmatprep.mubr.f32.mxu1 %v14845_v60  ;;  %4447 = vmatprep.mubr.f32.mxu0 %v14845_v60  ;;  %v11540_v35 = vpop.permute.xlu1 %6163  ;;  %v11544_v33 = vpop.permute.xlu0 %6168 }
 0x170   : > { %14851 = vst [vmem:[#allocation17_spill] sm:$0xff] %v11540_v35  ;;  %8158 = vst [vmem:[%s11204_s30 + $0xe0] sm:$0xff] %v7646_v17  ;;  %v7136_v53 = vadd.f32 %v10959_v1, %v4126_v9  ;;  %6488 = vperm.xlu0 %9892, %v5702_v59   ;;  %v631_v59 = vld [vmem:[%s14782_s3 + $0x230] sm:$0xff]  ;;  %6493 = vperm.xlu1 %9893, %v5703_v47  }
 0x171   : > { %8159 = vst [vmem:[%s11204_s30 + $0xe8] sm:$0xff] %v7647_v40  ;;  %v7137_v43 = vadd.f32 %v10959_v1, %v4128_v22  ;;  %v1756_v52 = vpop.f32.mrb[32].mxu1  ;;  %v4131_v45 = vpop.f32.mrb[32].mxu0  ;;  %v5704_v1 = vld [vmem:[%s14783_s4 + $0x430] sm:$0xff] }
 0x172   : > { %v7648_v55 = vmax.f32 %v7136_v53, 0.0  ;;  %v4132_v41 = vadd.f32 %v4131_v45, %v1756_v52  ;;  %v1758_v35 = vpop.f32.mrb[33].mxu1  ;;  %8856 = vmatmul.mubr.msk.f32.gmra.mrb[138].mxu1 %vm820_vm1, %v630_v58  ;;  %v4133_v46 = vpop.f32.mrb[33].mxu0  ;;  %9114 = vmatmul.mubr.msk.f32.gmra.mrb[138].mxu0 %vm820_vm1, %v373_v0  ;;  %v374_v40 = vld [vmem:[%s14781_s2 + $0x230] sm:$0xff]  ;;  %v5705_v52 = vld [vmem:[%s14783_s4 + $0x438] sm:$0xff] }
 0x173   : > { %v7649_v17 = vmax.f32 %v7137_v43, 0.0  ;;  %v4134_v9 = vadd.f32 %v4133_v46, %v1758_v35  ;;  %2078 = vmatprep.mubr.f32.mxu1 %v14845_v60  ;;  %4453 = vmatprep.mubr.f32.mxu0 %v14845_v60  ;;  %v11564_v22 = vpop.permute.xlu1 %6173  ;;  %v11568_v0 = vpop.permute.xlu0 %6178 }
 0x174   : > { %14852 = vst [vmem:[#allocation18_spill] sm:$0xff] %v11564_v22  ;;  %8160 = vst [vmem:[%s11204_s30 + $0xf0] sm:$0xff] %v7648_v55  ;;  %v7138_v58 = vadd.f32 %v10961_v2, %v4132_v41  ;;  %6498 = vperm.xlu0 %9892, %v5704_v1   ;;  %v632_v1 = vld [vmem:[%s14782_s3 + $0x238] sm:$0xff]  ;;  %6503 = vperm.xlu1 %9893, %v5705_v52  }
 0x175   : > { %8161 = vst [vmem:[%s11204_s30 + $0xf8] sm:$0xff] %v7649_v17  ;;  %v7139_v35 = vadd.f32 %v10961_v2, %v4134_v9  ;;  %v1762_v53 = vpop.f32.mrb[34].mxu1  ;;  %v4137_v43 = vpop.f32.mrb[34].mxu0  ;;  %v5706_v2 = vld [vmem:[%s14783_s4 + $0x440] sm:$0xff]  ;;  %v375_v17 = vld [vmem:[%s14781_s2 + $0x238] sm:$0xff] }
 0x176   : > { %v7650_v45 = vmax.f32 %v7138_v58, 0.0  ;;  %v4138_v46 = vadd.f32 %v4137_v43, %v1762_v53  ;;  %v1764_v22 = vpop.f32.mrb[35].mxu1  ;;  %8857 = vmatmul.mubr.msk.f32.gmra.mrb[140].mxu1 %vm820_vm1, %v631_v59  ;;  %v4139_v47 = vpop.f32.mrb[35].mxu0  ;;  %9115 = vmatmul.mubr.msk.f32.gmra.mrb[140].mxu0 %vm820_vm1, %v374_v40  ;;  %v5707_v53 = vld [vmem:[%s14783_s4 + $0x448] sm:$0xff] }
 0x177   : > { %v7651_v55 = vmax.f32 %v7139_v35, 0.0  ;;  %v4140_v41 = vadd.f32 %v4139_v47, %v1764_v22  ;;  %2084 = vmatprep.mubr.f32.mxu1 %v14845_v60  ;;  %4459 = vmatprep.mubr.f32.mxu0 %v14845_v60  ;;  %v11588_v9 = vpop.permute.xlu1 %6183  ;;  %v11592_v40 = vpop.permute.xlu0 %6188 }
 0x178   : > { %14853 = vst [vmem:[#allocation19_spill] sm:$0xff] %v11588_v9  ;;  %8162 = vst [vmem:[%s11204_s30 + $0x100] sm:$0xff] %v7650_v45  ;;  %v7140_v59 = vadd.f32 %v10979_v7, %v4138_v46  ;;  %6508 = vperm.xlu0 %9892, %v5706_v2   ;;  %v633_v2 = vld [vmem:[%s14782_s3 + $0x240] sm:$0xff]  ;;  %6513 = vperm.xlu1 %9893, %v5707_v53  }
 0x179   : > { %8163 = vst [vmem:[%s11204_s30 + $0x108] sm:$0xff] %v7651_v55  ;;  %v7141_v22 = vadd.f32 %v10979_v7, %v4140_v41  ;;  %v1768_v58 = vpop.f32.mrb[36].mxu1  ;;  %v4143_v35 = vpop.f32.mrb[36].mxu0  ;;  %v5708_v7 = vld [vmem:[%s14783_s4 + $0x450] sm:$0xff]  ;;  %v376_v55 = vld [vmem:[%s14781_s2 + $0x240] sm:$0xff] }
 0x17a   : > { %v7652_v43 = vmax.f32 %v7140_v59, 0.0  ;;  %v4144_v47 = vadd.f32 %v4143_v35, %v1768_v58  ;;  %v1770_v9 = vpop.f32.mrb[37].mxu1  ;;  %8858 = vmatmul.mubr.msk.f32.gmra.mrb[142].mxu1 %vm820_vm1, %v632_v1  ;;  %v4145_v52 = vpop.f32.mrb[37].mxu0  ;;  %9116 = vmatmul.mubr.msk.f32.gmra.mrb[142].mxu0 %vm820_vm1, %v375_v17  ;;  %v5709_v58 = vld [vmem:[%s14783_s4 + $0x458] sm:$0xff] }
 0x17b   : > { %v7653_v45 = vmax.f32 %v7141_v22, 0.0  ;;  %v4146_v46 = vadd.f32 %v4145_v52, %v1770_v9  ;;  %2090 = vmatprep.mubr.f32.mxu1 %v14845_v60  ;;  %4465 = vmatprep.mubr.f32.mxu0 %v14845_v60  ;;  %v11612_v41 = vpop.permute.xlu1 %6193  ;;  %v11616_v17 = vpop.permute.xlu0 %6198 }
 0x17c   : > { %14854 = vst [vmem:[#allocation20_spill] sm:$0xff] %v11612_v41  ;;  %8164 = vst [vmem:[%s11204_s30 + $0x110] sm:$0xff] %v7652_v43  ;;  %v7142_v1 = vadd.f32 %v10981_v8, %v4144_v47  ;;  %6518 = vperm.xlu0 %9892, %v5708_v7   ;;  %v634_v7 = vld [vmem:[%s14782_s3 + $0x248] sm:$0xff]  ;;  %6523 = vperm.xlu1 %9893, %v5709_v58  }
 0x17d   : > { %8165 = vst [vmem:[%s11204_s30 + $0x118] sm:$0xff] %v7653_v45  ;;  %v7143_v9 = vadd.f32 %v10981_v8, %v4146_v46  ;;  %v1774_v59 = vpop.f32.mrb[38].mxu1  ;;  %v4149_v22 = vpop.f32.mrb[38].mxu0  ;;  %v5710_v8 = vld [vmem:[%s14783_s4 + $0x460] sm:$0xff]  ;;  %v377_v45 = vld [vmem:[%s14781_s2 + $0x248] sm:$0xff] }
 0x17e   : > { %v7654_v35 = vmax.f32 %v7142_v1, 0.0  ;;  %v4150_v52 = vadd.f32 %v4149_v22, %v1774_v59  ;;  %v1776_v41 = vpop.f32.mrb[39].mxu1  ;;  %8859 = vmatmul.mubr.msk.f32.gmra.mrb[144].mxu1 %vm820_vm1, %v633_v2  ;;  %v4151_v53 = vpop.f32.mrb[39].mxu0  ;;  %9117 = vmatmul.mubr.msk.f32.gmra.mrb[144].mxu0 %vm820_vm1, %v376_v55  ;;  %v5711_v59 = vld [vmem:[%s14783_s4 + $0x468] sm:$0xff] }
 0x17f   : > { %v7655_v43 = vmax.f32 %v7143_v9, 0.0  ;;  %v4152_v47 = vadd.f32 %v4151_v53, %v1776_v41  ;;  %2096 = vmatprep.mubr.f32.mxu1 %v14845_v60  ;;  %4471 = vmatprep.mubr.f32.mxu0 %v14845_v60  ;;  %v11636_v46 = vpop.permute.xlu1 %6203  ;;  %v11640_v55 = vpop.permute.xlu0 %6208 }
 0x180   : > { %14855 = vst [vmem:[#allocation21_spill] sm:$0xff] %v11636_v46  ;;  %8166 = vst [vmem:[%s11204_s30 + $0x120] sm:$0xff] %v7654_v35  ;;  %v7144_v2 = vadd.f32 %v10999_v13, %v4150_v52  ;;  %6528 = vperm.xlu0 %9892, %v5710_v8   ;;  %v635_v8 = vld [vmem:[%s14782_s3 + $0x250] sm:$0xff]  ;;  %6533 = vperm.xlu1 %9893, %v5711_v59  }
 0x181   : > { %8167 = vst [vmem:[%s11204_s30 + $0x128] sm:$0xff] %v7655_v43  ;;  %v7145_v41 = vadd.f32 %v10999_v13, %v4152_v47  ;;  %v1780_v1 = vpop.f32.mrb[40].mxu1  ;;  %v4155_v9 = vpop.f32.mrb[40].mxu0  ;;  %v5712_v13 = vld [vmem:[%s14783_s4 + $0x470] sm:$0xff] }
 0x182   : > { %v7656_v22 = vmax.f32 %v7144_v2, 0.0  ;;  %v4156_v53 = vadd.f32 %v4155_v9, %v1780_v1  ;;  %v1782_v46 = vpop.f32.mrb[41].mxu1  ;;  %8860 = vmatmul.mubr.msk.f32.gmra.mrb[146].mxu1 %vm820_vm1, %v634_v7  ;;  %v4157_v58 = vpop.f32.mrb[41].mxu0  ;;  %9118 = vmatmul.mubr.msk.f32.gmra.mrb[146].mxu0 %vm820_vm1, %v377_v45  ;;  %v378_v43 = vld [vmem:[%s14781_s2 + $0x250] sm:$0xff]  ;;  %v5713_v1 = vld [vmem:[%s14783_s4 + $0x478] sm:$0xff] }
 0x183   : > { %v7657_v35 = vmax.f32 %v7145_v41, 0.0  ;;  %v4158_v52 = vadd.f32 %v4157_v58, %v1782_v46  ;;  %2102 = vmatprep.mubr.f32.mxu1 %v14845_v60  ;;  %4477 = vmatprep.mubr.f32.mxu0 %v14845_v60  ;;  %v11660_v47 = vpop.permute.xlu1 %6213  ;;  %v11664_v45 = vpop.permute.xlu0 %6218 }
 0x184   : > { %14856 = vst [vmem:[#allocation22_spill] sm:$0xff] %v11660_v47  ;;  %8168 = vst [vmem:[%s11204_s30 + $0x130] sm:$0xff] %v7656_v22  ;;  %v7146_v7 = vadd.f32 %v11001_v14, %v4156_v53  ;;  %6538 = vperm.xlu0 %9892, %v5712_v13   ;;  %v636_v13 = vld [vmem:[%s14782_s3 + $0x258] sm:$0xff]  ;;  %6543 = vperm.xlu1 %9893, %v5713_v1  }
 0x185   : > { %8169 = vst [vmem:[%s11204_s30 + $0x138] sm:$0xff] %v7657_v35  ;;  %v7147_v46 = vadd.f32 %v11001_v14, %v4158_v52  ;;  %v1786_v2 = vpop.f32.mrb[42].mxu1  ;;  %v4161_v41 = vpop.f32.mrb[42].mxu0  ;;  %v5714_v14 = vld [vmem:[%s14783_s4 + $0x480] sm:$0xff]  ;;  %v379_v35 = vld [vmem:[%s14781_s2 + $0x258] sm:$0xff] }
 0x186   : > { %v7658_v9 = vmax.f32 %v7146_v7, 0.0  ;;  %v4162_v58 = vadd.f32 %v4161_v41, %v1786_v2  ;;  %v1788_v47 = vpop.f32.mrb[43].mxu1  ;;  %8861 = vmatmul.mubr.msk.f32.gmra.mrb[148].mxu1 %vm820_vm1, %v635_v8  ;;  %v4163_v59 = vpop.f32.mrb[43].mxu0  ;;  %9119 = vmatmul.mubr.msk.f32.gmra.mrb[148].mxu0 %vm820_vm1, %v378_v43  ;;  %v5715_v2 = vld [vmem:[%s14783_s4 + $0x488] sm:$0xff] }
 0x187   : > { %v7659_v22 = vmax.f32 %v7147_v46, 0.0  ;;  %v4164_v53 = vadd.f32 %v4163_v59, %v1788_v47  ;;  %2108 = vmatprep.mubr.f32.mxu1 %v14845_v60  ;;  %4483 = vmatprep.mubr.f32.mxu0 %v14845_v60  ;;  %v11684_v52 = vpop.permute.xlu1 %6223  ;;  %v11688_v43 = vpop.permute.xlu0 %6228 }
 0x188   : > { %14857 = vst [vmem:[#allocation23_spill] sm:$0xff] %v11684_v52  ;;  %8170 = vst [vmem:[%s11204_s30 + $0x140] sm:$0xff] %v7658_v9  ;;  %v7148_v8 = vadd.f32 %v11019_v20, %v4162_v58  ;;  %6548 = vperm.xlu0 %9892, %v5714_v14   ;;  %v637_v14 = vld [vmem:[%s14782_s3 + $0x260] sm:$0xff]  ;;  %6553 = vperm.xlu1 %9893, %v5715_v2  }
 0x189   : > { %8171 = vst [vmem:[%s11204_s30 + $0x148] sm:$0xff] %v7659_v22  ;;  %v7149_v47 = vadd.f32 %v11019_v20, %v4164_v53  ;;  %v1792_v7 = vpop.f32.mrb[44].mxu1  ;;  %v4167_v46 = vpop.f32.mrb[44].mxu0  ;;  %v5716_v20 = vld [vmem:[%s14783_s4 + $0x490] sm:$0xff]  ;;  %v380_v22 = vld [vmem:[%s14781_s2 + $0x260] sm:$0xff] }
 0x18a   : > { %v7660_v41 = vmax.f32 %v7148_v8, 0.0  ;;  %v4168_v59 = vadd.f32 %v4167_v46, %v1792_v7  ;;  %v1794_v52 = vpop.f32.mrb[45].mxu1  ;;  %8862 = vmatmul.mubr.msk.f32.gmra.mrb[150].mxu1 %vm820_vm1, %v636_v13  ;;  %v4169_v1 = vpop.f32.mrb[45].mxu0  ;;  %9120 = vmatmul.mubr.msk.f32.gmra.mrb[150].mxu0 %vm820_vm1, %v379_v35  ;;  %v5717_v7 = vld [vmem:[%s14783_s4 + $0x498] sm:$0xff] }
 0x18b   : > { %v7661_v9 = vmax.f32 %v7149_v47, 0.0  ;;  %v4170_v58 = vadd.f32 %v4169_v1, %v1794_v52  ;;  %2114 = vmatprep.mubr.f32.mxu1 %v14845_v60  ;;  %4489 = vmatprep.mubr.f32.mxu0 %v14845_v60  ;;  %v11708_v53 = vpop.permute.xlu1 %6233  ;;  %v11712_v35 = vpop.permute.xlu0 %6238 }
 0x18c   : > { %14858 = vst [vmem:[#allocation24_spill] sm:$0xff] %v11708_v53  ;;  %8172 = vst [vmem:[%s11204_s30 + $0x150] sm:$0xff] %v7660_v41  ;;  %v7150_v13 = vadd.f32 %v11021_v21, %v4168_v59  ;;  %6558 = vperm.xlu0 %9892, %v5716_v20   ;;  %v638_v20 = vld [vmem:[%s14782_s3 + $0x268] sm:$0xff]  ;;  %6563 = vperm.xlu1 %9893, %v5717_v7  }
 0x18d   : > { %8173 = vst [vmem:[%s11204_s30 + $0x158] sm:$0xff] %v7661_v9  ;;  %v7151_v52 = vadd.f32 %v11021_v21, %v4170_v58  ;;  %v1798_v8 = vpop.f32.mrb[46].mxu1  ;;  %v4173_v47 = vpop.f32.mrb[46].mxu0  ;;  %v5718_v21 = vld [vmem:[%s14783_s4 + $0x4a0] sm:$0xff]  ;;  %v381_v9 = vld [vmem:[%s14781_s2 + $0x268] sm:$0xff] }
 0x18e   : > { %v7662_v46 = vmax.f32 %v7150_v13, 0.0  ;;  %v4174_v1 = vadd.f32 %v4173_v47, %v1798_v8  ;;  %v1800_v53 = vpop.f32.mrb[47].mxu1  ;;  %8863 = vmatmul.mubr.msk.f32.gmra.mrb[152].mxu1 %vm820_vm1, %v637_v14  ;;  %v4175_v2 = vpop.f32.mrb[47].mxu0  ;;  %9121 = vmatmul.mubr.msk.f32.gmra.mrb[152].mxu0 %vm820_vm1, %v380_v22  ;;  %v5719_v8 = vld [vmem:[%s14783_s4 + $0x4a8] sm:$0xff] }
 0x18f   : > { %v7663_v41 = vmax.f32 %v7151_v52, 0.0  ;;  %v4176_v59 = vadd.f32 %v4175_v2, %v1800_v53  ;;  %2120 = vmatprep.mubr.f32.mxu1 %v14845_v60  ;;  %4495 = vmatprep.mubr.f32.mxu0 %v14845_v60  ;;  %v11732_v58 = vpop.permute.xlu1 %6243  ;;  %v11736_v22 = vpop.permute.xlu0 %6248 }
 0x190   : > { %14859 = vst [vmem:[#allocation25_spill] sm:$0xff] %v11732_v58  ;;  %8174 = vst [vmem:[%s11204_s30 + $0x160] sm:$0xff] %v7662_v46  ;;  %v7152_v14 = vadd.f32 %v11039_v30, %v4174_v1  ;;  %6568 = vperm.xlu0 %9892, %v5718_v21   ;;  %v639_v21 = vld [vmem:[%s14782_s3 + $0x270] sm:$0xff]  ;;  %6573 = vperm.xlu1 %9893, %v5719_v8  }
 0x191   : > { %8175 = vst [vmem:[%s11204_s30 + $0x168] sm:$0xff] %v7663_v41  ;;  %v7153_v53 = vadd.f32 %v11039_v30, %v4176_v59  ;;  %v1804_v13 = vpop.f32.mrb[48].mxu1  ;;  %v4179_v52 = vpop.f32.mrb[48].mxu0  ;;  %v5720_v30 = vld [vmem:[%s14783_s4 + $0x4b0] sm:$0xff] }
 0x192   : > { %v7664_v47 = vmax.f32 %v7152_v14, 0.0  ;;  %v4180_v2 = vadd.f32 %v4179_v52, %v1804_v13  ;;  %v1806_v58 = vpop.f32.mrb[49].mxu1  ;;  %8864 = vmatmul.mubr.msk.f32.gmra.mrb[154].mxu1 %vm820_vm1, %v638_v20  ;;  %v4181_v7 = vpop.f32.mrb[49].mxu0  ;;  %9122 = vmatmul.mubr.msk.f32.gmra.mrb[154].mxu0 %vm820_vm1, %v381_v9  ;;  %v382_v41 = vld [vmem:[%s14781_s2 + $0x270] sm:$0xff]  ;;  %v5721_v13 = vld [vmem:[%s14783_s4 + $0x4b8] sm:$0xff] }
 0x193   : > { %v7665_v46 = vmax.f32 %v7153_v53, 0.0  ;;  %v4182_v1 = vadd.f32 %v4181_v7, %v1806_v58  ;;  %2126 = vmatprep.mubr.f32.mxu1 %v14845_v60  ;;  %4501 = vmatprep.mubr.f32.mxu0 %v14845_v60  ;;  %v11756_v59 = vpop.permute.xlu1 %6253  ;;  %v11760_v9 = vpop.permute.xlu0 %6258 }
 0x194   : > { %14860 = vst [vmem:[#allocation26_spill] sm:$0xff] %v11756_v59  ;;  %8176 = vst [vmem:[%s11204_s30 + $0x170] sm:$0xff] %v7664_v47  ;;  %v7154_v20 = vadd.f32 %v11041_v31, %v4180_v2  ;;  %6578 = vperm.xlu0 %9892, %v5720_v30   ;;  %v640_v30 = vld [vmem:[%s14782_s3 + $0x278] sm:$0xff]  ;;  %6583 = vperm.xlu1 %9893, %v5721_v13  }
 0x195   : > { %8177 = vst [vmem:[%s11204_s30 + $0x178] sm:$0xff] %v7665_v46  ;;  %v7155_v58 = vadd.f32 %v11041_v31, %v4182_v1  ;;  %v1810_v14 = vpop.f32.mrb[50].mxu1  ;;  %v4185_v53 = vpop.f32.mrb[50].mxu0  ;;  %v5722_v31 = vld [vmem:[%s14783_s4 + $0x4c0] sm:$0xff]  ;;  %v383_v46 = vld [vmem:[%s14781_s2 + $0x278] sm:$0xff] }
 0x196   : > { %v7666_v52 = vmax.f32 %v7154_v20, 0.0  ;;  %v4186_v7 = vadd.f32 %v4185_v53, %v1810_v14  ;;  %v1812_v59 = vpop.f32.mrb[51].mxu1  ;;  %8865 = vmatmul.mubr.msk.f32.gmra.mrb[156].mxu1 %vm820_vm1, %v639_v21  ;;  %v4187_v8 = vpop.f32.mrb[51].mxu0  ;;  %9123 = vmatmul.mubr.msk.f32.gmra.mrb[156].mxu0 %vm820_vm1, %v382_v41  ;;  %v5723_v14 = vld [vmem:[%s14783_s4 + $0x4c8] sm:$0xff] }
 0x197   : > { %v7667_v47 = vmax.f32 %v7155_v58, 0.0  ;;  %v4188_v2 = vadd.f32 %v4187_v8, %v1812_v59  ;;  %2132 = vmatprep.mubr.f32.mxu1 %v14845_v60  ;;  %4507 = vmatprep.mubr.f32.mxu0 %v14845_v60  ;;  %v11780_v1 = vpop.permute.xlu1 %6263  ;;  %v11784_v41 = vpop.permute.xlu0 %6268 }
 0x198   : > { %14861 = vst [vmem:[#allocation27_spill] sm:$0xff] %v11780_v1  ;;  %8178 = vst [vmem:[%s11204_s30 + $0x180] sm:$0xff] %v7666_v52  ;;  %v7156_v21 = vadd.f32 %v11059_v38, %v4186_v7  ;;  %6588 = vperm.xlu0 %9892, %v5722_v31   ;;  %v641_v31 = vld [vmem:[%s14782_s3 + $0x280] sm:$0xff]  ;;  %6593 = vperm.xlu1 %9893, %v5723_v14  }
 0x199   : > { %8179 = vst [vmem:[%s11204_s30 + $0x188] sm:$0xff] %v7667_v47  ;;  %v7157_v59 = vadd.f32 %v11059_v38, %v4188_v2  ;;  %v1816_v20 = vpop.f32.mrb[52].mxu1  ;;  %v4191_v58 = vpop.f32.mrb[52].mxu0  ;;  %v5724_v38 = vld [vmem:[%s14783_s4 + $0x4d0] sm:$0xff]  ;;  %v384_v47 = vld [vmem:[%s14781_s2 + $0x280] sm:$0xff] }
 0x19a   : > { %v7668_v53 = vmax.f32 %v7156_v21, 0.0  ;;  %v4192_v8 = vadd.f32 %v4191_v58, %v1816_v20  ;;  %v1818_v1 = vpop.f32.mrb[53].mxu1  ;;  %8866 = vmatmul.mubr.msk.f32.gmra.mrb[158].mxu1 %vm820_vm1, %v640_v30  ;;  %v4193_v13 = vpop.f32.mrb[53].mxu0  ;;  %9124 = vmatmul.mubr.msk.f32.gmra.mrb[158].mxu0 %vm820_vm1, %v383_v46  ;;  %v5725_v20 = vld [vmem:[%s14783_s4 + $0x4d8] sm:$0xff] }
 0x19b   : > { %v7669_v52 = vmax.f32 %v7157_v59, 0.0  ;;  %v4194_v7 = vadd.f32 %v4193_v13, %v1818_v1  ;;  %2138 = vmatprep.mubr.f32.mxu1 %v14845_v60  ;;  %4513 = vmatprep.mubr.f32.mxu0 %v14845_v60  ;;  %v11804_v2 = vpop.permute.xlu1 %6273  ;;  %v11808_v46 = vpop.permute.xlu0 %6278 }
 0x19c   : > { %14862 = vst [vmem:[#allocation28_spill] sm:$0xff] %v11804_v2  ;;  %8180 = vst [vmem:[%s11204_s30 + $0x190] sm:$0xff] %v7668_v53  ;;  %v7158_v30 = vadd.f32 %v11061_v39, %v4192_v8  ;;  %6598 = vperm.xlu0 %9892, %v5724_v38   ;;  %v642_v38 = vld [vmem:[%s14782_s3 + $0x288] sm:$0xff]  ;;  %6603 = vperm.xlu1 %9893, %v5725_v20  }
 0x19d   : > { %8181 = vst [vmem:[%s11204_s30 + $0x198] sm:$0xff] %v7669_v52  ;;  %v7159_v1 = vadd.f32 %v11061_v39, %v4194_v7  ;;  %v1822_v21 = vpop.f32.mrb[54].mxu1  ;;  %v4197_v59 = vpop.f32.mrb[54].mxu0  ;;  %v5726_v39 = vld [vmem:[%s14783_s4 + $0x4e0] sm:$0xff]  ;;  %v385_v52 = vld [vmem:[%s14781_s2 + $0x288] sm:$0xff] }
 0x19e   : > { %v7670_v58 = vmax.f32 %v7158_v30, 0.0  ;;  %v4198_v13 = vadd.f32 %v4197_v59, %v1822_v21  ;;  %v1824_v2 = vpop.f32.mrb[55].mxu1  ;;  %8867 = vmatmul.mubr.msk.f32.gmra.mrb[160].mxu1 %vm820_vm1, %v641_v31  ;;  %v4199_v14 = vpop.f32.mrb[55].mxu0  ;;  %9125 = vmatmul.mubr.msk.f32.gmra.mrb[160].mxu0 %vm820_vm1, %v384_v47  ;;  %v5727_v21 = vld [vmem:[%s14783_s4 + $0x4e8] sm:$0xff] }
 0x19f   : > { %v7671_v53 = vmax.f32 %v7159_v1, 0.0  ;;  %v4200_v8 = vadd.f32 %v4199_v14, %v1824_v2  ;;  %2144 = vmatprep.mubr.f32.mxu1 %v14845_v60  ;;  %4519 = vmatprep.mubr.f32.mxu0 %v14845_v60  ;;  %v11828_v7 = vpop.permute.xlu1 %6283  ;;  %v11832_v47 = vpop.permute.xlu0 %6288 }
 0x1a0   : > { %14863 = vst [vmem:[#allocation29_spill] sm:$0xff] %v11828_v7  ;;  %8182 = vst [vmem:[%s11204_s30 + $0x1a0] sm:$0xff] %v7670_v58  ;;  %v7160_v31 = vadd.f32 %v11079_v48, %v4198_v13  ;;  %6608 = vperm.xlu0 %9892, %v5726_v39   ;;  %v643_v39 = vld [vmem:[%s14782_s3 + $0x290] sm:$0xff]  ;;  %6613 = vperm.xlu1 %9893, %v5727_v21  }
 0x1a1   : > { %8183 = vst [vmem:[%s11204_s30 + $0x1a8] sm:$0xff] %v7671_v53  ;;  %v7161_v2 = vadd.f32 %v11079_v48, %v4200_v8  ;;  %v1828_v30 = vpop.f32.mrb[56].mxu1  ;;  %v4203_v1 = vpop.f32.mrb[56].mxu0  ;;  %v5728_v48 = vld [vmem:[%s14783_s4 + $0x4f0] sm:$0xff] }
 0x1a2   : > { %v7672_v59 = vmax.f32 %v7160_v31, 0.0  ;;  %v4204_v14 = vadd.f32 %v4203_v1, %v1828_v30  ;;  %v1830_v7 = vpop.f32.mrb[57].mxu1  ;;  %8868 = vmatmul.mubr.msk.f32.gmra.mrb[162].mxu1 %vm820_vm1, %v642_v38  ;;  %v4205_v20 = vpop.f32.mrb[57].mxu0  ;;  %9126 = vmatmul.mubr.msk.f32.gmra.mrb[162].mxu0 %vm820_vm1, %v385_v52  ;;  %v386_v53 = vld [vmem:[%s14781_s2 + $0x290] sm:$0xff]  ;;  %v5729_v30 = vld [vmem:[%s14783_s4 + $0x4f8] sm:$0xff] }
 0x1a3   : > { %v7673_v58 = vmax.f32 %v7161_v2, 0.0  ;;  %v4206_v13 = vadd.f32 %v4205_v20, %v1830_v7  ;;  %2150 = vmatprep.mubr.f32.mxu1 %v14845_v60  ;;  %4525 = vmatprep.mubr.f32.mxu0 %v14845_v60  ;;  %v11852_v8 = vpop.permute.xlu1 %6293  ;;  %v11856_v52 = vpop.permute.xlu0 %6298 }
 0x1a4   : > { %14864 = vst [vmem:[#allocation30_spill] sm:$0xff] %v11852_v8  ;;  %8184 = vst [vmem:[%s11204_s30 + $0x1b0] sm:$0xff] %v7672_v59  ;;  %v7162_v38 = vadd.f32 %v11081_v49, %v4204_v14  ;;  %6618 = vperm.xlu0 %9892, %v5728_v48   ;;  %v644_v48 = vld [vmem:[%s14782_s3 + $0x298] sm:$0xff]  ;;  %6623 = vperm.xlu1 %9893, %v5729_v30  }
 0x1a5   : > { %8185 = vst [vmem:[%s11204_s30 + $0x1b8] sm:$0xff] %v7673_v58  ;;  %v7163_v7 = vadd.f32 %v11081_v49, %v4206_v13  ;;  %v1834_v31 = vpop.f32.mrb[58].mxu1  ;;  %v4209_v2 = vpop.f32.mrb[58].mxu0  ;;  %v5730_v49 = vld [vmem:[%s14783_s4 + $0x500] sm:$0xff]  ;;  %v387_v58 = vld [vmem:[%s14781_s2 + $0x298] sm:$0xff] }
 0x1a6   : > { %v7674_v1 = vmax.f32 %v7162_v38, 0.0  ;;  %v4210_v20 = vadd.f32 %v4209_v2, %v1834_v31  ;;  %v1836_v8 = vpop.f32.mrb[59].mxu1  ;;  %8869 = vmatmul.mubr.msk.f32.gmra.mrb[164].mxu1 %vm820_vm1, %v643_v39  ;;  %v4211_v21 = vpop.f32.mrb[59].mxu0  ;;  %9127 = vmatmul.mubr.msk.f32.gmra.mrb[164].mxu0 %vm820_vm1, %v386_v53  ;;  %v5731_v31 = vld [vmem:[%s14783_s4 + $0x508] sm:$0xff] }
 0x1a7   : > { %v7675_v59 = vmax.f32 %v7163_v7, 0.0  ;;  %v4212_v14 = vadd.f32 %v4211_v21, %v1836_v8  ;;  %2156 = vmatprep.mubr.f32.mxu1 %v14845_v60  ;;  %4531 = vmatprep.mubr.f32.mxu0 %v14845_v60  ;;  %v11876_v13 = vpop.permute.xlu1 %6303  ;;  %v11880_v53 = vpop.permute.xlu0 %6308 }
 0x1a8   : > { %14865 = vst [vmem:[#allocation31_spill] sm:$0xff] %v11876_v13  ;;  %8186 = vst [vmem:[%s11204_s30 + $0x1c0] sm:$0xff] %v7674_v1  ;;  %v7164_v39 = vadd.f32 %v11099_v56, %v4210_v20  ;;  %6628 = vperm.xlu0 %9892, %v5730_v49   ;;  %v645_v49 = vld [vmem:[%s14782_s3 + $0x2a0] sm:$0xff]  ;;  %6633 = vperm.xlu1 %9893, %v5731_v31  }
 0x1a9   : > { %8187 = vst [vmem:[%s11204_s30 + $0x1c8] sm:$0xff] %v7675_v59  ;;  %v7165_v8 = vadd.f32 %v11099_v56, %v4212_v14  ;;  %v1840_v38 = vpop.f32.mrb[60].mxu1  ;;  %v4215_v7 = vpop.f32.mrb[60].mxu0  ;;  %v5732_v56 = vld [vmem:[%s14783_s4 + $0x510] sm:$0xff]  ;;  %v388_v59 = vld [vmem:[%s14781_s2 + $0x2a0] sm:$0xff] }
 0x1aa   : > { %v7676_v2 = vmax.f32 %v7164_v39, 0.0  ;;  %v4216_v21 = vadd.f32 %v4215_v7, %v1840_v38  ;;  %v1842_v13 = vpop.f32.mrb[61].mxu1  ;;  %8870 = vmatmul.mubr.msk.f32.gmra.mrb[166].mxu1 %vm820_vm1, %v644_v48  ;;  %v4217_v30 = vpop.f32.mrb[61].mxu0  ;;  %9128 = vmatmul.mubr.msk.f32.gmra.mrb[166].mxu0 %vm820_vm1, %v387_v58  ;;  %v5733_v38 = vld [vmem:[%s14783_s4 + $0x518] sm:$0xff] }
 0x1ab   : > { %v7677_v1 = vmax.f32 %v7165_v8, 0.0  ;;  %v4218_v20 = vadd.f32 %v4217_v30, %v1842_v13  ;;  %2162 = vmatprep.mubr.f32.mxu1 %v14845_v60  ;;  %4537 = vmatprep.mubr.f32.mxu0 %v14845_v60  ;;  %v11900_v14 = vpop.permute.xlu1 %6313  ;;  %v11904_v58 = vpop.permute.xlu0 %6318 }
 0x1ac   : > { %14866 = vst [vmem:[#allocation32_spill] sm:$0xff] %v11900_v14  ;;  %8188 = vst [vmem:[%s11204_s30 + $0x1d0] sm:$0xff] %v7676_v2  ;;  %v7166_v48 = vadd.f32 %v11101_v57, %v4216_v21  ;;  %6638 = vperm.xlu0 %9892, %v5732_v56   ;;  %v646_v56 = vld [vmem:[%s14782_s3 + $0x2a8] sm:$0xff]  ;;  %6643 = vperm.xlu1 %9893, %v5733_v38  }
 0x1ad   : > { %8189 = vst [vmem:[%s11204_s30 + $0x1d8] sm:$0xff] %v7677_v1  ;;  %v7167_v13 = vadd.f32 %v11101_v57, %v4218_v20  ;;  %v1846_v39 = vpop.f32.mrb[62].mxu1  ;;  %v4221_v8 = vpop.f32.mrb[62].mxu0  ;;  %v5734_v57 = vld [vmem:[%s14783_s4 + $0x520] sm:$0xff]  ;;  %v389_v1 = vld [vmem:[%s14781_s2 + $0x2a8] sm:$0xff] }
 0x1ae   : > { %v7678_v7 = vmax.f32 %v7166_v48, 0.0  ;;  %v4222_v30 = vadd.f32 %v4221_v8, %v1846_v39  ;;  %v1848_v14 = vpop.f32.mrb[63].mxu1  ;;  %8871 = vmatmul.mubr.msk.f32.gmra.mrb[168].mxu1 %vm820_vm1, %v645_v49  ;;  %v4223_v31 = vpop.f32.mrb[63].mxu0  ;;  %9129 = vmatmul.mubr.msk.f32.gmra.mrb[168].mxu0 %vm820_vm1, %v388_v59  ;;  %v5735_v39 = vld [vmem:[%s14783_s4 + $0x528] sm:$0xff] }
 0x1af   : > { %v7679_v2 = vmax.f32 %v7167_v13, 0.0  ;;  %v4224_v21 = vadd.f32 %v4223_v31, %v1848_v14  ;;  %2168 = vmatprep.mubr.f32.mxu1 %v14845_v60  ;;  %4543 = vmatprep.mubr.f32.mxu0 %v14845_v60  ;;  %v11924_v20 = vpop.permute.xlu1 %6323  ;;  %v11928_v59 = vpop.permute.xlu0 %6328 }
 0x1b0   : > { %14867 = vst [vmem:[#allocation33_spill] sm:$0xff] %v11924_v20  ;;  %8190 = vst [vmem:[%s11204_s30 + $0x1e0] sm:$0xff] %v7678_v7  ;;  %v7168_v49 = vadd.f32 %v11119_v3, %v4222_v30  ;;  %6648 = vperm.xlu0 %9892, %v5734_v57   ;;  %v647_v57 = vld [vmem:[%s14782_s3 + $0x2b0] sm:$0xff]  ;;  %6653 = vperm.xlu1 %9893, %v5735_v39  }
 0x1b1   : > { %8191 = vst [vmem:[%s11204_s30 + $0x1e8] sm:$0xff] %v7679_v2  ;;  %v7169_v14 = vadd.f32 %v11119_v3, %v4224_v21  ;;  %v1852_v48 = vpop.f32.mrb[64].mxu1  ;;  %v4227_v13 = vpop.f32.mrb[64].mxu0  ;;  %v5736_v3 = vld [vmem:[%s14783_s4 + $0x530] sm:$0xff] }
 0x1b2   : > { %v7680_v8 = vmax.f32 %v7168_v49, 0.0  ;;  %v4228_v31 = vadd.f32 %v4227_v13, %v1852_v48  ;;  %v1854_v20 = vpop.f32.mrb[65].mxu1  ;;  %8872 = vmatmul.mubr.msk.f32.gmra.mrb[170].mxu1 %vm820_vm1, %v646_v56  ;;  %v4229_v38 = vpop.f32.mrb[65].mxu0  ;;  %9130 = vmatmul.mubr.msk.f32.gmra.mrb[170].mxu0 %vm820_vm1, %v389_v1  ;;  %v390_v2 = vld [vmem:[%s14781_s2 + $0x2b0] sm:$0xff]  ;;  %v5737_v48 = vld [vmem:[%s14783_s4 + $0x538] sm:$0xff] }
 0x1b3   : > { %v7681_v7 = vmax.f32 %v7169_v14, 0.0  ;;  %v4230_v30 = vadd.f32 %v4229_v38, %v1854_v20  ;;  %2174 = vmatprep.mubr.f32.mxu1 %v14845_v60  ;;  %4549 = vmatprep.mubr.f32.mxu0 %v14845_v60  ;;  %v11948_v21 = vpop.permute.xlu1 %6333  ;;  %v11952_v1 = vpop.permute.xlu0 %6338 }
 0x1b4   : > { %14868 = vst [vmem:[#allocation34_spill] sm:$0xff] %v11948_v21  ;;  %8192 = vst [vmem:[%s11204_s30 + $0x1f0] sm:$0xff] %v7680_v8  ;;  %v7170_v56 = vadd.f32 %v11121_v4, %v4228_v31  ;;  %6658 = vperm.xlu0 %9892, %v5736_v3   ;;  %v648_v3 = vld [vmem:[%s14782_s3 + $0x2b8] sm:$0xff]  ;;  %6663 = vperm.xlu1 %9893, %v5737_v48  }
 0x1b5   : > { %8193 = vst [vmem:[%s11204_s30 + $0x1f8] sm:$0xff] %v7681_v7  ;;  %v7171_v20 = vadd.f32 %v11121_v4, %v4230_v30  ;;  %v1858_v49 = vpop.f32.mrb[66].mxu1  ;;  %v4233_v14 = vpop.f32.mrb[66].mxu0  ;;  %v5738_v4 = vld [vmem:[%s14783_s4 + $0x540] sm:$0xff]  ;;  %v391_v7 = vld [vmem:[%s14781_s2 + $0x2b8] sm:$0xff] }
 0x1b6   : > { %v7682_v13 = vmax.f32 %v7170_v56, 0.0  ;;  %v4234_v38 = vadd.f32 %v4233_v14, %v1858_v49  ;;  %v1860_v21 = vpop.f32.mrb[67].mxu1  ;;  %8873 = vmatmul.mubr.msk.f32.gmra.mrb[172].mxu1 %vm820_vm1, %v647_v57  ;;  %v4235_v39 = vpop.f32.mrb[67].mxu0  ;;  %9131 = vmatmul.mubr.msk.f32.gmra.mrb[172].mxu0 %vm820_vm1, %v390_v2  ;;  %v5739_v49 = vld [vmem:[%s14783_s4 + $0x548] sm:$0xff] }
 0x1b7   : > { %v7683_v8 = vmax.f32 %v7171_v20, 0.0  ;;  %v4236_v31 = vadd.f32 %v4235_v39, %v1860_v21  ;;  %2180 = vmatprep.mubr.f32.mxu1 %v14845_v60  ;;  %4555 = vmatprep.mubr.f32.mxu0 %v14845_v60  ;;  %v11972_v30 = vpop.permute.xlu1 %6343  ;;  %v11976_v2 = vpop.permute.xlu0 %6348 }
 0x1b8   : > { %14869 = vst [vmem:[#allocation35_spill] sm:$0xff] %v11972_v30  ;;  %8194 = vst [vmem:[%s11204_s30 + $0x200] sm:$0xff] %v7682_v13  ;;  %v7172_v57 = vadd.f32 %v11139_v11, %v4234_v38  ;;  %6668 = vperm.xlu0 %9892, %v5738_v4   ;;  %v649_v4 = vld [vmem:[%s14782_s3 + $0x2c0] sm:$0xff]  ;;  %6673 = vperm.xlu1 %9893, %v5739_v49  }
 0x1b9   : > { %8195 = vst [vmem:[%s11204_s30 + $0x208] sm:$0xff] %v7683_v8  ;;  %v7173_v21 = vadd.f32 %v11139_v11, %v4236_v31  ;;  %v1864_v56 = vpop.f32.mrb[68].mxu1  ;;  %v4239_v20 = vpop.f32.mrb[68].mxu0  ;;  %v5740_v11 = vld [vmem:[%s14783_s4 + $0x550] sm:$0xff]  ;;  %v392_v8 = vld [vmem:[%s14781_s2 + $0x2c0] sm:$0xff] }
 0x1ba   : > { %v7684_v14 = vmax.f32 %v7172_v57, 0.0  ;;  %v4240_v39 = vadd.f32 %v4239_v20, %v1864_v56  ;;  %v1866_v30 = vpop.f32.mrb[69].mxu1  ;;  %8874 = vmatmul.mubr.msk.f32.gmra.mrb[174].mxu1 %vm820_vm1, %v648_v3  ;;  %v4241_v48 = vpop.f32.mrb[69].mxu0  ;;  %9132 = vmatmul.mubr.msk.f32.gmra.mrb[174].mxu0 %vm820_vm1, %v391_v7  ;;  %v5741_v56 = vld [vmem:[%s14783_s4 + $0x558] sm:$0xff] }
 0x1bb   : > { %v7685_v13 = vmax.f32 %v7173_v21, 0.0  ;;  %v4242_v38 = vadd.f32 %v4241_v48, %v1866_v30  ;;  %2186 = vmatprep.mubr.f32.mxu1 %v14845_v60  ;;  %4561 = vmatprep.mubr.f32.mxu0 %v14845_v60  ;;  %v11996_v31 = vpop.permute.xlu1 %6353  ;;  %v12000_v7 = vpop.permute.xlu0 %6358 }
 0x1bc   : > { %14870 = vst [vmem:[#allocation36_spill] sm:$0xff] %v11996_v31  ;;  %8196 = vst [vmem:[%s11204_s30 + $0x210] sm:$0xff] %v7684_v14  ;;  %v7174_v3 = vadd.f32 %v11141_v12, %v4240_v39  ;;  %6678 = vperm.xlu0 %9892, %v5740_v11   ;;  %v650_v11 = vld [vmem:[%s14782_s3 + $0x2c8] sm:$0xff]  ;;  %6683 = vperm.xlu1 %9893, %v5741_v56  }
 0x1bd   : > { %8197 = vst [vmem:[%s11204_s30 + $0x218] sm:$0xff] %v7685_v13  ;;  %v7175_v30 = vadd.f32 %v11141_v12, %v4242_v38  ;;  %v1870_v57 = vpop.f32.mrb[70].mxu1  ;;  %v4245_v21 = vpop.f32.mrb[70].mxu0  ;;  %v5742_v12 = vld [vmem:[%s14783_s4 + $0x560] sm:$0xff]  ;;  %v393_v13 = vld [vmem:[%s14781_s2 + $0x2c8] sm:$0xff] }
 0x1be   : > { %v7686_v20 = vmax.f32 %v7174_v3, 0.0  ;;  %v4246_v48 = vadd.f32 %v4245_v21, %v1870_v57  ;;  %v1872_v31 = vpop.f32.mrb[71].mxu1  ;;  %8875 = vmatmul.mubr.msk.f32.gmra.mrb[176].mxu1 %vm820_vm1, %v649_v4  ;;  %v4247_v49 = vpop.f32.mrb[71].mxu0  ;;  %9133 = vmatmul.mubr.msk.f32.gmra.mrb[176].mxu0 %vm820_vm1, %v392_v8  ;;  %v5743_v57 = vld [vmem:[%s14783_s4 + $0x568] sm:$0xff] }
 0x1bf   : > { %v7687_v14 = vmax.f32 %v7175_v30, 0.0  ;;  %v4248_v39 = vadd.f32 %v4247_v49, %v1872_v31  ;;  %2192 = vmatprep.mubr.f32.mxu1 %v14845_v60  ;;  %4567 = vmatprep.mubr.f32.mxu0 %v14845_v60  ;;  %v12020_v38 = vpop.permute.xlu1 %6363  ;;  %v12024_v8 = vpop.permute.xlu0 %6368 }
 0x1c0   : > { %14871 = vst [vmem:[#allocation37_spill] sm:$0xff] %v12020_v38  ;;  %8198 = vst [vmem:[%s11204_s30 + $0x220] sm:$0xff] %v7686_v20  ;;  %v7176_v4 = vadd.f32 %v11159_v24, %v4246_v48  ;;  %6688 = vperm.xlu0 %9892, %v5742_v12   ;;  %v651_v12 = vld [vmem:[%s14782_s3 + $0x2d0] sm:$0xff]  ;;  %6693 = vperm.xlu1 %9893, %v5743_v57  }
 0x1c1   : > { %8199 = vst [vmem:[%s11204_s30 + $0x228] sm:$0xff] %v7687_v14  ;;  %v7177_v31 = vadd.f32 %v11159_v24, %v4248_v39  ;;  %v1876_v3 = vpop.f32.mrb[72].mxu1  ;;  %v4251_v30 = vpop.f32.mrb[72].mxu0  ;;  %v5744_v24 = vld [vmem:[%s14783_s4 + $0x570] sm:$0xff] }
 0x1c2   : > { %v7688_v21 = vmax.f32 %v7176_v4, 0.0  ;;  %v4252_v49 = vadd.f32 %v4251_v30, %v1876_v3  ;;  %v1878_v38 = vpop.f32.mrb[73].mxu1  ;;  %8876 = vmatmul.mubr.msk.f32.gmra.mrb[178].mxu1 %vm820_vm1, %v650_v11  ;;  %v4253_v56 = vpop.f32.mrb[73].mxu0  ;;  %9134 = vmatmul.mubr.msk.f32.gmra.mrb[178].mxu0 %vm820_vm1, %v393_v13  ;;  %v394_v14 = vld [vmem:[%s14781_s2 + $0x2d0] sm:$0xff]  ;;  %v5745_v3 = vld [vmem:[%s14783_s4 + $0x578] sm:$0xff] }
 0x1c3   : > { %v7689_v20 = vmax.f32 %v7177_v31, 0.0  ;;  %v4254_v48 = vadd.f32 %v4253_v56, %v1878_v38  ;;  %2198 = vmatprep.mubr.f32.mxu1 %v14845_v60  ;;  %4573 = vmatprep.mubr.f32.mxu0 %v14845_v60  ;;  %v12044_v39 = vpop.permute.xlu1 %6373  ;;  %v12048_v13 = vpop.permute.xlu0 %6378 }
 0x1c4   : > { %14872 = vst [vmem:[#allocation38_spill] sm:$0xff] %v12044_v39  ;;  %8200 = vst [vmem:[%s11204_s30 + $0x230] sm:$0xff] %v7688_v21  ;;  %v7178_v11 = vadd.f32 %v11161_v25, %v4252_v49  ;;  %6698 = vperm.xlu0 %9892, %v5744_v24   ;;  %v652_v24 = vld [vmem:[%s14782_s3 + $0x2d8] sm:$0xff]  ;;  %6703 = vperm.xlu1 %9893, %v5745_v3  }
 0x1c5   : > { %8201 = vst [vmem:[%s11204_s30 + $0x238] sm:$0xff] %v7689_v20  ;;  %v7179_v38 = vadd.f32 %v11161_v25, %v4254_v48  ;;  %v1882_v4 = vpop.f32.mrb[74].mxu1  ;;  %v4257_v31 = vpop.f32.mrb[74].mxu0  ;;  %v5746_v25 = vld [vmem:[%s14783_s4 + $0x580] sm:$0xff]  ;;  %v395_v20 = vld [vmem:[%s14781_s2 + $0x2d8] sm:$0xff] }
 0x1c6   : > { %v7690_v30 = vmax.f32 %v7178_v11, 0.0  ;;  %v4258_v56 = vadd.f32 %v4257_v31, %v1882_v4  ;;  %v1884_v39 = vpop.f32.mrb[75].mxu1  ;;  %8877 = vmatmul.mubr.msk.f32.gmra.mrb[180].mxu1 %vm820_vm1, %v651_v12  ;;  %v4259_v57 = vpop.f32.mrb[75].mxu0  ;;  %9135 = vmatmul.mubr.msk.f32.gmra.mrb[180].mxu0 %vm820_vm1, %v394_v14  ;;  %v5747_v4 = vld [vmem:[%s14783_s4 + $0x588] sm:$0xff] }
 0x1c7   : > { %v7691_v21 = vmax.f32 %v7179_v38, 0.0  ;;  %v4260_v49 = vadd.f32 %v4259_v57, %v1884_v39  ;;  %2204 = vmatprep.mubr.f32.mxu1 %v14845_v60  ;;  %4579 = vmatprep.mubr.f32.mxu0 %v14845_v60  ;;  %v12068_v48 = vpop.permute.xlu1 %6383  ;;  %v12072_v14 = vpop.permute.xlu0 %6388 }
 0x1c8   : > { %14873 = vst [vmem:[#allocation39_spill] sm:$0xff] %v12068_v48  ;;  %8202 = vst [vmem:[%s11204_s30 + $0x240] sm:$0xff] %v7690_v30  ;;  %v7180_v12 = vadd.f32 %v11180_v50, %v4258_v56  ;;  %6708 = vperm.xlu0 %9892, %v5746_v25   ;;  %v653_v25 = vld [vmem:[%s14782_s3 + $0x2e0] sm:$0xff]  ;;  %6713 = vperm.xlu1 %9893, %v5747_v4  }
 0x1c9   : > { %8203 = vst [vmem:[%s11204_s30 + $0x248] sm:$0xff] %v7691_v21  ;;  %v7181_v39 = vadd.f32 %v11180_v50, %v4260_v49  ;;  %v1888_v11 = vpop.f32.mrb[76].mxu1  ;;  %v4263_v38 = vpop.f32.mrb[76].mxu0  ;;  %v5748_v50 = vld [vmem:[%s14783_s4 + $0x590] sm:$0xff]  ;;  %v396_v21 = vld [vmem:[%s14781_s2 + $0x2e0] sm:$0xff] }
 0x1ca   : > { %v7692_v31 = vmax.f32 %v7180_v12, 0.0  ;;  %v4264_v57 = vadd.f32 %v4263_v38, %v1888_v11  ;;  %v1890_v48 = vpop.f32.mrb[77].mxu1  ;;  %8878 = vmatmul.mubr.msk.f32.gmra.mrb[182].mxu1 %vm820_vm1, %v652_v24  ;;  %v4265_v3 = vpop.f32.mrb[77].mxu0  ;;  %9136 = vmatmul.mubr.msk.f32.gmra.mrb[182].mxu0 %vm820_vm1, %v395_v20  ;;  %v5749_v11 = vld [vmem:[%s14783_s4 + $0x598] sm:$0xff] }
 0x1cb   : > { %v7693_v30 = vmax.f32 %v7181_v39, 0.0  ;;  %v4266_v56 = vadd.f32 %v4265_v3, %v1890_v48  ;;  %2210 = vmatprep.mubr.f32.mxu1 %v14845_v60  ;;  %4585 = vmatprep.mubr.f32.mxu0 %v14845_v60  ;;  %v12092_v49 = vpop.permute.xlu1 %6393  ;;  %v12096_v20 = vpop.permute.xlu0 %6398 }
 0x1cc   : > { %14874 = vst [vmem:[#allocation40_spill] sm:$0xff] %v12092_v49  ;;  %8204 = vst [vmem:[%s11204_s30 + $0x250] sm:$0xff] %v7692_v31  ;;  %v7182_v24 = vadd.f32 %v11183_v54, %v4264_v57  ;;  %6718 = vperm.xlu0 %9892, %v5748_v50   ;;  %v654_v50 = vld [vmem:[%s14782_s3 + $0x2e8] sm:$0xff]  ;;  %6723 = vperm.xlu1 %9893, %v5749_v11  }
 0x1cd   : > { %8205 = vst [vmem:[%s11204_s30 + $0x258] sm:$0xff] %v7693_v30  ;;  %v7183_v48 = vadd.f32 %v11183_v54, %v4266_v56  ;;  %v1894_v12 = vpop.f32.mrb[78].mxu1  ;;  %v4269_v39 = vpop.f32.mrb[78].mxu0  ;;  %v5750_v54 = vld [vmem:[%s14783_s4 + $0x5a0] sm:$0xff]  ;;  %v397_v30 = vld [vmem:[%s14781_s2 + $0x2e8] sm:$0xff] }
 0x1ce   : > { %v7694_v38 = vmax.f32 %v7182_v24, 0.0  ;;  %v4270_v3 = vadd.f32 %v4269_v39, %v1894_v12  ;;  %v1896_v49 = vpop.f32.mrb[79].mxu1  ;;  %8879 = vmatmul.mubr.msk.f32.gmra.mrb[184].mxu1 %vm820_vm1, %v653_v25  ;;  %v4271_v4 = vpop.f32.mrb[79].mxu0  ;;  %9137 = vmatmul.mubr.msk.f32.gmra.mrb[184].mxu0 %vm820_vm1, %v396_v21  ;;  %v5751_v12 = vld [vmem:[%s14783_s4 + $0x5a8] sm:$0xff] }
 0x1cf   : > { %v7695_v31 = vmax.f32 %v7183_v48, 0.0  ;;  %v4272_v57 = vadd.f32 %v4271_v4, %v1896_v49  ;;  %2216 = vmatprep.mubr.f32.mxu1 %v14845_v60  ;;  %4591 = vmatprep.mubr.f32.mxu0 %v14845_v60  ;;  %v12116_v56 = vpop.permute.xlu1 %6403  ;;  %v12120_v21 = vpop.permute.xlu0 %6408 }
 0x1d0   : > { %14875 = vst [vmem:[#allocation41_spill] sm:$0xff] %v12116_v56  ;;  %8206 = vst [vmem:[%s11204_s30 + $0x260] sm:$0xff] %v7694_v38  ;;  %v7184_v25 = vadd.f32 %v11202_v19, %v4270_v3  ;;  %6728 = vperm.xlu0 %9892, %v5750_v54   ;;  %v655_v54 = vld [vmem:[%s14782_s3 + $0x2f0] sm:$0xff]  ;;  %6733 = vperm.xlu1 %9893, %v5751_v12  }
 0x1d1   : > { %8207 = vst [vmem:[%s11204_s30 + $0x268] sm:$0xff] %v7695_v31  ;;  %v7185_v49 = vadd.f32 %v11202_v19, %v4272_v57  ;;  %v1900_v24 = vpop.f32.mrb[80].mxu1  ;;  %v4275_v48 = vpop.f32.mrb[80].mxu0  ;;  %v5752_v19 = vld [vmem:[%s14783_s4 + $0x5b0] sm:$0xff] }
 0x1d2   : > { %v7696_v39 = vmax.f32 %v7184_v25, 0.0  ;;  %v4276_v4 = vadd.f32 %v4275_v48, %v1900_v24  ;;  %v1902_v56 = vpop.f32.mrb[81].mxu1  ;;  %8880 = vmatmul.mubr.msk.f32.gmra.mrb[186].mxu1 %vm820_vm1, %v654_v50  ;;  %v4277_v11 = vpop.f32.mrb[81].mxu0  ;;  %9138 = vmatmul.mubr.msk.f32.gmra.mrb[186].mxu0 %vm820_vm1, %v397_v30  ;;  %v398_v31 = vld [vmem:[%s14781_s2 + $0x2f0] sm:$0xff]  ;;  %v5753_v24 = vld [vmem:[%s14783_s4 + $0x5b8] sm:$0xff] }
 0x1d3   : > { %v7697_v38 = vmax.f32 %v7185_v49, 0.0  ;;  %v4278_v3 = vadd.f32 %v4277_v11, %v1902_v56  ;;  %2222 = vmatprep.mubr.f32.mxu1 %v14845_v60  ;;  %4597 = vmatprep.mubr.f32.mxu0 %v14845_v60  ;;  %v12140_v57 = vpop.permute.xlu1 %6413  ;;  %v12144_v30 = vpop.permute.xlu0 %6418 }
 0x1d4   : > { %14876 = vst [vmem:[#allocation42_spill] sm:$0xff] %v12140_v57  ;;  %8208 = vst [vmem:[%s11204_s30 + $0x270] sm:$0xff] %v7696_v39  ;;  %v7186_v50 = vadd.f32 %v11208_v27, %v4276_v4  ;;  %6738 = vperm.xlu0 %9892, %v5752_v19   ;;  %v656_v19 = vld [vmem:[%s14782_s3 + $0x2f8] sm:$0xff]  ;;  %6743 = vperm.xlu1 %9893, %v5753_v24  }
 0x1d5   : > { %8209 = vst [vmem:[%s11204_s30 + $0x278] sm:$0xff] %v7697_v38  ;;  %v7187_v56 = vadd.f32 %v11208_v27, %v4278_v3  ;;  %v1906_v25 = vpop.f32.mrb[82].mxu1  ;;  %v4281_v49 = vpop.f32.mrb[82].mxu0  ;;  %v5754_v27 = vld [vmem:[%s14783_s4 + $0x5c0] sm:$0xff]  ;;  %v399_v38 = vld [vmem:[%s14781_s2 + $0x2f8] sm:$0xff] }
 0x1d6   : > { %v7698_v48 = vmax.f32 %v7186_v50, 0.0  ;;  %v4282_v11 = vadd.f32 %v4281_v49, %v1906_v25  ;;  %v1908_v57 = vpop.f32.mrb[83].mxu1  ;;  %8881 = vmatmul.mubr.msk.f32.gmra.mrb[188].mxu1 %vm820_vm1, %v655_v54  ;;  %v4283_v12 = vpop.f32.mrb[83].mxu0  ;;  %9139 = vmatmul.mubr.msk.f32.gmra.mrb[188].mxu0 %vm820_vm1, %v398_v31  ;;  %v5755_v25 = vld [vmem:[%s14783_s4 + $0x5c8] sm:$0xff] }
 0x1d7   : > { %v7699_v39 = vmax.f32 %v7187_v56, 0.0  ;;  %v4284_v4 = vadd.f32 %v4283_v12, %v1908_v57  ;;  %2228 = vmatprep.mubr.f32.mxu1 %v14845_v60  ;;  %4603 = vmatprep.mubr.f32.mxu0 %v14845_v60  ;;  %v12164_v3 = vpop.permute.xlu1 %6423  ;;  %v12168_v31 = vpop.permute.xlu0 %6428 }
 0x1d8   : > { %14877 = vst [vmem:[#allocation43_spill] sm:$0xff] %v12164_v3  ;;  %8210 = vst [vmem:[%s11204_s30 + $0x280] sm:$0xff] %v7698_v48  ;;  %v7188_v54 = vadd.f32 %v11228_v62, %v4282_v11  ;;  %6748 = vperm.xlu0 %9892, %v5754_v27   ;;  %v657_v27 = vld [vmem:[%s14782_s3 + $0x300] sm:$0xff]  ;;  %6753 = vperm.xlu1 %9893, %v5755_v25  }
 0x1d9   : > { %8211 = vst [vmem:[%s11204_s30 + $0x288] sm:$0xff] %v7699_v39  ;;  %v7189_v57 = vadd.f32 %v11228_v62, %v4284_v4  ;;  %v1912_v50 = vpop.f32.mrb[84].mxu1  ;;  %v4287_v56 = vpop.f32.mrb[84].mxu0  ;;  %v5756_v62 = vld [vmem:[%s14783_s4 + $0x5d0] sm:$0xff]  ;;  %v400_v39 = vld [vmem:[%s14781_s2 + $0x300] sm:$0xff] }
 0x1da   : > { %v7700_v49 = vmax.f32 %v7188_v54, 0.0  ;;  %v4288_v12 = vadd.f32 %v4287_v56, %v1912_v50  ;;  %v1914_v3 = vpop.f32.mrb[85].mxu1  ;;  %8882 = vmatmul.mubr.msk.f32.gmra.mrb[190].mxu1 %vm820_vm1, %v656_v19  ;;  %v4289_v24 = vpop.f32.mrb[85].mxu0  ;;  %9140 = vmatmul.mubr.msk.f32.gmra.mrb[190].mxu0 %vm820_vm1, %v399_v38  ;;  %v5757_v50 = vld [vmem:[%s14783_s4 + $0x5d8] sm:$0xff] }
 0x1db   : > { %v7701_v48 = vmax.f32 %v7189_v57, 0.0  ;;  %v4290_v11 = vadd.f32 %v4289_v24, %v1914_v3  ;;  %2234 = vmatprep.mubr.f32.mxu1 %v14845_v60  ;;  %4609 = vmatprep.mubr.f32.mxu0 %v14845_v60  ;;  %v12188_v4 = vpop.permute.xlu1 %6433  ;;  %v12192_v38 = vpop.permute.xlu0 %6438 }
 0x1dc   : > { %8212 = vst [vmem:[%s11204_s30 + $0x290] sm:$0xff] %v7700_v49  ;;  %v7190_v19 = vadd.f32 %v11232_v5, %v4288_v12  ;;  %6758 = vperm.xlu0 %9892, %v5756_v62   ;;  %v658_v62 = vld [vmem:[%s14782_s3 + $0x308] sm:$0xff]  ;;  %6763 = vperm.xlu1 %9893, %v5757_v50  }
 0x1dd   : > { %8213 = vst [vmem:[%s11204_s30 + $0x298] sm:$0xff] %v7701_v48  ;;  %v7191_v3 = vadd.f32 %v11232_v5, %v4290_v11  ;;  %v1918_v54 = vpop.f32.mrb[86].mxu1  ;;  %v4293_v57 = vpop.f32.mrb[86].mxu0  ;;  %v5758_v5 = vld [vmem:[%s14783_s4 + $0x5e0] sm:$0xff]  ;;  %v401_v11 = vld [vmem:[%s14781_s2 + $0x308] sm:$0xff] }
 0x1de   : > { %v7702_v56 = vmax.f32 %v7190_v19, 0.0  ;;  %v4294_v24 = vadd.f32 %v4293_v57, %v1918_v54  ;;  %v1920_v49 = vpop.f32.mrb[87].mxu1  ;;  %8883 = vmatmul.mubr.msk.f32.gmra.mrb[192].mxu1 %vm820_vm1, %v657_v27  ;;  %v4295_v25 = vpop.f32.mrb[87].mxu0  ;;  %9141 = vmatmul.mubr.msk.f32.gmra.mrb[192].mxu0 %vm820_vm1, %v400_v39  ;;  %v5759_v57 = vld [vmem:[%s14783_s4 + $0x5e8] sm:$0xff] }
 0x1df   : > { %v7703_v12 = vmax.f32 %v7191_v3, 0.0  ;;  %v4296_v48 = vadd.f32 %v4295_v25, %v1920_v49  ;;  %2240 = vmatprep.mubr.f32.mxu1 %v14845_v60  ;;  %4615 = vmatprep.mubr.f32.mxu0 %v14845_v60  ;;  %v12214_v39 = vpop.permute.xlu1 %6443 }
 0x1e0   : > { %8214 = vst [vmem:[%s11204_s30 + $0x2a0] sm:$0xff] %v7702_v56  ;;  %v7192_v27 = vadd.f32 %v11252_v42, %v4294_v24  ;;  %6768 = vperm.xlu0 %9892, %v5758_v5   ;;  %v659_v5 = vld [vmem:[%s14782_s3 + $0x310] sm:$0xff]  ;;  %6773 = vperm.xlu1 %9893, %v5759_v57  }
 0x1e1   : > { %8215 = vst [vmem:[%s11204_s30 + $0x2a8] sm:$0xff] %v7703_v12  ;;  %v7193_v19 = vadd.f32 %v11252_v42, %v4296_v48  ;;  %v1924_v3 = vpop.f32.mrb[88].mxu1  ;;  %v4299_v54 = vpop.f32.mrb[88].mxu0  ;;  %v5760_v42 = vld [vmem:[%s14783_s4 + $0x5f0] sm:$0xff] }
 0x1e2   : > { %v7704_v49 = vmax.f32 %v7192_v27, 0.0  ;;  %v4300_v25 = vadd.f32 %v4299_v54, %v1924_v3  ;;  %v1926_v56 = vpop.f32.mrb[89].mxu1  ;;  %8884 = vmatmul.mubr.msk.f32.gmra.mrb[194].mxu1 %vm820_vm1, %v658_v62  ;;  %v4301_v24 = vpop.f32.mrb[89].mxu0  ;;  %9142 = vmatmul.mubr.msk.f32.gmra.mrb[194].mxu0 %vm820_vm1, %v401_v11  ;;  %v402_v48 = vld [vmem:[%s14781_s2 + $0x310] sm:$0xff]  ;;  %v5761_v54 = vld [vmem:[%s14783_s4 + $0x5f8] sm:$0xff] }
 0x1e3   : > { %v7705_v50 = vmax.f32 %v7193_v19, 0.0  ;;  %v4302_v12 = vadd.f32 %v4301_v24, %v1926_v56  ;;  %2246 = vmatprep.mubr.f32.mxu1 %v14845_v60  ;;  %4621 = vmatprep.mubr.f32.mxu0 %v14845_v60  ;;  %v12236_v11 = vpop.permute.xlu0 %6448 }
 0x1e4   : > { %8216 = vst [vmem:[%s11204_s30 + $0x2b0] sm:$0xff] %v7704_v49  ;;  %v7194_v62 = vadd.f32 %v11256_v44, %v4300_v25  ;;  %6778 = vperm.xlu0 %9892, %v5760_v42   ;;  %v660_v42 = vld [vmem:[%s14782_s3 + $0x318] sm:$0xff]  ;;  %6783 = vperm.xlu1 %9893, %v5761_v54  }
 0x1e5   : > { %8217 = vst [vmem:[%s11204_s30 + $0x2b8] sm:$0xff] %v7705_v50  ;;  %v7195_v27 = vadd.f32 %v11256_v44, %v4302_v12  ;;  %v1930_v19 = vpop.f32.mrb[90].mxu1  ;;  %v4305_v3 = vpop.f32.mrb[90].mxu0  ;;  %v5762_v44 = vld [vmem:[%s14783_s4 + $0x600] sm:$0xff]  ;;  %v403_v12 = vld [vmem:[%s14781_s2 + $0x318] sm:$0xff] }
 0x1e6   : > { %v7706_v56 = vmax.f32 %v7194_v62, 0.0  ;;  %v4306_v24 = vadd.f32 %v4305_v3, %v1930_v19  ;;  %v1932_v49 = vpop.f32.mrb[91].mxu1  ;;  %8885 = vmatmul.mubr.msk.f32.gmra.mrb[196].mxu1 %vm820_vm1, %v659_v5  ;;  %v4307_v25 = vpop.f32.mrb[91].mxu0  ;;  %9143 = vmatmul.mubr.msk.f32.gmra.mrb[196].mxu0 %vm820_vm1, %v402_v48  ;;  %v5763_v3 = vld [vmem:[%s14783_s4 + $0x608] sm:$0xff] }
 0x1e7   : > { %v7707_v57 = vmax.f32 %v7195_v27, 0.0  ;;  %v4308_v50 = vadd.f32 %v4307_v25, %v1932_v49  ;;  %2252 = vmatprep.mubr.f32.mxu1 %v14845_v60  ;;  %4627 = vmatprep.mubr.f32.mxu0 %v14845_v60  ;;  %v12258_v48 = vpop.permute.xlu1 %6453 }
 0x1e8   : > { %8218 = vst [vmem:[%s11204_s30 + $0x2c0] sm:$0xff] %v7706_v56  ;;  %v7196_v5 = vadd.f32 %v11276_v16, %v4306_v24  ;;  %6788 = vperm.xlu0 %9892, %v5762_v44   ;;  %v661_v44 = vld [vmem:[%s14782_s3 + $0x320] sm:$0xff]  ;;  %6793 = vperm.xlu1 %9893, %v5763_v3  }
 0x1e9   : > { %8219 = vst [vmem:[%s11204_s30 + $0x2c8] sm:$0xff] %v7707_v57  ;;  %v7197_v62 = vadd.f32 %v11276_v16, %v4308_v50  ;;  %v1936_v27 = vpop.f32.mrb[92].mxu1  ;;  %v4311_v19 = vpop.f32.mrb[92].mxu0  ;;  %v5764_v16 = vld [vmem:[%s14783_s4 + $0x610] sm:$0xff]  ;;  %v404_v50 = vld [vmem:[%s14781_s2 + $0x320] sm:$0xff] }
 0x1ea   : > { %v7708_v49 = vmax.f32 %v7196_v5, 0.0  ;;  %v4312_v25 = vadd.f32 %v4311_v19, %v1936_v27  ;;  %v1938_v56 = vpop.f32.mrb[93].mxu1  ;;  %8886 = vmatmul.mubr.msk.f32.gmra.mrb[198].mxu1 %vm820_vm1, %v660_v42  ;;  %v4313_v24 = vpop.f32.mrb[93].mxu0  ;;  %9144 = vmatmul.mubr.msk.f32.gmra.mrb[198].mxu0 %vm820_vm1, %v403_v12  ;;  %v5765_v19 = vld [vmem:[%s14783_s4 + $0x618] sm:$0xff] }
 0x1eb   : > { %v7709_v54 = vmax.f32 %v7197_v62, 0.0  ;;  %v4314_v57 = vadd.f32 %v4313_v24, %v1938_v56  ;;  %2258 = vmatprep.mubr.f32.mxu1 %v14845_v60  ;;  %4633 = vmatprep.mubr.f32.mxu0 %v14845_v60  ;;  %v12280_v12 = vpop.permute.xlu0 %6458 }
 0x1ec   : > { %8220 = vst [vmem:[%s11204_s30 + $0x2d0] sm:$0xff] %v7708_v49  ;;  %v7198_v42 = vadd.f32 %v11280_v26, %v4312_v25  ;;  %6798 = vperm.xlu0 %9892, %v5764_v16   ;;  %v662_v16 = vld [vmem:[%s14782_s3 + $0x328] sm:$0xff]  ;;  %6803 = vperm.xlu1 %9893, %v5765_v19  }
 0x1ed   : > { %8221 = vst [vmem:[%s11204_s30 + $0x2d8] sm:$0xff] %v7709_v54  ;;  %v7199_v5 = vadd.f32 %v11280_v26, %v4314_v57  ;;  %v1942_v62 = vpop.f32.mrb[94].mxu1  ;;  %v4317_v27 = vpop.f32.mrb[94].mxu0  ;;  %v5766_v26 = vld [vmem:[%s14783_s4 + $0x620] sm:$0xff]  ;;  %v405_v57 = vld [vmem:[%s14781_s2 + $0x328] sm:$0xff] }
 0x1ee   : > { %v7710_v56 = vmax.f32 %v7198_v42, 0.0  ;;  %v4318_v24 = vadd.f32 %v4317_v27, %v1942_v62  ;;  %v1944_v49 = vpop.f32.mrb[95].mxu1  ;;  %8887 = vmatmul.mubr.msk.f32.gmra.mrb[200].mxu1 %vm820_vm1, %v661_v44  ;;  %v4319_v25 = vpop.f32.mrb[95].mxu0  ;;  %9145 = vmatmul.mubr.msk.f32.gmra.mrb[200].mxu0 %vm820_vm1, %v404_v50  ;;  %v5767_v27 = vld [vmem:[%s14783_s4 + $0x628] sm:$0xff] }
 0x1ef   : > { %v7711_v3 = vmax.f32 %v7199_v5, 0.0  ;;  %v4320_v54 = vadd.f32 %v4319_v25, %v1944_v49  ;;  %2264 = vmatprep.mubr.f32.mxu1 %v14845_v60  ;;  %4639 = vmatprep.mubr.f32.mxu0 %v14845_v60  ;;  %v12302_v50 = vpop.permute.xlu1 %6463 }
 0x1f0   : > { %8222 = vst [vmem:[%s11204_s30 + $0x2e0] sm:$0xff] %v7710_v56  ;;  %v7200_v44 = vadd.f32 %v11300_v63, %v4318_v24  ;;  %6808 = vperm.xlu0 %9892, %v5766_v26   ;;  %v663_v26 = vld [vmem:[%s14782_s3 + $0x330] sm:$0xff]  ;;  %6813 = vperm.xlu1 %9893, %v5767_v27  }
 0x1f1   : > { %8223 = vst [vmem:[%s11204_s30 + $0x2e8] sm:$0xff] %v7711_v3  ;;  %v7201_v42 = vadd.f32 %v11300_v63, %v4320_v54  ;;  %v1948_v5 = vpop.f32.mrb[96].mxu1  ;;  %v4323_v62 = vpop.f32.mrb[96].mxu0  ;;  %v5768_v63 = vld [vmem:[%s14783_s4 + $0x630] sm:$0xff] }
 0x1f2   : > { %v7712_v49 = vmax.f32 %v7200_v44, 0.0  ;;  %v4324_v25 = vadd.f32 %v4323_v62, %v1948_v5  ;;  %v1950_v56 = vpop.f32.mrb[97].mxu1  ;;  %8888 = vmatmul.mubr.msk.f32.gmra.mrb[202].mxu1 %vm820_vm1, %v662_v16  ;;  %v4325_v24 = vpop.f32.mrb[97].mxu0  ;;  %9146 = vmatmul.mubr.msk.f32.gmra.mrb[202].mxu0 %vm820_vm1, %v405_v57  ;;  %v406_v54 = vld [vmem:[%s14781_s2 + $0x330] sm:$0xff]  ;;  %v5769_v62 = vld [vmem:[%s14783_s4 + $0x638] sm:$0xff] }
 0x1f3   : > { %v7713_v19 = vmax.f32 %v7201_v42, 0.0  ;;  %v4326_v3 = vadd.f32 %v4325_v24, %v1950_v56  ;;  %2270 = vmatprep.mubr.f32.mxu1 %v14845_v60  ;;  %4645 = vmatprep.mubr.f32.mxu0 %v14845_v60  ;;  %v12324_v57 = vpop.permute.xlu0 %6468 }
 0x1f4   : > { %8224 = vst [vmem:[%s11204_s30 + $0x2f0] sm:$0xff] %v7712_v49  ;;  %v7202_v16 = vadd.f32 %v11304_v28, %v4324_v25  ;;  %6818 = vperm.xlu0 %9892, %v5768_v63   ;;  %v664_v63 = vld [vmem:[%s14782_s3 + $0x338] sm:$0xff]  ;;  %6823 = vperm.xlu1 %9893, %v5769_v62  }
 0x1f5   : > { %8225 = vst [vmem:[%s11204_s30 + $0x2f8] sm:$0xff] %v7713_v19  ;;  %v7203_v44 = vadd.f32 %v11304_v28, %v4326_v3  ;;  %v1954_v42 = vpop.f32.mrb[98].mxu1  ;;  %v4329_v5 = vpop.f32.mrb[98].mxu0  ;;  %v5770_v28 = vld [vmem:[%s14783_s4 + $0x640] sm:$0xff]  ;;  %v407_v3 = vld [vmem:[%s14781_s2 + $0x338] sm:$0xff] }
 0x1f6   : > { %v7714_v56 = vmax.f32 %v7202_v16, 0.0  ;;  %v4330_v24 = vadd.f32 %v4329_v5, %v1954_v42  ;;  %v1956_v49 = vpop.f32.mrb[99].mxu1  ;;  %8889 = vmatmul.mubr.msk.f32.gmra.mrb[204].mxu1 %vm820_vm1, %v663_v26  ;;  %v4331_v25 = vpop.f32.mrb[99].mxu0  ;;  %9147 = vmatmul.mubr.msk.f32.gmra.mrb[204].mxu0 %vm820_vm1, %v406_v54  ;;  %v5771_v5 = vld [vmem:[%s14783_s4 + $0x648] sm:$0xff] }
 0x1f7   : > { %v7715_v27 = vmax.f32 %v7203_v44, 0.0  ;;  %v4332_v19 = vadd.f32 %v4331_v25, %v1956_v49  ;;  %2276 = vmatprep.mubr.f32.mxu1 %v14845_v60  ;;  %4651 = vmatprep.mubr.f32.mxu0 %v14845_v60  ;;  %v12346_v54 = vpop.permute.xlu1 %6473 }
 0x1f8   : > { %8226 = vst [vmem:[%s11204_s30 + $0x300] sm:$0xff] %v7714_v56  ;;  %v7204_v26 = vadd.f32 %v11324_v23, %v4330_v24  ;;  %6828 = vperm.xlu0 %9892, %v5770_v28   ;;  %v665_v28 = vld [vmem:[%s14782_s3 + $0x340] sm:$0xff]  ;;  %6833 = vperm.xlu1 %9893, %v5771_v5  }
 0x1f9   : > { %8227 = vst [vmem:[%s11204_s30 + $0x308] sm:$0xff] %v7715_v27  ;;  %v7205_v16 = vadd.f32 %v11324_v23, %v4332_v19  ;;  %v1960_v44 = vpop.f32.mrb[100].mxu1  ;;  %v4335_v42 = vpop.f32.mrb[100].mxu0  ;;  %v5772_v23 = vld [vmem:[%s14783_s4 + $0x650] sm:$0xff]  ;;  %v408_v19 = vld [vmem:[%s14781_s2 + $0x340] sm:$0xff] }
 0x1fa   : > { %v7716_v49 = vmax.f32 %v7204_v26, 0.0  ;;  %v4336_v25 = vadd.f32 %v4335_v42, %v1960_v44  ;;  %v1962_v56 = vpop.f32.mrb[101].mxu1  ;;  %8890 = vmatmul.mubr.msk.f32.gmra.mrb[206].mxu1 %vm820_vm1, %v664_v63  ;;  %v4337_v24 = vpop.f32.mrb[101].mxu0  ;;  %9148 = vmatmul.mubr.msk.f32.gmra.mrb[206].mxu0 %vm820_vm1, %v407_v3  ;;  %v5773_v42 = vld [vmem:[%s14783_s4 + $0x658] sm:$0xff] }
 0x1fb   : > { %v7717_v62 = vmax.f32 %v7205_v16, 0.0  ;;  %v4338_v27 = vadd.f32 %v4337_v24, %v1962_v56  ;;  %2282 = vmatprep.mubr.f32.mxu1 %v14845_v60  ;;  %4657 = vmatprep.mubr.f32.mxu0 %v14845_v60  ;;  %v12368_v3 = vpop.permute.xlu0 %6478 }
 0x1fc   : > { %8228 = vst [vmem:[%s11204_s30 + $0x310] sm:$0xff] %v7716_v49  ;;  %v7206_v63 = vadd.f32 %v11328_v51, %v4336_v25  ;;  %6838 = vperm.xlu0 %9892, %v5772_v23   ;;  %v666_v23 = vld [vmem:[%s14782_s3 + $0x348] sm:$0xff]  ;;  %6843 = vperm.xlu1 %9893, %v5773_v42  }
 0x1fd   : > { %8229 = vst [vmem:[%s11204_s30 + $0x318] sm:$0xff] %v7717_v62  ;;  %v7207_v26 = vadd.f32 %v11328_v51, %v4338_v27  ;;  %v1966_v16 = vpop.f32.mrb[102].mxu1  ;;  %v4341_v44 = vpop.f32.mrb[102].mxu0  ;;  %v5774_v51 = vld [vmem:[%s14783_s4 + $0x660] sm:$0xff]  ;;  %v409_v27 = vld [vmem:[%s14781_s2 + $0x348] sm:$0xff] }
 0x1fe   : > { %v7718_v56 = vmax.f32 %v7206_v63, 0.0  ;;  %v4342_v24 = vadd.f32 %v4341_v44, %v1966_v16  ;;  %v1968_v49 = vpop.f32.mrb[103].mxu1  ;;  %8891 = vmatmul.mubr.msk.f32.gmra.mrb[208].mxu1 %vm820_vm1, %v665_v28  ;;  %v4343_v25 = vpop.f32.mrb[103].mxu0  ;;  %9149 = vmatmul.mubr.msk.f32.gmra.mrb[208].mxu0 %vm820_vm1, %v408_v19  ;;  %v5775_v44 = vld [vmem:[%s14783_s4 + $0x668] sm:$0xff] }
 0x1ff   : > { %v7719_v5 = vmax.f32 %v7207_v26, 0.0  ;;  %v4344_v62 = vadd.f32 %v4343_v25, %v1968_v49  ;;  %2288 = vmatprep.mubr.f32.mxu1 %v14845_v60  ;;  %4663 = vmatprep.mubr.f32.mxu0 %v14845_v60  ;;  %v12390_v19 = vpop.permute.xlu1 %6483 }
 0x200   : > { %8230 = vst [vmem:[%s11204_s30 + $0x320] sm:$0xff] %v7718_v56  ;;  %v7208_v28 = vadd.f32 %v11348_v34, %v4342_v24  ;;  %6848 = vperm.xlu0 %9892, %v5774_v51   ;;  %v667_v51 = vld [vmem:[%s14782_s3 + $0x350] sm:$0xff]  ;;  %6853 = vperm.xlu1 %9893, %v5775_v44  }
 0x201   : > { %8231 = vst [vmem:[%s11204_s30 + $0x328] sm:$0xff] %v7719_v5  ;;  %v7209_v63 = vadd.f32 %v11348_v34, %v4344_v62  ;;  %v1972_v26 = vpop.f32.mrb[104].mxu1  ;;  %v4347_v16 = vpop.f32.mrb[104].mxu0  ;;  %v5776_v34 = vld [vmem:[%s14783_s4 + $0x670] sm:$0xff] }
 0x202   : > { %v7720_v49 = vmax.f32 %v7208_v28, 0.0  ;;  %v4348_v25 = vadd.f32 %v4347_v16, %v1972_v26  ;;  %v1974_v56 = vpop.f32.mrb[105].mxu1  ;;  %8892 = vmatmul.mubr.msk.f32.gmra.mrb[210].mxu1 %vm820_vm1, %v666_v23  ;;  %v4349_v24 = vpop.f32.mrb[105].mxu0  ;;  %9150 = vmatmul.mubr.msk.f32.gmra.mrb[210].mxu0 %vm820_vm1, %v409_v27  ;;  %v410_v62 = vld [vmem:[%s14781_s2 + $0x350] sm:$0xff]  ;;  %v5777_v16 = vld [vmem:[%s14783_s4 + $0x678] sm:$0xff] }
 0x203   : > { %v7721_v42 = vmax.f32 %v7209_v63, 0.0  ;;  %v4350_v5 = vadd.f32 %v4349_v24, %v1974_v56  ;;  %2294 = vmatprep.mubr.f32.mxu1 %v14845_v60  ;;  %4669 = vmatprep.mubr.f32.mxu0 %v14845_v60  ;;  %v12412_v27 = vpop.permute.xlu0 %6488 }
 0x204   : > { %8232 = vst [vmem:[%s11204_s30 + $0x330] sm:$0xff] %v7720_v49  ;;  %v7210_v23 = vadd.f32 %v11352_v37, %v4348_v25  ;;  %6858 = vperm.xlu0 %9892, %v5776_v34   ;;  %v668_v34 = vld [vmem:[%s14782_s3 + $0x358] sm:$0xff]  ;;  %6863 = vperm.xlu1 %9893, %v5777_v16  }
 0x205   : > { %8233 = vst [vmem:[%s11204_s30 + $0x338] sm:$0xff] %v7721_v42  ;;  %v7211_v28 = vadd.f32 %v11352_v37, %v4350_v5  ;;  %v1978_v63 = vpop.f32.mrb[106].mxu1  ;;  %v4353_v26 = vpop.f32.mrb[106].mxu0  ;;  %v5778_v37 = vld [vmem:[%s14783_s4 + $0x680] sm:$0xff]  ;;  %v411_v5 = vld [vmem:[%s14781_s2 + $0x358] sm:$0xff] }
 0x206   : > { %v7722_v56 = vmax.f32 %v7210_v23, 0.0  ;;  %v4354_v24 = vadd.f32 %v4353_v26, %v1978_v63  ;;  %v1980_v49 = vpop.f32.mrb[107].mxu1  ;;  %8893 = vmatmul.mubr.msk.f32.gmra.mrb[212].mxu1 %vm820_vm1, %v667_v51  ;;  %v4355_v25 = vpop.f32.mrb[107].mxu0  ;;  %9151 = vmatmul.mubr.msk.f32.gmra.mrb[212].mxu0 %vm820_vm1, %v410_v62  ;;  %v5779_v26 = vld [vmem:[%s14783_s4 + $0x688] sm:$0xff] }
 0x207   : > { %v7723_v44 = vmax.f32 %v7211_v28, 0.0  ;;  %v4356_v42 = vadd.f32 %v4355_v25, %v1980_v49  ;;  %2300 = vmatprep.mubr.f32.mxu1 %v14845_v60  ;;  %4675 = vmatprep.mubr.f32.mxu0 %v14845_v60  ;;  %v12434_v62 = vpop.permute.xlu1 %6493 }
 0x208   : > { %8234 = vst [vmem:[%s11204_s30 + $0x340] sm:$0xff] %v7722_v56  ;;  %v7212_v51 = vadd.f32 %v11372_v18, %v4354_v24  ;;  %6868 = vperm.xlu0 %9892, %v5778_v37   ;;  %v669_v37 = vld [vmem:[%s14782_s3 + $0x360] sm:$0xff]  ;;  %6873 = vperm.xlu1 %9893, %v5779_v26  }
 0x209   : > { %8235 = vst [vmem:[%s11204_s30 + $0x348] sm:$0xff] %v7723_v44  ;;  %v7213_v23 = vadd.f32 %v11372_v18, %v4356_v42  ;;  %v1984_v28 = vpop.f32.mrb[108].mxu1  ;;  %v4359_v63 = vpop.f32.mrb[108].mxu0  ;;  %v5780_v18 = vld [vmem:[%s14783_s4 + $0x690] sm:$0xff]  ;;  %v412_v42 = vld [vmem:[%s14781_s2 + $0x360] sm:$0xff] }
 0x20a   : > { %v7724_v49 = vmax.f32 %v7212_v51, 0.0  ;;  %v4360_v25 = vadd.f32 %v4359_v63, %v1984_v28  ;;  %v1986_v56 = vpop.f32.mrb[109].mxu1  ;;  %8894 = vmatmul.mubr.msk.f32.gmra.mrb[214].mxu1 %vm820_vm1, %v668_v34  ;;  %v4361_v24 = vpop.f32.mrb[109].mxu0  ;;  %9152 = vmatmul.mubr.msk.f32.gmra.mrb[214].mxu0 %vm820_vm1, %v411_v5  ;;  %v5781_v63 = vld [vmem:[%s14783_s4 + $0x698] sm:$0xff] }
 0x20b   : > { %v7725_v16 = vmax.f32 %v7213_v23, 0.0  ;;  %v4362_v44 = vadd.f32 %v4361_v24, %v1986_v56  ;;  %2306 = vmatprep.mubr.f32.mxu1 %v14845_v60  ;;  %4681 = vmatprep.mubr.f32.mxu0 %v14845_v60  ;;  %v12456_v5 = vpop.permute.xlu0 %6498 }
 0x20c   : > { %8236 = vst [vmem:[%s11204_s30 + $0x350] sm:$0xff] %v7724_v49  ;;  %v7214_v34 = vadd.f32 %v11376_v32, %v4360_v25  ;;  %6878 = vperm.xlu0 %9892, %v5780_v18   ;;  %v670_v18 = vld [vmem:[%s14782_s3 + $0x368] sm:$0xff]  ;;  %6883 = vperm.xlu1 %9893, %v5781_v63  }
 0x20d   : > { %8237 = vst [vmem:[%s11204_s30 + $0x358] sm:$0xff] %v7725_v16  ;;  %v7215_v51 = vadd.f32 %v11376_v32, %v4362_v44  ;;  %v1990_v23 = vpop.f32.mrb[110].mxu1  ;;  %v4365_v28 = vpop.f32.mrb[110].mxu0  ;;  %v5782_v32 = vld [vmem:[%s14783_s4 + $0x6a0] sm:$0xff]  ;;  %v413_v44 = vld [vmem:[%s14781_s2 + $0x368] sm:$0xff] }
 0x20e   : > { %v7726_v56 = vmax.f32 %v7214_v34, 0.0  ;;  %v4366_v24 = vadd.f32 %v4365_v28, %v1990_v23  ;;  %v1992_v49 = vpop.f32.mrb[111].mxu1  ;;  %8895 = vmatmul.mubr.msk.f32.gmra.mrb[216].mxu1 %vm820_vm1, %v669_v37  ;;  %v4367_v25 = vpop.f32.mrb[111].mxu0  ;;  %9153 = vmatmul.mubr.msk.f32.gmra.mrb[216].mxu0 %vm820_vm1, %v412_v42  ;;  %v5783_v28 = vld [vmem:[%s14783_s4 + $0x6a8] sm:$0xff] }
 0x20f   : > { %v7727_v26 = vmax.f32 %v7215_v51, 0.0  ;;  %v4368_v16 = vadd.f32 %v4367_v25, %v1992_v49  ;;  %2312 = vmatprep.mubr.f32.mxu1 %v14845_v60  ;;  %4687 = vmatprep.mubr.f32.mxu0 %v14845_v60  ;;  %v12478_v42 = vpop.permute.xlu1 %6503 }
 0x210   : > { %8238 = vst [vmem:[%s11204_s30 + $0x360] sm:$0xff] %v7726_v56  ;;  %v7216_v37 = vadd.f32 %v11396_v10, %v4366_v24  ;;  %14878 = vst [vmem:[#allocation44_spill] sm:$0xff] %v12478_v42  ;;  %6888 = vperm.xlu0 %9892, %v5782_v32   ;;  %v671_v32 = vld [vmem:[%s14782_s3 + $0x370] sm:$0xff]  ;;  %6893 = vperm.xlu1 %9893, %v5783_v28   ;;  %v5786_v28 = vld [vmem:[%s14783_s4 + $0x6c0] sm:$0xff] }
 0x211   : > { %8239 = vst [vmem:[%s11204_s30 + $0x368] sm:$0xff] %v7727_v26  ;;  %v7217_v34 = vadd.f32 %v11396_v10, %v4368_v16  ;;  %v1996_v51 = vpop.f32.mrb[112].mxu1  ;;  %v4371_v23 = vpop.f32.mrb[112].mxu0  ;;  %v5784_v10 = vld [vmem:[%s14783_s4 + $0x6b0] sm:$0xff] }
 0x212   : > { %v7728_v49 = vmax.f32 %v7216_v37, 0.0  ;;  %v4372_v25 = vadd.f32 %v4371_v23, %v1996_v51  ;;  %v1998_v56 = vpop.f32.mrb[113].mxu1  ;;  %8896 = vmatmul.mubr.msk.f32.gmra.mrb[218].mxu1 %vm820_vm1, %v670_v18  ;;  %v4373_v24 = vpop.f32.mrb[113].mxu0  ;;  %9154 = vmatmul.mubr.msk.f32.gmra.mrb[218].mxu0 %vm820_vm1, %v413_v44  ;;  %v414_v16 = vld [vmem:[%s14781_s2 + $0x370] sm:$0xff]  ;;  %v14879_v18 = vld [vmem:[#allocation11_spill] sm:$0xff] }
 0x213   : > { %v7729_v63 = vmax.f32 %v7217_v34, 0.0  ;;  %v4374_v26 = vadd.f32 %v4373_v24, %v1998_v56  ;;  %2318 = vmatprep.mubr.f32.mxu1 %v14845_v60  ;;  %4693 = vmatprep.mubr.f32.mxu0 %v14845_v60  ;;  %v12500_v37 = vpop.permute.xlu0 %6508  ;;  %v5785_v56 = vld [vmem:[%s14783_s4 + $0x6b8] sm:$0xff] }
 0x214   : > { %8240 = vst [vmem:[%s11204_s30 + $0x370] sm:$0xff] %v7728_v49  ;;  %v7218_v44 = vadd.f32 %v14879_v18, %v4372_v25  ;;  %14880 = vst [vmem:[#allocation11_spill] sm:$0xff] %v12500_v37  ;;  %6898 = vperm.xlu0 %9892, %v5784_v10   ;;  %v672_v10 = vld [vmem:[%s14782_s3 + $0x378] sm:$0xff]  ;;  %6903 = vperm.xlu1 %9893, %v5785_v56   ;;  %v5788_v56 = vld [vmem:[%s14783_s4 + $0x6d0] sm:$0xff] }
 0x215   : > { %8241 = vst [vmem:[%s11204_s30 + $0x378] sm:$0xff] %v7729_v63  ;;  %v7219_v34 = vadd.f32 %v14879_v18, %v4374_v26  ;;  %v2002_v51 = vpop.f32.mrb[114].mxu1  ;;  %v4377_v23 = vpop.f32.mrb[114].mxu0 }
 0x216   : > { %v7730_v24 = vmax.f32 %v7218_v44, 0.0  ;;  %v4378_v42 = vadd.f32 %v4377_v23, %v2002_v51  ;;  %v2004_v49 = vpop.f32.mrb[115].mxu1  ;;  %8897 = vmatmul.mubr.msk.f32.gmra.mrb[220].mxu1 %vm820_vm1, %v671_v32  ;;  %v4379_v25 = vpop.f32.mrb[115].mxu0  ;;  %9155 = vmatmul.mubr.msk.f32.gmra.mrb[220].mxu0 %vm820_vm1, %v414_v16  ;;  %v415_v32 = vld [vmem:[%s14781_s2 + $0x378] sm:$0xff]  ;;  %v14881_v16 = vld [vmem:[#allocation12_spill] sm:$0xff] }
 0x217   : > { %v7731_v63 = vmax.f32 %v7219_v34, 0.0  ;;  %v4380_v26 = vadd.f32 %v4379_v25, %v2004_v49  ;;  %2324 = vmatprep.mubr.f32.mxu1 %v14845_v60  ;;  %4699 = vmatprep.mubr.f32.mxu0 %v14845_v60  ;;  %v12522_v44 = vpop.permute.xlu1 %6513  ;;  %v5787_v49 = vld [vmem:[%s14783_s4 + $0x6c8] sm:$0xff] }
 0x218   : > { %8242 = vst [vmem:[%s11204_s30 + $0x380] sm:$0xff] %v7730_v24  ;;  %v7220_v18 = vadd.f32 %v14881_v16, %v4378_v42  ;;  %6908 = vperm.xlu0 %9892, %v5786_v28   ;;  %v673_v28 = vld [vmem:[%s14782_s3 + $0x380] sm:$0xff]  ;;  %6913 = vperm.xlu1 %9893, %v5787_v49  }
 0x219   : > { %8243 = vst [vmem:[%s11204_s30 + $0x388] sm:$0xff] %v7731_v63  ;;  %v7221_v34 = vadd.f32 %v14881_v16, %v4380_v26  ;;  %v2008_v51 = vpop.f32.mrb[116].mxu1  ;;  %v4383_v23 = vpop.f32.mrb[116].mxu0 }
 0x21a   : > { %v7732_v25 = vmax.f32 %v7220_v18, 0.0  ;;  %v4384_v37 = vadd.f32 %v4383_v23, %v2008_v51  ;;  %v2010_v24 = vpop.f32.mrb[117].mxu1  ;;  %8898 = vmatmul.mubr.msk.f32.gmra.mrb[222].mxu1 %vm820_vm1, %v672_v10  ;;  %v4385_v42 = vpop.f32.mrb[117].mxu0  ;;  %9156 = vmatmul.mubr.msk.f32.gmra.mrb[222].mxu0 %vm820_vm1, %v415_v32  ;;  %v416_v10 = vld [vmem:[%s14781_s2 + $0x380] sm:$0xff]  ;;  %v5789_v23 = vld [vmem:[%s14783_s4 + $0x6d8] sm:$0xff] }
 0x21b   : > { %v7733_v63 = vmax.f32 %v7221_v34, 0.0  ;;  %v4386_v26 = vadd.f32 %v4385_v42, %v2010_v24  ;;  %2330 = vmatprep.mubr.f32.mxu1 %v14845_v60  ;;  %4705 = vmatprep.mubr.f32.mxu0 %v14845_v60  ;;  %v12544_v16 = vpop.permute.xlu0 %6518 }
 0x21c   : > { %8244 = vst [vmem:[%s11204_s30 + $0x390] sm:$0xff] %v7732_v25  ;;  %v7222_v32 = vadd.f32 %v11424_v15, %v4384_v37  ;;  %14882 = vst [vmem:[#allocation12_spill] sm:$0xff] %v12544_v16  ;;  %6918 = vperm.xlu0 %9892, %v5788_v56   ;;  %v674_v56 = vld [vmem:[%s14782_s3 + $0x388] sm:$0xff]  ;;  %6923 = vperm.xlu1 %9893, %v5789_v23   ;;  %v5792_v23 = vld [vmem:[%s14783_s4 + $0x6f0] sm:$0xff] }
 0x21d   : > { %8245 = vst [vmem:[%s11204_s30 + $0x398] sm:$0xff] %v7733_v63  ;;  %v7223_v18 = vadd.f32 %v11424_v15, %v4386_v26  ;;  %v2014_v34 = vpop.f32.mrb[118].mxu1  ;;  %v4389_v51 = vpop.f32.mrb[118].mxu0  ;;  %v5790_v15 = vld [vmem:[%s14783_s4 + $0x6e0] sm:$0xff]  ;;  %v417_v26 = vld [vmem:[%s14781_s2 + $0x388] sm:$0xff] }
 0x21e   : > { %v7734_v24 = vmax.f32 %v7222_v32, 0.0  ;;  %v4390_v42 = vadd.f32 %v4389_v51, %v2014_v34  ;;  %v2016_v25 = vpop.f32.mrb[119].mxu1  ;;  %8899 = vmatmul.mubr.msk.f32.gmra.mrb[224].mxu1 %vm820_vm1, %v673_v28  ;;  %v4391_v37 = vpop.f32.mrb[119].mxu0  ;;  %9157 = vmatmul.mubr.msk.f32.gmra.mrb[224].mxu0 %vm820_vm1, %v416_v10  ;;  %v14883_v28 = vld [vmem:[#allocation13_spill] sm:$0xff] }
 0x21f   : > { %v7735_v49 = vmax.f32 %v7223_v18, 0.0  ;;  %v4392_v63 = vadd.f32 %v4391_v37, %v2016_v25  ;;  %2336 = vmatprep.mubr.f32.mxu1 %v14845_v60  ;;  %4711 = vmatprep.mubr.f32.mxu0 %v14845_v60  ;;  %v12566_v32 = vpop.permute.xlu1 %6523  ;;  %v5791_v25 = vld [vmem:[%s14783_s4 + $0x6e8] sm:$0xff] }
 0x220   : > { %8246 = vst [vmem:[%s11204_s30 + $0x3a0] sm:$0xff] %v7734_v24  ;;  %v7224_v10 = vadd.f32 %v14883_v28, %v4390_v42  ;;  %6928 = vperm.xlu0 %9892, %v5790_v15   ;;  %v675_v15 = vld [vmem:[%s14782_s3 + $0x390] sm:$0xff]  ;;  %6933 = vperm.xlu1 %9893, %v5791_v25  }
 0x221   : > { %8247 = vst [vmem:[%s11204_s30 + $0x3a8] sm:$0xff] %v7735_v49  ;;  %v7225_v18 = vadd.f32 %v14883_v28, %v4392_v63  ;;  %v2020_v34 = vpop.f32.mrb[120].mxu1  ;;  %v4395_v51 = vpop.f32.mrb[120].mxu0 }
 0x222   : > { %v7736_v37 = vmax.f32 %v7224_v10, 0.0  ;;  %v4396_v16 = vadd.f32 %v4395_v51, %v2020_v34  ;;  %v2022_v24 = vpop.f32.mrb[121].mxu1  ;;  %8900 = vmatmul.mubr.msk.f32.gmra.mrb[226].mxu1 %vm820_vm1, %v674_v56  ;;  %v4397_v42 = vpop.f32.mrb[121].mxu0  ;;  %9158 = vmatmul.mubr.msk.f32.gmra.mrb[226].mxu0 %vm820_vm1, %v417_v26  ;;  %v418_v56 = vld [vmem:[%s14781_s2 + $0x390] sm:$0xff]  ;;  %v5793_v51 = vld [vmem:[%s14783_s4 + $0x6f8] sm:$0xff] }
 0x223   : > { %v7737_v49 = vmax.f32 %v7225_v18, 0.0  ;;  %v4398_v63 = vadd.f32 %v4397_v42, %v2022_v24  ;;  %2342 = vmatprep.mubr.f32.mxu1 %v14845_v60  ;;  %4717 = vmatprep.mubr.f32.mxu0 %v14845_v60  ;;  %v12588_v28 = vpop.permute.xlu0 %6528 }
 0x224   : > { %8248 = vst [vmem:[%s11204_s30 + $0x3b0] sm:$0xff] %v7736_v37  ;;  %v7226_v26 = vadd.f32 %v11448_v61, %v4396_v16  ;;  %14884 = vst [vmem:[#allocation13_spill] sm:$0xff] %v12588_v28  ;;  %6938 = vperm.xlu0 %9892, %v5792_v23   ;;  %v676_v23 = vld [vmem:[%s14782_s3 + $0x398] sm:$0xff]  ;;  %6943 = vperm.xlu1 %9893, %v5793_v51   ;;  %v5796_v51 = vld [vmem:[%s14783_s4 + $0x710] sm:$0xff] }
 0x225   : > { %8249 = vst [vmem:[%s11204_s30 + $0x3b8] sm:$0xff] %v7737_v49  ;;  %v7227_v10 = vadd.f32 %v11448_v61, %v4398_v63  ;;  %v2026_v18 = vpop.f32.mrb[122].mxu1  ;;  %v4401_v34 = vpop.f32.mrb[122].mxu0  ;;  %v5794_v61 = vld [vmem:[%s14783_s4 + $0x700] sm:$0xff]  ;;  %v419_v63 = vld [vmem:[%s14781_s2 + $0x398] sm:$0xff] }
 0x226   : > { %v7738_v24 = vmax.f32 %v7226_v26, 0.0  ;;  %v4402_v42 = vadd.f32 %v4401_v34, %v2026_v18  ;;  %v2028_v37 = vpop.f32.mrb[123].mxu1  ;;  %8901 = vmatmul.mubr.msk.f32.gmra.mrb[228].mxu1 %vm820_vm1, %v675_v15  ;;  %v4403_v16 = vpop.f32.mrb[123].mxu0  ;;  %9159 = vmatmul.mubr.msk.f32.gmra.mrb[228].mxu0 %vm820_vm1, %v418_v56  ;;  %v14885_v15 = vld [vmem:[#allocation14_spill] sm:$0xff] }
 0x227   : > { %v7739_v25 = vmax.f32 %v7227_v10, 0.0  ;;  %v4404_v49 = vadd.f32 %v4403_v16, %v2028_v37  ;;  %2348 = vmatprep.mubr.f32.mxu1 %v14845_v60  ;;  %4723 = vmatprep.mubr.f32.mxu0 %v14845_v60  ;;  %v12610_v26 = vpop.permute.xlu1 %6533  ;;  %v5795_v37 = vld [vmem:[%s14783_s4 + $0x708] sm:$0xff] }
 0x228   : > { %8250 = vst [vmem:[%s11204_s30 + $0x3c0] sm:$0xff] %v7738_v24  ;;  %v7228_v56 = vadd.f32 %v14885_v15, %v4402_v42  ;;  %6948 = vperm.xlu0 %9892, %v5794_v61   ;;  %v677_v61 = vld [vmem:[%s14782_s3 + $0x3a0] sm:$0xff]  ;;  %6953 = vperm.xlu1 %9893, %v5795_v37  }
 0x229   : > { %8251 = vst [vmem:[%s11204_s30 + $0x3c8] sm:$0xff] %v7739_v25  ;;  %v7229_v10 = vadd.f32 %v14885_v15, %v4404_v49  ;;  %v2032_v18 = vpop.f32.mrb[124].mxu1  ;;  %v4407_v34 = vpop.f32.mrb[124].mxu0 }
 0x22a   : > { %v7740_v16 = vmax.f32 %v7228_v56, 0.0  ;;  %v4408_v28 = vadd.f32 %v4407_v34, %v2032_v18  ;;  %v2034_v24 = vpop.f32.mrb[125].mxu1  ;;  %8902 = vmatmul.mubr.msk.f32.gmra.mrb[230].mxu1 %vm820_vm1, %v676_v23  ;;  %v4409_v42 = vpop.f32.mrb[125].mxu0  ;;  %9160 = vmatmul.mubr.msk.f32.gmra.mrb[230].mxu0 %vm820_vm1, %v419_v63  ;;  %v420_v23 = vld [vmem:[%s14781_s2 + $0x3a0] sm:$0xff]  ;;  %v5797_v34 = vld [vmem:[%s14783_s4 + $0x718] sm:$0xff] }
 0x22b   : > { %v7741_v25 = vmax.f32 %v7229_v10, 0.0  ;;  %v4410_v49 = vadd.f32 %v4409_v42, %v2034_v24  ;;  %2354 = vmatprep.mubr.f32.mxu1 %v14845_v60  ;;  %4729 = vmatprep.mubr.f32.mxu0 %v14845_v60  ;;  %v12632_v15 = vpop.permute.xlu0 %6538 }
 0x22c   : > { %8252 = vst [vmem:[%s11204_s30 + $0x3d0] sm:$0xff] %v7740_v16  ;;  %v7230_v63 = vadd.f32 %v11472_v29, %v4408_v28  ;;  %14886 = vst [vmem:[#allocation14_spill] sm:$0xff] %v12632_v15  ;;  %6958 = vperm.xlu0 %9892, %v5796_v51   ;;  %v678_v51 = vld [vmem:[%s14782_s3 + $0x3a8] sm:$0xff]  ;;  %6963 = vperm.xlu1 %9893, %v5797_v34   ;;  %v5800_v34 = vld [vmem:[%s14783_s4 + $0x730] sm:$0xff] }
 0x22d   : > { %8253 = vst [vmem:[%s11204_s30 + $0x3d8] sm:$0xff] %v7741_v25  ;;  %v7231_v56 = vadd.f32 %v11472_v29, %v4410_v49  ;;  %v2038_v10 = vpop.f32.mrb[126].mxu1  ;;  %v4413_v18 = vpop.f32.mrb[126].mxu0  ;;  %v5798_v29 = vld [vmem:[%s14783_s4 + $0x720] sm:$0xff]  ;;  %v421_v49 = vld [vmem:[%s14781_s2 + $0x3a8] sm:$0xff] }
 0x22e   : > { %v7742_v24 = vmax.f32 %v7230_v63, 0.0  ;;  %v4414_v42 = vadd.f32 %v4413_v18, %v2038_v10  ;;  %v2040_v16 = vpop.f32.mrb[127].mxu1  ;;  %8903 = vmatmul.mubr.msk.f32.gmra.mrb[232].mxu1 %vm820_vm1, %v677_v61  ;;  %v4415_v28 = vpop.f32.mrb[127].mxu0  ;;  %9161 = vmatmul.mubr.msk.f32.gmra.mrb[232].mxu0 %vm820_vm1, %v420_v23  ;;  %v14887_v61 = vld [vmem:[#allocation15_spill] sm:$0xff] }
 0x22f   : > { %v7743_v37 = vmax.f32 %v7231_v56, 0.0  ;;  %v4416_v25 = vadd.f32 %v4415_v28, %v2040_v16  ;;  %2360 = vmatprep.mubr.f32.mxu1 %v14845_v60  ;;  %4735 = vmatprep.mubr.f32.mxu0 %v14845_v60  ;;  %v12654_v63 = vpop.permute.xlu1 %6543  ;;  %v5799_v16 = vld [vmem:[%s14783_s4 + $0x728] sm:$0xff] }
 0x230   : > { %8254 = vst [vmem:[%s11204_s30 + $0x3e0] sm:$0xff] %v7742_v24  ;;  %v7232_v23 = vadd.f32 %v14887_v61, %v4414_v42  ;;  %6968 = vperm.xlu0 %9892, %v5798_v29   ;;  %v679_v29 = vld [vmem:[%s14782_s3 + $0x3b0] sm:$0xff]  ;;  %6973 = vperm.xlu1 %9893, %v5799_v16  }
 0x231   : > { %8255 = vst [vmem:[%s11204_s30 + $0x3e8] sm:$0xff] %v7743_v37  ;;  %v7233_v56 = vadd.f32 %v14887_v61, %v4416_v25  ;;  %v2044_v10 = vpop.f32.mrb[128].mxu1  ;;  %v4419_v18 = vpop.f32.mrb[128].mxu0 }
 0x232   : > { %v7744_v28 = vmax.f32 %v7232_v23, 0.0  ;;  %v4420_v15 = vadd.f32 %v4419_v18, %v2044_v10  ;;  %v2046_v24 = vpop.f32.mrb[129].mxu1  ;;  %8904 = vmatmul.mubr.msk.f32.gmra.mrb[234].mxu1 %vm820_vm1, %v678_v51  ;;  %v4421_v42 = vpop.f32.mrb[129].mxu0  ;;  %9162 = vmatmul.mubr.msk.f32.gmra.mrb[234].mxu0 %vm820_vm1, %v421_v49  ;;  %v422_v51 = vld [vmem:[%s14781_s2 + $0x3b0] sm:$0xff]  ;;  %v5801_v18 = vld [vmem:[%s14783_s4 + $0x738] sm:$0xff] }
 0x233   : > { %v7745_v37 = vmax.f32 %v7233_v56, 0.0  ;;  %v4422_v25 = vadd.f32 %v4421_v42, %v2046_v24  ;;  %2366 = vmatprep.mubr.f32.mxu1 %v14845_v60  ;;  %4741 = vmatprep.mubr.f32.mxu0 %v14845_v60  ;;  %v12676_v61 = vpop.permute.xlu0 %6548 }
 0x234   : > { %8256 = vst [vmem:[%s11204_s30 + $0x3f0] sm:$0xff] %v7744_v28  ;;  %v7234_v49 = vadd.f32 %v11496_v6, %v4420_v15  ;;  %14888 = vst [vmem:[#allocation15_spill] sm:$0xff] %v12676_v61  ;;  %6978 = vperm.xlu0 %9892, %v5800_v34   ;;  %v680_v34 = vld [vmem:[%s14782_s3 + $0x3b8] sm:$0xff]  ;;  %6983 = vperm.xlu1 %9893, %v5801_v18   ;;  %v5804_v18 = vld [vmem:[%s14783_s4 + $0x750] sm:$0xff] }
 0x235   : > { %8257 = vst [vmem:[%s11204_s30 + $0x3f8] sm:$0xff] %v7745_v37  ;;  %v7235_v23 = vadd.f32 %v11496_v6, %v4422_v25  ;;  %v2050_v56 = vpop.f32.mrb[130].mxu1  ;;  %v4425_v10 = vpop.f32.mrb[130].mxu0  ;;  %v5802_v6 = vld [vmem:[%s14783_s4 + $0x740] sm:$0xff]  ;;  %v423_v25 = vld [vmem:[%s14781_s2 + $0x3b8] sm:$0xff] }
 0x236   : > { %v7746_v24 = vmax.f32 %v7234_v49, 0.0  ;;  %v4426_v42 = vadd.f32 %v4425_v10, %v2050_v56  ;;  %v2052_v28 = vpop.f32.mrb[131].mxu1  ;;  %8905 = vmatmul.mubr.msk.f32.gmra.mrb[236].mxu1 %vm820_vm1, %v679_v29  ;;  %v4427_v15 = vpop.f32.mrb[131].mxu0  ;;  %9163 = vmatmul.mubr.msk.f32.gmra.mrb[236].mxu0 %vm820_vm1, %v422_v51  ;;  %v14889_v29 = vld [vmem:[#allocation16_spill] sm:$0xff] }
 0x237   : > { %v7747_v16 = vmax.f32 %v7235_v23, 0.0  ;;  %v4428_v37 = vadd.f32 %v4427_v15, %v2052_v28  ;;  %2372 = vmatprep.mubr.f32.mxu1 %v14845_v60  ;;  %4747 = vmatprep.mubr.f32.mxu0 %v14845_v60  ;;  %v12698_v49 = vpop.permute.xlu1 %6553  ;;  %v5803_v28 = vld [vmem:[%s14783_s4 + $0x748] sm:$0xff] }
 0x238   : > { %8258 = vst [vmem:[%s11204_s30 + $0x400] sm:$0xff] %v7746_v24  ;;  %v7236_v51 = vadd.f32 %v14889_v29, %v4426_v42  ;;  %6988 = vperm.xlu0 %9892, %v5802_v6   ;;  %v681_v6 = vld [vmem:[%s14782_s3 + $0x3c0] sm:$0xff]  ;;  %6993 = vperm.xlu1 %9893, %v5803_v28  }
 0x239   : > { %8259 = vst [vmem:[%s11204_s30 + $0x408] sm:$0xff] %v7747_v16  ;;  %v7237_v23 = vadd.f32 %v14889_v29, %v4428_v37  ;;  %v2056_v56 = vpop.f32.mrb[132].mxu1  ;;  %v4431_v10 = vpop.f32.mrb[132].mxu0 }
 0x23a   : > { %v7748_v15 = vmax.f32 %v7236_v51, 0.0  ;;  %v4432_v61 = vadd.f32 %v4431_v10, %v2056_v56  ;;  %v2058_v24 = vpop.f32.mrb[133].mxu1  ;;  %8906 = vmatmul.mubr.msk.f32.gmra.mrb[238].mxu1 %vm820_vm1, %v680_v34  ;;  %v4433_v42 = vpop.f32.mrb[133].mxu0  ;;  %9164 = vmatmul.mubr.msk.f32.gmra.mrb[238].mxu0 %vm820_vm1, %v423_v25  ;;  %v424_v34 = vld [vmem:[%s14781_s2 + $0x3c0] sm:$0xff]  ;;  %v5805_v10 = vld [vmem:[%s14783_s4 + $0x758] sm:$0xff] }
 0x23b   : > { %v7749_v16 = vmax.f32 %v7237_v23, 0.0  ;;  %v4434_v37 = vadd.f32 %v4433_v42, %v2058_v24  ;;  %2378 = vmatprep.mubr.f32.mxu1 %v14845_v60  ;;  %4753 = vmatprep.mubr.f32.mxu0 %v14845_v60  ;;  %v12720_v29 = vpop.permute.xlu0 %6558 }
 0x23c   : > { %8260 = vst [vmem:[%s11204_s30 + $0x410] sm:$0xff] %v7748_v15  ;;  %v7238_v25 = vadd.f32 %v11520_v36, %v4432_v61  ;;  %14890 = vst [vmem:[#allocation16_spill] sm:$0xff] %v12720_v29  ;;  %6998 = vperm.xlu0 %9892, %v5804_v18   ;;  %v682_v18 = vld [vmem:[%s14782_s3 + $0x3c8] sm:$0xff]  ;;  %7003 = vperm.xlu1 %9893, %v5805_v10   ;;  %v5808_v10 = vld [vmem:[%s14783_s4 + $0x770] sm:$0xff] }
 0x23d   : > { %8261 = vst [vmem:[%s11204_s30 + $0x418] sm:$0xff] %v7749_v16  ;;  %v7239_v51 = vadd.f32 %v11520_v36, %v4434_v37  ;;  %v2062_v23 = vpop.f32.mrb[134].mxu1  ;;  %v4437_v56 = vpop.f32.mrb[134].mxu0  ;;  %v5806_v36 = vld [vmem:[%s14783_s4 + $0x760] sm:$0xff]  ;;  %v425_v37 = vld [vmem:[%s14781_s2 + $0x3c8] sm:$0xff] }
 0x23e   : > { %v7750_v24 = vmax.f32 %v7238_v25, 0.0  ;;  %v4438_v42 = vadd.f32 %v4437_v56, %v2062_v23  ;;  %v2064_v15 = vpop.f32.mrb[135].mxu1  ;;  %8907 = vmatmul.mubr.msk.f32.gmra.mrb[240].mxu1 %vm820_vm1, %v681_v6  ;;  %v4439_v61 = vpop.f32.mrb[135].mxu0  ;;  %9165 = vmatmul.mubr.msk.f32.gmra.mrb[240].mxu0 %vm820_vm1, %v424_v34  ;;  %v14891_v6 = vld [vmem:[#allocation17_spill] sm:$0xff] }
 0x23f   : > { %v7751_v28 = vmax.f32 %v7239_v51, 0.0  ;;  %v4440_v16 = vadd.f32 %v4439_v61, %v2064_v15  ;;  %2384 = vmatprep.mubr.f32.mxu1 %v14845_v60  ;;  %4759 = vmatprep.mubr.f32.mxu0 %v14845_v60  ;;  %v12742_v25 = vpop.permute.xlu1 %6563  ;;  %v5807_v15 = vld [vmem:[%s14783_s4 + $0x768] sm:$0xff] }
 0x240   : > { %8262 = vst [vmem:[%s11204_s30 + $0x420] sm:$0xff] %v7750_v24  ;;  %v7240_v34 = vadd.f32 %v14891_v6, %v4438_v42  ;;  %7008 = vperm.xlu0 %9892, %v5806_v36   ;;  %v683_v36 = vld [vmem:[%s14782_s3 + $0x3d0] sm:$0xff]  ;;  %7013 = vperm.xlu1 %9893, %v5807_v15  }
 0x241   : > { %8263 = vst [vmem:[%s11204_s30 + $0x428] sm:$0xff] %v7751_v28  ;;  %v7241_v51 = vadd.f32 %v14891_v6, %v4440_v16  ;;  %v2068_v23 = vpop.f32.mrb[136].mxu1  ;;  %v4443_v56 = vpop.f32.mrb[136].mxu0 }
 0x242   : > { %v7752_v61 = vmax.f32 %v7240_v34, 0.0  ;;  %v4444_v29 = vadd.f32 %v4443_v56, %v2068_v23  ;;  %v2070_v24 = vpop.f32.mrb[137].mxu1  ;;  %8908 = vmatmul.mubr.msk.f32.gmra.mrb[242].mxu1 %vm820_vm1, %v682_v18  ;;  %v4445_v42 = vpop.f32.mrb[137].mxu0  ;;  %9166 = vmatmul.mubr.msk.f32.gmra.mrb[242].mxu0 %vm820_vm1, %v425_v37  ;;  %v426_v18 = vld [vmem:[%s14781_s2 + $0x3d0] sm:$0xff]  ;;  %v5809_v56 = vld [vmem:[%s14783_s4 + $0x778] sm:$0xff] }
 0x243   : > { %v7753_v28 = vmax.f32 %v7241_v51, 0.0  ;;  %v4446_v16 = vadd.f32 %v4445_v42, %v2070_v24  ;;  %2390 = vmatprep.mubr.f32.mxu1 %v14845_v60  ;;  %4765 = vmatprep.mubr.f32.mxu0 %v14845_v60  ;;  %v12764_v6 = vpop.permute.xlu0 %6568 }
 0x244   : > { %8264 = vst [vmem:[%s11204_s30 + $0x430] sm:$0xff] %v7752_v61  ;;  %v7242_v37 = vadd.f32 %v11544_v33, %v4444_v29  ;;  %14892 = vst [vmem:[#allocation17_spill] sm:$0xff] %v12764_v6  ;;  %7018 = vperm.xlu0 %9892, %v5808_v10   ;;  %v684_v10 = vld [vmem:[%s14782_s3 + $0x3d8] sm:$0xff]  ;;  %7023 = vperm.xlu1 %9893, %v5809_v56   ;;  %v5812_v56 = vld [vmem:[%s14783_s4 + $0x790] sm:$0xff] }
 0x245   : > { %8265 = vst [vmem:[%s11204_s30 + $0x438] sm:$0xff] %v7753_v28  ;;  %v7243_v34 = vadd.f32 %v11544_v33, %v4446_v16  ;;  %v2074_v51 = vpop.f32.mrb[138].mxu1  ;;  %v4449_v23 = vpop.f32.mrb[138].mxu0  ;;  %v5810_v33 = vld [vmem:[%s14783_s4 + $0x780] sm:$0xff]  ;;  %v427_v16 = vld [vmem:[%s14781_s2 + $0x3d8] sm:$0xff] }
 0x246   : > { %v7754_v24 = vmax.f32 %v7242_v37, 0.0  ;;  %v4450_v42 = vadd.f32 %v4449_v23, %v2074_v51  ;;  %v2076_v61 = vpop.f32.mrb[139].mxu1  ;;  %8909 = vmatmul.mubr.msk.f32.gmra.mrb[244].mxu1 %vm820_vm1, %v683_v36  ;;  %v4451_v29 = vpop.f32.mrb[139].mxu0  ;;  %9167 = vmatmul.mubr.msk.f32.gmra.mrb[244].mxu0 %vm820_vm1, %v426_v18  ;;  %v14893_v36 = vld [vmem:[#allocation18_spill] sm:$0xff] }
 0x247   : > { %v7755_v15 = vmax.f32 %v7243_v34, 0.0  ;;  %v4452_v28 = vadd.f32 %v4451_v29, %v2076_v61  ;;  %2396 = vmatprep.mubr.f32.mxu1 %v14845_v60  ;;  %4771 = vmatprep.mubr.f32.mxu0 %v14845_v60  ;;  %v12786_v37 = vpop.permute.xlu1 %6573  ;;  %v5811_v61 = vld [vmem:[%s14783_s4 + $0x788] sm:$0xff] }
 0x248   : > { %8266 = vst [vmem:[%s11204_s30 + $0x440] sm:$0xff] %v7754_v24  ;;  %v7244_v18 = vadd.f32 %v14893_v36, %v4450_v42  ;;  %7028 = vperm.xlu0 %9892, %v5810_v33   ;;  %v685_v33 = vld [vmem:[%s14782_s3 + $0x3e0] sm:$0xff]  ;;  %7033 = vperm.xlu1 %9893, %v5811_v61  }
 0x249   : > { %8267 = vst [vmem:[%s11204_s30 + $0x448] sm:$0xff] %v7755_v15  ;;  %v7245_v34 = vadd.f32 %v14893_v36, %v4452_v28  ;;  %v2080_v51 = vpop.f32.mrb[140].mxu1  ;;  %v4455_v23 = vpop.f32.mrb[140].mxu0 }
 0x24a   : > { %v7756_v29 = vmax.f32 %v7244_v18, 0.0  ;;  %v4456_v6 = vadd.f32 %v4455_v23, %v2080_v51  ;;  %v2082_v24 = vpop.f32.mrb[141].mxu1  ;;  %8910 = vmatmul.mubr.msk.f32.gmra.mrb[246].mxu1 %vm820_vm1, %v684_v10  ;;  %v4457_v42 = vpop.f32.mrb[141].mxu0  ;;  %9168 = vmatmul.mubr.msk.f32.gmra.mrb[246].mxu0 %vm820_vm1, %v427_v16  ;;  %v428_v10 = vld [vmem:[%s14781_s2 + $0x3e0] sm:$0xff]  ;;  %v5813_v23 = vld [vmem:[%s14783_s4 + $0x798] sm:$0xff] }
 0x24b   : > { %v7757_v15 = vmax.f32 %v7245_v34, 0.0  ;;  %v4458_v28 = vadd.f32 %v4457_v42, %v2082_v24  ;;  %2402 = vmatprep.mubr.f32.mxu1 %v14845_v60  ;;  %4777 = vmatprep.mubr.f32.mxu0 %v14845_v60  ;;  %v12808_v36 = vpop.permute.xlu0 %6578 }
 0x24c   : > { %8268 = vst [vmem:[%s11204_s30 + $0x450] sm:$0xff] %v7756_v29  ;;  %v7246_v16 = vadd.f32 %v11568_v0, %v4456_v6  ;;  %14894 = vst [vmem:[#allocation18_spill] sm:$0xff] %v12808_v36  ;;  %7038 = vperm.xlu0 %9892, %v5812_v56   ;;  %v686_v56 = vld [vmem:[%s14782_s3 + $0x3e8] sm:$0xff]  ;;  %7043 = vperm.xlu1 %9893, %v5813_v23   ;;  %v5816_v23 = vld [vmem:[%s14783_s4 + $0x7b0] sm:$0xff] }
 0x24d   : > { %8269 = vst [vmem:[%s11204_s30 + $0x458] sm:$0xff] %v7757_v15  ;;  %v7247_v18 = vadd.f32 %v11568_v0, %v4458_v28  ;;  %v2086_v34 = vpop.f32.mrb[142].mxu1  ;;  %v4461_v51 = vpop.f32.mrb[142].mxu0  ;;  %v5814_v0 = vld [vmem:[%s14783_s4 + $0x7a0] sm:$0xff]  ;;  %v429_v28 = vld [vmem:[%s14781_s2 + $0x3e8] sm:$0xff] }
 0x24e   : > { %v7758_v24 = vmax.f32 %v7246_v16, 0.0  ;;  %v4462_v42 = vadd.f32 %v4461_v51, %v2086_v34  ;;  %v2088_v29 = vpop.f32.mrb[143].mxu1  ;;  %8911 = vmatmul.mubr.msk.f32.gmra.mrb[248].mxu1 %vm820_vm1, %v685_v33  ;;  %v4463_v6 = vpop.f32.mrb[143].mxu0  ;;  %9169 = vmatmul.mubr.msk.f32.gmra.mrb[248].mxu0 %vm820_vm1, %v428_v10  ;;  %v14895_v33 = vld [vmem:[#allocation19_spill] sm:$0xff] }
 0x24f   : > { %v7759_v61 = vmax.f32 %v7247_v18, 0.0  ;;  %v4464_v15 = vadd.f32 %v4463_v6, %v2088_v29  ;;  %2408 = vmatprep.mubr.f32.mxu1 %v14845_v60  ;;  %4783 = vmatprep.mubr.f32.mxu0 %v14845_v60  ;;  %v12830_v16 = vpop.permute.xlu1 %6583  ;;  %v5815_v29 = vld [vmem:[%s14783_s4 + $0x7a8] sm:$0xff] }
 0x250   : > { %8270 = vst [vmem:[%s11204_s30 + $0x460] sm:$0xff] %v7758_v24  ;;  %v7248_v10 = vadd.f32 %v14895_v33, %v4462_v42  ;;  %7048 = vperm.xlu0 %9892, %v5814_v0   ;;  %v687_v0 = vld [vmem:[%s14782_s3 + $0x3f0] sm:$0xff]  ;;  %7053 = vperm.xlu1 %9893, %v5815_v29  }
 0x251   : > { %8271 = vst [vmem:[%s11204_s30 + $0x468] sm:$0xff] %v7759_v61  ;;  %v7249_v18 = vadd.f32 %v14895_v33, %v4464_v15  ;;  %v2092_v34 = vpop.f32.mrb[144].mxu1  ;;  %v4467_v51 = vpop.f32.mrb[144].mxu0 }
 0x252   : > { %v7760_v6 = vmax.f32 %v7248_v10, 0.0  ;;  %v4468_v36 = vadd.f32 %v4467_v51, %v2092_v34  ;;  %v2094_v24 = vpop.f32.mrb[145].mxu1  ;;  %8912 = vmatmul.mubr.msk.f32.gmra.mrb[250].mxu1 %vm820_vm1, %v686_v56  ;;  %v4469_v42 = vpop.f32.mrb[145].mxu0  ;;  %9170 = vmatmul.mubr.msk.f32.gmra.mrb[250].mxu0 %vm820_vm1, %v429_v28  ;;  %v430_v56 = vld [vmem:[%s14781_s2 + $0x3f0] sm:$0xff]  ;;  %v5817_v51 = vld [vmem:[%s14783_s4 + $0x7b8] sm:$0xff] }
 0x253   : > { %v7761_v61 = vmax.f32 %v7249_v18, 0.0  ;;  %v4470_v15 = vadd.f32 %v4469_v42, %v2094_v24  ;;  %2414 = vmatprep.mubr.f32.mxu1 %v14845_v60  ;;  %4789 = vmatprep.mubr.f32.mxu0 %v14845_v60  ;;  %v12852_v33 = vpop.permute.xlu0 %6588 }
 0x254   : > { %8272 = vst [vmem:[%s11204_s30 + $0x470] sm:$0xff] %v7760_v6  ;;  %v7250_v28 = vadd.f32 %v11592_v40, %v4468_v36  ;;  %14896 = vst [vmem:[#allocation19_spill] sm:$0xff] %v12852_v33  ;;  %7058 = vperm.xlu0 %9892, %v5816_v23   ;;  %v688_v23 = vld [vmem:[%s14782_s3 + $0x3f8] sm:$0xff]  ;;  %7063 = vperm.xlu1 %9893, %v5817_v51   ;;  %v5820_v51 = vld [vmem:[%s14783_s4 + $0x7d0] sm:$0xff] }
 0x255   : > { %8273 = vst [vmem:[%s11204_s30 + $0x478] sm:$0xff] %v7761_v61  ;;  %v7251_v10 = vadd.f32 %v11592_v40, %v4470_v15  ;;  %v2098_v18 = vpop.f32.mrb[146].mxu1  ;;  %v4473_v34 = vpop.f32.mrb[146].mxu0  ;;  %v5818_v40 = vld [vmem:[%s14783_s4 + $0x7c0] sm:$0xff]  ;;  %v431_v15 = vld [vmem:[%s14781_s2 + $0x3f8] sm:$0xff] }
 0x256   : > { %v7762_v24 = vmax.f32 %v7250_v28, 0.0  ;;  %v4474_v42 = vadd.f32 %v4473_v34, %v2098_v18  ;;  %v2100_v6 = vpop.f32.mrb[147].mxu1  ;;  %8913 = vmatmul.mubr.msk.f32.gmra.mrb[252].mxu1 %vm820_vm1, %v687_v0  ;;  %v4475_v36 = vpop.f32.mrb[147].mxu0  ;;  %9171 = vmatmul.mubr.msk.f32.gmra.mrb[252].mxu0 %vm820_vm1, %v430_v56  ;;  %v14897_v0 = vld [vmem:[#allocation20_spill] sm:$0xff] }
 0x257   : > { %v7763_v29 = vmax.f32 %v7251_v10, 0.0  ;;  %v4476_v61 = vadd.f32 %v4475_v36, %v2100_v6  ;;  %2420 = vmatprep.mubr.f32.mxu1 %v14845_v60  ;;  %4795 = vmatprep.mubr.f32.mxu0 %v14845_v60  ;;  %v12874_v28 = vpop.permute.xlu1 %6593  ;;  %v5819_v6 = vld [vmem:[%s14783_s4 + $0x7c8] sm:$0xff] }
 0x258   : > { %8274 = vst [vmem:[%s11204_s30 + $0x480] sm:$0xff] %v7762_v24  ;;  %v7252_v56 = vadd.f32 %v14897_v0, %v4474_v42  ;;  %7068 = vperm.xlu0 %9892, %v5818_v40   ;;  %v689_v40 = vld [vmem:[%s14782_s3 + $0x400] sm:$0xff]  ;;  %7073 = vperm.xlu1 %9893, %v5819_v6  }
 0x259   : > { %8275 = vst [vmem:[%s11204_s30 + $0x488] sm:$0xff] %v7763_v29  ;;  %v7253_v10 = vadd.f32 %v14897_v0, %v4476_v61  ;;  %v2104_v18 = vpop.f32.mrb[148].mxu1  ;;  %v4479_v34 = vpop.f32.mrb[148].mxu0 }
 0x25a   : > { %v7764_v36 = vmax.f32 %v7252_v56, 0.0  ;;  %v4480_v33 = vadd.f32 %v4479_v34, %v2104_v18  ;;  %v2106_v24 = vpop.f32.mrb[149].mxu1  ;;  %8914 = vmatmul.mubr.msk.f32.gmra.mrb[254].mxu1 %vm820_vm1, %v688_v23  ;;  %v4481_v42 = vpop.f32.mrb[149].mxu0  ;;  %9172 = vmatmul.mubr.msk.f32.gmra.mrb[254].mxu0 %vm820_vm1, %v431_v15  ;;  %v432_v23 = vld [vmem:[%s14781_s2 + $0x400] sm:$0xff]  ;;  %v5821_v34 = vld [vmem:[%s14783_s4 + $0x7d8] sm:$0xff] }
 0x25b   : > { %v7765_v29 = vmax.f32 %v7253_v10, 0.0  ;;  %v4482_v61 = vadd.f32 %v4481_v42, %v2106_v24  ;;  %2426 = vmatprep.mubr.f32.mxu1 %v14845_v60  ;;  %4801 = vmatprep.mubr.f32.mxu0 %v14845_v60  ;;  %v12896_v0 = vpop.permute.xlu0 %6598 }
 0x25c   : > { %8276 = vst [vmem:[%s11204_s30 + $0x490] sm:$0xff] %v7764_v36  ;;  %v7254_v15 = vadd.f32 %v11616_v17, %v4480_v33  ;;  %14898 = vst [vmem:[#allocation20_spill] sm:$0xff] %v12896_v0  ;;  %7078 = vperm.xlu0 %9892, %v5820_v51   ;;  %v690_v51 = vld [vmem:[%s14782_s3 + $0x408] sm:$0xff]  ;;  %7083 = vperm.xlu1 %9893, %v5821_v34   ;;  %v5824_v34 = vld [vmem:[%s14783_s4 + $0x7f0] sm:$0xff] }
 0x25d   : > { %8277 = vst [vmem:[%s11204_s30 + $0x498] sm:$0xff] %v7765_v29  ;;  %v7255_v56 = vadd.f32 %v11616_v17, %v4482_v61  ;;  %v2110_v10 = vpop.f32.mrb[150].mxu1  ;;  %v4485_v18 = vpop.f32.mrb[150].mxu0  ;;  %v5822_v17 = vld [vmem:[%s14783_s4 + $0x7e0] sm:$0xff]  ;;  %v433_v61 = vld [vmem:[%s14781_s2 + $0x408] sm:$0xff] }
 0x25e   : > { %v7766_v24 = vmax.f32 %v7254_v15, 0.0  ;;  %v4486_v42 = vadd.f32 %v4485_v18, %v2110_v10  ;;  %v2112_v36 = vpop.f32.mrb[151].mxu1  ;;  %8915 = vmatmul.mubr.msk.f32.gmra.mrb[150].mxu1 %vm820_vm1, %v689_v40  ;;  %v4487_v33 = vpop.f32.mrb[151].mxu0  ;;  %9173 = vmatmul.mubr.msk.f32.gmra.mrb[0].mxu0 %vm820_vm1, %v432_v23  ;;  %v14899_v40 = vld [vmem:[#allocation21_spill] sm:$0xff] }
 0x25f   : > { %v7767_v6 = vmax.f32 %v7255_v56, 0.0  ;;  %v4488_v29 = vadd.f32 %v4487_v33, %v2112_v36  ;;  %2432 = vmatprep.mubr.f32.mxu1 %v14845_v60  ;;  %4807 = vmatprep.mubr.f32.mxu0 %v14845_v60  ;;  %v12918_v15 = vpop.permute.xlu1 %6603  ;;  %v5823_v36 = vld [vmem:[%s14783_s4 + $0x7e8] sm:$0xff] }
 0x260   : > { %8278 = vst [vmem:[%s11204_s30 + $0x4a0] sm:$0xff] %v7766_v24  ;;  %v7256_v23 = vadd.f32 %v14899_v40, %v4486_v42  ;;  %7088 = vperm.xlu0 %9892, %v5822_v17   ;;  %v691_v17 = vld [vmem:[%s14782_s3 + $0x410] sm:$0xff]  ;;  %7093 = vperm.xlu1 %9893, %v5823_v36  }
 0x261   : > { %8279 = vst [vmem:[%s11204_s30 + $0x4a8] sm:$0xff] %v7767_v6  ;;  %v7257_v56 = vadd.f32 %v14899_v40, %v4488_v29  ;;  %v2116_v10 = vpop.f32.mrb[152].mxu1  ;;  %v4491_v18 = vpop.f32.mrb[152].mxu0 }
 0x262   : > { %v7768_v33 = vmax.f32 %v7256_v23, 0.0  ;;  %v4492_v0 = vadd.f32 %v4491_v18, %v2116_v10  ;;  %v2118_v24 = vpop.f32.mrb[153].mxu1  ;;  %8916 = vmatmul.mubr.msk.f32.gmra.mrb[152].mxu1 %vm820_vm1, %v690_v51  ;;  %v4493_v42 = vpop.f32.mrb[153].mxu0  ;;  %9174 = vmatmul.mubr.msk.f32.gmra.mrb[2].mxu0 %vm820_vm1, %v433_v61  ;;  %v434_v51 = vld [vmem:[%s14781_s2 + $0x410] sm:$0xff]  ;;  %v5825_v18 = vld [vmem:[%s14783_s4 + $0x7f8] sm:$0xff] }
 0x263   : > { %v7769_v6 = vmax.f32 %v7257_v56, 0.0  ;;  %v4494_v29 = vadd.f32 %v4493_v42, %v2118_v24  ;;  %2438 = vmatprep.mubr.f32.mxu1 %v14845_v60  ;;  %4813 = vmatprep.mubr.f32.mxu0 %v14845_v60  ;;  %v12940_v40 = vpop.permute.xlu0 %6608 }
 0x264   : > { %8280 = vst [vmem:[%s11204_s30 + $0x4b0] sm:$0xff] %v7768_v33  ;;  %v7258_v61 = vadd.f32 %v11640_v55, %v4492_v0  ;;  %14900 = vst [vmem:[#allocation21_spill] sm:$0xff] %v12940_v40  ;;  %7098 = vperm.xlu0 %9892, %v5824_v34   ;;  %v435_v34 = vld [vmem:[%s14781_s2 + $0x418] sm:$0xff] }
 0x265   : > { %8281 = vst [vmem:[%s11204_s30 + $0x4b8] sm:$0xff] %v7769_v6  ;;  %v7259_v23 = vadd.f32 %v11640_v55, %v4494_v29  ;;  %v2122_v56 = vpop.f32.mrb[154].mxu1  ;;  %v4497_v10 = vpop.f32.mrb[154].mxu0  ;;  %v692_v55 = vld [vmem:[%s14782_s3 + $0x418] sm:$0xff] }
 0x266   : > { %v7770_v24 = vmax.f32 %v7258_v61, 0.0  ;;  %v4498_v42 = vadd.f32 %v4497_v10, %v2122_v56  ;;  %v2124_v33 = vpop.f32.mrb[155].mxu1  ;;  %8917 = vmatmul.mubr.msk.f32.gmra.mrb[154].mxu1 %vm820_vm1, %v691_v17  ;;  %v4499_v0 = vpop.f32.mrb[155].mxu0  ;;  %9175 = vmatmul.mubr.msk.f32.gmra.mrb[4].mxu0 %vm820_vm1, %v434_v51  ;;  %v14901_v29 = vld [vmem:[#allocation22_spill] sm:$0xff] }
 0x267   : > { %v7771_v36 = vmax.f32 %v7259_v23, 0.0  ;;  %v4500_v6 = vadd.f32 %v4499_v0, %v2124_v33  ;;  %2444 = vmatprep.mubr.f32.mxu1 %v14845_v60  ;;  %4819 = vmatprep.mubr.f32.mxu0 %v14845_v60  ;;  %v12959_v61 = vpop.permute.xlu1 %6613 }
 0x268   : > { %8282 = vst [vmem:[%s11204_s30 + $0x4c0] sm:$0xff] %v7770_v24  ;;  %v7260_v17 = vadd.f32 %v14901_v29, %v4498_v42  ;;  %7103 = vperm.xlu1 %9893, %v5825_v18   ;;  %v693_v18 = vld [vmem:[%s14782_s3 + $0x420] sm:$0xff] }
 0x269   : > { %8283 = vst [vmem:[%s11204_s30 + $0x4c8] sm:$0xff] %v7771_v36  ;;  %v7261_v51 = vadd.f32 %v14901_v29, %v4500_v6  ;;  %v2128_v23 = vpop.f32.mrb[156].mxu1  ;;  %v4503_v56 = vpop.f32.mrb[156].mxu0  ;;  %v436_v36 = vld [vmem:[%s14781_s2 + $0x420] sm:$0xff] }
 0x26a   : > { %v7772_v10 = vmax.f32 %v7260_v17, 0.0  ;;  %v4504_v33 = vadd.f32 %v4503_v56, %v2128_v23  ;;  %v2130_v0 = vpop.f32.mrb[157].mxu1  ;;  %8918 = vmatmul.mubr.msk.f32.gmra.mrb[156].mxu1 %vm820_vm1, %v692_v55  ;;  %v4505_v40 = vpop.f32.mrb[157].mxu0  ;;  %9176 = vmatmul.mubr.msk.f32.gmra.mrb[6].mxu0 %vm820_vm1, %v435_v34 }
 0x26b   : > { %v7773_v24 = vmax.f32 %v7261_v51, 0.0  ;;  %v4506_v42 = vadd.f32 %v4505_v40, %v2130_v0  ;;  %2450 = vmatprep.mubr.f32.mxu1 %v14845_v60  ;;  %4825 = vmatprep.mubr.f32.mxu0 %v14845_v60 }
 0x26c   : > { %8284 = vst [vmem:[%s11204_s30 + $0x4d0] sm:$0xff] %v7772_v10  ;;  %v7262_v6 = vadd.f32 %v11664_v45, %v4504_v33  ;;  %v437_v10 = vld [vmem:[%s14781_s2 + $0x428] sm:$0xff]  ;;  %v14902_v33 = vld [vmem:[#allocation23_spill] sm:$0xff] }
 0x26d   : > { %8285 = vst [vmem:[%s11204_s30 + $0x4d8] sm:$0xff] %v7773_v24  ;;  %v7263_v55 = vadd.f32 %v11664_v45, %v4506_v42  ;;  %v2134_v40 = vpop.f32.mrb[158].mxu1  ;;  %v4509_v34 = vpop.f32.mrb[158].mxu0  ;;  %v694_v45 = vld [vmem:[%s14782_s3 + $0x428] sm:$0xff] }
 0x26e   : > { %v7774_v29 = vmax.f32 %v7262_v6, 0.0  ;;  %v4510_v17 = vadd.f32 %v4509_v34, %v2134_v40  ;;  %v2136_v51 = vpop.f32.mrb[159].mxu1  ;;  %8919 = vmatmul.mubr.msk.f32.gmra.mrb[158].mxu1 %vm820_vm1, %v693_v18  ;;  %v4511_v23 = vpop.f32.mrb[159].mxu0  ;;  %9177 = vmatmul.mubr.msk.f32.gmra.mrb[8].mxu0 %vm820_vm1, %v436_v36 }
 0x26f   : > { %v7775_v56 = vmax.f32 %v7263_v55, 0.0  ;;  %v4512_v0 = vadd.f32 %v4511_v23, %v2136_v51  ;;  %2456 = vmatprep.mubr.f32.mxu1 %v14845_v60  ;;  %4831 = vmatprep.mubr.f32.mxu0 %v14845_v60 }
 0x270   : > { %8286 = vst [vmem:[%s11204_s30 + $0x4e0] sm:$0xff] %v7774_v29  ;;  %v7264_v24 = vadd.f32 %v14902_v33, %v4510_v17  ;;  %v695_v29 = vld [vmem:[%s14782_s3 + $0x430] sm:$0xff] }
 0x271   : > { %8287 = vst [vmem:[%s11204_s30 + $0x4e8] sm:$0xff] %v7775_v56  ;;  %v7265_v42 = vadd.f32 %v14902_v33, %v4512_v0  ;;  %v2140_v18 = vpop.f32.mrb[160].mxu1  ;;  %v4515_v36 = vpop.f32.mrb[160].mxu0  ;;  %v438_v17 = vld [vmem:[%s14781_s2 + $0x430] sm:$0xff] }
 0x272   : > { %v7776_v6 = vmax.f32 %v7264_v24, 0.0  ;;  %v4516_v55 = vadd.f32 %v4515_v36, %v2140_v18  ;;  %v2142_v40 = vpop.f32.mrb[161].mxu1  ;;  %8920 = vmatmul.mubr.msk.f32.gmra.mrb[160].mxu1 %vm820_vm1, %v694_v45  ;;  %v4517_v34 = vpop.f32.mrb[161].mxu0  ;;  %9178 = vmatmul.mubr.msk.f32.gmra.mrb[10].mxu0 %vm820_vm1, %v437_v10 }
 0x273   : > { %v7777_v51 = vmax.f32 %v7265_v42, 0.0  ;;  %v4518_v23 = vadd.f32 %v4517_v34, %v2142_v40  ;;  %2462 = vmatprep.mubr.f32.mxu1 %v14845_v60  ;;  %4837 = vmatprep.mubr.f32.mxu0 %v14845_v60 }
 0x274   : > { %8288 = vst [vmem:[%s11204_s30 + $0x4f0] sm:$0xff] %v7776_v6  ;;  %v7266_v56 = vadd.f32 %v11688_v43, %v4516_v55  ;;  %v439_v6 = vld [vmem:[%s14781_s2 + $0x438] sm:$0xff]  ;;  %v14903_v55 = vld [vmem:[#allocation24_spill] sm:$0xff] }
 0x275   : > { %8289 = vst [vmem:[%s11204_s30 + $0x4f8] sm:$0xff] %v7777_v51  ;;  %v7267_v0 = vadd.f32 %v11688_v43, %v4518_v23  ;;  %v2146_v45 = vpop.f32.mrb[162].mxu1  ;;  %v4521_v10 = vpop.f32.mrb[162].mxu0  ;;  %v696_v43 = vld [vmem:[%s14782_s3 + $0x438] sm:$0xff] }
 0x276   : > { %v7778_v33 = vmax.f32 %v7266_v56, 0.0  ;;  %v4522_v24 = vadd.f32 %v4521_v10, %v2146_v45  ;;  %v2148_v42 = vpop.f32.mrb[163].mxu1  ;;  %8921 = vmatmul.mubr.msk.f32.gmra.mrb[162].mxu1 %vm820_vm1, %v695_v29  ;;  %v4523_v18 = vpop.f32.mrb[163].mxu0  ;;  %9179 = vmatmul.mubr.msk.f32.gmra.mrb[12].mxu0 %vm820_vm1, %v438_v17 }
 0x277   : > { %v7779_v36 = vmax.f32 %v7267_v0, 0.0  ;;  %v4524_v40 = vadd.f32 %v4523_v18, %v2148_v42  ;;  %2468 = vmatprep.mubr.f32.mxu1 %v14845_v60  ;;  %4843 = vmatprep.mubr.f32.mxu0 %v14845_v60 }
 0x278   : > { %8290 = vst [vmem:[%s11204_s30 + $0x500] sm:$0xff] %v7778_v33  ;;  %v7268_v34 = vadd.f32 %v14903_v55, %v4522_v24  ;;  %v697_v33 = vld [vmem:[%s14782_s3 + $0x440] sm:$0xff] }
 0x279   : > { %8291 = vst [vmem:[%s11204_s30 + $0x508] sm:$0xff] %v7779_v36  ;;  %v7269_v51 = vadd.f32 %v14903_v55, %v4524_v40  ;;  %v2152_v23 = vpop.f32.mrb[164].mxu1  ;;  %v4527_v29 = vpop.f32.mrb[164].mxu0  ;;  %v440_v24 = vld [vmem:[%s14781_s2 + $0x440] sm:$0xff] }
 0x27a   : > { %v7780_v17 = vmax.f32 %v7268_v34, 0.0  ;;  %v4528_v56 = vadd.f32 %v4527_v29, %v2152_v23  ;;  %v2154_v0 = vpop.f32.mrb[165].mxu1  ;;  %8922 = vmatmul.mubr.msk.f32.gmra.mrb[164].mxu1 %vm820_vm1, %v696_v43  ;;  %v4529_v45 = vpop.f32.mrb[165].mxu0  ;;  %9180 = vmatmul.mubr.msk.f32.gmra.mrb[14].mxu0 %vm820_vm1, %v439_v6 }
 0x27b   : > { %v7781_v10 = vmax.f32 %v7269_v51, 0.0  ;;  %v4530_v42 = vadd.f32 %v4529_v45, %v2154_v0  ;;  %2474 = vmatprep.mubr.f32.mxu1 %v14845_v60  ;;  %4849 = vmatprep.mubr.f32.mxu0 %v14845_v60 }
 0x27c   : > { %8292 = vst [vmem:[%s11204_s30 + $0x510] sm:$0xff] %v7780_v17  ;;  %v7270_v18 = vadd.f32 %v11712_v35, %v4528_v56  ;;  %v441_v17 = vld [vmem:[%s14781_s2 + $0x448] sm:$0xff]  ;;  %v14904_v56 = vld [vmem:[#allocation25_spill] sm:$0xff] }
 0x27d   : > { %8293 = vst [vmem:[%s11204_s30 + $0x518] sm:$0xff] %v7781_v10  ;;  %v7271_v36 = vadd.f32 %v11712_v35, %v4530_v42  ;;  %v2158_v40 = vpop.f32.mrb[166].mxu1  ;;  %v4533_v43 = vpop.f32.mrb[166].mxu0  ;;  %v698_v35 = vld [vmem:[%s14782_s3 + $0x448] sm:$0xff] }
 0x27e   : > { %v7782_v6 = vmax.f32 %v7270_v18, 0.0  ;;  %v4534_v55 = vadd.f32 %v4533_v43, %v2158_v40  ;;  %v2160_v34 = vpop.f32.mrb[167].mxu1  ;;  %8923 = vmatmul.mubr.msk.f32.gmra.mrb[166].mxu1 %vm820_vm1, %v697_v33  ;;  %v4535_v51 = vpop.f32.mrb[167].mxu0  ;;  %9181 = vmatmul.mubr.msk.f32.gmra.mrb[16].mxu0 %vm820_vm1, %v440_v24 }
 0x27f   : > { %v7783_v23 = vmax.f32 %v7271_v36, 0.0  ;;  %v4536_v29 = vadd.f32 %v4535_v51, %v2160_v34  ;;  %2480 = vmatprep.mubr.f32.mxu1 %v14845_v60  ;;  %4855 = vmatprep.mubr.f32.mxu0 %v14845_v60 }
 0x280   : > { %8294 = vst [vmem:[%s11204_s30 + $0x520] sm:$0xff] %v7782_v6  ;;  %v7272_v0 = vadd.f32 %v14904_v56, %v4534_v55  ;;  %v699_v6 = vld [vmem:[%s14782_s3 + $0x450] sm:$0xff] }
 0x281   : > { %8295 = vst [vmem:[%s11204_s30 + $0x528] sm:$0xff] %v7783_v23  ;;  %v7273_v45 = vadd.f32 %v14904_v56, %v4536_v29  ;;  %v2164_v10 = vpop.f32.mrb[168].mxu1  ;;  %v4539_v42 = vpop.f32.mrb[168].mxu0  ;;  %v442_v55 = vld [vmem:[%s14781_s2 + $0x450] sm:$0xff] }
 0x282   : > { %v7784_v33 = vmax.f32 %v7272_v0, 0.0  ;;  %v4540_v24 = vadd.f32 %v4539_v42, %v2164_v10  ;;  %v2166_v18 = vpop.f32.mrb[169].mxu1  ;;  %8924 = vmatmul.mubr.msk.f32.gmra.mrb[168].mxu1 %vm820_vm1, %v698_v35  ;;  %v4541_v36 = vpop.f32.mrb[169].mxu0  ;;  %9182 = vmatmul.mubr.msk.f32.gmra.mrb[18].mxu0 %vm820_vm1, %v441_v17  ;;  %v443_v42 = vld [vmem:[%s14781_s2 + $0x458] sm:$0xff] }
 0x283   : > { %v7785_v40 = vmax.f32 %v7273_v45, 0.0  ;;  %v4542_v43 = vadd.f32 %v4541_v36, %v2166_v18  ;;  %2486 = vmatprep.mubr.f32.mxu1 %v14845_v60  ;;  %4861 = vmatprep.mubr.f32.mxu0 %v14845_v60 }
 0x284   : > { %8296 = vst [vmem:[%s11204_s30 + $0x530] sm:$0xff] %v7784_v33  ;;  %v7274_v34 = vadd.f32 %v11736_v22, %v4540_v24  ;;  %v14905_v33 = vld [vmem:[#allocation26_spill] sm:$0xff] }
 0x285   : > { %8297 = vst [vmem:[%s11204_s30 + $0x538] sm:$0xff] %v7785_v40  ;;  %v7275_v51 = vadd.f32 %v11736_v22, %v4542_v43  ;;  %v2170_v23 = vpop.f32.mrb[170].mxu1  ;;  %v4545_v29 = vpop.f32.mrb[170].mxu0  ;;  %v700_v22 = vld [vmem:[%s14782_s3 + $0x458] sm:$0xff] }
 0x286   : > { %v7786_v35 = vmax.f32 %v7274_v34, 0.0  ;;  %v4546_v17 = vadd.f32 %v4545_v29, %v2170_v23  ;;  %v2172_v56 = vpop.f32.mrb[171].mxu1  ;;  %8925 = vmatmul.mubr.msk.f32.gmra.mrb[170].mxu1 %vm820_vm1, %v699_v6  ;;  %v4547_v0 = vpop.f32.mrb[171].mxu0  ;;  %9183 = vmatmul.mubr.msk.f32.gmra.mrb[20].mxu0 %vm820_vm1, %v442_v55  ;;  %v701_v29 = vld [vmem:[%s14782_s3 + $0x460] sm:$0xff] }
 0x287   : > { %v7787_v45 = vmax.f32 %v7275_v51, 0.0  ;;  %v4548_v10 = vadd.f32 %v4547_v0, %v2172_v56  ;;  %2492 = vmatprep.mubr.f32.mxu1 %v14845_v60  ;;  %4867 = vmatprep.mubr.f32.mxu0 %v14845_v60 }
 0x288   : > { %8298 = vst [vmem:[%s11204_s30 + $0x540] sm:$0xff] %v7786_v35  ;;  %v7276_v24 = vadd.f32 %v14905_v33, %v4546_v17  ;;  %v444_v35 = vld [vmem:[%s14781_s2 + $0x460] sm:$0xff] }
 0x289   : > { %8299 = vst [vmem:[%s11204_s30 + $0x548] sm:$0xff] %v7787_v45  ;;  %v7277_v18 = vadd.f32 %v14905_v33, %v4548_v10  ;;  %v2176_v36 = vpop.f32.mrb[172].mxu1  ;;  %v4551_v40 = vpop.f32.mrb[172].mxu0 }
 0x28a   : > { %v7788_v43 = vmax.f32 %v7276_v24, 0.0  ;;  %v4552_v6 = vadd.f32 %v4551_v40, %v2176_v36  ;;  %v2178_v55 = vpop.f32.mrb[173].mxu1  ;;  %8926 = vmatmul.mubr.msk.f32.gmra.mrb[172].mxu1 %vm820_vm1, %v700_v22  ;;  %v4553_v34 = vpop.f32.mrb[173].mxu0  ;;  %9184 = vmatmul.mubr.msk.f32.gmra.mrb[22].mxu0 %vm820_vm1, %v443_v42  ;;  %v445_v36 = vld [vmem:[%s14781_s2 + $0x468] sm:$0xff]  ;;  %v14906_v40 = vld [vmem:[#allocation27_spill] sm:$0xff] }
 0x28b   : > { %v7789_v51 = vmax.f32 %v7277_v18, 0.0  ;;  %v4554_v23 = vadd.f32 %v4553_v34, %v2178_v55  ;;  %2498 = vmatprep.mubr.f32.mxu1 %v14845_v60  ;;  %4873 = vmatprep.mubr.f32.mxu0 %v14845_v60 }
 0x28c   : > { %8300 = vst [vmem:[%s11204_s30 + $0x550] sm:$0xff] %v7788_v43  ;;  %v7278_v17 = vadd.f32 %v11760_v9, %v4552_v6 }
 0x28d   : > { %8301 = vst [vmem:[%s11204_s30 + $0x558] sm:$0xff] %v7789_v51  ;;  %v7279_v56 = vadd.f32 %v11760_v9, %v4554_v23  ;;  %v2182_v0 = vpop.f32.mrb[174].mxu1  ;;  %v4557_v45 = vpop.f32.mrb[174].mxu0  ;;  %v702_v9 = vld [vmem:[%s14782_s3 + $0x468] sm:$0xff] }
 0x28e   : > { %v7790_v10 = vmax.f32 %v7278_v17, 0.0  ;;  %v4558_v22 = vadd.f32 %v4557_v45, %v2182_v0  ;;  %v2184_v42 = vpop.f32.mrb[175].mxu1  ;;  %8927 = vmatmul.mubr.msk.f32.gmra.mrb[174].mxu1 %vm820_vm1, %v701_v29  ;;  %v4559_v33 = vpop.f32.mrb[175].mxu0  ;;  %9185 = vmatmul.mubr.msk.f32.gmra.mrb[24].mxu0 %vm820_vm1, %v444_v35  ;;  %v703_v0 = vld [vmem:[%s14782_s3 + $0x470] sm:$0xff] }
 0x28f   : > { %v7791_v24 = vmax.f32 %v7279_v56, 0.0  ;;  %v4560_v18 = vadd.f32 %v4559_v33, %v2184_v42  ;;  %2504 = vmatprep.mubr.f32.mxu1 %v14845_v60  ;;  %4879 = vmatprep.mubr.f32.mxu0 %v14845_v60  ;;  %v446_v45 = vld [vmem:[%s14781_s2 + $0x470] sm:$0xff] }
 0x290   : > { %8302 = vst [vmem:[%s11204_s30 + $0x560] sm:$0xff] %v7790_v10  ;;  %v7280_v43 = vadd.f32 %v14906_v40, %v4558_v22 }
 0x291   : > { %8303 = vst [vmem:[%s11204_s30 + $0x568] sm:$0xff] %v7791_v24  ;;  %v7281_v6 = vadd.f32 %v14906_v40, %v4560_v18  ;;  %v2188_v55 = vpop.f32.mrb[176].mxu1  ;;  %v4563_v34 = vpop.f32.mrb[176].mxu0 }
 0x292   : > { %v7792_v51 = vmax.f32 %v7280_v43, 0.0  ;;  %v4564_v23 = vadd.f32 %v4563_v34, %v2188_v55  ;;  %v2190_v29 = vpop.f32.mrb[177].mxu1  ;;  %8928 = vmatmul.mubr.msk.f32.gmra.mrb[176].mxu1 %vm820_vm1, %v702_v9  ;;  %v4565_v35 = vpop.f32.mrb[177].mxu0  ;;  %9186 = vmatmul.mubr.msk.f32.gmra.mrb[26].mxu0 %vm820_vm1, %v445_v36  ;;  %v14907_v55 = vld [vmem:[#allocation28_spill] sm:$0xff] }
 0x293   : > { %v7793_v17 = vmax.f32 %v7281_v6, 0.0  ;;  %v4566_v56 = vadd.f32 %v4565_v35, %v2190_v29  ;;  %2510 = vmatprep.mubr.f32.mxu1 %v14845_v60  ;;  %4885 = vmatprep.mubr.f32.mxu0 %v14845_v60  ;;  %v447_v6 = vld [vmem:[%s14781_s2 + $0x478] sm:$0xff] }
 0x294   : > { %8304 = vst [vmem:[%s11204_s30 + $0x570] sm:$0xff] %v7792_v51  ;;  %v7282_v10 = vadd.f32 %v11784_v41, %v4564_v23 }
 0x295   : > { %8305 = vst [vmem:[%s11204_s30 + $0x578] sm:$0xff] %v7793_v17  ;;  %v7283_v22 = vadd.f32 %v11784_v41, %v4566_v56  ;;  %v2194_v42 = vpop.f32.mrb[178].mxu1  ;;  %v4569_v33 = vpop.f32.mrb[178].mxu0  ;;  %v704_v41 = vld [vmem:[%s14782_s3 + $0x478] sm:$0xff] }
 0x296   : > { %v7794_v24 = vmax.f32 %v7282_v10, 0.0  ;;  %v4570_v18 = vadd.f32 %v4569_v33, %v2194_v42  ;;  %v2196_v9 = vpop.f32.mrb[179].mxu1  ;;  %8929 = vmatmul.mubr.msk.f32.gmra.mrb[178].mxu1 %vm820_vm1, %v703_v0  ;;  %v4571_v36 = vpop.f32.mrb[179].mxu0  ;;  %9187 = vmatmul.mubr.msk.f32.gmra.mrb[28].mxu0 %vm820_vm1, %v446_v45  ;;  %v448_v42 = vld [vmem:[%s14781_s2 + $0x480] sm:$0xff] }
 0x297   : > { %v7795_v40 = vmax.f32 %v7283_v22, 0.0  ;;  %v4572_v43 = vadd.f32 %v4571_v36, %v2196_v9  ;;  %2516 = vmatprep.mubr.f32.mxu1 %v14845_v60  ;;  %4891 = vmatprep.mubr.f32.mxu0 %v14845_v60  ;;  %v705_v22 = vld [vmem:[%s14782_s3 + $0x480] sm:$0xff] }
 0x298   : > { %8306 = vst [vmem:[%s11204_s30 + $0x580] sm:$0xff] %v7794_v24  ;;  %v7284_v34 = vadd.f32 %v14907_v55, %v4570_v18 }
 0x299   : > { %8307 = vst [vmem:[%s11204_s30 + $0x588] sm:$0xff] %v7795_v40  ;;  %v7285_v51 = vadd.f32 %v14907_v55, %v4572_v43  ;;  %v2200_v23 = vpop.f32.mrb[180].mxu1  ;;  %v4575_v29 = vpop.f32.mrb[180].mxu0 }
 0x29a   : > { %v7796_v35 = vmax.f32 %v7284_v34, 0.0  ;;  %v4576_v17 = vadd.f32 %v4575_v29, %v2200_v23  ;;  %v2202_v56 = vpop.f32.mrb[181].mxu1  ;;  %8930 = vmatmul.mubr.msk.f32.gmra.mrb[180].mxu1 %vm820_vm1, %v704_v41  ;;  %v4577_v0 = vpop.f32.mrb[181].mxu0  ;;  %9188 = vmatmul.mubr.msk.f32.gmra.mrb[30].mxu0 %vm820_vm1, %v447_v6  ;;  %v449_v34 = vld [vmem:[%s14781_s2 + $0x488] sm:$0xff] }
 0x29b   : > { %v7797_v45 = vmax.f32 %v7285_v51, 0.0  ;;  %v4578_v10 = vadd.f32 %v4577_v0, %v2202_v56  ;;  %2522 = vmatprep.mubr.f32.mxu1 %v14845_v60  ;;  %4897 = vmatprep.mubr.f32.mxu0 %v14845_v60  ;;  %v14908_v51 = vld [vmem:[#allocation29_spill] sm:$0xff] }
 0x29c   : > { %8308 = vst [vmem:[%s11204_s30 + $0x590] sm:$0xff] %v7796_v35  ;;  %v7286_v33 = vadd.f32 %v11808_v46, %v4576_v17 }
 0x29d   : > { %8309 = vst [vmem:[%s11204_s30 + $0x598] sm:$0xff] %v7797_v45  ;;  %v7287_v24 = vadd.f32 %v11808_v46, %v4578_v10  ;;  %v2206_v18 = vpop.f32.mrb[182].mxu1  ;;  %v4581_v9 = vpop.f32.mrb[182].mxu0  ;;  %v706_v46 = vld [vmem:[%s14782_s3 + $0x488] sm:$0xff] }
 0x29e   : > { %v7798_v36 = vmax.f32 %v7286_v33, 0.0  ;;  %v4582_v40 = vadd.f32 %v4581_v9, %v2206_v18  ;;  %v2208_v43 = vpop.f32.mrb[183].mxu1  ;;  %8931 = vmatmul.mubr.msk.f32.gmra.mrb[182].mxu1 %vm820_vm1, %v705_v22  ;;  %v4583_v41 = vpop.f32.mrb[183].mxu0  ;;  %9189 = vmatmul.mubr.msk.f32.gmra.mrb[32].mxu0 %vm820_vm1, %v448_v42  ;;  %v707_v33 = vld [vmem:[%s14782_s3 + $0x490] sm:$0xff] }
 0x29f   : > { %v7799_v6 = vmax.f32 %v7287_v24, 0.0  ;;  %v4584_v55 = vadd.f32 %v4583_v41, %v2208_v43  ;;  %2528 = vmatprep.mubr.f32.mxu1 %v14845_v60  ;;  %4903 = vmatprep.mubr.f32.mxu0 %v14845_v60  ;;  %v450_v24 = vld [vmem:[%s14781_s2 + $0x490] sm:$0xff] }
 0x2a0   : > { %8310 = vst [vmem:[%s11204_s30 + $0x5a0] sm:$0xff] %v7798_v36  ;;  %v7288_v23 = vadd.f32 %v14908_v51, %v4582_v40 }
 0x2a1   : > { %8311 = vst [vmem:[%s11204_s30 + $0x5a8] sm:$0xff] %v7799_v6  ;;  %v7289_v29 = vadd.f32 %v14908_v51, %v4584_v55  ;;  %v2212_v35 = vpop.f32.mrb[184].mxu1  ;;  %v4587_v17 = vpop.f32.mrb[184].mxu0  ;;  %v451_v51 = vld [vmem:[%s14781_s2 + $0x498] sm:$0xff] }
 0x2a2   : > { %v7800_v56 = vmax.f32 %v7288_v23, 0.0  ;;  %v4588_v0 = vadd.f32 %v4587_v17, %v2212_v35  ;;  %v2214_v45 = vpop.f32.mrb[185].mxu1  ;;  %8932 = vmatmul.mubr.msk.f32.gmra.mrb[184].mxu1 %vm820_vm1, %v706_v46  ;;  %v4589_v10 = vpop.f32.mrb[185].mxu0  ;;  %9190 = vmatmul.mubr.msk.f32.gmra.mrb[34].mxu0 %vm820_vm1, %v449_v34  ;;  %v14909_v23 = vld [vmem:[#allocation30_spill] sm:$0xff] }
 0x2a3   : > { %v7801_v22 = vmax.f32 %v7289_v29, 0.0  ;;  %v4590_v42 = vadd.f32 %v4589_v10, %v2214_v45  ;;  %2534 = vmatprep.mubr.f32.mxu1 %v14845_v60  ;;  %4909 = vmatprep.mubr.f32.mxu0 %v14845_v60 }
 0x2a4   : > { %8312 = vst [vmem:[%s11204_s30 + $0x5b0] sm:$0xff] %v7800_v56  ;;  %v7290_v18 = vadd.f32 %v11832_v47, %v4588_v0 }
 0x2a5   : > { %8313 = vst [vmem:[%s11204_s30 + $0x5b8] sm:$0xff] %v7801_v22  ;;  %v7291_v9 = vadd.f32 %v11832_v47, %v4590_v42  ;;  %v2218_v36 = vpop.f32.mrb[186].mxu1  ;;  %v4593_v40 = vpop.f32.mrb[186].mxu0  ;;  %v708_v47 = vld [vmem:[%s14782_s3 + $0x498] sm:$0xff] }
 0x2a6   : > { %v7802_v43 = vmax.f32 %v7290_v18, 0.0  ;;  %v4594_v41 = vadd.f32 %v4593_v40, %v2218_v36  ;;  %v2220_v6 = vpop.f32.mrb[187].mxu1  ;;  %8933 = vmatmul.mubr.msk.f32.gmra.mrb[186].mxu1 %vm820_vm1, %v707_v33  ;;  %v4595_v55 = vpop.f32.mrb[187].mxu0  ;;  %9191 = vmatmul.mubr.msk.f32.gmra.mrb[36].mxu0 %vm820_vm1, %v450_v24  ;;  %v709_v24 = vld [vmem:[%s14782_s3 + $0x4a0] sm:$0xff] }
 0x2a7   : > { %v7803_v46 = vmax.f32 %v7291_v9, 0.0  ;;  %v4596_v34 = vadd.f32 %v4595_v55, %v2220_v6  ;;  %2540 = vmatprep.mubr.f32.mxu1 %v14845_v60  ;;  %4915 = vmatprep.mubr.f32.mxu0 %v14845_v60  ;;  %v452_v18 = vld [vmem:[%s14781_s2 + $0x4a0] sm:$0xff] }
 0x2a8   : > { %8314 = vst [vmem:[%s11204_s30 + $0x5c0] sm:$0xff] %v7802_v43  ;;  %v7292_v29 = vadd.f32 %v14909_v23, %v4594_v41 }
 0x2a9   : > { %8315 = vst [vmem:[%s11204_s30 + $0x5c8] sm:$0xff] %v7803_v46  ;;  %v7293_v35 = vadd.f32 %v14909_v23, %v4596_v34  ;;  %v2224_v17 = vpop.f32.mrb[188].mxu1  ;;  %v4599_v56 = vpop.f32.mrb[188].mxu0  ;;  %v14910_v23 = vld [vmem:[#allocation31_spill] sm:$0xff] }
 0x2aa   : > { %v7804_v0 = vmax.f32 %v7292_v29, 0.0  ;;  %v4600_v45 = vadd.f32 %v4599_v56, %v2224_v17  ;;  %v2226_v10 = vpop.f32.mrb[189].mxu1  ;;  %8934 = vmatmul.mubr.msk.f32.gmra.mrb[188].mxu1 %vm820_vm1, %v708_v47  ;;  %v4601_v22 = vpop.f32.mrb[189].mxu0  ;;  %9192 = vmatmul.mubr.msk.f32.gmra.mrb[38].mxu0 %vm820_vm1, %v451_v51  ;;  %v453_v51 = vld [vmem:[%s14781_s2 + $0x4a8] sm:$0xff] }
 0x2ab   : > { %v7805_v42 = vmax.f32 %v7293_v35, 0.0  ;;  %v4602_v33 = vadd.f32 %v4601_v22, %v2226_v10  ;;  %2546 = vmatprep.mubr.f32.mxu1 %v14845_v60  ;;  %4921 = vmatprep.mubr.f32.mxu0 %v14845_v60 }
 0x2ac   : > { %8316 = vst [vmem:[%s11204_s30 + $0x5d0] sm:$0xff] %v7804_v0  ;;  %v7294_v9 = vadd.f32 %v11856_v52, %v4600_v45 }
 0x2ad   : > { %8317 = vst [vmem:[%s11204_s30 + $0x5d8] sm:$0xff] %v7805_v42  ;;  %v7295_v36 = vadd.f32 %v11856_v52, %v4602_v33  ;;  %v2230_v40 = vpop.f32.mrb[190].mxu1  ;;  %v4605_v43 = vpop.f32.mrb[190].mxu0  ;;  %v710_v52 = vld [vmem:[%s14782_s3 + $0x4a8] sm:$0xff] }
 0x2ae   : > { %v7806_v41 = vmax.f32 %v7294_v9, 0.0  ;;  %v4606_v6 = vadd.f32 %v4605_v43, %v2230_v40  ;;  %v2232_v55 = vpop.f32.mrb[191].mxu1  ;;  %8935 = vmatmul.mubr.msk.f32.gmra.mrb[190].mxu1 %vm820_vm1, %v709_v24  ;;  %v4607_v46 = vpop.f32.mrb[191].mxu0  ;;  %9193 = vmatmul.mubr.msk.f32.gmra.mrb[40].mxu0 %vm820_vm1, %v452_v18  ;;  %v711_v24 = vld [vmem:[%s14782_s3 + $0x4b0] sm:$0xff] }
 0x2af   : > { %v7807_v34 = vmax.f32 %v7295_v36, 0.0  ;;  %v4608_v47 = vadd.f32 %v4607_v46, %v2232_v55  ;;  %2552 = vmatprep.mubr.f32.mxu1 %v14845_v60  ;;  %4927 = vmatprep.mubr.f32.mxu0 %v14845_v60  ;;  %v454_v18 = vld [vmem:[%s14781_s2 + $0x4b0] sm:$0xff] }
 0x2b0   : > { %8318 = vst [vmem:[%s11204_s30 + $0x5e0] sm:$0xff] %v7806_v41  ;;  %v7296_v29 = vadd.f32 %v14910_v23, %v4606_v6 }
 0x2b1   : > { %8319 = vst [vmem:[%s11204_s30 + $0x5e8] sm:$0xff] %v7807_v34  ;;  %v7297_v35 = vadd.f32 %v14910_v23, %v4608_v47  ;;  %v2236_v17 = vpop.f32.mrb[192].mxu1  ;;  %v4611_v56 = vpop.f32.mrb[192].mxu0 }
 0x2b2   : > { %v7808_v0 = vmax.f32 %v7296_v29, 0.0  ;;  %v4612_v45 = vadd.f32 %v4611_v56, %v2236_v17  ;;  %v2238_v10 = vpop.f32.mrb[193].mxu1  ;;  %8936 = vmatmul.mubr.msk.f32.gmra.mrb[192].mxu1 %vm820_vm1, %v710_v52  ;;  %v4613_v22 = vpop.f32.mrb[193].mxu0  ;;  %9194 = vmatmul.mubr.msk.f32.gmra.mrb[42].mxu0 %vm820_vm1, %v453_v51  ;;  %v455_v52 = vld [vmem:[%s14781_s2 + $0x4b8] sm:$0xff]  ;;  %v14911_v51 = vld [vmem:[#allocation32_spill] sm:$0xff] }
 0x2b3   : > { %v7809_v42 = vmax.f32 %v7297_v35, 0.0  ;;  %v4614_v33 = vadd.f32 %v4613_v22, %v2238_v10  ;;  %2558 = vmatprep.mubr.f32.mxu1 %v14845_v60  ;;  %4933 = vmatprep.mubr.f32.mxu0 %v14845_v60 }
 0x2b4   : > { %8320 = vst [vmem:[%s11204_s30 + $0x5f0] sm:$0xff] %v7808_v0  ;;  %v7298_v9 = vadd.f32 %v11880_v53, %v4612_v45 }
 0x2b5   : > { %8321 = vst [vmem:[%s11204_s30 + $0x5f8] sm:$0xff] %v7809_v42  ;;  %v7299_v36 = vadd.f32 %v11880_v53, %v4614_v33  ;;  %v2242_v40 = vpop.f32.mrb[194].mxu1  ;;  %v4617_v43 = vpop.f32.mrb[194].mxu0  ;;  %v712_v53 = vld [vmem:[%s14782_s3 + $0x4b8] sm:$0xff]  ;;  %v713_v33 = vld [vmem:[%s14782_s3 + $0x4c0] sm:$0xff] }
 0x2b6   : > { %v7810_v41 = vmax.f32 %v7298_v9, 0.0  ;;  %v4618_v6 = vadd.f32 %v4617_v43, %v2242_v40  ;;  %v2244_v55 = vpop.f32.mrb[195].mxu1  ;;  %8937 = vmatmul.mubr.msk.f32.gmra.mrb[194].mxu1 %vm820_vm1, %v711_v24  ;;  %v4619_v46 = vpop.f32.mrb[195].mxu0  ;;  %9195 = vmatmul.mubr.msk.f32.gmra.mrb[44].mxu0 %vm820_vm1, %v454_v18  ;;  %v456_v24 = vld [vmem:[%s14781_s2 + $0x4c0] sm:$0xff] }
 0x2b7   : > { %v7811_v34 = vmax.f32 %v7299_v36, 0.0  ;;  %v4620_v47 = vadd.f32 %v4619_v46, %v2244_v55  ;;  %2564 = vmatprep.mubr.f32.mxu1 %v14845_v60  ;;  %4939 = vmatprep.mubr.f32.mxu0 %v14845_v60 }
 0x2b8   : > { %8322 = vst [vmem:[%s11204_s30 + $0x600] sm:$0xff] %v7810_v41  ;;  %v7300_v23 = vadd.f32 %v14911_v51, %v4618_v6 }
 0x2b9   : > { %8323 = vst [vmem:[%s11204_s30 + $0x608] sm:$0xff] %v7811_v34  ;;  %v7301_v29 = vadd.f32 %v14911_v51, %v4620_v47  ;;  %v2248_v35 = vpop.f32.mrb[196].mxu1  ;;  %v4623_v17 = vpop.f32.mrb[196].mxu0  ;;  %v457_v47 = vld [vmem:[%s14781_s2 + $0x4c8] sm:$0xff] }
 0x2ba   : > { %v7812_v56 = vmax.f32 %v7300_v23, 0.0  ;;  %v4624_v0 = vadd.f32 %v4623_v17, %v2248_v35  ;;  %v2250_v45 = vpop.f32.mrb[197].mxu1  ;;  %8938 = vmatmul.mubr.msk.f32.gmra.mrb[196].mxu1 %vm820_vm1, %v712_v53  ;;  %v4625_v10 = vpop.f32.mrb[197].mxu0  ;;  %9196 = vmatmul.mubr.msk.f32.gmra.mrb[46].mxu0 %vm820_vm1, %v455_v52  ;;  %v14912_v53 = vld [vmem:[#allocation33_spill] sm:$0xff] }
 0x2bb   : > { %v7813_v22 = vmax.f32 %v7301_v29, 0.0  ;;  %v4626_v42 = vadd.f32 %v4625_v10, %v2250_v45  ;;  %2570 = vmatprep.mubr.f32.mxu1 %v14845_v60  ;;  %4945 = vmatprep.mubr.f32.mxu0 %v14845_v60 }
 0x2bc   : > { %8324 = vst [vmem:[%s11204_s30 + $0x610] sm:$0xff] %v7812_v56  ;;  %v7302_v18 = vadd.f32 %v11904_v58, %v4624_v0 }
 0x2bd   : > { %8325 = vst [vmem:[%s11204_s30 + $0x618] sm:$0xff] %v7813_v22  ;;  %v7303_v9 = vadd.f32 %v11904_v58, %v4626_v42  ;;  %v2254_v36 = vpop.f32.mrb[198].mxu1  ;;  %v4629_v40 = vpop.f32.mrb[198].mxu0  ;;  %v714_v58 = vld [vmem:[%s14782_s3 + $0x4c8] sm:$0xff]  ;;  %v715_v22 = vld [vmem:[%s14782_s3 + $0x4d0] sm:$0xff] }
 0x2be   : > { %v7814_v43 = vmax.f32 %v7302_v18, 0.0  ;;  %v4630_v41 = vadd.f32 %v4629_v40, %v2254_v36  ;;  %v2256_v6 = vpop.f32.mrb[199].mxu1  ;;  %8939 = vmatmul.mubr.msk.f32.gmra.mrb[198].mxu1 %vm820_vm1, %v713_v33  ;;  %v4631_v55 = vpop.f32.mrb[199].mxu0  ;;  %9197 = vmatmul.mubr.msk.f32.gmra.mrb[48].mxu0 %vm820_vm1, %v456_v24  ;;  %v458_v42 = vld [vmem:[%s14781_s2 + $0x4d0] sm:$0xff] }
 0x2bf   : > { %v7815_v46 = vmax.f32 %v7303_v9, 0.0  ;;  %v4632_v34 = vadd.f32 %v4631_v55, %v2256_v6  ;;  %2576 = vmatprep.mubr.f32.mxu1 %v14845_v60  ;;  %4951 = vmatprep.mubr.f32.mxu0 %v14845_v60 }
 0x2c0   : > { %8326 = vst [vmem:[%s11204_s30 + $0x620] sm:$0xff] %v7814_v43  ;;  %v7304_v52 = vadd.f32 %v14912_v53, %v4630_v41 }
 0x2c1   : > { %8327 = vst [vmem:[%s11204_s30 + $0x628] sm:$0xff] %v7815_v46  ;;  %v7305_v51 = vadd.f32 %v14912_v53, %v4632_v34  ;;  %v2260_v23 = vpop.f32.mrb[200].mxu1  ;;  %v4635_v29 = vpop.f32.mrb[200].mxu0  ;;  %v459_v46 = vld [vmem:[%s14781_s2 + $0x4d8] sm:$0xff] }
 0x2c2   : > { %v7816_v35 = vmax.f32 %v7304_v52, 0.0  ;;  %v4636_v17 = vadd.f32 %v4635_v29, %v2260_v23  ;;  %v2262_v56 = vpop.f32.mrb[201].mxu1  ;;  %8940 = vmatmul.mubr.msk.f32.gmra.mrb[200].mxu1 %vm820_vm1, %v714_v58  ;;  %v4637_v0 = vpop.f32.mrb[201].mxu0  ;;  %9198 = vmatmul.mubr.msk.f32.gmra.mrb[50].mxu0 %vm820_vm1, %v457_v47  ;;  %v14913_v34 = vld [vmem:[#allocation34_spill] sm:$0xff] }
 0x2c3   : > { %v7817_v45 = vmax.f32 %v7305_v51, 0.0  ;;  %v4638_v10 = vadd.f32 %v4637_v0, %v2262_v56  ;;  %2582 = vmatprep.mubr.f32.mxu1 %v14845_v60  ;;  %4957 = vmatprep.mubr.f32.mxu0 %v14845_v60  ;;  %v717_v0 = vld [vmem:[%s14782_s3 + $0x4e0] sm:$0xff] }
 0x2c4   : > { %8328 = vst [vmem:[%s11204_s30 + $0x630] sm:$0xff] %v7816_v35  ;;  %v7306_v33 = vadd.f32 %v11928_v59, %v4636_v17 }
 0x2c5   : > { %8329 = vst [vmem:[%s11204_s30 + $0x638] sm:$0xff] %v7817_v45  ;;  %v7307_v24 = vadd.f32 %v11928_v59, %v4638_v10  ;;  %v2266_v18 = vpop.f32.mrb[202].mxu1  ;;  %v4641_v9 = vpop.f32.mrb[202].mxu0  ;;  %v716_v59 = vld [vmem:[%s14782_s3 + $0x4d8] sm:$0xff]  ;;  %v460_v45 = vld [vmem:[%s14781_s2 + $0x4e0] sm:$0xff] }
 0x2c6   : > { %v7818_v36 = vmax.f32 %v7306_v33, 0.0  ;;  %v4642_v40 = vadd.f32 %v4641_v9, %v2266_v18  ;;  %v2268_v43 = vpop.f32.mrb[203].mxu1  ;;  %8941 = vmatmul.mubr.msk.f32.gmra.mrb[202].mxu1 %vm820_vm1, %v715_v22  ;;  %v4643_v41 = vpop.f32.mrb[203].mxu0  ;;  %9199 = vmatmul.mubr.msk.f32.gmra.mrb[52].mxu0 %vm820_vm1, %v458_v42 }
 0x2c7   : > { %v7819_v6 = vmax.f32 %v7307_v24, 0.0  ;;  %v4644_v55 = vadd.f32 %v4643_v41, %v2268_v43  ;;  %2588 = vmatprep.mubr.f32.mxu1 %v14845_v60  ;;  %4963 = vmatprep.mubr.f32.mxu0 %v14845_v60  ;;  %v461_v41 = vld [vmem:[%s14781_s2 + $0x4e8] sm:$0xff] }
 0x2c8   : > { %8330 = vst [vmem:[%s11204_s30 + $0x640] sm:$0xff] %v7818_v36  ;;  %v7308_v58 = vadd.f32 %v14913_v34, %v4642_v40 }
 0x2c9   : > { %8331 = vst [vmem:[%s11204_s30 + $0x648] sm:$0xff] %v7819_v6  ;;  %v7309_v47 = vadd.f32 %v14913_v34, %v4644_v55  ;;  %v2272_v53 = vpop.f32.mrb[204].mxu1  ;;  %v4647_v52 = vpop.f32.mrb[204].mxu0  ;;  %v14914_v6 = vld [vmem:[#allocation35_spill] sm:$0xff] }
 0x2ca   : > { %v7820_v51 = vmax.f32 %v7308_v58, 0.0  ;;  %v4648_v23 = vadd.f32 %v4647_v52, %v2272_v53  ;;  %v2274_v29 = vpop.f32.mrb[205].mxu1  ;;  %8942 = vmatmul.mubr.msk.f32.gmra.mrb[204].mxu1 %vm820_vm1, %v716_v59  ;;  %v4649_v35 = vpop.f32.mrb[205].mxu0  ;;  %9200 = vmatmul.mubr.msk.f32.gmra.mrb[54].mxu0 %vm820_vm1, %v459_v46 }
 0x2cb   : > { %v7821_v17 = vmax.f32 %v7309_v47, 0.0  ;;  %v4650_v56 = vadd.f32 %v4649_v35, %v2274_v29  ;;  %2594 = vmatprep.mubr.f32.mxu1 %v14845_v60  ;;  %4969 = vmatprep.mubr.f32.mxu0 %v14845_v60  ;;  %v719_v29 = vld [vmem:[%s14782_s3 + $0x4f0] sm:$0xff] }
 0x2cc   : > { %8332 = vst [vmem:[%s11204_s30 + $0x650] sm:$0xff] %v7820_v51  ;;  %v7310_v10 = vadd.f32 %v11952_v1, %v4648_v23  ;;  %v462_v35 = vld [vmem:[%s14781_s2 + $0x4f0] sm:$0xff] }
 0x2cd   : > { %8333 = vst [vmem:[%s11204_s30 + $0x658] sm:$0xff] %v7821_v17  ;;  %v7311_v22 = vadd.f32 %v11952_v1, %v4650_v56  ;;  %v2278_v42 = vpop.f32.mrb[206].mxu1  ;;  %v4653_v33 = vpop.f32.mrb[206].mxu0  ;;  %v718_v1 = vld [vmem:[%s14782_s3 + $0x4e8] sm:$0xff] }
 0x2ce   : > { %v7822_v24 = vmax.f32 %v7310_v10, 0.0  ;;  %v4654_v18 = vadd.f32 %v4653_v33, %v2278_v42  ;;  %v2280_v9 = vpop.f32.mrb[207].mxu1  ;;  %8943 = vmatmul.mubr.msk.f32.gmra.mrb[206].mxu1 %vm820_vm1, %v717_v0  ;;  %v4655_v36 = vpop.f32.mrb[207].mxu0  ;;  %9201 = vmatmul.mubr.msk.f32.gmra.mrb[56].mxu0 %vm820_vm1, %v460_v45 }
 0x2cf   : > { %v7823_v40 = vmax.f32 %v7311_v22, 0.0  ;;  %v4656_v43 = vadd.f32 %v4655_v36, %v2280_v9  ;;  %2600 = vmatprep.mubr.f32.mxu1 %v14845_v60  ;;  %4975 = vmatprep.mubr.f32.mxu0 %v14845_v60  ;;  %v463_v9 = vld [vmem:[%s14781_s2 + $0x4f8] sm:$0xff]  ;;  %v14915_v36 = vld [vmem:[#allocation36_spill] sm:$0xff] }
 0x2d0   : > { %8334 = vst [vmem:[%s11204_s30 + $0x660] sm:$0xff] %v7822_v24  ;;  %v7312_v55 = vadd.f32 %v14914_v6, %v4654_v18 }
 0x2d1   : > { %8335 = vst [vmem:[%s11204_s30 + $0x668] sm:$0xff] %v7823_v40  ;;  %v7313_v59 = vadd.f32 %v14914_v6, %v4656_v43  ;;  %v2284_v46 = vpop.f32.mrb[208].mxu1  ;;  %v4659_v34 = vpop.f32.mrb[208].mxu0 }
 0x2d2   : > { %v7824_v58 = vmax.f32 %v7312_v55, 0.0  ;;  %v4660_v47 = vadd.f32 %v4659_v34, %v2284_v46  ;;  %v2286_v53 = vpop.f32.mrb[209].mxu1  ;;  %8944 = vmatmul.mubr.msk.f32.gmra.mrb[208].mxu1 %vm820_vm1, %v718_v1  ;;  %v4661_v52 = vpop.f32.mrb[209].mxu0  ;;  %9202 = vmatmul.mubr.msk.f32.gmra.mrb[58].mxu0 %vm820_vm1, %v461_v41 }
 0x2d3   : > { %v7825_v51 = vmax.f32 %v7313_v59, 0.0  ;;  %v4662_v23 = vadd.f32 %v4661_v52, %v2286_v53  ;;  %2606 = vmatprep.mubr.f32.mxu1 %v14845_v60  ;;  %4981 = vmatprep.mubr.f32.mxu0 %v14845_v60  ;;  %v464_v53 = vld [vmem:[%s14781_s2 + $0x500] sm:$0xff] }
 0x2d4   : > { %8336 = vst [vmem:[%s11204_s30 + $0x670] sm:$0xff] %v7824_v58  ;;  %v7314_v17 = vadd.f32 %v11976_v2, %v4660_v47  ;;  %v721_v47 = vld [vmem:[%s14782_s3 + $0x500] sm:$0xff] }
 0x2d5   : > { %8337 = vst [vmem:[%s11204_s30 + $0x678] sm:$0xff] %v7825_v51  ;;  %v7315_v56 = vadd.f32 %v11976_v2, %v4662_v23  ;;  %v2290_v0 = vpop.f32.mrb[210].mxu1  ;;  %v4665_v45 = vpop.f32.mrb[210].mxu0  ;;  %v720_v2 = vld [vmem:[%s14782_s3 + $0x4f8] sm:$0xff] }
 0x2d6   : > { %v7826_v10 = vmax.f32 %v7314_v17, 0.0  ;;  %v4666_v22 = vadd.f32 %v4665_v45, %v2290_v0  ;;  %v2292_v42 = vpop.f32.mrb[211].mxu1  ;;  %8945 = vmatmul.mubr.msk.f32.gmra.mrb[210].mxu1 %vm820_vm1, %v719_v29  ;;  %v4667_v33 = vpop.f32.mrb[211].mxu0  ;;  %9203 = vmatmul.mubr.msk.f32.gmra.mrb[60].mxu0 %vm820_vm1, %v462_v35 }
 0x2d7   : > { %v7827_v24 = vmax.f32 %v7315_v56, 0.0  ;;  %v4668_v18 = vadd.f32 %v4667_v33, %v2292_v42  ;;  %2612 = vmatprep.mubr.f32.mxu1 %v14845_v60  ;;  %4987 = vmatprep.mubr.f32.mxu0 %v14845_v60  ;;  %v14916_v42 = vld [vmem:[#allocation37_spill] sm:$0xff] }
 0x2d8   : > { %8338 = vst [vmem:[%s11204_s30 + $0x680] sm:$0xff] %v7826_v10  ;;  %v7316_v40 = vadd.f32 %v14915_v36, %v4666_v22  ;;  %v465_v22 = vld [vmem:[%s14781_s2 + $0x508] sm:$0xff] }
 0x2d9   : > { %8339 = vst [vmem:[%s11204_s30 + $0x688] sm:$0xff] %v7827_v24  ;;  %v7317_v43 = vadd.f32 %v14915_v36, %v4668_v18  ;;  %v2296_v1 = vpop.f32.mrb[212].mxu1  ;;  %v4671_v41 = vpop.f32.mrb[212].mxu0 }
 0x2da   : > { %v7828_v6 = vmax.f32 %v7316_v40, 0.0  ;;  %v4672_v55 = vadd.f32 %v4671_v41, %v2296_v1  ;;  %v2298_v59 = vpop.f32.mrb[213].mxu1  ;;  %8946 = vmatmul.mubr.msk.f32.gmra.mrb[212].mxu1 %vm820_vm1, %v720_v2  ;;  %v4673_v46 = vpop.f32.mrb[213].mxu0  ;;  %9204 = vmatmul.mubr.msk.f32.gmra.mrb[62].mxu0 %vm820_vm1, %v463_v9 }
 0x2db   : > { %v7829_v34 = vmax.f32 %v7317_v43, 0.0  ;;  %v4674_v58 = vadd.f32 %v4673_v46, %v2298_v59  ;;  %2618 = vmatprep.mubr.f32.mxu1 %v14845_v60  ;;  %4993 = vmatprep.mubr.f32.mxu0 %v14845_v60 }
 0x2dc   : > { %8340 = vst [vmem:[%s11204_s30 + $0x690] sm:$0xff] %v7828_v6  ;;  %v7318_v52 = vadd.f32 %v12000_v7, %v4672_v55  ;;  %v723_v6 = vld [vmem:[%s14782_s3 + $0x510] sm:$0xff] }
 0x2dd   : > { %8341 = vst [vmem:[%s11204_s30 + $0x698] sm:$0xff] %v7829_v34  ;;  %v7319_v51 = vadd.f32 %v12000_v7, %v4674_v58  ;;  %v2302_v23 = vpop.f32.mrb[214].mxu1  ;;  %v4677_v29 = vpop.f32.mrb[214].mxu0  ;;  %v722_v7 = vld [vmem:[%s14782_s3 + $0x508] sm:$0xff]  ;;  %v466_v55 = vld [vmem:[%s14781_s2 + $0x510] sm:$0xff] }
 0x2de   : > { %v7830_v35 = vmax.f32 %v7318_v52, 0.0  ;;  %v4678_v17 = vadd.f32 %v4677_v29, %v2302_v23  ;;  %v2304_v56 = vpop.f32.mrb[215].mxu1  ;;  %8947 = vmatmul.mubr.msk.f32.gmra.mrb[214].mxu1 %vm820_vm1, %v721_v47  ;;  %v4679_v0 = vpop.f32.mrb[215].mxu0  ;;  %9205 = vmatmul.mubr.msk.f32.gmra.mrb[64].mxu0 %vm820_vm1, %v464_v53 }
 0x2df   : > { %v7831_v45 = vmax.f32 %v7319_v51, 0.0  ;;  %v4680_v10 = vadd.f32 %v4679_v0, %v2304_v56  ;;  %2624 = vmatprep.mubr.f32.mxu1 %v14845_v60  ;;  %4999 = vmatprep.mubr.f32.mxu0 %v14845_v60 }
 0x2e0   : > { %8342 = vst [vmem:[%s11204_s30 + $0x6a0] sm:$0xff] %v7830_v35  ;;  %v7320_v33 = vadd.f32 %v14916_v42, %v4678_v17  ;;  %v467_v35 = vld [vmem:[%s14781_s2 + $0x518] sm:$0xff] }
 0x2e1   : > { %8343 = vst [vmem:[%s11204_s30 + $0x6a8] sm:$0xff] %v7831_v45  ;;  %v7321_v24 = vadd.f32 %v14916_v42, %v4680_v10  ;;  %v2308_v18 = vpop.f32.mrb[216].mxu1  ;;  %v4683_v2 = vpop.f32.mrb[216].mxu0  ;;  %v14917_v17 = vld [vmem:[#allocation38_spill] sm:$0xff] }
 0x2e2   : > { %v7832_v9 = vmax.f32 %v7320_v33, 0.0  ;;  %v4684_v36 = vadd.f32 %v4683_v2, %v2308_v18  ;;  %v2310_v40 = vpop.f32.mrb[217].mxu1  ;;  %8948 = vmatmul.mubr.msk.f32.gmra.mrb[216].mxu1 %vm820_vm1, %v722_v7  ;;  %v4685_v43 = vpop.f32.mrb[217].mxu0  ;;  %9206 = vmatmul.mubr.msk.f32.gmra.mrb[66].mxu0 %vm820_vm1, %v465_v22  ;;  %v725_v2 = vld [vmem:[%s14782_s3 + $0x520] sm:$0xff] }
 0x2e3   : > { %v7833_v1 = vmax.f32 %v7321_v24, 0.0  ;;  %v4686_v41 = vadd.f32 %v4685_v43, %v2310_v40  ;;  %2630 = vmatprep.mubr.f32.mxu1 %v14845_v60  ;;  %5005 = vmatprep.mubr.f32.mxu0 %v14845_v60 }
 0x2e4   : > { %8344 = vst [vmem:[%s11204_s30 + $0x6b0] sm:$0xff] %v7832_v9  ;;  %v7322_v59 = vadd.f32 %v12024_v8, %v4684_v36  ;;  %v468_v9 = vld [vmem:[%s14781_s2 + $0x520] sm:$0xff] }
 0x2e5   : > { %8345 = vst [vmem:[%s11204_s30 + $0x6b8] sm:$0xff] %v7833_v1  ;;  %v7323_v46 = vadd.f32 %v12024_v8, %v4686_v41  ;;  %v2314_v34 = vpop.f32.mrb[218].mxu1  ;;  %v4689_v58 = vpop.f32.mrb[218].mxu0  ;;  %v724_v8 = vld [vmem:[%s14782_s3 + $0x518] sm:$0xff] }
 0x2e6   : > { %v7834_v47 = vmax.f32 %v7322_v59, 0.0  ;;  %v4690_v53 = vadd.f32 %v4689_v58, %v2314_v34  ;;  %v2316_v52 = vpop.f32.mrb[219].mxu1  ;;  %8949 = vmatmul.mubr.msk.f32.gmra.mrb[218].mxu1 %vm820_vm1, %v723_v6  ;;  %v4691_v51 = vpop.f32.mrb[219].mxu0  ;;  %9207 = vmatmul.mubr.msk.f32.gmra.mrb[68].mxu0 %vm820_vm1, %v466_v55  ;;  %v469_v58 = vld [vmem:[%s14781_s2 + $0x528] sm:$0xff] }
 0x2e7   : > { %v7835_v23 = vmax.f32 %v7323_v46, 0.0  ;;  %v4692_v29 = vadd.f32 %v4691_v51, %v2316_v52  ;;  %2636 = vmatprep.mubr.f32.mxu1 %v14845_v60  ;;  %5011 = vmatprep.mubr.f32.mxu0 %v14845_v60 }
 0x2e8   : > { %8346 = vst [vmem:[%s11204_s30 + $0x6c0] sm:$0xff] %v7834_v47  ;;  %v7324_v56 = vadd.f32 %v14917_v17, %v4690_v53  ;;  %v14918_v47 = vld [vmem:[#allocation39_spill] sm:$0xff] }
 0x2e9   : > { %8347 = vst [vmem:[%s11204_s30 + $0x6c8] sm:$0xff] %v7835_v23  ;;  %v7325_v0 = vadd.f32 %v14917_v17, %v4692_v29  ;;  %v2320_v45 = vpop.f32.mrb[220].mxu1  ;;  %v4695_v10 = vpop.f32.mrb[220].mxu0 }
 0x2ea   : > { %v7836_v7 = vmax.f32 %v7324_v56, 0.0  ;;  %v4696_v22 = vadd.f32 %v4695_v10, %v2320_v45  ;;  %v2322_v42 = vpop.f32.mrb[221].mxu1  ;;  %8950 = vmatmul.mubr.msk.f32.gmra.mrb[220].mxu1 %vm820_vm1, %v724_v8  ;;  %v4697_v33 = vpop.f32.mrb[221].mxu0  ;;  %9208 = vmatmul.mubr.msk.f32.gmra.mrb[70].mxu0 %vm820_vm1, %v467_v35  ;;  %v727_v45 = vld [vmem:[%s14782_s3 + $0x530] sm:$0xff] }
 0x2eb   : > { %v7837_v24 = vmax.f32 %v7325_v0, 0.0  ;;  %v4698_v18 = vadd.f32 %v4697_v33, %v2322_v42  ;;  %2642 = vmatprep.mubr.f32.mxu1 %v14845_v60  ;;  %5017 = vmatprep.mubr.f32.mxu0 %v14845_v60  ;;  %v470_v10 = vld [vmem:[%s14781_s2 + $0x530] sm:$0xff] }
 0x2ec   : > { %8348 = vst [vmem:[%s11204_s30 + $0x6d0] sm:$0xff] %v7836_v7  ;;  %v7326_v36 = vadd.f32 %v12048_v13, %v4696_v22 }
 0x2ed   : > { %8349 = vst [vmem:[%s11204_s30 + $0x6d8] sm:$0xff] %v7837_v24  ;;  %v7327_v40 = vadd.f32 %v12048_v13, %v4698_v18  ;;  %v2326_v43 = vpop.f32.mrb[222].mxu1  ;;  %v4701_v1 = vpop.f32.mrb[222].mxu0  ;;  %v726_v13 = vld [vmem:[%s14782_s3 + $0x528] sm:$0xff] }
 0x2ee   : > { %v7838_v41 = vmax.f32 %v7326_v36, 0.0  ;;  %v4702_v6 = vadd.f32 %v4701_v1, %v2326_v43  ;;  %v2328_v55 = vpop.f32.mrb[223].mxu1  ;;  %8951 = vmatmul.mubr.msk.f32.gmra.mrb[222].mxu1 %vm820_vm1, %v725_v2  ;;  %v4703_v59 = vpop.f32.mrb[223].mxu0  ;;  %9209 = vmatmul.mubr.msk.f32.gmra.mrb[72].mxu0 %vm820_vm1, %v468_v9  ;;  %v471_v43 = vld [vmem:[%s14781_s2 + $0x538] sm:$0xff]  ;;  %v14919_v1 = vld [vmem:[#allocation40_spill] sm:$0xff] }
 0x2ef   : > { %v7839_v46 = vmax.f32 %v7327_v40, 0.0  ;;  %v4704_v34 = vadd.f32 %v4703_v59, %v2328_v55  ;;  %2648 = vmatprep.mubr.f32.mxu1 %v14845_v60  ;;  %5023 = vmatprep.mubr.f32.mxu0 %v14845_v60 }
 0x2f0   : > { %8350 = vst [vmem:[%s11204_s30 + $0x6e0] sm:$0xff] %v7838_v41  ;;  %v7328_v53 = vadd.f32 %v14918_v47, %v4702_v6 }
 0x2f1   : > { %8351 = vst [vmem:[%s11204_s30 + $0x6e8] sm:$0xff] %v7839_v46  ;;  %v7329_v52 = vadd.f32 %v14918_v47, %v4704_v34  ;;  %v2332_v51 = vpop.f32.mrb[224].mxu1  ;;  %v4707_v23 = vpop.f32.mrb[224].mxu0 }
 0x2f2   : > { %v7840_v29 = vmax.f32 %v7328_v53, 0.0  ;;  %v4708_v8 = vadd.f32 %v4707_v23, %v2332_v51  ;;  %v2334_v35 = vpop.f32.mrb[225].mxu1  ;;  %8952 = vmatmul.mubr.msk.f32.gmra.mrb[224].mxu1 %vm820_vm1, %v726_v13  ;;  %v4709_v17 = vpop.f32.mrb[225].mxu0  ;;  %9210 = vmatmul.mubr.msk.f32.gmra.mrb[74].mxu0 %vm820_vm1, %v469_v58  ;;  %v472_v51 = vld [vmem:[%s14781_s2 + $0x540] sm:$0xff] }
 0x2f3   : > { %v7841_v56 = vmax.f32 %v7329_v52, 0.0  ;;  %v4710_v0 = vadd.f32 %v4709_v17, %v2334_v35  ;;  %2654 = vmatprep.mubr.f32.mxu1 %v14845_v60  ;;  %5029 = vmatprep.mubr.f32.mxu0 %v14845_v60  ;;  %v729_v52 = vld [vmem:[%s14782_s3 + $0x540] sm:$0xff] }
 0x2f4   : > { %8352 = vst [vmem:[%s11204_s30 + $0x6f0] sm:$0xff] %v7840_v29  ;;  %v7330_v7 = vadd.f32 %v12072_v14, %v4708_v8 }
 0x2f5   : > { %8353 = vst [vmem:[%s11204_s30 + $0x6f8] sm:$0xff] %v7841_v56  ;;  %v7331_v22 = vadd.f32 %v12072_v14, %v4710_v0  ;;  %v2338_v42 = vpop.f32.mrb[226].mxu1  ;;  %v4713_v33 = vpop.f32.mrb[226].mxu0  ;;  %v728_v14 = vld [vmem:[%s14782_s3 + $0x538] sm:$0xff] }
 0x2f6   : > { %v7842_v24 = vmax.f32 %v7330_v7, 0.0  ;;  %v4714_v18 = vadd.f32 %v4713_v33, %v2338_v42  ;;  %v2340_v2 = vpop.f32.mrb[227].mxu1  ;;  %8953 = vmatmul.mubr.msk.f32.gmra.mrb[226].mxu1 %vm820_vm1, %v727_v45  ;;  %v4715_v9 = vpop.f32.mrb[227].mxu0  ;;  %9211 = vmatmul.mubr.msk.f32.gmra.mrb[76].mxu0 %vm820_vm1, %v470_v10  ;;  %v14920_v42 = vld [vmem:[#allocation41_spill] sm:$0xff] }
 0x2f7   : > { %v7843_v36 = vmax.f32 %v7331_v22, 0.0  ;;  %v4716_v40 = vadd.f32 %v4715_v9, %v2340_v2  ;;  %2660 = vmatprep.mubr.f32.mxu1 %v14845_v60  ;;  %5035 = vmatprep.mubr.f32.mxu0 %v14845_v60  ;;  %v473_v22 = vld [vmem:[%s14781_s2 + $0x548] sm:$0xff] }
 0x2f8   : > { %8354 = vst [vmem:[%s11204_s30 + $0x700] sm:$0xff] %v7842_v24  ;;  %v7332_v41 = vadd.f32 %v14919_v1, %v4714_v18 }
 0x2f9   : > { %8355 = vst [vmem:[%s11204_s30 + $0x708] sm:$0xff] %v7843_v36  ;;  %v7333_v6 = vadd.f32 %v14919_v1, %v4716_v40  ;;  %v2344_v55 = vpop.f32.mrb[228].mxu1  ;;  %v4719_v59 = vpop.f32.mrb[228].mxu0 }
 0x2fa   : > { %v7844_v46 = vmax.f32 %v7332_v41, 0.0  ;;  %v4720_v34 = vadd.f32 %v4719_v59, %v2344_v55  ;;  %v2346_v13 = vpop.f32.mrb[229].mxu1  ;;  %8954 = vmatmul.mubr.msk.f32.gmra.mrb[228].mxu1 %vm820_vm1, %v728_v14  ;;  %v4721_v58 = vpop.f32.mrb[229].mxu0  ;;  %9212 = vmatmul.mubr.msk.f32.gmra.mrb[78].mxu0 %vm820_vm1, %v471_v43  ;;  %v731_v41 = vld [vmem:[%s14782_s3 + $0x550] sm:$0xff] }
 0x2fb   : > { %v7845_v47 = vmax.f32 %v7333_v6, 0.0  ;;  %v4722_v53 = vadd.f32 %v4721_v58, %v2346_v13  ;;  %2666 = vmatprep.mubr.f32.mxu1 %v14845_v60  ;;  %5041 = vmatprep.mubr.f32.mxu0 %v14845_v60  ;;  %v474_v6 = vld [vmem:[%s14781_s2 + $0x550] sm:$0xff] }
 0x2fc   : > { %8356 = vst [vmem:[%s11204_s30 + $0x710] sm:$0xff] %v7844_v46  ;;  %v7334_v23 = vadd.f32 %v12096_v20, %v4720_v34 }
 0x2fd   : > { %8357 = vst [vmem:[%s11204_s30 + $0x718] sm:$0xff] %v7845_v47  ;;  %v7335_v29 = vadd.f32 %v12096_v20, %v4722_v53  ;;  %v2350_v8 = vpop.f32.mrb[230].mxu1  ;;  %v4725_v35 = vpop.f32.mrb[230].mxu0  ;;  %v730_v20 = vld [vmem:[%s14782_s3 + $0x548] sm:$0xff] }
 0x2fe   : > { %v7846_v17 = vmax.f32 %v7334_v23, 0.0  ;;  %v4726_v56 = vadd.f32 %v4725_v35, %v2350_v8  ;;  %v2352_v0 = vpop.f32.mrb[231].mxu1  ;;  %8955 = vmatmul.mubr.msk.f32.gmra.mrb[230].mxu1 %vm820_vm1, %v729_v52  ;;  %v4727_v45 = vpop.f32.mrb[231].mxu0  ;;  %9213 = vmatmul.mubr.msk.f32.gmra.mrb[80].mxu0 %vm820_vm1, %v472_v51  ;;  %v475_v23 = vld [vmem:[%s14781_s2 + $0x558] sm:$0xff] }
 0x2ff   : > { %v7847_v10 = vmax.f32 %v7335_v29, 0.0  ;;  %v4728_v7 = vadd.f32 %v4727_v45, %v2352_v0  ;;  %2672 = vmatprep.mubr.f32.mxu1 %v14845_v60  ;;  %5047 = vmatprep.mubr.f32.mxu0 %v14845_v60  ;;  %v14921_v29 = vld [vmem:[#allocation42_spill] sm:$0xff] }
 0x300   : > { %8358 = vst [vmem:[%s11204_s30 + $0x720] sm:$0xff] %v7846_v17  ;;  %v7336_v33 = vadd.f32 %v14920_v42, %v4726_v56 }
 0x301   : > { %8359 = vst [vmem:[%s11204_s30 + $0x728] sm:$0xff] %v7847_v10  ;;  %v7337_v24 = vadd.f32 %v14920_v42, %v4728_v7  ;;  %v2356_v18 = vpop.f32.mrb[232].mxu1  ;;  %v4731_v2 = vpop.f32.mrb[232].mxu0  ;;  %v733_v42 = vld [vmem:[%s14782_s3 + $0x560] sm:$0xff] }
 0x302   : > { %v7848_v9 = vmax.f32 %v7336_v33, 0.0  ;;  %v4732_v36 = vadd.f32 %v4731_v2, %v2356_v18  ;;  %v2358_v40 = vpop.f32.mrb[233].mxu1  ;;  %8956 = vmatmul.mubr.msk.f32.gmra.mrb[232].mxu1 %vm820_vm1, %v730_v20  ;;  %v4733_v14 = vpop.f32.mrb[233].mxu0  ;;  %9214 = vmatmul.mubr.msk.f32.gmra.mrb[82].mxu0 %vm820_vm1, %v473_v22  ;;  %v476_v33 = vld [vmem:[%s14781_s2 + $0x560] sm:$0xff] }
 0x303   : > { %v7849_v43 = vmax.f32 %v7337_v24, 0.0  ;;  %v4734_v1 = vadd.f32 %v4733_v14, %v2358_v40  ;;  %2678 = vmatprep.mubr.f32.mxu1 %v14845_v60  ;;  %5053 = vmatprep.mubr.f32.mxu0 %v14845_v60 }
 0x304   : > { %8360 = vst [vmem:[%s11204_s30 + $0x730] sm:$0xff] %v7848_v9  ;;  %v7338_v55 = vadd.f32 %v12120_v21, %v4732_v36 }
 0x305   : > { %8361 = vst [vmem:[%s11204_s30 + $0x738] sm:$0xff] %v7849_v43  ;;  %v7339_v59 = vadd.f32 %v12120_v21, %v4734_v1  ;;  %v2362_v46 = vpop.f32.mrb[234].mxu1  ;;  %v4737_v34 = vpop.f32.mrb[234].mxu0  ;;  %v732_v21 = vld [vmem:[%s14782_s3 + $0x558] sm:$0xff] }
 0x306   : > { %v7850_v13 = vmax.f32 %v7338_v55, 0.0  ;;  %v4738_v58 = vadd.f32 %v4737_v34, %v2362_v46  ;;  %v2364_v47 = vpop.f32.mrb[235].mxu1  ;;  %8957 = vmatmul.mubr.msk.f32.gmra.mrb[234].mxu1 %vm820_vm1, %v731_v41  ;;  %v4739_v53 = vpop.f32.mrb[235].mxu0  ;;  %9215 = vmatmul.mubr.msk.f32.gmra.mrb[84].mxu0 %vm820_vm1, %v474_v6  ;;  %v477_v6 = vld [vmem:[%s14781_s2 + $0x568] sm:$0xff]  ;;  %v14922_v55 = vld [vmem:[#allocation43_spill] sm:$0xff] }
 0x307   : > { %v7851_v52 = vmax.f32 %v7339_v59, 0.0  ;;  %v4740_v51 = vadd.f32 %v4739_v53, %v2364_v47  ;;  %2684 = vmatprep.mubr.f32.mxu1 %v14845_v60  ;;  %5059 = vmatprep.mubr.f32.mxu0 %v14845_v60 }
 0x308   : > { %8362 = vst [vmem:[%s11204_s30 + $0x740] sm:$0xff] %v7850_v13  ;;  %v7340_v8 = vadd.f32 %v14921_v29, %v4738_v58 }
 0x309   : > { %8363 = vst [vmem:[%s11204_s30 + $0x748] sm:$0xff] %v7851_v52  ;;  %v7341_v35 = vadd.f32 %v14921_v29, %v4740_v51  ;;  %v2368_v17 = vpop.f32.mrb[236].mxu1  ;;  %v4743_v56 = vpop.f32.mrb[236].mxu0  ;;  %v478_v29 = vld [vmem:[%s14781_s2 + $0x570] sm:$0xff] }
 0x30a   : > { %v7852_v0 = vmax.f32 %v7340_v8, 0.0  ;;  %v4744_v45 = vadd.f32 %v4743_v56, %v2368_v17  ;;  %v2370_v10 = vpop.f32.mrb[237].mxu1  ;;  %8958 = vmatmul.mubr.msk.f32.gmra.mrb[236].mxu1 %vm820_vm1, %v732_v21  ;;  %v4745_v7 = vpop.f32.mrb[237].mxu0  ;;  %9216 = vmatmul.mubr.msk.f32.gmra.mrb[86].mxu0 %vm820_vm1, %v475_v23  ;;  %v735_v23 = vld [vmem:[%s14782_s3 + $0x570] sm:$0xff] }
 0x30b   : > { %v7853_v20 = vmax.f32 %v7341_v35, 0.0  ;;  %v4746_v22 = vadd.f32 %v4745_v7, %v2370_v10  ;;  %2690 = vmatprep.mubr.f32.mxu1 %v14845_v60  ;;  %5065 = vmatprep.mubr.f32.mxu0 %v14845_v60 }
 0x30c   : > { %8364 = vst [vmem:[%s11204_s30 + $0x750] sm:$0xff] %v7852_v0  ;;  %v7342_v24 = vadd.f32 %v12144_v30, %v4744_v45 }
 0x30d   : > { %8365 = vst [vmem:[%s11204_s30 + $0x758] sm:$0xff] %v7853_v20  ;;  %v7343_v18 = vadd.f32 %v12144_v30, %v4746_v22  ;;  %v2374_v2 = vpop.f32.mrb[238].mxu1  ;;  %v4749_v9 = vpop.f32.mrb[238].mxu0  ;;  %v734_v30 = vld [vmem:[%s14782_s3 + $0x568] sm:$0xff] }
 0x30e   : > { %v7854_v36 = vmax.f32 %v7342_v24, 0.0  ;;  %v4750_v40 = vadd.f32 %v4749_v9, %v2374_v2  ;;  %v2376_v14 = vpop.f32.mrb[239].mxu1  ;;  %8959 = vmatmul.mubr.msk.f32.gmra.mrb[238].mxu1 %vm820_vm1, %v733_v42  ;;  %v4751_v43 = vpop.f32.mrb[239].mxu0  ;;  %9217 = vmatmul.mubr.msk.f32.gmra.mrb[88].mxu0 %vm820_vm1, %v476_v33  ;;  %v479_v42 = vld [vmem:[%s14781_s2 + $0x578] sm:$0xff] }
 0x30f   : > { %v7855_v1 = vmax.f32 %v7343_v18, 0.0  ;;  %v4752_v41 = vadd.f32 %v4751_v43, %v2376_v14  ;;  %2696 = vmatprep.mubr.f32.mxu1 %v14845_v60  ;;  %5071 = vmatprep.mubr.f32.mxu0 %v14845_v60 }
 0x310   : > { %8366 = vst [vmem:[%s11204_s30 + $0x760] sm:$0xff] %v7854_v36  ;;  %v7344_v59 = vadd.f32 %v14922_v55, %v4750_v40 }
 0x311   : > { %8367 = vst [vmem:[%s11204_s30 + $0x768] sm:$0xff] %v7855_v1  ;;  %v7345_v46 = vadd.f32 %v14922_v55, %v4752_v41  ;;  %v2380_v34 = vpop.f32.mrb[240].mxu1  ;;  %v4755_v13 = vpop.f32.mrb[240].mxu0  ;;  %v480_v41 = vld [vmem:[%s14781_s2 + $0x580] sm:$0xff] }
 0x312   : > { %v7856_v58 = vmax.f32 %v7344_v59, 0.0  ;;  %v4756_v47 = vadd.f32 %v4755_v13, %v2380_v34  ;;  %v2382_v53 = vpop.f32.mrb[241].mxu1  ;;  %8960 = vmatmul.mubr.msk.f32.gmra.mrb[240].mxu1 %vm820_vm1, %v734_v30  ;;  %v4757_v52 = vpop.f32.mrb[241].mxu0  ;;  %9218 = vmatmul.mubr.msk.f32.gmra.mrb[90].mxu0 %vm820_vm1, %v477_v6 }
 0x313   : > { %v7857_v51 = vmax.f32 %v7345_v46, 0.0  ;;  %v4758_v21 = vadd.f32 %v4757_v52, %v2382_v53  ;;  %2702 = vmatprep.mubr.f32.mxu1 %v14845_v60  ;;  %5077 = vmatprep.mubr.f32.mxu0 %v14845_v60  ;;  %v481_v52 = vld [vmem:[%s14781_s2 + $0x588] sm:$0xff] }
 0x314   : > { %8368 = vst [vmem:[%s11204_s30 + $0x770] sm:$0xff] %v7856_v58  ;;  %v7346_v8 = vadd.f32 %v12168_v31, %v4756_v47 }
 0x315   : > { %8369 = vst [vmem:[%s11204_s30 + $0x778] sm:$0xff] %v7857_v51  ;;  %v7347_v35 = vadd.f32 %v12168_v31, %v4758_v21  ;;  %v2386_v17 = vpop.f32.mrb[242].mxu1  ;;  %v4761_v56 = vpop.f32.mrb[242].mxu0  ;;  %v736_v31 = vld [vmem:[%s14782_s3 + $0x578] sm:$0xff] }
 0x316   : > { %v7858_v0 = vmax.f32 %v7346_v8, 0.0  ;;  %v4762_v45 = vadd.f32 %v4761_v56, %v2386_v17  ;;  %v2388_v10 = vpop.f32.mrb[243].mxu1  ;;  %8961 = vmatmul.mubr.msk.f32.gmra.mrb[242].mxu1 %vm820_vm1, %v735_v23  ;;  %v4763_v7 = vpop.f32.mrb[243].mxu0  ;;  %9219 = vmatmul.mubr.msk.f32.gmra.mrb[92].mxu0 %vm820_vm1, %v478_v29 }
 0x317   : > { %v7859_v20 = vmax.f32 %v7347_v35, 0.0  ;;  %v4764_v22 = vadd.f32 %v4763_v7, %v2388_v10  ;;  %2708 = vmatprep.mubr.f32.mxu1 %v14845_v60  ;;  %5083 = vmatprep.mubr.f32.mxu0 %v14845_v60  ;;  %v482_v10 = vld [vmem:[%s14781_s2 + $0x590] sm:$0xff] }
 0x318   : > { %8370 = vst [vmem:[%s11204_s30 + $0x780] sm:$0xff] %v7858_v0  ;;  %v7348_v33 = vadd.f32 %v12188_v4, %v4762_v45 }
 0x319   : > { %8371 = vst [vmem:[%s11204_s30 + $0x788] sm:$0xff] %v7859_v20  ;;  %v7349_v24 = vadd.f32 %v12188_v4, %v4764_v22  ;;  %v2392_v18 = vpop.f32.mrb[244].mxu1  ;;  %v4767_v2 = vpop.f32.mrb[244].mxu0  ;;  %v737_v4 = vld [vmem:[%s14782_s3 + $0x580] sm:$0xff] }
 0x31a   : > { %v7860_v9 = vmax.f32 %v7348_v33, 0.0  ;;  %v4768_v36 = vadd.f32 %v4767_v2, %v2392_v18  ;;  %v2394_v40 = vpop.f32.mrb[245].mxu1  ;;  %8962 = vmatmul.mubr.msk.f32.gmra.mrb[244].mxu1 %vm820_vm1, %v736_v31  ;;  %v4769_v14 = vpop.f32.mrb[245].mxu0  ;;  %9220 = vmatmul.mubr.msk.f32.gmra.mrb[94].mxu0 %vm820_vm1, %v479_v42 }
 0x31b   : > { %v7861_v43 = vmax.f32 %v7349_v24, 0.0  ;;  %v4770_v1 = vadd.f32 %v4769_v14, %v2394_v40  ;;  %2714 = vmatprep.mubr.f32.mxu1 %v14845_v60  ;;  %5089 = vmatprep.mubr.f32.mxu0 %v14845_v60 }
 0x31c   : > { %8372 = vst [vmem:[%s11204_s30 + $0x790] sm:$0xff] %v7860_v9  ;;  %v7350_v30 = vadd.f32 %v12192_v38, %v4768_v36  ;;  %v483_v36 = vld [vmem:[%s14781_s2 + $0x598] sm:$0xff] }
 0x31d   : > { %8373 = vst [vmem:[%s11204_s30 + $0x798] sm:$0xff] %v7861_v43  ;;  %v7351_v6 = vadd.f32 %v12192_v38, %v4770_v1  ;;  %v2398_v55 = vpop.f32.mrb[246].mxu1  ;;  %v4773_v59 = vpop.f32.mrb[246].mxu0  ;;  %v738_v38 = vld [vmem:[%s14782_s3 + $0x588] sm:$0xff] }
 0x31e   : > { %v7862_v46 = vmax.f32 %v7350_v30, 0.0  ;;  %v4774_v34 = vadd.f32 %v4773_v59, %v2398_v55  ;;  %v2400_v13 = vpop.f32.mrb[247].mxu1  ;;  %8963 = vmatmul.mubr.msk.f32.gmra.mrb[246].mxu1 %vm820_vm1, %v737_v4  ;;  %v4775_v58 = vpop.f32.mrb[247].mxu0  ;;  %9221 = vmatmul.mubr.msk.f32.gmra.mrb[96].mxu0 %vm820_vm1, %v480_v41 }
 0x31f   : > { %v7863_v47 = vmax.f32 %v7351_v6, 0.0  ;;  %v4776_v53 = vadd.f32 %v4775_v58, %v2400_v13  ;;  %2720 = vmatprep.mubr.f32.mxu1 %v14845_v60  ;;  %5095 = vmatprep.mubr.f32.mxu0 %v14845_v60 }
 0x320   : > { %8374 = vst [vmem:[%s11204_s30 + $0x7a0] sm:$0xff] %v7862_v46  ;;  %v7352_v51 = vadd.f32 %v12214_v39, %v4774_v34  ;;  %v484_v46 = vld [vmem:[%s14781_s2 + $0x5a0] sm:$0xff] }
 0x321   : > { %8375 = vst [vmem:[%s11204_s30 + $0x7a8] sm:$0xff] %v7863_v47  ;;  %v7353_v21 = vadd.f32 %v12214_v39, %v4776_v53  ;;  %v2404_v23 = vpop.f32.mrb[248].mxu1  ;;  %v4779_v29 = vpop.f32.mrb[248].mxu0  ;;  %v739_v39 = vld [vmem:[%s14782_s3 + $0x590] sm:$0xff] }
 0x322   : > { %v7864_v8 = vmax.f32 %v7352_v51, 0.0  ;;  %v4780_v35 = vadd.f32 %v4779_v29, %v2404_v23  ;;  %v2406_v17 = vpop.f32.mrb[249].mxu1  ;;  %8964 = vmatmul.mubr.msk.f32.gmra.mrb[248].mxu1 %vm820_vm1, %v738_v38  ;;  %v4781_v56 = vpop.f32.mrb[249].mxu0  ;;  %9222 = vmatmul.mubr.msk.f32.gmra.mrb[98].mxu0 %vm820_vm1, %v481_v52  ;;  %v485_v29 = vld [vmem:[%s14781_s2 + $0x5a8] sm:$0xff] }
 0x323   : > { %v7865_v0 = vmax.f32 %v7353_v21, 0.0  ;;  %v4782_v45 = vadd.f32 %v4781_v56, %v2406_v17  ;;  %2726 = vmatprep.mubr.f32.mxu1 %v14845_v60  ;;  %5101 = vmatprep.mubr.f32.mxu0 %v14845_v60 }
 0x324   : > { %8376 = vst [vmem:[%s11204_s30 + $0x7b0] sm:$0xff] %v7864_v8  ;;  %v7354_v7 = vadd.f32 %v12236_v11, %v4780_v35 }
 0x325   : > { %8377 = vst [vmem:[%s11204_s30 + $0x7b8] sm:$0xff] %v7865_v0  ;;  %v7355_v20 = vadd.f32 %v12236_v11, %v4782_v45  ;;  %v2410_v22 = vpop.f32.mrb[250].mxu1  ;;  %v4785_v31 = vpop.f32.mrb[250].mxu0  ;;  %v740_v11 = vld [vmem:[%s14782_s3 + $0x598] sm:$0xff] }
 0x326   : > { %v7866_v42 = vmax.f32 %v7354_v7, 0.0  ;;  %v4786_v33 = vadd.f32 %v4785_v31, %v2410_v22  ;;  %v2412_v24 = vpop.f32.mrb[251].mxu1  ;;  %8965 = vmatmul.mubr.msk.f32.gmra.mrb[250].mxu1 %vm820_vm1, %v739_v39  ;;  %v4787_v18 = vpop.f32.mrb[251].mxu0  ;;  %9223 = vmatmul.mubr.msk.f32.gmra.mrb[100].mxu0 %vm820_vm1, %v482_v10  ;;  %v486_v22 = vld [vmem:[%s14781_s2 + $0x5b0] sm:$0xff] }
 0x327   : > { %v7867_v2 = vmax.f32 %v7355_v20, 0.0  ;;  %v4788_v9 = vadd.f32 %v4787_v18, %v2412_v24  ;;  %2732 = vmatprep.mubr.f32.mxu1 %v14845_v60  ;;  %5107 = vmatprep.mubr.f32.mxu0 %v14845_v60 }
 0x328   : > { %8378 = vst [vmem:[%s11204_s30 + $0x7c0] sm:$0xff] %v7866_v42  ;;  %v7356_v40 = vadd.f32 %v12258_v48, %v4786_v33 }
 0x329   : > { %8379 = vst [vmem:[%s11204_s30 + $0x7c8] sm:$0xff] %v7867_v2  ;;  %v7357_v14 = vadd.f32 %v12258_v48, %v4788_v9  ;;  %v2416_v43 = vpop.f32.mrb[252].mxu1  ;;  %v4791_v1 = vpop.f32.mrb[252].mxu0  ;;  %v741_v48 = vld [vmem:[%s14782_s3 + $0x5a0] sm:$0xff] }
 0x32a   : > { %v7868_v4 = vmax.f32 %v7356_v40, 0.0  ;;  %v4792_v41 = vadd.f32 %v4791_v1, %v2416_v43  ;;  %v2418_v30 = vpop.f32.mrb[253].mxu1  ;;  %8966 = vmatmul.mubr.msk.f32.gmra.mrb[252].mxu1 %vm820_vm1, %v740_v11  ;;  %v4793_v6 = vpop.f32.mrb[253].mxu0  ;;  %9224 = vmatmul.mubr.msk.f32.gmra.mrb[102].mxu0 %vm820_vm1, %v483_v36 }
 0x32b   : > { %v7869_v55 = vmax.f32 %v7357_v14, 0.0  ;;  %v4794_v59 = vadd.f32 %v4793_v6, %v2418_v30  ;;  %2738 = vmatprep.mubr.f32.mxu1 %v14845_v60  ;;  %5113 = vmatprep.mubr.f32.mxu0 %v14845_v60  ;;  %v487_v14 = vld [vmem:[%s14781_s2 + $0x5b8] sm:$0xff] }
 0x32c   : > { %8380 = vst [vmem:[%s11204_s30 + $0x7d0] sm:$0xff] %v7868_v4  ;;  %v7358_v34 = vadd.f32 %v12280_v12, %v4792_v41 }
 0x32d   : > { %8381 = vst [vmem:[%s11204_s30 + $0x7d8] sm:$0xff] %v7869_v55  ;;  %v7359_v13 = vadd.f32 %v12280_v12, %v4794_v59  ;;  %v2422_v58 = vpop.f32.mrb[254].mxu1  ;;  %v4797_v47 = vpop.f32.mrb[254].mxu0  ;;  %v742_v12 = vld [vmem:[%s14782_s3 + $0x5a8] sm:$0xff] }
 0x32e   : > { %v7870_v53 = vmax.f32 %v7358_v34, 0.0  ;;  %v4798_v38 = vadd.f32 %v4797_v47, %v2422_v58  ;;  %v2424_v52 = vpop.f32.mrb[255].mxu1  ;;  %8967 = vmatmul.mubr.msk.f32.gmra.mrb[254].mxu1 %vm820_vm1, %v741_v48  ;;  %v4799_v51 = vpop.f32.mrb[255].mxu0  ;;  %9225 = vmatmul.mubr.msk.f32.gmra.mrb[104].mxu0 %vm820_vm1, %v484_v46  ;;  %v488_v34 = vld [vmem:[%s14781_s2 + $0x5c0] sm:$0xff] }
 0x32f   : > { %v7871_v21 = vmax.f32 %v7359_v13, 0.0  ;;  %v4800_v23 = vadd.f32 %v4799_v51, %v2424_v52  ;;  %2744 = vmatprep.mubr.f32.mxu1 %v14845_v60  ;;  %5119 = vmatprep.mubr.f32.mxu0 %v14845_v60 }
 0x330   : > { %8382 = vst [vmem:[%s11204_s30 + $0x7e0] sm:$0xff] %v7870_v53  ;;  %v7360_v8 = vadd.f32 %v12302_v50, %v4798_v38 }
 0x331   : > { %8383 = vst [vmem:[%s11204_s30 + $0x7e8] sm:$0xff] %v7871_v21  ;;  %v7361_v35 = vadd.f32 %v12302_v50, %v4800_v23  ;;  %v2428_v17 = vpop.f32.mrb[150].mxu1  ;;  %v4803_v56 = vpop.f32.mrb[0].mxu0  ;;  %v743_v50 = vld [vmem:[%s14782_s3 + $0x5b0] sm:$0xff] }
 0x332   : > { %v7872_v0 = vmax.f32 %v7360_v8, 0.0  ;;  %v4804_v45 = vadd.f32 %v4803_v56, %v2428_v17  ;;  %v2430_v39 = vpop.f32.mrb[151].mxu1  ;;  %8968 = vmatmul.mubr.msk.f32.gmra.mrb[150].mxu1 %vm820_vm1, %v742_v12  ;;  %v4805_v10 = vpop.f32.mrb[1].mxu0  ;;  %9226 = vmatmul.mubr.msk.f32.gmra.mrb[106].mxu0 %vm820_vm1, %v485_v29  ;;  %v489_v29 = vld [vmem:[%s14781_s2 + $0x5c8] sm:$0xff] }
 0x333   : > { %v7873_v7 = vmax.f32 %v7361_v35, 0.0  ;;  %v4806_v20 = vadd.f32 %v4805_v10, %v2430_v39  ;;  %2750 = vmatprep.mubr.f32.mxu1 %v14845_v60  ;;  %5125 = vmatprep.mubr.f32.mxu0 %v14845_v60 }
 0x334   : > { %8384 = vst [vmem:[%s11204_s30 + $0x7f0] sm:$0xff] %v7872_v0  ;;  %v7362_v31 = vadd.f32 %v12324_v57, %v4804_v45 }
 0x335   : > { %8385 = vst [vmem:[%s11204_s30 + $0x7f8] sm:$0xff] %v7873_v7  ;;  %v7363_v42 = vadd.f32 %v12324_v57, %v4806_v20  ;;  %v2434_v33 = vpop.f32.mrb[152].mxu1  ;;  %v4809_v24 = vpop.f32.mrb[2].mxu0  ;;  %v744_v57 = vld [vmem:[%s14782_s3 + $0x5b8] sm:$0xff] }
 0x336   : > { %v7874_v18 = vmax.f32 %v7362_v31, 0.0  ;;  %v4810_v2 = vadd.f32 %v4809_v24, %v2434_v33  ;;  %v2436_v9 = vpop.f32.mrb[153].mxu1  ;;  %8969 = vmatmul.mubr.msk.f32.gmra.mrb[152].mxu1 %vm820_vm1, %v743_v50  ;;  %v4811_v11 = vpop.f32.mrb[3].mxu0  ;;  %9227 = vmatmul.mubr.msk.f32.gmra.mrb[108].mxu0 %vm820_vm1, %v486_v22  ;;  %v490_v50 = vld [vmem:[%s14781_s2 + $0x5d0] sm:$0xff] }
 0x337   : > { %v7875_v36 = vmax.f32 %v7363_v42, 0.0  ;;  %v4812_v40 = vadd.f32 %v4811_v11, %v2436_v9  ;;  %2756 = vmatprep.mubr.f32.mxu1 %v14845_v60  ;;  %5131 = vmatprep.mubr.f32.mxu0 %v14845_v60 }
 0x338   : > { %8386 = vst [vmem:[%s11204_s30 + $0x800] sm:$0xff] %v7874_v18  ;;  %v7364_v43 = vadd.f32 %v12346_v54, %v4810_v2 }
 0x339   : > { %8387 = vst [vmem:[%s11204_s30 + $0x808] sm:$0xff] %v7875_v36  ;;  %v7365_v1 = vadd.f32 %v12346_v54, %v4812_v40  ;;  %v2440_v4 = vpop.f32.mrb[154].mxu1  ;;  %v4815_v41 = vpop.f32.mrb[4].mxu0  ;;  %v745_v54 = vld [vmem:[%s14782_s3 + $0x5c0] sm:$0xff]  ;;  %v491_v40 = vld [vmem:[%s14781_s2 + $0x5d8] sm:$0xff] }
 0x33a   : > { %v7876_v30 = vmax.f32 %v7364_v43, 0.0  ;;  %v4816_v6 = vadd.f32 %v4815_v41, %v2440_v4  ;;  %v2442_v55 = vpop.f32.mrb[155].mxu1  ;;  %8970 = vmatmul.mubr.msk.f32.gmra.mrb[154].mxu1 %vm820_vm1, %v744_v57  ;;  %v4817_v59 = vpop.f32.mrb[5].mxu0  ;;  %9228 = vmatmul.mubr.msk.f32.gmra.mrb[110].mxu0 %vm820_vm1, %v487_v14 }
 0x33b   : > { %v7877_v48 = vmax.f32 %v7365_v1, 0.0  ;;  %v4818_v46 = vadd.f32 %v4817_v59, %v2442_v55  ;;  %2762 = vmatprep.mubr.f32.mxu1 %v14845_v60  ;;  %5137 = vmatprep.mubr.f32.mxu0 %v14845_v60 }
 0x33c   : > { %8388 = vst [vmem:[%s11204_s30 + $0x810] sm:$0xff] %v7876_v30  ;;  %v7366_v13 = vadd.f32 %v12368_v3, %v4816_v6 }
 0x33d   : > { %8389 = vst [vmem:[%s11204_s30 + $0x818] sm:$0xff] %v7877_v48  ;;  %v7367_v58 = vadd.f32 %v12368_v3, %v4818_v46  ;;  %v2446_v47 = vpop.f32.mrb[156].mxu1  ;;  %v4821_v53 = vpop.f32.mrb[6].mxu0  ;;  %v746_v3 = vld [vmem:[%s14782_s3 + $0x5c8] sm:$0xff]  ;;  %v492_v48 = vld [vmem:[%s14781_s2 + $0x5e0] sm:$0xff] }
 0x33e   : > { %v7878_v38 = vmax.f32 %v7366_v13, 0.0  ;;  %v4822_v52 = vadd.f32 %v4821_v53, %v2446_v47  ;;  %v2448_v51 = vpop.f32.mrb[157].mxu1  ;;  %8971 = vmatmul.mubr.msk.f32.gmra.mrb[156].mxu1 %vm820_vm1, %v745_v54  ;;  %v4823_v21 = vpop.f32.mrb[7].mxu0  ;;  %9229 = vmatmul.mubr.msk.f32.gmra.mrb[112].mxu0 %vm820_vm1, %v488_v34 }
 0x33f   : > { %v7879_v23 = vmax.f32 %v7367_v58, 0.0  ;;  %v4824_v12 = vadd.f32 %v4823_v21, %v2448_v51  ;;  %2768 = vmatprep.mubr.f32.mxu1 %v14845_v60  ;;  %5143 = vmatprep.mubr.f32.mxu0 %v14845_v60  ;;  %v493_v21 = vld [vmem:[%s14781_s2 + $0x5e8] sm:$0xff] }
 0x340   : > { %8390 = vst [vmem:[%s11204_s30 + $0x820] sm:$0xff] %v7878_v38  ;;  %v7368_v8 = vadd.f32 %v12390_v19, %v4822_v52 }
 0x341   : > { %8391 = vst [vmem:[%s11204_s30 + $0x828] sm:$0xff] %v7879_v23  ;;  %v7369_v35 = vadd.f32 %v12390_v19, %v4824_v12  ;;  %v2452_v17 = vpop.f32.mrb[158].mxu1  ;;  %v4827_v56 = vpop.f32.mrb[8].mxu0  ;;  %v747_v19 = vld [vmem:[%s14782_s3 + $0x5d0] sm:$0xff]  ;;  %v14923_v23 = vld [vmem:[#allocation44_spill] sm:$0xff] }
 0x342   : > { %v7880_v0 = vmax.f32 %v7368_v8, 0.0  ;;  %v4828_v45 = vadd.f32 %v4827_v56, %v2452_v17  ;;  %v2454_v39 = vpop.f32.mrb[159].mxu1  ;;  %8972 = vmatmul.mubr.msk.f32.gmra.mrb[158].mxu1 %vm820_vm1, %v746_v3  ;;  %v4829_v10 = vpop.f32.mrb[9].mxu0  ;;  %9230 = vmatmul.mubr.msk.f32.gmra.mrb[114].mxu0 %vm820_vm1, %v489_v29 }
 0x343   : > { %v7881_v7 = vmax.f32 %v7369_v35, 0.0  ;;  %v4830_v20 = vadd.f32 %v4829_v10, %v2454_v39  ;;  %2774 = vmatprep.mubr.f32.mxu1 %v14845_v60  ;;  %5149 = vmatprep.mubr.f32.mxu0 %v14845_v60  ;;  %v751_v10 = vld [vmem:[%s14782_s3 + $0x5f0] sm:$0xff] }
 0x344   : > { %8392 = vst [vmem:[%s11204_s30 + $0x830] sm:$0xff] %v7880_v0  ;;  %v7370_v22 = vadd.f32 %v12412_v27, %v4828_v45 }
 0x345   : > { %8393 = vst [vmem:[%s11204_s30 + $0x838] sm:$0xff] %v7881_v7  ;;  %v7371_v31 = vadd.f32 %v12412_v27, %v4830_v20  ;;  %v2458_v42 = vpop.f32.mrb[160].mxu1  ;;  %v4833_v33 = vpop.f32.mrb[10].mxu0  ;;  %v748_v27 = vld [vmem:[%s14782_s3 + $0x5d8] sm:$0xff]  ;;  %v494_v7 = vld [vmem:[%s14781_s2 + $0x5f0] sm:$0xff]  ;;  %v14924_v20 = vld [vmem:[#allocation11_spill] sm:$0xff] }
 0x346   : > { %v7882_v24 = vmax.f32 %v7370_v22, 0.0  ;;  %v4834_v18 = vadd.f32 %v4833_v33, %v2458_v42  ;;  %v2460_v2 = vpop.f32.mrb[161].mxu1  ;;  %8973 = vmatmul.mubr.msk.f32.gmra.mrb[160].mxu1 %vm820_vm1, %v747_v19  ;;  %v4835_v9 = vpop.f32.mrb[11].mxu0  ;;  %9231 = vmatmul.mubr.msk.f32.gmra.mrb[116].mxu0 %vm820_vm1, %v490_v50 }
 0x347   : > { %v7883_v11 = vmax.f32 %v7371_v31, 0.0  ;;  %v4836_v36 = vadd.f32 %v4835_v9, %v2460_v2  ;;  %2780 = vmatprep.mubr.f32.mxu1 %v14845_v60  ;;  %5155 = vmatprep.mubr.f32.mxu0 %v14845_v60 }
 0x348   : > { %8394 = vst [vmem:[%s11204_s30 + $0x840] sm:$0xff] %v7882_v24  ;;  %v7372_v57 = vadd.f32 %v12434_v62, %v4834_v18 }
 0x349   : > { %8395 = vst [vmem:[%s11204_s30 + $0x848] sm:$0xff] %v7883_v11  ;;  %v7373_v14 = vadd.f32 %v12434_v62, %v4836_v36  ;;  %v2464_v43 = vpop.f32.mrb[162].mxu1  ;;  %v4839_v1 = vpop.f32.mrb[12].mxu0  ;;  %v749_v62 = vld [vmem:[%s14782_s3 + $0x5e0] sm:$0xff]  ;;  %v752_v11 = vld [vmem:[%s14782_s3 + $0x5f8] sm:$0xff] }
 0x34a   : > { %v7884_v4 = vmax.f32 %v7372_v57, 0.0  ;;  %v4840_v41 = vadd.f32 %v4839_v1, %v2464_v43  ;;  %v2466_v30 = vpop.f32.mrb[163].mxu1  ;;  %8974 = vmatmul.mubr.msk.f32.gmra.mrb[162].mxu1 %vm820_vm1, %v748_v27  ;;  %v4841_v6 = vpop.f32.mrb[13].mxu0  ;;  %9232 = vmatmul.mubr.msk.f32.gmra.mrb[118].mxu0 %vm820_vm1, %v491_v40  ;;  %v495_v36 = vld [vmem:[%s14781_s2 + $0x5f8] sm:$0xff] }
 0x34b   : > { %v7885_v55 = vmax.f32 %v7373_v14, 0.0  ;;  %v4842_v59 = vadd.f32 %v4841_v6, %v2466_v30  ;;  %2786 = vmatprep.mubr.f32.mxu1 %v14845_v60  ;;  %5161 = vmatprep.mubr.f32.mxu0 %v14845_v60 }
 0x34c   : > { %8396 = vst [vmem:[%s11204_s30 + $0x850] sm:$0xff] %v7884_v4  ;;  %v7374_v46 = vadd.f32 %v12456_v5, %v4840_v41 }
 0x34d   : > { %8397 = vst [vmem:[%s11204_s30 + $0x858] sm:$0xff] %v7885_v55  ;;  %v7375_v54 = vadd.f32 %v12456_v5, %v4842_v59  ;;  %v2470_v34 = vpop.f32.mrb[164].mxu1  ;;  %v4845_v13 = vpop.f32.mrb[14].mxu0  ;;  %v750_v5 = vld [vmem:[%s14782_s3 + $0x5e8] sm:$0xff]  ;;  %v496_v55 = vld [vmem:[%s14781_s2 + $0x600] sm:$0xff] }
 0x34e   : > { %v7886_v58 = vmax.f32 %v7374_v46, 0.0  ;;  %v4846_v47 = vadd.f32 %v4845_v13, %v2470_v34  ;;  %v2472_v53 = vpop.f32.mrb[165].mxu1  ;;  %8975 = vmatmul.mubr.msk.f32.gmra.mrb[164].mxu1 %vm820_vm1, %v749_v62  ;;  %v4847_v38 = vpop.f32.mrb[15].mxu0  ;;  %9233 = vmatmul.mubr.msk.f32.gmra.mrb[120].mxu0 %vm820_vm1, %v492_v48  ;;  %v14925_v59 = vld [vmem:[#allocation12_spill] sm:$0xff] }
 0x34f   : > { %v7887_v52 = vmax.f32 %v7375_v54, 0.0  ;;  %v4848_v51 = vadd.f32 %v4847_v38, %v2472_v53  ;;  %2792 = vmatprep.mubr.f32.mxu1 %v14845_v60  ;;  %5167 = vmatprep.mubr.f32.mxu0 %v14845_v60 }
 0x350   : > { %8398 = vst [vmem:[%s11204_s30 + $0x860] sm:$0xff] %v7886_v58  ;;  %v7376_v12 = vadd.f32 %v14923_v23, %v4846_v47 }
 0x351   : > { %8399 = vst [vmem:[%s11204_s30 + $0x868] sm:$0xff] %v7887_v52  ;;  %v7377_v3 = vadd.f32 %v14923_v23, %v4848_v51  ;;  %v2476_v29 = vpop.f32.mrb[166].mxu1  ;;  %v4851_v8 = vpop.f32.mrb[16].mxu0  ;;  %v754_v52 = vld [vmem:[%s14782_s3 + $0x608] sm:$0xff] }
 0x352   : > { %v7888_v35 = vmax.f32 %v7376_v12, 0.0  ;;  %v4852_v17 = vadd.f32 %v4851_v8, %v2476_v29  ;;  %v2478_v56 = vpop.f32.mrb[167].mxu1  ;;  %8976 = vmatmul.mubr.msk.f32.gmra.mrb[166].mxu1 %vm820_vm1, %v750_v5  ;;  %v4853_v0 = vpop.f32.mrb[17].mxu0  ;;  %9234 = vmatmul.mubr.msk.f32.gmra.mrb[122].mxu0 %vm820_vm1, %v493_v21  ;;  %v497_v51 = vld [vmem:[%s14781_s2 + $0x608] sm:$0xff] }
 0x353   : > { %v7889_v45 = vmax.f32 %v7377_v3, 0.0  ;;  %v4854_v39 = vadd.f32 %v4853_v0, %v2478_v56  ;;  %2798 = vmatprep.mubr.f32.mxu1 %v14845_v60  ;;  %5173 = vmatprep.mubr.f32.mxu0 %v14845_v60  ;;  %v498_v0 = vld [vmem:[%s14781_s2 + $0x610] sm:$0xff] }
 0x354   : > { %8400 = vst [vmem:[%s11204_s30 + $0x870] sm:$0xff] %v7888_v35  ;;  %v7378_v19 = vadd.f32 %v14924_v20, %v4852_v17 }
 0x355   : > { %8401 = vst [vmem:[%s11204_s30 + $0x878] sm:$0xff] %v7889_v45  ;;  %v7379_v50 = vadd.f32 %v14924_v20, %v4854_v39  ;;  %v2482_v22 = vpop.f32.mrb[168].mxu1  ;;  %v4857_v31 = vpop.f32.mrb[18].mxu0  ;;  %v14926_v45 = vld [vmem:[#allocation13_spill] sm:$0xff] }
 0x356   : > { %v7890_v42 = vmax.f32 %v7378_v19, 0.0  ;;  %v4858_v33 = vadd.f32 %v4857_v31, %v2482_v22  ;;  %v2484_v24 = vpop.f32.mrb[169].mxu1  ;;  %8977 = vmatmul.mubr.msk.f32.gmra.mrb[168].mxu1 %vm820_vm1, %v751_v10  ;;  %v4859_v18 = vpop.f32.mrb[19].mxu0  ;;  %9235 = vmatmul.mubr.msk.f32.gmra.mrb[124].mxu0 %vm820_vm1, %v494_v7 }
 0x357   : > { %v7891_v2 = vmax.f32 %v7379_v50, 0.0  ;;  %v4860_v9 = vadd.f32 %v4859_v18, %v2484_v24  ;;  %2804 = vmatprep.mubr.f32.mxu1 %v14845_v60  ;;  %5179 = vmatprep.mubr.f32.mxu0 %v14845_v60  ;;  %v756_v24 = vld [vmem:[%s14782_s3 + $0x618] sm:$0xff] }
 0x358   : > { %8402 = vst [vmem:[%s11204_s30 + $0x880] sm:$0xff] %v7890_v42  ;;  %v7380_v27 = vadd.f32 %v12522_v44, %v4858_v33  ;;  %v499_v18 = vld [vmem:[%s14781_s2 + $0x618] sm:$0xff] }
 0x359   : > { %8403 = vst [vmem:[%s11204_s30 + $0x888] sm:$0xff] %v7891_v2  ;;  %v7381_v40 = vadd.f32 %v12522_v44, %v4860_v9  ;;  %v2488_v57 = vpop.f32.mrb[170].mxu1  ;;  %v4863_v14 = vpop.f32.mrb[20].mxu0  ;;  %v753_v44 = vld [vmem:[%s14782_s3 + $0x600] sm:$0xff] }
 0x35a   : > { %v7892_v43 = vmax.f32 %v7380_v27, 0.0  ;;  %v4864_v1 = vadd.f32 %v4863_v14, %v2488_v57  ;;  %v2490_v4 = vpop.f32.mrb[171].mxu1  ;;  %8978 = vmatmul.mubr.msk.f32.gmra.mrb[170].mxu1 %vm820_vm1, %v752_v11  ;;  %v4865_v41 = vpop.f32.mrb[21].mxu0  ;;  %9236 = vmatmul.mubr.msk.f32.gmra.mrb[126].mxu0 %vm820_vm1, %v495_v36 }
 0x35b   : > { %v7893_v30 = vmax.f32 %v7381_v40, 0.0  ;;  %v4866_v6 = vadd.f32 %v4865_v41, %v2490_v4  ;;  %2810 = vmatprep.mubr.f32.mxu1 %v14845_v60  ;;  %5185 = vmatprep.mubr.f32.mxu0 %v14845_v60  ;;  %v500_v4 = vld [vmem:[%s14781_s2 + $0x620] sm:$0xff]  ;;  %v14927_v41 = vld [vmem:[#allocation14_spill] sm:$0xff] }
 0x35c   : > { %8404 = vst [vmem:[%s11204_s30 + $0x890] sm:$0xff] %v7892_v43  ;;  %v7382_v62 = vadd.f32 %v14925_v59, %v4864_v1 }
 0x35d   : > { %8405 = vst [vmem:[%s11204_s30 + $0x898] sm:$0xff] %v7893_v30  ;;  %v7383_v48 = vadd.f32 %v14925_v59, %v4866_v6  ;;  %v2494_v46 = vpop.f32.mrb[172].mxu1  ;;  %v4869_v54 = vpop.f32.mrb[22].mxu0 }
 0x35e   : > { %v7894_v34 = vmax.f32 %v7382_v62, 0.0  ;;  %v4870_v13 = vadd.f32 %v4869_v54, %v2494_v46  ;;  %v2496_v58 = vpop.f32.mrb[173].mxu1  ;;  %8979 = vmatmul.mubr.msk.f32.gmra.mrb[172].mxu1 %vm820_vm1, %v753_v44  ;;  %v4871_v47 = vpop.f32.mrb[23].mxu0  ;;  %9237 = vmatmul.mubr.msk.f32.gmra.mrb[128].mxu0 %vm820_vm1, %v496_v55 }
 0x35f   : > { %v7895_v53 = vmax.f32 %v7383_v48, 0.0  ;;  %v4872_v38 = vadd.f32 %v4871_v47, %v2496_v58  ;;  %2816 = vmatprep.mubr.f32.mxu1 %v14845_v60  ;;  %5191 = vmatprep.mubr.f32.mxu0 %v14845_v60  ;;  %v501_v58 = vld [vmem:[%s14781_s2 + $0x628] sm:$0xff] }
 0x360   : > { %8406 = vst [vmem:[%s11204_s30 + $0x8a0] sm:$0xff] %v7894_v34  ;;  %v7384_v5 = vadd.f32 %v12566_v32, %v4870_v13  ;;  %v758_v13 = vld [vmem:[%s14782_s3 + $0x628] sm:$0xff] }
 0x361   : > { %8407 = vst [vmem:[%s11204_s30 + $0x8a8] sm:$0xff] %v7895_v53  ;;  %v7385_v21 = vadd.f32 %v12566_v32, %v4872_v38  ;;  %v2500_v23 = vpop.f32.mrb[174].mxu1  ;;  %v4875_v12 = vpop.f32.mrb[24].mxu0  ;;  %v755_v32 = vld [vmem:[%s14782_s3 + $0x610] sm:$0xff] }
 0x362   : > { %v7896_v3 = vmax.f32 %v7384_v5, 0.0  ;;  %v4876_v29 = vadd.f32 %v4875_v12, %v2500_v23  ;;  %v2502_v8 = vpop.f32.mrb[175].mxu1  ;;  %8980 = vmatmul.mubr.msk.f32.gmra.mrb[174].mxu1 %vm820_vm1, %v754_v52  ;;  %v4877_v35 = vpop.f32.mrb[25].mxu0  ;;  %9238 = vmatmul.mubr.msk.f32.gmra.mrb[130].mxu0 %vm820_vm1, %v497_v51 }
 0x363   : > { %v7897_v17 = vmax.f32 %v7385_v21, 0.0  ;;  %v4878_v56 = vadd.f32 %v4877_v35, %v2502_v8  ;;  %2822 = vmatprep.mubr.f32.mxu1 %v14845_v60  ;;  %5197 = vmatprep.mubr.f32.mxu0 %v14845_v60  ;;  %v14928_v8 = vld [vmem:[#allocation15_spill] sm:$0xff] }
 0x364   : > { %8408 = vst [vmem:[%s11204_s30 + $0x8b0] sm:$0xff] %v7896_v3  ;;  %v7386_v39 = vadd.f32 %v14926_v45, %v4876_v29  ;;  %v502_v29 = vld [vmem:[%s14781_s2 + $0x630] sm:$0xff] }
 0x365   : > { %8409 = vst [vmem:[%s11204_s30 + $0x8b8] sm:$0xff] %v7897_v17  ;;  %v7387_v10 = vadd.f32 %v14926_v45, %v4878_v56  ;;  %v2506_v7 = vpop.f32.mrb[176].mxu1  ;;  %v4881_v20 = vpop.f32.mrb[26].mxu0 }
 0x366   : > { %v7898_v19 = vmax.f32 %v7386_v39, 0.0  ;;  %v4882_v50 = vadd.f32 %v4881_v20, %v2506_v7  ;;  %v2508_v22 = vpop.f32.mrb[177].mxu1  ;;  %8981 = vmatmul.mubr.msk.f32.gmra.mrb[176].mxu1 %vm820_vm1, %v755_v32  ;;  %v4883_v31 = vpop.f32.mrb[27].mxu0  ;;  %9239 = vmatmul.mubr.msk.f32.gmra.mrb[132].mxu0 %vm820_vm1, %v498_v0 }
 0x367   : > { %v7899_v42 = vmax.f32 %v7387_v10, 0.0  ;;  %v4884_v33 = vadd.f32 %v4883_v31, %v2508_v22  ;;  %2828 = vmatprep.mubr.f32.mxu1 %v14845_v60  ;;  %5203 = vmatprep.mubr.f32.mxu0 %v14845_v60 }
 0x368   : > { %8410 = vst [vmem:[%s11204_s30 + $0x8c0] sm:$0xff] %v7898_v19  ;;  %v7388_v2 = vadd.f32 %v12610_v26, %v4882_v50  ;;  %v760_v19 = vld [vmem:[%s14782_s3 + $0x638] sm:$0xff] }
 0x369   : > { %8411 = vst [vmem:[%s11204_s30 + $0x8c8] sm:$0xff] %v7899_v42  ;;  %v7389_v9 = vadd.f32 %v12610_v26, %v4884_v33  ;;  %v2512_v11 = vpop.f32.mrb[178].mxu1  ;;  %v4887_v36 = vpop.f32.mrb[28].mxu0  ;;  %v757_v26 = vld [vmem:[%s14782_s3 + $0x620] sm:$0xff]  ;;  %v503_v50 = vld [vmem:[%s14781_s2 + $0x638] sm:$0xff] }
 0x36a   : > { %v7900_v27 = vmax.f32 %v7388_v2, 0.0  ;;  %v4888_v40 = vadd.f32 %v4887_v36, %v2512_v11  ;;  %v2514_v57 = vpop.f32.mrb[179].mxu1  ;;  %8982 = vmatmul.mubr.msk.f32.gmra.mrb[178].mxu1 %vm820_vm1, %v756_v24  ;;  %v4889_v14 = vpop.f32.mrb[29].mxu0  ;;  %9240 = vmatmul.mubr.msk.f32.gmra.mrb[134].mxu0 %vm820_vm1, %v499_v18 }
 0x36b   : > { %v7901_v43 = vmax.f32 %v7389_v9, 0.0  ;;  %v4890_v1 = vadd.f32 %v4889_v14, %v2514_v57  ;;  %2834 = vmatprep.mubr.f32.mxu1 %v14845_v60  ;;  %5209 = vmatprep.mubr.f32.mxu0 %v14845_v60 }
 0x36c   : > { %8412 = vst [vmem:[%s11204_s30 + $0x8d0] sm:$0xff] %v7900_v27  ;;  %v7390_v30 = vadd.f32 %v14927_v41, %v4888_v40  ;;  %v504_v27 = vld [vmem:[%s14781_s2 + $0x640] sm:$0xff]  ;;  %v14929_v40 = vld [vmem:[#allocation16_spill] sm:$0xff] }
 0x36d   : > { %8413 = vst [vmem:[%s11204_s30 + $0x8d8] sm:$0xff] %v7901_v43  ;;  %v7391_v6 = vadd.f32 %v14927_v41, %v4890_v1  ;;  %v2518_v44 = vpop.f32.mrb[180].mxu1  ;;  %v4893_v55 = vpop.f32.mrb[30].mxu0 }
 0x36e   : > { %v7902_v59 = vmax.f32 %v7390_v30, 0.0  ;;  %v4894_v62 = vadd.f32 %v4893_v55, %v2518_v44  ;;  %v2520_v48 = vpop.f32.mrb[181].mxu1  ;;  %8983 = vmatmul.mubr.msk.f32.gmra.mrb[180].mxu1 %vm820_vm1, %v757_v26  ;;  %v4895_v46 = vpop.f32.mrb[31].mxu0  ;;  %9241 = vmatmul.mubr.msk.f32.gmra.mrb[136].mxu0 %vm820_vm1, %v500_v4  ;;  %v762_v55 = vld [vmem:[%s14782_s3 + $0x648] sm:$0xff] }
 0x36f   : > { %v7903_v54 = vmax.f32 %v7391_v6, 0.0  ;;  %v4896_v34 = vadd.f32 %v4895_v46, %v2520_v48  ;;  %2840 = vmatprep.mubr.f32.mxu1 %v14845_v60  ;;  %5215 = vmatprep.mubr.f32.mxu0 %v14845_v60 }
 0x370   : > { %8414 = vst [vmem:[%s11204_s30 + $0x8e0] sm:$0xff] %v7902_v59  ;;  %v7392_v47 = vadd.f32 %v12654_v63, %v4894_v62  ;;  %v505_v59 = vld [vmem:[%s14781_s2 + $0x648] sm:$0xff] }
 0x371   : > { %8415 = vst [vmem:[%s11204_s30 + $0x8e8] sm:$0xff] %v7903_v54  ;;  %v7393_v53 = vadd.f32 %v12654_v63, %v4896_v34  ;;  %v2524_v38 = vpop.f32.mrb[182].mxu1  ;;  %v4899_v52 = vpop.f32.mrb[32].mxu0  ;;  %v759_v63 = vld [vmem:[%s14782_s3 + $0x630] sm:$0xff] }
 0x372   : > { %v7904_v51 = vmax.f32 %v7392_v47, 0.0  ;;  %v4900_v5 = vadd.f32 %v4899_v52, %v2524_v38  ;;  %v2526_v21 = vpop.f32.mrb[183].mxu1  ;;  %8984 = vmatmul.mubr.msk.f32.gmra.mrb[182].mxu1 %vm820_vm1, %v758_v13  ;;  %v4901_v23 = vpop.f32.mrb[33].mxu0  ;;  %9242 = vmatmul.mubr.msk.f32.gmra.mrb[138].mxu0 %vm820_vm1, %v501_v58  ;;  %v506_v52 = vld [vmem:[%s14781_s2 + $0x650] sm:$0xff] }
 0x373   : > { %v7905_v12 = vmax.f32 %v7393_v53, 0.0  ;;  %v4902_v3 = vadd.f32 %v4901_v23, %v2526_v21  ;;  %2846 = vmatprep.mubr.f32.mxu1 %v14845_v60  ;;  %5221 = vmatprep.mubr.f32.mxu0 %v14845_v60 }
 0x374   : > { %8416 = vst [vmem:[%s11204_s30 + $0x8f0] sm:$0xff] %v7904_v51  ;;  %v7394_v35 = vadd.f32 %v14928_v8, %v4900_v5  ;;  %v14930_v51 = vld [vmem:[#allocation17_spill] sm:$0xff] }
 0x375   : > { %8417 = vst [vmem:[%s11204_s30 + $0x8f8] sm:$0xff] %v7905_v12  ;;  %v7395_v17 = vadd.f32 %v14928_v8, %v4902_v3  ;;  %v2530_v56 = vpop.f32.mrb[184].mxu1  ;;  %v4905_v32 = vpop.f32.mrb[34].mxu0 }
 0x376   : > { %v7906_v0 = vmax.f32 %v7394_v35, 0.0  ;;  %v4906_v45 = vadd.f32 %v4905_v32, %v2530_v56  ;;  %v2532_v39 = vpop.f32.mrb[185].mxu1  ;;  %8985 = vmatmul.mubr.msk.f32.gmra.mrb[184].mxu1 %vm820_vm1, %v759_v63  ;;  %v4907_v10 = vpop.f32.mrb[35].mxu0  ;;  %9243 = vmatmul.mubr.msk.f32.gmra.mrb[140].mxu0 %vm820_vm1, %v502_v29  ;;  %v764_v56 = vld [vmem:[%s14782_s3 + $0x658] sm:$0xff] }
 0x377   : > { %v7907_v7 = vmax.f32 %v7395_v17, 0.0  ;;  %v4908_v20 = vadd.f32 %v4907_v10, %v2532_v39  ;;  %2852 = vmatprep.mubr.f32.mxu1 %v14845_v60  ;;  %5227 = vmatprep.mubr.f32.mxu0 %v14845_v60  ;;  %v507_v32 = vld [vmem:[%s14781_s2 + $0x658] sm:$0xff] }
 0x378   : > { %8418 = vst [vmem:[%s11204_s30 + $0x900] sm:$0xff] %v7906_v0  ;;  %v7396_v22 = vadd.f32 %v12698_v49, %v4906_v45 }
 0x379   : > { %8419 = vst [vmem:[%s11204_s30 + $0x908] sm:$0xff] %v7907_v7  ;;  %v7397_v31 = vadd.f32 %v12698_v49, %v4908_v20  ;;  %v2536_v42 = vpop.f32.mrb[186].mxu1  ;;  %v4911_v33 = vpop.f32.mrb[36].mxu0  ;;  %v761_v49 = vld [vmem:[%s14782_s3 + $0x640] sm:$0xff] }
 0x37a   : > { %v7908_v24 = vmax.f32 %v7396_v22, 0.0  ;;  %v4912_v18 = vadd.f32 %v4911_v33, %v2536_v42  ;;  %v2538_v2 = vpop.f32.mrb[187].mxu1  ;;  %8986 = vmatmul.mubr.msk.f32.gmra.mrb[186].mxu1 %vm820_vm1, %v760_v19  ;;  %v4913_v9 = vpop.f32.mrb[37].mxu0  ;;  %9244 = vmatmul.mubr.msk.f32.gmra.mrb[142].mxu0 %vm820_vm1, %v503_v50  ;;  %v508_v42 = vld [vmem:[%s14781_s2 + $0x660] sm:$0xff]  ;;  %v14931_v33 = vld [vmem:[#allocation18_spill] sm:$0xff] }
 0x37b   : > { %v7909_v11 = vmax.f32 %v7397_v31, 0.0  ;;  %v4914_v36 = vadd.f32 %v4913_v9, %v2538_v2  ;;  %2858 = vmatprep.mubr.f32.mxu1 %v14845_v60  ;;  %5233 = vmatprep.mubr.f32.mxu0 %v14845_v60 }
 0x37c   : > { %8420 = vst [vmem:[%s11204_s30 + $0x910] sm:$0xff] %v7908_v24  ;;  %v7398_v57 = vadd.f32 %v14929_v40, %v4912_v18 }
 0x37d   : > { %8421 = vst [vmem:[%s11204_s30 + $0x918] sm:$0xff] %v7909_v11  ;;  %v7399_v14 = vadd.f32 %v14929_v40, %v4914_v36  ;;  %v2542_v43 = vpop.f32.mrb[188].mxu1  ;;  %v4917_v1 = vpop.f32.mrb[38].mxu0 }
 0x37e   : > { %v7910_v26 = vmax.f32 %v7398_v57, 0.0  ;;  %v4918_v4 = vadd.f32 %v4917_v1, %v2542_v43  ;;  %v2544_v41 = vpop.f32.mrb[189].mxu1  ;;  %8987 = vmatmul.mubr.msk.f32.gmra.mrb[188].mxu1 %vm820_vm1, %v761_v49  ;;  %v4919_v30 = vpop.f32.mrb[39].mxu0  ;;  %9245 = vmatmul.mubr.msk.f32.gmra.mrb[144].mxu0 %vm820_vm1, %v504_v27  ;;  %v509_v43 = vld [vmem:[%s14781_s2 + $0x668] sm:$0xff] }
 0x37f   : > { %v7911_v6 = vmax.f32 %v7399_v14, 0.0  ;;  %v4920_v44 = vadd.f32 %v4919_v30, %v2544_v41  ;;  %2864 = vmatprep.mubr.f32.mxu1 %v14845_v60  ;;  %5239 = vmatprep.mubr.f32.mxu0 %v14845_v60  ;;  %v766_v14 = vld [vmem:[%s14782_s3 + $0x668] sm:$0xff] }
 0x380   : > { %8422 = vst [vmem:[%s11204_s30 + $0x920] sm:$0xff] %v7910_v26  ;;  %v7400_v62 = vadd.f32 %v12742_v25, %v4918_v4 }
 0x381   : > { %8423 = vst [vmem:[%s11204_s30 + $0x928] sm:$0xff] %v7911_v6  ;;  %v7401_v48 = vadd.f32 %v12742_v25, %v4920_v44  ;;  %v2548_v46 = vpop.f32.mrb[190].mxu1  ;;  %v4923_v54 = vpop.f32.mrb[40].mxu0  ;;  %v763_v25 = vld [vmem:[%s14782_s3 + $0x650] sm:$0xff] }
 0x382   : > { %v7912_v34 = vmax.f32 %v7400_v62, 0.0  ;;  %v4924_v13 = vadd.f32 %v4923_v54, %v2548_v46  ;;  %v2550_v58 = vpop.f32.mrb[191].mxu1  ;;  %8988 = vmatmul.mubr.msk.f32.gmra.mrb[190].mxu1 %vm820_vm1, %v762_v55  ;;  %v4925_v47 = vpop.f32.mrb[41].mxu0  ;;  %9246 = vmatmul.mubr.msk.f32.gmra.mrb[146].mxu0 %vm820_vm1, %v505_v59  ;;  %v14932_v46 = vld [vmem:[#allocation19_spill] sm:$0xff] }
 0x383   : > { %v7913_v53 = vmax.f32 %v7401_v48, 0.0  ;;  %v4926_v38 = vadd.f32 %v4925_v47, %v2550_v58  ;;  %2870 = vmatprep.mubr.f32.mxu1 %v14845_v60  ;;  %5245 = vmatprep.mubr.f32.mxu0 %v14845_v60  ;;  %v510_v48 = vld [vmem:[%s14781_s2 + $0x670] sm:$0xff] }
 0x384   : > { %8424 = vst [vmem:[%s11204_s30 + $0x930] sm:$0xff] %v7912_v34  ;;  %v7402_v5 = vadd.f32 %v14930_v51, %v4924_v13 }
 0x385   : > { %8425 = vst [vmem:[%s11204_s30 + $0x938] sm:$0xff] %v7913_v53  ;;  %v7403_v21 = vadd.f32 %v14930_v51, %v4926_v38  ;;  %v2554_v23 = vpop.f32.mrb[192].mxu1  ;;  %v4929_v12 = vpop.f32.mrb[42].mxu0 }
 0x386   : > { %v7914_v3 = vmax.f32 %v7402_v5, 0.0  ;;  %v4930_v63 = vadd.f32 %v4929_v12, %v2554_v23  ;;  %v2556_v29 = vpop.f32.mrb[193].mxu1  ;;  %8989 = vmatmul.mubr.msk.f32.gmra.mrb[192].mxu1 %vm820_vm1, %v763_v25  ;;  %v4931_v8 = vpop.f32.mrb[43].mxu0  ;;  %9247 = vmatmul.mubr.msk.f32.gmra.mrb[148].mxu0 %vm820_vm1, %v506_v52  ;;  %v768_v5 = vld [vmem:[%s14782_s3 + $0x678] sm:$0xff] }
 0x387   : > { %v7915_v35 = vmax.f32 %v7403_v21, 0.0  ;;  %v4932_v17 = vadd.f32 %v4931_v8, %v2556_v29  ;;  %2876 = vmatprep.mubr.f32.mxu1 %v14845_v60  ;;  %5251 = vmatprep.mubr.f32.mxu0 %v14845_v60  ;;  %v511_v21 = vld [vmem:[%s14781_s2 + $0x678] sm:$0xff] }
 0x388   : > { %8426 = vst [vmem:[%s11204_s30 + $0x940] sm:$0xff] %v7914_v3  ;;  %v7404_v0 = vadd.f32 %v12786_v37, %v4930_v63 }
 0x389   : > { %8427 = vst [vmem:[%s11204_s30 + $0x948] sm:$0xff] %v7915_v35  ;;  %v7405_v45 = vadd.f32 %v12786_v37, %v4932_v17  ;;  %v2560_v39 = vpop.f32.mrb[194].mxu1  ;;  %v4935_v10 = vpop.f32.mrb[44].mxu0  ;;  %v765_v37 = vld [vmem:[%s14782_s3 + $0x660] sm:$0xff] }
 0x38a   : > { %v7916_v7 = vmax.f32 %v7404_v0, 0.0  ;;  %v4936_v20 = vadd.f32 %v4935_v10, %v2560_v39  ;;  %v2562_v19 = vpop.f32.mrb[195].mxu1  ;;  %8990 = vmatmul.mubr.msk.f32.gmra.mrb[194].mxu1 %vm820_vm1, %v764_v56  ;;  %v4937_v50 = vpop.f32.mrb[45].mxu0  ;;  %9248 = vmatmul.mubr.msk.f32.gmra.mrb[150].mxu0 %vm820_vm1, %v507_v32  ;;  %v512_v0 = vld [vmem:[%s14781_s2 + $0x680] sm:$0xff] }
 0x38b   : > { %v7917_v22 = vmax.f32 %v7405_v45, 0.0  ;;  %v4938_v31 = vadd.f32 %v4937_v50, %v2562_v19  ;;  %2882 = vmatprep.mubr.f32.mxu1 %v14845_v60  ;;  %5257 = vmatprep.mubr.f32.mxu0 %v14845_v60  ;;  %v14933_v45 = vld [vmem:[#allocation20_spill] sm:$0xff] }
 0x38c   : > { %8428 = vst [vmem:[%s11204_s30 + $0x950] sm:$0xff] %v7916_v7  ;;  %v7406_v24 = vadd.f32 %v14931_v33, %v4936_v20 }
 0x38d   : > { %8429 = vst [vmem:[%s11204_s30 + $0x958] sm:$0xff] %v7917_v22  ;;  %v7407_v18 = vadd.f32 %v14931_v33, %v4938_v31  ;;  %v2566_v2 = vpop.f32.mrb[196].mxu1  ;;  %v4941_v9 = vpop.f32.mrb[46].mxu0  ;;  %v770_v33 = vld [vmem:[%s14782_s3 + $0x688] sm:$0xff] }
 0x38e   : > { %v7918_v11 = vmax.f32 %v7406_v24, 0.0  ;;  %v4942_v36 = vadd.f32 %v4941_v9, %v2566_v2  ;;  %v2568_v49 = vpop.f32.mrb[197].mxu1  ;;  %8991 = vmatmul.mubr.msk.f32.gmra.mrb[196].mxu1 %vm820_vm1, %v765_v37  ;;  %v4943_v27 = vpop.f32.mrb[47].mxu0  ;;  %9249 = vmatmul.mubr.msk.f32.gmra.mrb[152].mxu0 %vm820_vm1, %v508_v42  ;;  %v513_v24 = vld [vmem:[%s14781_s2 + $0x688] sm:$0xff] }
 0x38f   : > { %v7919_v40 = vmax.f32 %v7407_v18, 0.0  ;;  %v4944_v57 = vadd.f32 %v4943_v27, %v2568_v49  ;;  %2888 = vmatprep.mubr.f32.mxu1 %v14845_v60  ;;  %5263 = vmatprep.mubr.f32.mxu0 %v14845_v60 }
 0x390   : > { %8430 = vst [vmem:[%s11204_s30 + $0x960] sm:$0xff] %v7918_v11  ;;  %v7408_v1 = vadd.f32 %v12830_v16, %v4942_v36 }
 0x391   : > { %8431 = vst [vmem:[%s11204_s30 + $0x968] sm:$0xff] %v7919_v40  ;;  %v7409_v26 = vadd.f32 %v12830_v16, %v4944_v57  ;;  %v2572_v4 = vpop.f32.mrb[198].mxu1  ;;  %v4947_v41 = vpop.f32.mrb[48].mxu0  ;;  %v767_v16 = vld [vmem:[%s14782_s3 + $0x670] sm:$0xff] }
 0x392   : > { %v7920_v30 = vmax.f32 %v7408_v1, 0.0  ;;  %v4948_v6 = vadd.f32 %v4947_v41, %v2572_v4  ;;  %v2574_v44 = vpop.f32.mrb[199].mxu1  ;;  %8992 = vmatmul.mubr.msk.f32.gmra.mrb[198].mxu1 %vm820_vm1, %v766_v14  ;;  %v4949_v55 = vpop.f32.mrb[49].mxu0  ;;  %9250 = vmatmul.mubr.msk.f32.gmra.mrb[154].mxu0 %vm820_vm1, %v509_v43  ;;  %v514_v43 = vld [vmem:[%s14781_s2 + $0x690] sm:$0xff] }
 0x393   : > { %v7921_v59 = vmax.f32 %v7409_v26, 0.0  ;;  %v4950_v62 = vadd.f32 %v4949_v55, %v2574_v44  ;;  %2894 = vmatprep.mubr.f32.mxu1 %v14845_v60  ;;  %5269 = vmatprep.mubr.f32.mxu0 %v14845_v60  ;;  %v14934_v1 = vld [vmem:[#allocation21_spill] sm:$0xff] }
 0x394   : > { %8432 = vst [vmem:[%s11204_s30 + $0x970] sm:$0xff] %v7920_v30  ;;  %v7410_v54 = vadd.f32 %v14932_v46, %v4948_v6 }
 0x395   : > { %8433 = vst [vmem:[%s11204_s30 + $0x978] sm:$0xff] %v7921_v59  ;;  %v7411_v34 = vadd.f32 %v14932_v46, %v4950_v62  ;;  %v2578_v13 = vpop.f32.mrb[200].mxu1  ;;  %v4953_v58 = vpop.f32.mrb[50].mxu0  ;;  %v515_v46 = vld [vmem:[%s14781_s2 + $0x698] sm:$0xff] }
 0x396   : > { %v7922_v47 = vmax.f32 %v7410_v54, 0.0  ;;  %v4954_v53 = vadd.f32 %v4953_v58, %v2578_v13  ;;  %v2580_v38 = vpop.f32.mrb[201].mxu1  ;;  %8993 = vmatmul.mubr.msk.f32.gmra.mrb[200].mxu1 %vm820_vm1, %v767_v16  ;;  %v4955_v25 = vpop.f32.mrb[51].mxu0  ;;  %9251 = vmatmul.mubr.msk.f32.gmra.mrb[156].mxu0 %vm820_vm1, %v510_v48  ;;  %v772_v48 = vld [vmem:[%s14782_s3 + $0x698] sm:$0xff] }
 0x397   : > { %v7923_v52 = vmax.f32 %v7411_v34, 0.0  ;;  %v4956_v51 = vadd.f32 %v4955_v25, %v2580_v38  ;;  %2900 = vmatprep.mubr.f32.mxu1 %v14845_v60  ;;  %5275 = vmatprep.mubr.f32.mxu0 %v14845_v60 }
 0x398   : > { %8434 = vst [vmem:[%s11204_s30 + $0x980] sm:$0xff] %v7922_v47  ;;  %v7412_v23 = vadd.f32 %v12874_v28, %v4954_v53 }
 0x399   : > { %8435 = vst [vmem:[%s11204_s30 + $0x988] sm:$0xff] %v7923_v52  ;;  %v7413_v12 = vadd.f32 %v12874_v28, %v4956_v51  ;;  %v2584_v3 = vpop.f32.mrb[202].mxu1  ;;  %v4959_v63 = vpop.f32.mrb[52].mxu0  ;;  %v769_v28 = vld [vmem:[%s14782_s3 + $0x680] sm:$0xff] }
 0x39a   : > { %v7924_v29 = vmax.f32 %v7412_v23, 0.0  ;;  %v4960_v8 = vadd.f32 %v4959_v63, %v2584_v3  ;;  %v2586_v35 = vpop.f32.mrb[203].mxu1  ;;  %8994 = vmatmul.mubr.msk.f32.gmra.mrb[202].mxu1 %vm820_vm1, %v768_v5  ;;  %v4961_v17 = vpop.f32.mrb[53].mxu0  ;;  %9252 = vmatmul.mubr.msk.f32.gmra.mrb[158].mxu0 %vm820_vm1, %v511_v21  ;;  %v516_v21 = vld [vmem:[%s14781_s2 + $0x6a0] sm:$0xff] }
 0x39b   : > { %v7925_v56 = vmax.f32 %v7413_v12, 0.0  ;;  %v4962_v32 = vadd.f32 %v4961_v17, %v2586_v35  ;;  %2906 = vmatprep.mubr.f32.mxu1 %v14845_v60  ;;  %5281 = vmatprep.mubr.f32.mxu0 %v14845_v60  ;;  %v6619_v52 = vpop.permute.xlu0 %6618 }
 0x39c   : > { %8436 = vst [vmem:[%s11204_s30 + $0x990] sm:$0xff] %v7924_v29  ;;  %v7414_v39 = vadd.f32 %v14933_v45, %v4960_v8 }
 0x39d   : > { %8437 = vst [vmem:[%s11204_s30 + $0x998] sm:$0xff] %v7925_v56  ;;  %v7415_v10 = vadd.f32 %v14933_v45, %v4962_v32  ;;  %v2590_v7 = vpop.f32.mrb[204].mxu1  ;;  %v4965_v20 = vpop.f32.mrb[54].mxu0  ;;  %v517_v45 = vld [vmem:[%s14781_s2 + $0x6a8] sm:$0xff] }
 0x39e   : > { %v7926_v19 = vmax.f32 %v7414_v39, 0.0  ;;  %v4966_v50 = vadd.f32 %v4965_v20, %v2590_v7  ;;  %v2592_v22 = vpop.f32.mrb[205].mxu1  ;;  %8995 = vmatmul.mubr.msk.f32.gmra.mrb[204].mxu1 %vm820_vm1, %v769_v28  ;;  %v4967_v31 = vpop.f32.mrb[55].mxu0  ;;  %9253 = vmatmul.mubr.msk.f32.gmra.mrb[160].mxu0 %vm820_vm1, %v512_v0  ;;  %v774_v0 = vld [vmem:[%s14782_s3 + $0x6a8] sm:$0xff] }
 0x39f   : > { %v7927_v37 = vmax.f32 %v7415_v10, 0.0  ;;  %v4968_v42 = vadd.f32 %v4967_v31, %v2592_v22  ;;  %2912 = vmatprep.mubr.f32.mxu1 %v14845_v60  ;;  %5287 = vmatprep.mubr.f32.mxu0 %v14845_v60  ;;  %v6624_v56 = vpop.permute.xlu1 %6623 }
 0x3a0   : > { %8438 = vst [vmem:[%s11204_s30 + $0x9a0] sm:$0xff] %v7926_v19  ;;  %v7416_v18 = vadd.f32 %v12918_v15, %v4966_v50 }
 0x3a1   : > { %8439 = vst [vmem:[%s11204_s30 + $0x9a8] sm:$0xff] %v7927_v37  ;;  %v7417_v2 = vadd.f32 %v12918_v15, %v4968_v42  ;;  %v2596_v9 = vpop.f32.mrb[206].mxu1  ;;  %v4971_v11 = vpop.f32.mrb[56].mxu0  ;;  %v771_v15 = vld [vmem:[%s14782_s3 + $0x690] sm:$0xff] }
 0x3a2   : > { %v7928_v36 = vmax.f32 %v7416_v18, 0.0  ;;  %v4972_v49 = vadd.f32 %v4971_v11, %v2596_v9  ;;  %v2598_v27 = vpop.f32.mrb[207].mxu1  ;;  %8996 = vmatmul.mubr.msk.f32.gmra.mrb[206].mxu1 %vm820_vm1, %v770_v33  ;;  %v4973_v40 = vpop.f32.mrb[57].mxu0  ;;  %9254 = vmatmul.mubr.msk.f32.gmra.mrb[162].mxu0 %vm820_vm1, %v513_v24  ;;  %v775_v24 = vld [vmem:[%s14782_s3 + $0x6b0] sm:$0xff] }
 0x3a3   : > { %v7929_v57 = vmax.f32 %v7417_v2, 0.0  ;;  %v4974_v14 = vadd.f32 %v4973_v40, %v2598_v27  ;;  %2918 = vmatprep.mubr.f32.mxu1 %v14845_v60  ;;  %5293 = vmatprep.mubr.f32.mxu0 %v14845_v60  ;;  %v6629_v37 = vpop.permute.xlu0 %6628  ;;  %v518_v18 = vld [vmem:[%s14781_s2 + $0x6b0] sm:$0xff] }
 0x3a4   : > { %8440 = vst [vmem:[%s11204_s30 + $0x9b0] sm:$0xff] %v7928_v36  ;;  %v7418_v26 = vadd.f32 %v14934_v1, %v4972_v49 }
 0x3a5   : > { %8441 = vst [vmem:[%s11204_s30 + $0x9b8] sm:$0xff] %v7929_v57  ;;  %v7419_v4 = vadd.f32 %v14934_v1, %v4974_v14  ;;  %v2602_v41 = vpop.f32.mrb[208].mxu1  ;;  %v4977_v30 = vpop.f32.mrb[58].mxu0  ;;  %v776_v1 = vld [vmem:[%s14782_s3 + $0x6b8] sm:$0xff] }
 0x3a6   : > { %v7930_v6 = vmax.f32 %v7418_v26, 0.0  ;;  %v4978_v44 = vadd.f32 %v4977_v30, %v2602_v41  ;;  %v2604_v55 = vpop.f32.mrb[209].mxu1  ;;  %8997 = vmatmul.mubr.msk.f32.gmra.mrb[208].mxu1 %vm820_vm1, %v771_v15  ;;  %v4979_v59 = vpop.f32.mrb[59].mxu0  ;;  %9255 = vmatmul.mubr.msk.f32.gmra.mrb[164].mxu0 %vm820_vm1, %v514_v43  ;;  %v519_v26 = vld [vmem:[%s14781_s2 + $0x6b8] sm:$0xff] }
 0x3a7   : > { %v7931_v62 = vmax.f32 %v7419_v4, 0.0  ;;  %v4980_v16 = vadd.f32 %v4979_v59, %v2604_v55  ;;  %2924 = vmatprep.mubr.f32.mxu1 %v14845_v60  ;;  %5299 = vmatprep.mubr.f32.mxu0 %v14845_v60  ;;  %v6634_v14 = vpop.permute.xlu1 %6633 }
 0x3a8   : > { %8442 = vst [vmem:[%s11204_s30 + $0x9c0] sm:$0xff] %v7930_v6  ;;  %v7420_v54 = vadd.f32 %v12959_v61, %v4978_v44 }
 0x3a9   : > { %8443 = vst [vmem:[%s11204_s30 + $0x9c8] sm:$0xff] %v7931_v62  ;;  %v7421_v34 = vadd.f32 %v12959_v61, %v4980_v16  ;;  %v2608_v13 = vpop.f32.mrb[210].mxu1  ;;  %v4983_v58 = vpop.f32.mrb[60].mxu0  ;;  %v773_v61 = vld [vmem:[%s14782_s3 + $0x6a0] sm:$0xff] }
 0x3aa   : > { %v7932_v47 = vmax.f32 %v7420_v54, 0.0  ;;  %v4984_v53 = vadd.f32 %v4983_v58, %v2608_v13  ;;  %v2610_v38 = vpop.f32.mrb[211].mxu1  ;;  %8998 = vmatmul.mubr.msk.f32.gmra.mrb[210].mxu1 %vm820_vm1, %v772_v48  ;;  %v4985_v25 = vpop.f32.mrb[61].mxu0  ;;  %9256 = vmatmul.mubr.msk.f32.gmra.mrb[166].mxu0 %vm820_vm1, %v515_v46  ;;  %v777_v54 = vld [vmem:[%s14782_s3 + $0x6c0] sm:$0xff] }
 0x3ab   : > { %v7933_v51 = vmax.f32 %v7421_v34, 0.0  ;;  %v4986_v5 = vadd.f32 %v4985_v25, %v2610_v38  ;;  %2930 = vmatprep.mubr.f32.mxu1 %v14845_v60  ;;  %5305 = vmatprep.mubr.f32.mxu0 %v14845_v60  ;;  %v6639_v16 = vpop.permute.xlu0 %6638  ;;  %v520_v34 = vld [vmem:[%s14781_s2 + $0x6c0] sm:$0xff] }
 0x3ac   : > { %8444 = vst [vmem:[%s11204_s30 + $0x9d0] sm:$0xff] %v7932_v47  ;;  %v7422_v23 = vadd.f32 %v6619_v52, %v4984_v53 }
 0x3ad   : > { %8445 = vst [vmem:[%s11204_s30 + $0x9d8] sm:$0xff] %v7933_v51  ;;  %v7423_v12 = vadd.f32 %v6619_v52, %v4986_v5  ;;  %v2614_v3 = vpop.f32.mrb[212].mxu1  ;;  %v4989_v63 = vpop.f32.mrb[62].mxu0 }
 0x3ae   : > { %v7934_v29 = vmax.f32 %v7422_v23, 0.0  ;;  %v4990_v8 = vadd.f32 %v4989_v63, %v2614_v3  ;;  %v2616_v35 = vpop.f32.mrb[213].mxu1  ;;  %8999 = vmatmul.mubr.msk.f32.gmra.mrb[212].mxu1 %vm820_vm1, %v773_v61  ;;  %v4991_v17 = vpop.f32.mrb[63].mxu0  ;;  %9257 = vmatmul.mubr.msk.f32.gmra.mrb[168].mxu0 %vm820_vm1, %v516_v21  ;;  %v778_v23 = vld [vmem:[%s14782_s3 + $0x6c8] sm:$0xff] }
 0x3af   : > { %v7935_v32 = vmax.f32 %v7423_v12, 0.0  ;;  %v4992_v28 = vadd.f32 %v4991_v17, %v2616_v35  ;;  %2936 = vmatprep.mubr.f32.mxu1 %v14845_v60  ;;  %5311 = vmatprep.mubr.f32.mxu0 %v14845_v60  ;;  %v6644_v5 = vpop.permute.xlu1 %6643  ;;  %v521_v12 = vld [vmem:[%s14781_s2 + $0x6c8] sm:$0xff] }
 0x3b0   : > { %8446 = vst [vmem:[%s11204_s30 + $0x9e0] sm:$0xff] %v7934_v29  ;;  %v7424_v39 = vadd.f32 %v6624_v56, %v4990_v8 }
 0x3b1   : > { %8447 = vst [vmem:[%s11204_s30 + $0x9e8] sm:$0xff] %v7935_v32  ;;  %v7425_v10 = vadd.f32 %v6624_v56, %v4992_v28  ;;  %v2620_v7 = vpop.f32.mrb[214].mxu1  ;;  %v4995_v20 = vpop.f32.mrb[64].mxu0 }
 0x3b2   : > { %v7936_v19 = vmax.f32 %v7424_v39, 0.0  ;;  %v4996_v50 = vadd.f32 %v4995_v20, %v2620_v7  ;;  %v2622_v22 = vpop.f32.mrb[215].mxu1  ;;  %9000 = vmatmul.mubr.msk.f32.gmra.mrb[214].mxu1 %vm820_vm1, %v774_v0  ;;  %v4997_v31 = vpop.f32.mrb[65].mxu0  ;;  %9258 = vmatmul.mubr.msk.f32.gmra.mrb[170].mxu0 %vm820_vm1, %v517_v45  ;;  %v779_v39 = vld [vmem:[%s14782_s3 + $0x6d0] sm:$0xff] }
 0x3b3   : > { %v7937_v42 = vmax.f32 %v7425_v10, 0.0  ;;  %v4998_v33 = vadd.f32 %v4997_v31, %v2622_v22  ;;  %2942 = vmatprep.mubr.f32.mxu1 %v14845_v60  ;;  %5317 = vmatprep.mubr.f32.mxu0 %v14845_v60  ;;  %v6649_v28 = vpop.permute.xlu0 %6648  ;;  %v522_v10 = vld [vmem:[%s14781_s2 + $0x6d0] sm:$0xff] }
 0x3b4   : > { %8448 = vst [vmem:[%s11204_s30 + $0x9f0] sm:$0xff] %v7936_v19  ;;  %v7426_v2 = vadd.f32 %v6629_v37, %v4996_v50 }
 0x3b5   : > { %8449 = vst [vmem:[%s11204_s30 + $0x9f8] sm:$0xff] %v7937_v42  ;;  %v7427_v9 = vadd.f32 %v6629_v37, %v4998_v33  ;;  %v2626_v11 = vpop.f32.mrb[216].mxu1  ;;  %v5001_v36 = vpop.f32.mrb[66].mxu0 }
 0x3b6   : > { %v7938_v49 = vmax.f32 %v7426_v2, 0.0  ;;  %v5002_v27 = vadd.f32 %v5001_v36, %v2626_v11  ;;  %v2628_v40 = vpop.f32.mrb[217].mxu1  ;;  %9001 = vmatmul.mubr.msk.f32.gmra.mrb[216].mxu1 %vm820_vm1, %v775_v24  ;;  %v5003_v57 = vpop.f32.mrb[67].mxu0  ;;  %9259 = vmatmul.mubr.msk.f32.gmra.mrb[172].mxu0 %vm820_vm1, %v518_v18  ;;  %v780_v2 = vld [vmem:[%s14782_s3 + $0x6d8] sm:$0xff] }
 0x3b7   : > { %v7939_v15 = vmax.f32 %v7427_v9, 0.0  ;;  %v5004_v43 = vadd.f32 %v5003_v57, %v2628_v40  ;;  %2948 = vmatprep.mubr.f32.mxu1 %v14845_v60  ;;  %5323 = vmatprep.mubr.f32.mxu0 %v14845_v60  ;;  %v6654_v33 = vpop.permute.xlu1 %6653  ;;  %v523_v9 = vld [vmem:[%s14781_s2 + $0x6d8] sm:$0xff] }
 0x3b8   : > { %8450 = vst [vmem:[%s11204_s30 + $0xa00] sm:$0xff] %v7938_v49  ;;  %v7428_v4 = vadd.f32 %v6634_v14, %v5002_v27 }
 0x3b9   : > { %8451 = vst [vmem:[%s11204_s30 + $0xa08] sm:$0xff] %v7939_v15  ;;  %v7429_v41 = vadd.f32 %v6634_v14, %v5004_v43  ;;  %v2632_v30 = vpop.f32.mrb[218].mxu1  ;;  %v5007_v6 = vpop.f32.mrb[68].mxu0 }
 0x3ba   : > { %v7940_v44 = vmax.f32 %v7428_v4, 0.0  ;;  %v5008_v55 = vadd.f32 %v5007_v6, %v2632_v30  ;;  %v2634_v59 = vpop.f32.mrb[219].mxu1  ;;  %9002 = vmatmul.mubr.msk.f32.gmra.mrb[218].mxu1 %vm820_vm1, %v776_v1  ;;  %v5009_v62 = vpop.f32.mrb[69].mxu0  ;;  %9260 = vmatmul.mubr.msk.f32.gmra.mrb[174].mxu0 %vm820_vm1, %v519_v26  ;;  %v781_v4 = vld [vmem:[%s14782_s3 + $0x6e0] sm:$0xff] }
 0x3bb   : > { %v7941_v48 = vmax.f32 %v7429_v41, 0.0  ;;  %v5010_v46 = vadd.f32 %v5009_v62, %v2634_v59  ;;  %2954 = vmatprep.mubr.f32.mxu1 %v14845_v60  ;;  %5329 = vmatprep.mubr.f32.mxu0 %v14845_v60  ;;  %v6659_v43 = vpop.permute.xlu0 %6658  ;;  %v524_v41 = vld [vmem:[%s14781_s2 + $0x6e0] sm:$0xff] }
 0x3bc   : > { %8452 = vst [vmem:[%s11204_s30 + $0xa10] sm:$0xff] %v7940_v44  ;;  %v7430_v13 = vadd.f32 %v6639_v16, %v5008_v55 }
 0x3bd   : > { %8453 = vst [vmem:[%s11204_s30 + $0xa18] sm:$0xff] %v7941_v48  ;;  %v7431_v58 = vadd.f32 %v6639_v16, %v5010_v46  ;;  %v2638_v47 = vpop.f32.mrb[220].mxu1  ;;  %v5013_v53 = vpop.f32.mrb[70].mxu0 }
 0x3be   : > { %v7942_v38 = vmax.f32 %v7430_v13, 0.0  ;;  %v5014_v25 = vadd.f32 %v5013_v53, %v2638_v47  ;;  %v2640_v52 = vpop.f32.mrb[221].mxu1  ;;  %9003 = vmatmul.mubr.msk.f32.gmra.mrb[220].mxu1 %vm820_vm1, %v777_v54  ;;  %v5015_v51 = vpop.f32.mrb[71].mxu0  ;;  %9261 = vmatmul.mubr.msk.f32.gmra.mrb[176].mxu0 %vm820_vm1, %v520_v34  ;;  %v782_v13 = vld [vmem:[%s14782_s3 + $0x6e8] sm:$0xff] }
 0x3bf   : > { %v7943_v61 = vmax.f32 %v7431_v58, 0.0  ;;  %v5016_v21 = vadd.f32 %v5015_v51, %v2640_v52  ;;  %2960 = vmatprep.mubr.f32.mxu1 %v14845_v60  ;;  %5335 = vmatprep.mubr.f32.mxu0 %v14845_v60  ;;  %v6664_v46 = vpop.permute.xlu1 %6663  ;;  %v525_v58 = vld [vmem:[%s14781_s2 + $0x6e8] sm:$0xff] }
 0x3c0   : > { %8454 = vst [vmem:[%s11204_s30 + $0xa20] sm:$0xff] %v7942_v38  ;;  %v7432_v3 = vadd.f32 %v6644_v5, %v5014_v25 }
 0x3c1   : > { %8455 = vst [vmem:[%s11204_s30 + $0xa28] sm:$0xff] %v7943_v61  ;;  %v7433_v63 = vadd.f32 %v6644_v5, %v5016_v21  ;;  %v2644_v29 = vpop.f32.mrb[222].mxu1  ;;  %v5019_v8 = vpop.f32.mrb[72].mxu0 }
 0x3c2   : > { %v7944_v35 = vmax.f32 %v7432_v3, 0.0  ;;  %v5020_v17 = vadd.f32 %v5019_v8, %v2644_v29  ;;  %v2646_v56 = vpop.f32.mrb[223].mxu1  ;;  %9004 = vmatmul.mubr.msk.f32.gmra.mrb[222].mxu1 %vm820_vm1, %v778_v23  ;;  %v5021_v32 = vpop.f32.mrb[73].mxu0  ;;  %9262 = vmatmul.mubr.msk.f32.gmra.mrb[178].mxu0 %vm820_vm1, %v521_v12  ;;  %v783_v3 = vld [vmem:[%s14782_s3 + $0x6f0] sm:$0xff] }
 0x3c3   : > { %v7945_v0 = vmax.f32 %v7433_v63, 0.0  ;;  %v5022_v45 = vadd.f32 %v5021_v32, %v2646_v56  ;;  %2966 = vmatprep.mubr.f32.mxu1 %v14845_v60  ;;  %5341 = vmatprep.mubr.f32.mxu0 %v14845_v60  ;;  %v6669_v21 = vpop.permute.xlu0 %6668  ;;  %v526_v63 = vld [vmem:[%s14781_s2 + $0x6f0] sm:$0xff] }
 0x3c4   : > { %8456 = vst [vmem:[%s11204_s30 + $0xa30] sm:$0xff] %v7944_v35  ;;  %v7434_v7 = vadd.f32 %v6649_v28, %v5020_v17 }
 0x3c5   : > { %8457 = vst [vmem:[%s11204_s30 + $0xa38] sm:$0xff] %v7945_v0  ;;  %v7435_v20 = vadd.f32 %v6649_v28, %v5022_v45  ;;  %v2650_v19 = vpop.f32.mrb[224].mxu1  ;;  %v5025_v50 = vpop.f32.mrb[74].mxu0 }
 0x3c6   : > { %v7946_v22 = vmax.f32 %v7434_v7, 0.0  ;;  %v5026_v31 = vadd.f32 %v5025_v50, %v2650_v19  ;;  %v2652_v37 = vpop.f32.mrb[225].mxu1  ;;  %9005 = vmatmul.mubr.msk.f32.gmra.mrb[224].mxu1 %vm820_vm1, %v779_v39  ;;  %v5027_v42 = vpop.f32.mrb[75].mxu0  ;;  %9263 = vmatmul.mubr.msk.f32.gmra.mrb[180].mxu0 %vm820_vm1, %v522_v10  ;;  %v784_v7 = vld [vmem:[%s14782_s3 + $0x6f8] sm:$0xff] }
 0x3c7   : > { %v7947_v24 = vmax.f32 %v7435_v20, 0.0  ;;  %v5028_v18 = vadd.f32 %v5027_v42, %v2652_v37  ;;  %2972 = vmatprep.mubr.f32.mxu1 %v14845_v60  ;;  %5347 = vmatprep.mubr.f32.mxu0 %v14845_v60  ;;  %v6674_v45 = vpop.permute.xlu1 %6673  ;;  %v527_v20 = vld [vmem:[%s14781_s2 + $0x6f8] sm:$0xff] }
 0x3c8   : > { %8458 = vst [vmem:[%s11204_s30 + $0xa40] sm:$0xff] %v7946_v22  ;;  %v7436_v11 = vadd.f32 %v6654_v33, %v5026_v31 }
 0x3c9   : > { %8459 = vst [vmem:[%s11204_s30 + $0xa48] sm:$0xff] %v7947_v24  ;;  %v7437_v36 = vadd.f32 %v6654_v33, %v5028_v18  ;;  %v2656_v49 = vpop.f32.mrb[226].mxu1  ;;  %v5031_v27 = vpop.f32.mrb[76].mxu0 }
 0x3ca   : > { %v7948_v40 = vmax.f32 %v7436_v11, 0.0  ;;  %v5032_v57 = vadd.f32 %v5031_v27, %v2656_v49  ;;  %v2658_v14 = vpop.f32.mrb[227].mxu1  ;;  %9006 = vmatmul.mubr.msk.f32.gmra.mrb[226].mxu1 %vm820_vm1, %v780_v2  ;;  %v5033_v15 = vpop.f32.mrb[77].mxu0  ;;  %9264 = vmatmul.mubr.msk.f32.gmra.mrb[182].mxu0 %vm820_vm1, %v523_v9  ;;  %v785_v11 = vld [vmem:[%s14782_s3 + $0x700] sm:$0xff] }
 0x3cb   : > { %v7949_v1 = vmax.f32 %v7437_v36, 0.0  ;;  %v5034_v26 = vadd.f32 %v5033_v15, %v2658_v14  ;;  %2978 = vmatprep.mubr.f32.mxu1 %v14845_v60  ;;  %5353 = vmatprep.mubr.f32.mxu0 %v14845_v60  ;;  %v6679_v18 = vpop.permute.xlu0 %6678  ;;  %v528_v36 = vld [vmem:[%s14781_s2 + $0x700] sm:$0xff] }
 0x3cc   : > { %8460 = vst [vmem:[%s11204_s30 + $0xa50] sm:$0xff] %v7948_v40  ;;  %v7438_v30 = vadd.f32 %v6659_v43, %v5032_v57 }
 0x3cd   : > { %8461 = vst [vmem:[%s11204_s30 + $0xa58] sm:$0xff] %v7949_v1  ;;  %v7439_v6 = vadd.f32 %v6659_v43, %v5034_v26  ;;  %v2662_v44 = vpop.f32.mrb[228].mxu1  ;;  %v5037_v55 = vpop.f32.mrb[78].mxu0 }
 0x3ce   : > { %v7950_v59 = vmax.f32 %v7438_v30, 0.0  ;;  %v5038_v62 = vadd.f32 %v5037_v55, %v2662_v44  ;;  %v2664_v16 = vpop.f32.mrb[229].mxu1  ;;  %9007 = vmatmul.mubr.msk.f32.gmra.mrb[228].mxu1 %vm820_vm1, %v781_v4  ;;  %v5039_v48 = vpop.f32.mrb[79].mxu0  ;;  %9265 = vmatmul.mubr.msk.f32.gmra.mrb[184].mxu0 %vm820_vm1, %v524_v41  ;;  %v786_v30 = vld [vmem:[%s14782_s3 + $0x708] sm:$0xff] }
 0x3cf   : > { %v7951_v54 = vmax.f32 %v7439_v6, 0.0  ;;  %v5040_v34 = vadd.f32 %v5039_v48, %v2664_v16  ;;  %2984 = vmatprep.mubr.f32.mxu1 %v14845_v60  ;;  %5359 = vmatprep.mubr.f32.mxu0 %v14845_v60  ;;  %v6684_v26 = vpop.permute.xlu1 %6683  ;;  %v529_v6 = vld [vmem:[%s14781_s2 + $0x708] sm:$0xff] }
 0x3d0   : > { %8462 = vst [vmem:[%s11204_s30 + $0xa60] sm:$0xff] %v7950_v59  ;;  %v7440_v47 = vadd.f32 %v6664_v46, %v5038_v62 }
 0x3d1   : > { %8463 = vst [vmem:[%s11204_s30 + $0xa68] sm:$0xff] %v7951_v54  ;;  %v7441_v53 = vadd.f32 %v6664_v46, %v5040_v34  ;;  %v2668_v38 = vpop.f32.mrb[230].mxu1  ;;  %v5043_v25 = vpop.f32.mrb[80].mxu0 }
 0x3d2   : > { %v7952_v52 = vmax.f32 %v7440_v47, 0.0  ;;  %v5044_v51 = vadd.f32 %v5043_v25, %v2668_v38  ;;  %v2670_v5 = vpop.f32.mrb[231].mxu1  ;;  %9008 = vmatmul.mubr.msk.f32.gmra.mrb[230].mxu1 %vm820_vm1, %v782_v13  ;;  %v5045_v61 = vpop.f32.mrb[81].mxu0  ;;  %9266 = vmatmul.mubr.msk.f32.gmra.mrb[186].mxu0 %vm820_vm1, %v525_v58  ;;  %v787_v47 = vld [vmem:[%s14782_s3 + $0x710] sm:$0xff] }
 0x3d3   : > { %v7953_v23 = vmax.f32 %v7441_v53, 0.0  ;;  %v5046_v12 = vadd.f32 %v5045_v61, %v2670_v5  ;;  %2990 = vmatprep.mubr.f32.mxu1 %v14845_v60  ;;  %5365 = vmatprep.mubr.f32.mxu0 %v14845_v60  ;;  %v6689_v34 = vpop.permute.xlu0 %6688  ;;  %v530_v53 = vld [vmem:[%s14781_s2 + $0x710] sm:$0xff] }
 0x3d4   : > { %8464 = vst [vmem:[%s11204_s30 + $0xa70] sm:$0xff] %v7952_v52  ;;  %v7442_v29 = vadd.f32 %v6669_v21, %v5044_v51 }
 0x3d5   : > { %8465 = vst [vmem:[%s11204_s30 + $0xa78] sm:$0xff] %v7953_v23  ;;  %v7443_v8 = vadd.f32 %v6669_v21, %v5046_v12  ;;  %v2674_v35 = vpop.f32.mrb[232].mxu1  ;;  %v5049_v17 = vpop.f32.mrb[82].mxu0 }
 0x3d6   : > { %v7954_v56 = vmax.f32 %v7442_v29, 0.0  ;;  %v5050_v32 = vadd.f32 %v5049_v17, %v2674_v35  ;;  %v2676_v28 = vpop.f32.mrb[233].mxu1  ;;  %9009 = vmatmul.mubr.msk.f32.gmra.mrb[232].mxu1 %vm820_vm1, %v783_v3  ;;  %v5051_v0 = vpop.f32.mrb[83].mxu0  ;;  %9267 = vmatmul.mubr.msk.f32.gmra.mrb[188].mxu0 %vm820_vm1, %v526_v63  ;;  %v788_v29 = vld [vmem:[%s14782_s3 + $0x718] sm:$0xff] }
 0x3d7   : > { %v7955_v39 = vmax.f32 %v7443_v8, 0.0  ;;  %v5052_v10 = vadd.f32 %v5051_v0, %v2676_v28  ;;  %2996 = vmatprep.mubr.f32.mxu1 %v14845_v60  ;;  %5371 = vmatprep.mubr.f32.mxu0 %v14845_v60  ;;  %v6694_v12 = vpop.permute.xlu1 %6693  ;;  %v531_v8 = vld [vmem:[%s14781_s2 + $0x718] sm:$0xff] }
 0x3d8   : > { %8466 = vst [vmem:[%s11204_s30 + $0xa80] sm:$0xff] %v7954_v56  ;;  %v7444_v19 = vadd.f32 %v6674_v45, %v5050_v32 }
 0x3d9   : > { %8467 = vst [vmem:[%s11204_s30 + $0xa88] sm:$0xff] %v7955_v39  ;;  %v7445_v50 = vadd.f32 %v6674_v45, %v5052_v10  ;;  %v2680_v22 = vpop.f32.mrb[234].mxu1  ;;  %v5055_v31 = vpop.f32.mrb[84].mxu0 }
 0x3da   : > { %v7956_v37 = vmax.f32 %v7444_v19, 0.0  ;;  %v5056_v42 = vadd.f32 %v5055_v31, %v2680_v22  ;;  %v2682_v33 = vpop.f32.mrb[235].mxu1  ;;  %9010 = vmatmul.mubr.msk.f32.gmra.mrb[234].mxu1 %vm820_vm1, %v784_v7  ;;  %v5057_v24 = vpop.f32.mrb[85].mxu0  ;;  %9268 = vmatmul.mubr.msk.f32.gmra.mrb[190].mxu0 %vm820_vm1, %v527_v20  ;;  %v789_v19 = vld [vmem:[%s14782_s3 + $0x720] sm:$0xff] }
 0x3db   : > { %v7957_v2 = vmax.f32 %v7445_v50, 0.0  ;;  %v5058_v9 = vadd.f32 %v5057_v24, %v2682_v33  ;;  %3002 = vmatprep.mubr.f32.mxu1 %v14845_v60  ;;  %5377 = vmatprep.mubr.f32.mxu0 %v14845_v60  ;;  %v6699_v10 = vpop.permute.xlu0 %6698  ;;  %v532_v50 = vld [vmem:[%s14781_s2 + $0x720] sm:$0xff] }
 0x3dc   : > { %8468 = vst [vmem:[%s11204_s30 + $0xa90] sm:$0xff] %v7956_v37  ;;  %v7446_v49 = vadd.f32 %v6679_v18, %v5056_v42 }
 0x3dd   : > { %8469 = vst [vmem:[%s11204_s30 + $0xa98] sm:$0xff] %v7957_v2  ;;  %v7447_v27 = vadd.f32 %v6679_v18, %v5058_v9  ;;  %v2686_v40 = vpop.f32.mrb[236].mxu1  ;;  %v5061_v57 = vpop.f32.mrb[86].mxu0 }
 0x3de   : > { %v7958_v14 = vmax.f32 %v7446_v49, 0.0  ;;  %v5062_v15 = vadd.f32 %v5061_v57, %v2686_v40  ;;  %v2688_v43 = vpop.f32.mrb[237].mxu1  ;;  %9011 = vmatmul.mubr.msk.f32.gmra.mrb[236].mxu1 %vm820_vm1, %v785_v11  ;;  %v5063_v1 = vpop.f32.mrb[87].mxu0  ;;  %9269 = vmatmul.mubr.msk.f32.gmra.mrb[192].mxu0 %vm820_vm1, %v528_v36  ;;  %v790_v49 = vld [vmem:[%s14782_s3 + $0x728] sm:$0xff] }
 0x3df   : > { %v7959_v4 = vmax.f32 %v7447_v27, 0.0  ;;  %v5064_v41 = vadd.f32 %v5063_v1, %v2688_v43  ;;  %3008 = vmatprep.mubr.f32.mxu1 %v14845_v60  ;;  %5383 = vmatprep.mubr.f32.mxu0 %v14845_v60  ;;  %v6704_v9 = vpop.permute.xlu1 %6703  ;;  %v533_v27 = vld [vmem:[%s14781_s2 + $0x728] sm:$0xff] }
 0x3e0   : > { %8470 = vst [vmem:[%s11204_s30 + $0xaa0] sm:$0xff] %v7958_v14  ;;  %v7448_v44 = vadd.f32 %v6684_v26, %v5062_v15 }
 0x3e1   : > { %8471 = vst [vmem:[%s11204_s30 + $0xaa8] sm:$0xff] %v7959_v4  ;;  %v7449_v55 = vadd.f32 %v6684_v26, %v5064_v41  ;;  %v2692_v59 = vpop.f32.mrb[238].mxu1  ;;  %v5067_v62 = vpop.f32.mrb[88].mxu0 }
 0x3e2   : > { %v7960_v16 = vmax.f32 %v7448_v44, 0.0  ;;  %v5068_v48 = vadd.f32 %v5067_v62, %v2692_v59  ;;  %v2694_v46 = vpop.f32.mrb[239].mxu1  ;;  %9012 = vmatmul.mubr.msk.f32.gmra.mrb[238].mxu1 %vm820_vm1, %v786_v30  ;;  %v5069_v54 = vpop.f32.mrb[89].mxu0  ;;  %9270 = vmatmul.mubr.msk.f32.gmra.mrb[194].mxu0 %vm820_vm1, %v529_v6  ;;  %v791_v44 = vld [vmem:[%s14782_s3 + $0x730] sm:$0xff] }
 0x3e3   : > { %v7961_v13 = vmax.f32 %v7449_v55, 0.0  ;;  %v5070_v58 = vadd.f32 %v5069_v54, %v2694_v46  ;;  %3014 = vmatprep.mubr.f32.mxu1 %v14845_v60  ;;  %5389 = vmatprep.mubr.f32.mxu0 %v14845_v60  ;;  %v6709_v41 = vpop.permute.xlu0 %6708  ;;  %v534_v55 = vld [vmem:[%s14781_s2 + $0x730] sm:$0xff] }
 0x3e4   : > { %8472 = vst [vmem:[%s11204_s30 + $0xab0] sm:$0xff] %v7960_v16  ;;  %v7450_v38 = vadd.f32 %v6689_v34, %v5068_v48 }
 0x3e5   : > { %8473 = vst [vmem:[%s11204_s30 + $0xab8] sm:$0xff] %v7961_v13  ;;  %v7451_v25 = vadd.f32 %v6689_v34, %v5070_v58  ;;  %v2698_v52 = vpop.f32.mrb[240].mxu1  ;;  %v5073_v51 = vpop.f32.mrb[90].mxu0 }
 0x3e6   : > { %v7962_v5 = vmax.f32 %v7450_v38, 0.0  ;;  %v5074_v61 = vadd.f32 %v5073_v51, %v2698_v52  ;;  %v2700_v21 = vpop.f32.mrb[241].mxu1  ;;  %9013 = vmatmul.mubr.msk.f32.gmra.mrb[240].mxu1 %vm820_vm1, %v787_v47  ;;  %v5075_v23 = vpop.f32.mrb[91].mxu0  ;;  %9271 = vmatmul.mubr.msk.f32.gmra.mrb[196].mxu0 %vm820_vm1, %v530_v53  ;;  %v792_v38 = vld [vmem:[%s14782_s3 + $0x738] sm:$0xff] }
 0x3e7   : > { %v7963_v3 = vmax.f32 %v7451_v25, 0.0  ;;  %v5076_v63 = vadd.f32 %v5075_v23, %v2700_v21  ;;  %3020 = vmatprep.mubr.f32.mxu1 %v14845_v60  ;;  %5395 = vmatprep.mubr.f32.mxu0 %v14845_v60  ;;  %v6714_v58 = vpop.permute.xlu1 %6713  ;;  %v535_v25 = vld [vmem:[%s14781_s2 + $0x738] sm:$0xff] }
 0x3e8   : > { %8474 = vst [vmem:[%s11204_s30 + $0xac0] sm:$0xff] %v7962_v5  ;;  %v7452_v35 = vadd.f32 %v6694_v12, %v5074_v61 }
 0x3e9   : > { %8475 = vst [vmem:[%s11204_s30 + $0xac8] sm:$0xff] %v7963_v3  ;;  %v7453_v17 = vadd.f32 %v6694_v12, %v5076_v63  ;;  %v2704_v56 = vpop.f32.mrb[242].mxu1  ;;  %v5079_v32 = vpop.f32.mrb[92].mxu0 }
 0x3ea   : > { %v7964_v28 = vmax.f32 %v7452_v35, 0.0  ;;  %v5080_v0 = vadd.f32 %v5079_v32, %v2704_v56  ;;  %v2706_v45 = vpop.f32.mrb[243].mxu1  ;;  %9014 = vmatmul.mubr.msk.f32.gmra.mrb[242].mxu1 %vm820_vm1, %v788_v29  ;;  %v5081_v39 = vpop.f32.mrb[93].mxu0  ;;  %9272 = vmatmul.mubr.msk.f32.gmra.mrb[198].mxu0 %vm820_vm1, %v531_v8  ;;  %v793_v35 = vld [vmem:[%s14782_s3 + $0x740] sm:$0xff] }
 0x3eb   : > { %v7965_v7 = vmax.f32 %v7453_v17, 0.0  ;;  %v5082_v20 = vadd.f32 %v5081_v39, %v2706_v45  ;;  %3026 = vmatprep.mubr.f32.mxu1 %v14845_v60  ;;  %5401 = vmatprep.mubr.f32.mxu0 %v14845_v60  ;;  %v6719_v63 = vpop.permute.xlu0 %6718  ;;  %v536_v17 = vld [vmem:[%s14781_s2 + $0x740] sm:$0xff] }
 0x3ec   : > { %8476 = vst [vmem:[%s11204_s30 + $0xad0] sm:$0xff] %v7964_v28  ;;  %v7454_v22 = vadd.f32 %v6699_v10, %v5080_v0 }
 0x3ed   : > { %8477 = vst [vmem:[%s11204_s30 + $0xad8] sm:$0xff] %v7965_v7  ;;  %v7455_v31 = vadd.f32 %v6699_v10, %v5082_v20  ;;  %v2710_v37 = vpop.f32.mrb[244].mxu1  ;;  %v5085_v42 = vpop.f32.mrb[94].mxu0 }
 0x3ee   : > { %v7966_v33 = vmax.f32 %v7454_v22, 0.0  ;;  %v5086_v24 = vadd.f32 %v5085_v42, %v2710_v37  ;;  %v2712_v18 = vpop.f32.mrb[245].mxu1  ;;  %9015 = vmatmul.mubr.msk.f32.gmra.mrb[244].mxu1 %vm820_vm1, %v789_v19  ;;  %v5087_v2 = vpop.f32.mrb[95].mxu0  ;;  %9273 = vmatmul.mubr.msk.f32.gmra.mrb[200].mxu0 %vm820_vm1, %v532_v50  ;;  %v794_v22 = vld [vmem:[%s14782_s3 + $0x748] sm:$0xff] }
 0x3ef   : > { %v7967_v11 = vmax.f32 %v7455_v31, 0.0  ;;  %v5088_v36 = vadd.f32 %v5087_v2, %v2712_v18  ;;  %3032 = vmatprep.mubr.f32.mxu1 %v14845_v60  ;;  %5407 = vmatprep.mubr.f32.mxu0 %v14845_v60  ;;  %v6724_v20 = vpop.permute.xlu1 %6723  ;;  %v537_v31 = vld [vmem:[%s14781_s2 + $0x748] sm:$0xff] }
 0x3f0   : > { %8478 = vst [vmem:[%s11204_s30 + $0xae0] sm:$0xff] %v7966_v33  ;;  %v7456_v40 = vadd.f32 %v6704_v9, %v5086_v24 }
 0x3f1   : > { %8479 = vst [vmem:[%s11204_s30 + $0xae8] sm:$0xff] %v7967_v11  ;;  %v7457_v57 = vadd.f32 %v6704_v9, %v5088_v36  ;;  %v2716_v14 = vpop.f32.mrb[246].mxu1  ;;  %v5091_v15 = vpop.f32.mrb[96].mxu0 }
 0x3f2   : > { %v7968_v43 = vmax.f32 %v7456_v40, 0.0  ;;  %v5092_v1 = vadd.f32 %v5091_v15, %v2716_v14  ;;  %v2718_v26 = vpop.f32.mrb[247].mxu1  ;;  %9016 = vmatmul.mubr.msk.f32.gmra.mrb[246].mxu1 %vm820_vm1, %v790_v49  ;;  %v5093_v4 = vpop.f32.mrb[97].mxu0  ;;  %9274 = vmatmul.mubr.msk.f32.gmra.mrb[202].mxu0 %vm820_vm1, %v533_v27  ;;  %v795_v40 = vld [vmem:[%s14782_s3 + $0x750] sm:$0xff] }
 0x3f3   : > { %v7969_v30 = vmax.f32 %v7457_v57, 0.0  ;;  %v5094_v6 = vadd.f32 %v5093_v4, %v2718_v26  ;;  %3038 = vmatprep.mubr.f32.mxu1 %v14845_v60  ;;  %5413 = vmatprep.mubr.f32.mxu0 %v14845_v60  ;;  %v6729_v36 = vpop.permute.xlu0 %6728  ;;  %v538_v57 = vld [vmem:[%s14781_s2 + $0x750] sm:$0xff] }
 0x3f4   : > { %8480 = vst [vmem:[%s11204_s30 + $0xaf0] sm:$0xff] %v7968_v43  ;;  %v7458_v59 = vadd.f32 %v6709_v41, %v5092_v1 }
 0x3f5   : > { %8481 = vst [vmem:[%s11204_s30 + $0xaf8] sm:$0xff] %v7969_v30  ;;  %v7459_v62 = vadd.f32 %v6709_v41, %v5094_v6  ;;  %v2722_v16 = vpop.f32.mrb[248].mxu1  ;;  %v5097_v48 = vpop.f32.mrb[98].mxu0 }
 0x3f6   : > { %v7970_v46 = vmax.f32 %v7458_v59, 0.0  ;;  %v5098_v54 = vadd.f32 %v5097_v48, %v2722_v16  ;;  %v2724_v34 = vpop.f32.mrb[249].mxu1  ;;  %9017 = vmatmul.mubr.msk.f32.gmra.mrb[248].mxu1 %vm820_vm1, %v791_v44  ;;  %v5099_v13 = vpop.f32.mrb[99].mxu0  ;;  %9275 = vmatmul.mubr.msk.f32.gmra.mrb[204].mxu0 %vm820_vm1, %v534_v55  ;;  %v796_v59 = vld [vmem:[%s14782_s3 + $0x758] sm:$0xff] }
 0x3f7   : > { %v7971_v47 = vmax.f32 %v7459_v62, 0.0  ;;  %v5100_v53 = vadd.f32 %v5099_v13, %v2724_v34  ;;  %3044 = vmatprep.mubr.f32.mxu1 %v14845_v60  ;;  %5419 = vmatprep.mubr.f32.mxu0 %v14845_v60  ;;  %v6734_v6 = vpop.permute.xlu1 %6733  ;;  %v539_v62 = vld [vmem:[%s14781_s2 + $0x758] sm:$0xff] }
 0x3f8   : > { %8482 = vst [vmem:[%s11204_s30 + $0xb00] sm:$0xff] %v7970_v46  ;;  %v7460_v52 = vadd.f32 %v6714_v58, %v5098_v54 }
 0x3f9   : > { %8483 = vst [vmem:[%s11204_s30 + $0xb08] sm:$0xff] %v7971_v47  ;;  %v7461_v51 = vadd.f32 %v6714_v58, %v5100_v53  ;;  %v2728_v5 = vpop.f32.mrb[250].mxu1  ;;  %v5103_v61 = vpop.f32.mrb[100].mxu0 }
 0x3fa   : > { %v7972_v21 = vmax.f32 %v7460_v52, 0.0  ;;  %v5104_v23 = vadd.f32 %v5103_v61, %v2728_v5  ;;  %v2730_v12 = vpop.f32.mrb[251].mxu1  ;;  %9018 = vmatmul.mubr.msk.f32.gmra.mrb[250].mxu1 %vm820_vm1, %v792_v38  ;;  %v5105_v3 = vpop.f32.mrb[101].mxu0  ;;  %9276 = vmatmul.mubr.msk.f32.gmra.mrb[206].mxu0 %vm820_vm1, %v535_v25  ;;  %v797_v52 = vld [vmem:[%s14782_s3 + $0x760] sm:$0xff] }
 0x3fb   : > { %v7973_v29 = vmax.f32 %v7461_v51, 0.0  ;;  %v5106_v8 = vadd.f32 %v5105_v3, %v2730_v12  ;;  %3050 = vmatprep.mubr.f32.mxu1 %v14845_v60  ;;  %5425 = vmatprep.mubr.f32.mxu0 %v14845_v60  ;;  %v6739_v53 = vpop.permute.xlu0 %6738  ;;  %v540_v51 = vld [vmem:[%s14781_s2 + $0x760] sm:$0xff] }
 0x3fc   : > { %8484 = vst [vmem:[%s11204_s30 + $0xb10] sm:$0xff] %v7972_v21  ;;  %v7462_v56 = vadd.f32 %v6719_v63, %v5104_v23 }
 0x3fd   : > { %8485 = vst [vmem:[%s11204_s30 + $0xb18] sm:$0xff] %v7973_v29  ;;  %v7463_v32 = vadd.f32 %v6719_v63, %v5106_v8  ;;  %v2734_v28 = vpop.f32.mrb[252].mxu1  ;;  %v5109_v0 = vpop.f32.mrb[102].mxu0 }
 0x3fe   : > { %v7974_v45 = vmax.f32 %v7462_v56, 0.0  ;;  %v5110_v39 = vadd.f32 %v5109_v0, %v2734_v28  ;;  %v2736_v10 = vpop.f32.mrb[253].mxu1  ;;  %9019 = vmatmul.mubr.msk.f32.gmra.mrb[252].mxu1 %vm820_vm1, %v793_v35  ;;  %v5111_v7 = vpop.f32.mrb[103].mxu0  ;;  %9277 = vmatmul.mubr.msk.f32.gmra.mrb[208].mxu0 %vm820_vm1, %v536_v17  ;;  %v798_v56 = vld [vmem:[%s14782_s3 + $0x768] sm:$0xff] }
 0x3ff   : > { %v7975_v19 = vmax.f32 %v7463_v32, 0.0  ;;  %v5112_v50 = vadd.f32 %v5111_v7, %v2736_v10  ;;  %3056 = vmatprep.mubr.f32.mxu1 %v14845_v60  ;;  %5431 = vmatprep.mubr.f32.mxu0 %v14845_v60  ;;  %v6744_v8 = vpop.permute.xlu1 %6743  ;;  %v541_v32 = vld [vmem:[%s14781_s2 + $0x768] sm:$0xff] }
 0x400   : > { %8486 = vst [vmem:[%s11204_s30 + $0xb20] sm:$0xff] %v7974_v45  ;;  %v7464_v37 = vadd.f32 %v6724_v20, %v5110_v39 }
 0x401   : > { %8487 = vst [vmem:[%s11204_s30 + $0xb28] sm:$0xff] %v7975_v19  ;;  %v7465_v42 = vadd.f32 %v6724_v20, %v5112_v50  ;;  %v2740_v33 = vpop.f32.mrb[254].mxu1  ;;  %v5115_v24 = vpop.f32.mrb[104].mxu0 }
 0x402   : > { %v7976_v18 = vmax.f32 %v7464_v37, 0.0  ;;  %v5116_v2 = vadd.f32 %v5115_v24, %v2740_v33  ;;  %v2742_v9 = vpop.f32.mrb[255].mxu1  ;;  %9020 = vmatmul.mubr.msk.f32.gmra.mrb[254].mxu1 %vm820_vm1, %v794_v22  ;;  %v5117_v11 = vpop.f32.mrb[105].mxu0  ;;  %9278 = vmatmul.mubr.msk.f32.gmra.mrb[210].mxu0 %vm820_vm1, %v537_v31  ;;  %v799_v37 = vld [vmem:[%s14782_s3 + $0x770] sm:$0xff] }
 0x403   : > { %v7977_v49 = vmax.f32 %v7465_v42, 0.0  ;;  %v5118_v27 = vadd.f32 %v5117_v11, %v2742_v9  ;;  %3062 = vmatprep.mubr.f32.mxu1 %v14845_v60  ;;  %5437 = vmatprep.mubr.f32.mxu0 %v14845_v60  ;;  %v6749_v50 = vpop.permute.xlu0 %6748  ;;  %v542_v42 = vld [vmem:[%s14781_s2 + $0x770] sm:$0xff] }
 0x404   : > { %8488 = vst [vmem:[%s11204_s30 + $0xb30] sm:$0xff] %v7976_v18  ;;  %v7466_v14 = vadd.f32 %v6729_v36, %v5116_v2 }
 0x405   : > { %8489 = vst [vmem:[%s11204_s30 + $0xb38] sm:$0xff] %v7977_v49  ;;  %v7467_v15 = vadd.f32 %v6729_v36, %v5118_v27  ;;  %v2746_v43 = vpop.f32.mrb[150].mxu1  ;;  %v5121_v1 = vpop.f32.mrb[106].mxu0 }
 0x406   : > { %v7978_v26 = vmax.f32 %v7466_v14, 0.0  ;;  %v5122_v4 = vadd.f32 %v5121_v1, %v2746_v43  ;;  %v2748_v41 = vpop.f32.mrb[151].mxu1  ;;  %9021 = vmatmul.mubr.msk.f32.gmra.mrb[150].mxu1 %vm820_vm1, %v795_v40  ;;  %v5123_v30 = vpop.f32.mrb[107].mxu0  ;;  %9279 = vmatmul.mubr.msk.f32.gmra.mrb[212].mxu0 %vm820_vm1, %v538_v57  ;;  %v800_v14 = vld [vmem:[%s14782_s3 + $0x778] sm:$0xff] }
 0x407   : > { %v7979_v44 = vmax.f32 %v7467_v15, 0.0  ;;  %v5124_v55 = vadd.f32 %v5123_v30, %v2748_v41  ;;  %3068 = vmatprep.mubr.f32.mxu1 %v14845_v60  ;;  %5443 = vmatprep.mubr.f32.mxu0 %v14845_v60  ;;  %v6754_v27 = vpop.permute.xlu1 %6753  ;;  %v543_v15 = vld [vmem:[%s14781_s2 + $0x778] sm:$0xff] }
 0x408   : > { %8490 = vst [vmem:[%s11204_s30 + $0xb40] sm:$0xff] %v7978_v26  ;;  %v7468_v16 = vadd.f32 %v6734_v6, %v5122_v4 }
 0x409   : > { %8491 = vst [vmem:[%s11204_s30 + $0xb48] sm:$0xff] %v7979_v44  ;;  %v7469_v48 = vadd.f32 %v6734_v6, %v5124_v55  ;;  %v2752_v46 = vpop.f32.mrb[152].mxu1  ;;  %v5127_v54 = vpop.f32.mrb[108].mxu0 }
 0x40a   : > { %v7980_v34 = vmax.f32 %v7468_v16, 0.0  ;;  %v5128_v13 = vadd.f32 %v5127_v54, %v2752_v46  ;;  %v2754_v58 = vpop.f32.mrb[153].mxu1  ;;  %9022 = vmatmul.mubr.msk.f32.gmra.mrb[152].mxu1 %vm820_vm1, %v796_v59  ;;  %v5129_v47 = vpop.f32.mrb[109].mxu0  ;;  %9280 = vmatmul.mubr.msk.f32.gmra.mrb[214].mxu0 %vm820_vm1, %v539_v62  ;;  %v801_v16 = vld [vmem:[%s14782_s3 + $0x780] sm:$0xff] }
 0x40b   : > { %v7981_v38 = vmax.f32 %v7469_v48, 0.0  ;;  %v5130_v25 = vadd.f32 %v5129_v47, %v2754_v58  ;;  %3074 = vmatprep.mubr.f32.mxu1 %v14845_v60  ;;  %5449 = vmatprep.mubr.f32.mxu0 %v14845_v60  ;;  %v6759_v55 = vpop.permute.xlu0 %6758  ;;  %v544_v48 = vld [vmem:[%s14781_s2 + $0x780] sm:$0xff] }
 0x40c   : > { %8492 = vst [vmem:[%s11204_s30 + $0xb50] sm:$0xff] %v7980_v34  ;;  %v7470_v5 = vadd.f32 %v6739_v53, %v5128_v13 }
 0x40d   : > { %8493 = vst [vmem:[%s11204_s30 + $0xb58] sm:$0xff] %v7981_v38  ;;  %v7471_v61 = vadd.f32 %v6739_v53, %v5130_v25  ;;  %v2758_v21 = vpop.f32.mrb[154].mxu1  ;;  %v5133_v23 = vpop.f32.mrb[110].mxu0 }
 0x40e   : > { %v7982_v12 = vmax.f32 %v7470_v5, 0.0  ;;  %v5134_v3 = vadd.f32 %v5133_v23, %v2758_v21  ;;  %v2760_v63 = vpop.f32.mrb[155].mxu1  ;;  %9023 = vmatmul.mubr.msk.f32.gmra.mrb[154].mxu1 %vm820_vm1, %v797_v52  ;;  %v5135_v29 = vpop.f32.mrb[111].mxu0  ;;  %9281 = vmatmul.mubr.msk.f32.gmra.mrb[216].mxu0 %vm820_vm1, %v540_v51  ;;  %v802_v5 = vld [vmem:[%s14782_s3 + $0x788] sm:$0xff] }
 0x40f   : > { %v7983_v35 = vmax.f32 %v7471_v61, 0.0  ;;  %v5136_v17 = vadd.f32 %v5135_v29, %v2760_v63  ;;  %3080 = vmatprep.mubr.f32.mxu1 %v14845_v60  ;;  %5455 = vmatprep.mubr.f32.mxu0 %v14845_v60  ;;  %v6764_v25 = vpop.permute.xlu1 %6763  ;;  %v545_v61 = vld [vmem:[%s14781_s2 + $0x788] sm:$0xff] }
 0x410   : > { %8494 = vst [vmem:[%s11204_s30 + $0xb60] sm:$0xff] %v7982_v12  ;;  %v7472_v28 = vadd.f32 %v6744_v8, %v5134_v3 }
 0x411   : > { %8495 = vst [vmem:[%s11204_s30 + $0xb68] sm:$0xff] %v7983_v35  ;;  %v7473_v0 = vadd.f32 %v6744_v8, %v5136_v17  ;;  %v2764_v45 = vpop.f32.mrb[156].mxu1  ;;  %v5139_v39 = vpop.f32.mrb[112].mxu0 }
 0x412   : > { %v7984_v10 = vmax.f32 %v7472_v28, 0.0  ;;  %v5140_v7 = vadd.f32 %v5139_v39, %v2764_v45  ;;  %v2766_v20 = vpop.f32.mrb[157].mxu1  ;;  %9024 = vmatmul.mubr.msk.f32.gmra.mrb[156].mxu1 %vm820_vm1, %v798_v56  ;;  %v5141_v19 = vpop.f32.mrb[113].mxu0  ;;  %9282 = vmatmul.mubr.msk.f32.gmra.mrb[218].mxu0 %vm820_vm1, %v541_v32  ;;  %v803_v28 = vld [vmem:[%s14782_s3 + $0x790] sm:$0xff] }
 0x413   : > { %v7985_v22 = vmax.f32 %v7473_v0, 0.0  ;;  %v5142_v31 = vadd.f32 %v5141_v19, %v2766_v20  ;;  %3086 = vmatprep.mubr.f32.mxu1 %v14845_v60  ;;  %5461 = vmatprep.mubr.f32.mxu0 %v14845_v60  ;;  %v6769_v17 = vpop.permute.xlu0 %6768  ;;  %v546_v0 = vld [vmem:[%s14781_s2 + $0x790] sm:$0xff] }
 0x414   : > { %8496 = vst [vmem:[%s11204_s30 + $0xb70] sm:$0xff] %v7984_v10  ;;  %v7474_v33 = vadd.f32 %v6749_v50, %v5140_v7 }
 0x415   : > { %8497 = vst [vmem:[%s11204_s30 + $0xb78] sm:$0xff] %v7985_v22  ;;  %v7475_v24 = vadd.f32 %v6749_v50, %v5142_v31  ;;  %v2770_v18 = vpop.f32.mrb[158].mxu1  ;;  %v5145_v2 = vpop.f32.mrb[114].mxu0 }
 0x416   : > { %v7986_v9 = vmax.f32 %v7474_v33, 0.0  ;;  %v5146_v11 = vadd.f32 %v5145_v2, %v2770_v18  ;;  %v2772_v36 = vpop.f32.mrb[159].mxu1  ;;  %9025 = vmatmul.mubr.msk.f32.gmra.mrb[158].mxu1 %vm820_vm1, %v799_v37  ;;  %v5147_v49 = vpop.f32.mrb[115].mxu0  ;;  %9283 = vmatmul.mubr.msk.f32.gmra.mrb[220].mxu0 %vm820_vm1, %v542_v42  ;;  %v804_v33 = vld [vmem:[%s14782_s3 + $0x798] sm:$0xff] }
 0x417   : > { %v7987_v40 = vmax.f32 %v7475_v24, 0.0  ;;  %v5148_v57 = vadd.f32 %v5147_v49, %v2772_v36  ;;  %3092 = vmatprep.mubr.f32.mxu1 %v14845_v60  ;;  %5467 = vmatprep.mubr.f32.mxu0 %v14845_v60  ;;  %v6774_v31 = vpop.permute.xlu1 %6773  ;;  %v547_v24 = vld [vmem:[%s14781_s2 + $0x798] sm:$0xff] }
 0x418   : > { %8498 = vst [vmem:[%s11204_s30 + $0xb80] sm:$0xff] %v7986_v9  ;;  %v7476_v43 = vadd.f32 %v6754_v27, %v5146_v11 }
 0x419   : > { %8499 = vst [vmem:[%s11204_s30 + $0xb88] sm:$0xff] %v7987_v40  ;;  %v7477_v1 = vadd.f32 %v6754_v27, %v5148_v57  ;;  %v2776_v26 = vpop.f32.mrb[160].mxu1  ;;  %v5151_v4 = vpop.f32.mrb[116].mxu0 }
 0x41a   : > { %v7988_v41 = vmax.f32 %v7476_v43, 0.0  ;;  %v5152_v30 = vadd.f32 %v5151_v4, %v2776_v26  ;;  %v2778_v6 = vpop.f32.mrb[161].mxu1  ;;  %9026 = vmatmul.mubr.msk.f32.gmra.mrb[160].mxu1 %vm820_vm1, %v800_v14  ;;  %v5153_v44 = vpop.f32.mrb[117].mxu0  ;;  %9284 = vmatmul.mubr.msk.f32.gmra.mrb[222].mxu0 %vm820_vm1, %v543_v15  ;;  %v805_v43 = vld [vmem:[%s14782_s3 + $0x7a0] sm:$0xff] }
 0x41b   : > { %v7989_v59 = vmax.f32 %v7477_v1, 0.0  ;;  %v5154_v62 = vadd.f32 %v5153_v44, %v2778_v6  ;;  %3098 = vmatprep.mubr.f32.mxu1 %v14845_v60  ;;  %5473 = vmatprep.mubr.f32.mxu0 %v14845_v60  ;;  %v6779_v57 = vpop.permute.xlu0 %6778  ;;  %v548_v1 = vld [vmem:[%s14781_s2 + $0x7a0] sm:$0xff] }
 0x41c   : > { %8500 = vst [vmem:[%s11204_s30 + $0xb90] sm:$0xff] %v7988_v41  ;;  %v7478_v46 = vadd.f32 %v6759_v55, %v5152_v30 }
 0x41d   : > { %8501 = vst [vmem:[%s11204_s30 + $0xb98] sm:$0xff] %v7989_v59  ;;  %v7479_v54 = vadd.f32 %v6759_v55, %v5154_v62  ;;  %v2782_v34 = vpop.f32.mrb[162].mxu1  ;;  %v5157_v13 = vpop.f32.mrb[118].mxu0 }
 0x41e   : > { %v7990_v58 = vmax.f32 %v7478_v46, 0.0  ;;  %v5158_v47 = vadd.f32 %v5157_v13, %v2782_v34  ;;  %v2784_v53 = vpop.f32.mrb[163].mxu1  ;;  %9027 = vmatmul.mubr.msk.f32.gmra.mrb[162].mxu1 %vm820_vm1, %v801_v16  ;;  %v5159_v38 = vpop.f32.mrb[119].mxu0  ;;  %9285 = vmatmul.mubr.msk.f32.gmra.mrb[224].mxu0 %vm820_vm1, %v544_v48  ;;  %v806_v46 = vld [vmem:[%s14782_s3 + $0x7a8] sm:$0xff] }
 0x41f   : > { %v7991_v52 = vmax.f32 %v7479_v54, 0.0  ;;  %v5160_v51 = vadd.f32 %v5159_v38, %v2784_v53  ;;  %3104 = vmatprep.mubr.f32.mxu1 %v14845_v60  ;;  %5479 = vmatprep.mubr.f32.mxu0 %v14845_v60  ;;  %v6784_v62 = vpop.permute.xlu1 %6783  ;;  %v549_v54 = vld [vmem:[%s14781_s2 + $0x7a8] sm:$0xff] }
 0x420   : > { %8502 = vst [vmem:[%s11204_s30 + $0xba0] sm:$0xff] %v7990_v58  ;;  %v7480_v21 = vadd.f32 %v6764_v25, %v5158_v47 }
 0x421   : > { %8503 = vst [vmem:[%s11204_s30 + $0xba8] sm:$0xff] %v7991_v52  ;;  %v7481_v23 = vadd.f32 %v6764_v25, %v5160_v51  ;;  %v2788_v12 = vpop.f32.mrb[164].mxu1  ;;  %v5163_v3 = vpop.f32.mrb[120].mxu0 }
 0x422   : > { %v7992_v63 = vmax.f32 %v7480_v21, 0.0  ;;  %v5164_v29 = vadd.f32 %v5163_v3, %v2788_v12  ;;  %v2790_v8 = vpop.f32.mrb[165].mxu1  ;;  %9028 = vmatmul.mubr.msk.f32.gmra.mrb[164].mxu1 %vm820_vm1, %v802_v5  ;;  %v5165_v35 = vpop.f32.mrb[121].mxu0  ;;  %9286 = vmatmul.mubr.msk.f32.gmra.mrb[226].mxu0 %vm820_vm1, %v545_v61  ;;  %v807_v21 = vld [vmem:[%s14782_s3 + $0x7b0] sm:$0xff] }
 0x423   : > { %v7993_v56 = vmax.f32 %v7481_v23, 0.0  ;;  %v5166_v32 = vadd.f32 %v5165_v35, %v2790_v8  ;;  %3110 = vmatprep.mubr.f32.mxu1 %v14845_v60  ;;  %5485 = vmatprep.mubr.f32.mxu0 %v14845_v60  ;;  %v6789_v51 = vpop.permute.xlu0 %6788  ;;  %v550_v23 = vld [vmem:[%s14781_s2 + $0x7b0] sm:$0xff] }
 0x424   : > { %8504 = vst [vmem:[%s11204_s30 + $0xbb0] sm:$0xff] %v7992_v63  ;;  %v7482_v45 = vadd.f32 %v6769_v17, %v5164_v29 }
 0x425   : > { %8505 = vst [vmem:[%s11204_s30 + $0xbb8] sm:$0xff] %v7993_v56  ;;  %v7483_v39 = vadd.f32 %v6769_v17, %v5166_v32  ;;  %v2794_v10 = vpop.f32.mrb[166].mxu1  ;;  %v5169_v7 = vpop.f32.mrb[122].mxu0 }
 0x426   : > { %v7994_v20 = vmax.f32 %v7482_v45, 0.0  ;;  %v5170_v19 = vadd.f32 %v5169_v7, %v2794_v10  ;;  %v2796_v50 = vpop.f32.mrb[167].mxu1  ;;  %9029 = vmatmul.mubr.msk.f32.gmra.mrb[166].mxu1 %vm820_vm1, %v803_v28  ;;  %v5171_v22 = vpop.f32.mrb[123].mxu0  ;;  %9287 = vmatmul.mubr.msk.f32.gmra.mrb[228].mxu0 %vm820_vm1, %v546_v0  ;;  %v808_v45 = vld [vmem:[%s14782_s3 + $0x7b8] sm:$0xff] }
 0x427   : > { %v7995_v37 = vmax.f32 %v7483_v39, 0.0  ;;  %v5172_v42 = vadd.f32 %v5171_v22, %v2796_v50  ;;  %3116 = vmatprep.mubr.f32.mxu1 %v14845_v60  ;;  %5491 = vmatprep.mubr.f32.mxu0 %v14845_v60  ;;  %v6794_v32 = vpop.permute.xlu1 %6793  ;;  %v551_v39 = vld [vmem:[%s14781_s2 + $0x7b8] sm:$0xff] }
 0x428   : > { %8506 = vst [vmem:[%s11204_s30 + $0xbc0] sm:$0xff] %v7994_v20  ;;  %v7484_v18 = vadd.f32 %v6774_v31, %v5170_v19 }
 0x429   : > { %8507 = vst [vmem:[%s11204_s30 + $0xbc8] sm:$0xff] %v7995_v37  ;;  %v7485_v2 = vadd.f32 %v6774_v31, %v5172_v42  ;;  %v2800_v9 = vpop.f32.mrb[168].mxu1  ;;  %v5175_v11 = vpop.f32.mrb[124].mxu0 }
 0x42a   : > { %v7996_v36 = vmax.f32 %v7484_v18, 0.0  ;;  %v5176_v49 = vadd.f32 %v5175_v11, %v2800_v9  ;;  %v2802_v27 = vpop.f32.mrb[169].mxu1  ;;  %9030 = vmatmul.mubr.msk.f32.gmra.mrb[168].mxu1 %vm820_vm1, %v804_v33  ;;  %v5177_v40 = vpop.f32.mrb[125].mxu0  ;;  %9288 = vmatmul.mubr.msk.f32.gmra.mrb[230].mxu0 %vm820_vm1, %v547_v24  ;;  %v809_v18 = vld [vmem:[%s14782_s3 + $0x7c0] sm:$0xff] }
 0x42b   : > { %v7997_v14 = vmax.f32 %v7485_v2, 0.0  ;;  %v5178_v15 = vadd.f32 %v5177_v40, %v2802_v27  ;;  %3122 = vmatprep.mubr.f32.mxu1 %v14845_v60  ;;  %5497 = vmatprep.mubr.f32.mxu0 %v14845_v60  ;;  %v6799_v42 = vpop.permute.xlu0 %6798  ;;  %v552_v2 = vld [vmem:[%s14781_s2 + $0x7c0] sm:$0xff] }
 0x42c   : > { %8508 = vst [vmem:[%s11204_s30 + $0xbd0] sm:$0xff] %v7996_v36  ;;  %v7486_v26 = vadd.f32 %v6779_v57, %v5176_v49 }
 0x42d   : > { %8509 = vst [vmem:[%s11204_s30 + $0xbd8] sm:$0xff] %v7997_v14  ;;  %v7487_v4 = vadd.f32 %v6779_v57, %v5178_v15  ;;  %v2806_v41 = vpop.f32.mrb[170].mxu1  ;;  %v5181_v30 = vpop.f32.mrb[126].mxu0 }
 0x42e   : > { %v7998_v6 = vmax.f32 %v7486_v26, 0.0  ;;  %v5182_v44 = vadd.f32 %v5181_v30, %v2806_v41  ;;  %v2808_v55 = vpop.f32.mrb[171].mxu1  ;;  %9031 = vmatmul.mubr.msk.f32.gmra.mrb[170].mxu1 %vm820_vm1, %v805_v43  ;;  %v5183_v59 = vpop.f32.mrb[127].mxu0  ;;  %9289 = vmatmul.mubr.msk.f32.gmra.mrb[232].mxu0 %vm820_vm1, %v548_v1  ;;  %v810_v26 = vld [vmem:[%s14782_s3 + $0x7c8] sm:$0xff] }
 0x42f   : > { %v7999_v16 = vmax.f32 %v7487_v4, 0.0  ;;  %v5184_v48 = vadd.f32 %v5183_v59, %v2808_v55  ;;  %3128 = vmatprep.mubr.f32.mxu1 %v14845_v60  ;;  %5503 = vmatprep.mubr.f32.mxu0 %v14845_v60  ;;  %v6804_v15 = vpop.permute.xlu1 %6803  ;;  %v553_v4 = vld [vmem:[%s14781_s2 + $0x7c8] sm:$0xff] }
 0x430   : > { %8510 = vst [vmem:[%s11204_s30 + $0xbe0] sm:$0xff] %v7998_v6  ;;  %v7488_v34 = vadd.f32 %v6784_v62, %v5182_v44 }
 0x431   : > { %8511 = vst [vmem:[%s11204_s30 + $0xbe8] sm:$0xff] %v7999_v16  ;;  %v7489_v13 = vadd.f32 %v6784_v62, %v5184_v48  ;;  %v2812_v58 = vpop.f32.mrb[172].mxu1  ;;  %v5187_v47 = vpop.f32.mrb[128].mxu0 }
 0x432   : > { %v8000_v53 = vmax.f32 %v7488_v34, 0.0  ;;  %v5188_v38 = vadd.f32 %v5187_v47, %v2812_v58  ;;  %v2814_v25 = vpop.f32.mrb[173].mxu1  ;;  %9032 = vmatmul.mubr.msk.f32.gmra.mrb[172].mxu1 %vm820_vm1, %v806_v46  ;;  %v5189_v52 = vpop.f32.mrb[129].mxu0  ;;  %9290 = vmatmul.mubr.msk.f32.gmra.mrb[234].mxu0 %vm820_vm1, %v549_v54  ;;  %v811_v34 = vld [vmem:[%s14782_s3 + $0x7d0] sm:$0xff] }
 0x433   : > { %v8001_v5 = vmax.f32 %v7489_v13, 0.0  ;;  %v5190_v61 = vadd.f32 %v5189_v52, %v2814_v25  ;;  %3134 = vmatprep.mubr.f32.mxu1 %v14845_v60  ;;  %5509 = vmatprep.mubr.f32.mxu0 %v14845_v60  ;;  %v6809_v48 = vpop.permute.xlu0 %6808  ;;  %v554_v13 = vld [vmem:[%s14781_s2 + $0x7d0] sm:$0xff] }
 0x434   : > { %8512 = vst [vmem:[%s11204_s30 + $0xbf0] sm:$0xff] %v8000_v53  ;;  %v7490_v12 = vadd.f32 %v6789_v51, %v5188_v38 }
 0x435   : > { %8513 = vst [vmem:[%s11204_s30 + $0xbf8] sm:$0xff] %v8001_v5  ;;  %v7491_v3 = vadd.f32 %v6789_v51, %v5190_v61  ;;  %v2818_v63 = vpop.f32.mrb[174].mxu1  ;;  %v5193_v29 = vpop.f32.mrb[130].mxu0 }
 0x436   : > { %v8002_v8 = vmax.f32 %v7490_v12, 0.0  ;;  %v5194_v35 = vadd.f32 %v5193_v29, %v2818_v63  ;;  %v2820_v17 = vpop.f32.mrb[175].mxu1  ;;  %9033 = vmatmul.mubr.msk.f32.gmra.mrb[174].mxu1 %vm820_vm1, %v807_v21  ;;  %v5195_v56 = vpop.f32.mrb[131].mxu0  ;;  %9291 = vmatmul.mubr.msk.f32.gmra.mrb[236].mxu0 %vm820_vm1, %v550_v23  ;;  %v812_v12 = vld [vmem:[%s14782_s3 + $0x7d8] sm:$0xff] }
 0x437   : > { %v8003_v28 = vmax.f32 %v7491_v3, 0.0  ;;  %v5196_v0 = vadd.f32 %v5195_v56, %v2820_v17  ;;  %3140 = vmatprep.mubr.f32.mxu1 %v14845_v60  ;;  %5515 = vmatprep.mubr.f32.mxu0 %v14845_v60  ;;  %v6814_v61 = vpop.permute.xlu1 %6813  ;;  %v555_v3 = vld [vmem:[%s14781_s2 + $0x7d8] sm:$0xff] }
 0x438   : > { %8514 = vst [vmem:[%s11204_s30 + $0xc00] sm:$0xff] %v8002_v8  ;;  %v7492_v10 = vadd.f32 %v6794_v32, %v5194_v35 }
 0x439   : > { %8515 = vst [vmem:[%s11204_s30 + $0xc08] sm:$0xff] %v8003_v28  ;;  %v7493_v7 = vadd.f32 %v6794_v32, %v5196_v0  ;;  %v2824_v20 = vpop.f32.mrb[176].mxu1  ;;  %v5199_v19 = vpop.f32.mrb[132].mxu0 }
 0x43a   : > { %v8004_v50 = vmax.f32 %v7492_v10, 0.0  ;;  %v5200_v22 = vadd.f32 %v5199_v19, %v2824_v20  ;;  %v2826_v31 = vpop.f32.mrb[177].mxu1  ;;  %9034 = vmatmul.mubr.msk.f32.gmra.mrb[176].mxu1 %vm820_vm1, %v808_v45  ;;  %v5201_v37 = vpop.f32.mrb[133].mxu0  ;;  %9292 = vmatmul.mubr.msk.f32.gmra.mrb[238].mxu0 %vm820_vm1, %v551_v39  ;;  %v813_v10 = vld [vmem:[%s14782_s3 + $0x7e0] sm:$0xff] }
 0x43b   : > { %v8005_v33 = vmax.f32 %v7493_v7, 0.0  ;;  %v5202_v24 = vadd.f32 %v5201_v37, %v2826_v31  ;;  %3146 = vmatprep.mubr.f32.mxu1 %v14845_v60  ;;  %5521 = vmatprep.mubr.f32.mxu0 %v14845_v60  ;;  %v6819_v0 = vpop.permute.xlu0 %6818  ;;  %v556_v7 = vld [vmem:[%s14781_s2 + $0x7e0] sm:$0xff] }
 0x43c   : > { %8516 = vst [vmem:[%s11204_s30 + $0xc10] sm:$0xff] %v8004_v50  ;;  %v7494_v9 = vadd.f32 %v6799_v42, %v5200_v22 }
 0x43d   : > { %8517 = vst [vmem:[%s11204_s30 + $0xc18] sm:$0xff] %v8005_v33  ;;  %v7495_v11 = vadd.f32 %v6799_v42, %v5202_v24  ;;  %v2830_v36 = vpop.f32.mrb[178].mxu1  ;;  %v5205_v49 = vpop.f32.mrb[134].mxu0 }
 0x43e   : > { %v8006_v27 = vmax.f32 %v7494_v9, 0.0  ;;  %v5206_v40 = vadd.f32 %v5205_v49, %v2830_v36  ;;  %v2832_v57 = vpop.f32.mrb[179].mxu1  ;;  %9035 = vmatmul.mubr.msk.f32.gmra.mrb[178].mxu1 %vm820_vm1, %v809_v18  ;;  %v5207_v14 = vpop.f32.mrb[135].mxu0  ;;  %9293 = vmatmul.mubr.msk.f32.gmra.mrb[240].mxu0 %vm820_vm1, %v552_v2  ;;  %v814_v9 = vld [vmem:[%s14782_s3 + $0x7e8] sm:$0xff] }
 0x43f   : > { %v8007_v43 = vmax.f32 %v7495_v11, 0.0  ;;  %v5208_v1 = vadd.f32 %v5207_v14, %v2832_v57  ;;  %3152 = vmatprep.mubr.f32.mxu1 %v14845_v60  ;;  %5527 = vmatprep.mubr.f32.mxu0 %v14845_v60  ;;  %v6824_v24 = vpop.permute.xlu1 %6823  ;;  %v557_v11 = vld [vmem:[%s14781_s2 + $0x7e8] sm:$0xff] }
 0x440   : > { %8518 = vst [vmem:[%s11204_s30 + $0xc20] sm:$0xff] %v8006_v27  ;;  %v7496_v41 = vadd.f32 %v6804_v15, %v5206_v40 }
 0x441   : > { %8519 = vst [vmem:[%s11204_s30 + $0xc28] sm:$0xff] %v8007_v43  ;;  %v7497_v30 = vadd.f32 %v6804_v15, %v5208_v1  ;;  %v2836_v6 = vpop.f32.mrb[180].mxu1  ;;  %v5211_v44 = vpop.f32.mrb[136].mxu0 }
 0x442   : > { %v8008_v55 = vmax.f32 %v7496_v41, 0.0  ;;  %v5212_v59 = vadd.f32 %v5211_v44, %v2836_v6  ;;  %v2838_v62 = vpop.f32.mrb[181].mxu1  ;;  %9036 = vmatmul.mubr.msk.f32.gmra.mrb[180].mxu1 %vm820_vm1, %v810_v26  ;;  %v5213_v16 = vpop.f32.mrb[137].mxu0  ;;  %9294 = vmatmul.mubr.msk.f32.gmra.mrb[242].mxu0 %vm820_vm1, %v553_v4  ;;  %v815_v41 = vld [vmem:[%s14782_s3 + $0x7f0] sm:$0xff] }
 0x443   : > { %v8009_v46 = vmax.f32 %v7497_v30, 0.0  ;;  %v5214_v54 = vadd.f32 %v5213_v16, %v2838_v62  ;;  %3158 = vmatprep.mubr.f32.mxu1 %v14845_v60  ;;  %5533 = vmatprep.mubr.f32.mxu0 %v14845_v60  ;;  %v6829_v1 = vpop.permute.xlu0 %6828  ;;  %v558_v30 = vld [vmem:[%s14781_s2 + $0x7f0] sm:$0xff] }
 0x444   : > { %8520 = vst [vmem:[%s11204_s30 + $0xc30] sm:$0xff] %v8008_v55  ;;  %v7498_v58 = vadd.f32 %v6809_v48, %v5212_v59 }
 0x445   : > { %8521 = vst [vmem:[%s11204_s30 + $0xc38] sm:$0xff] %v8009_v46  ;;  %v7499_v47 = vadd.f32 %v6809_v48, %v5214_v54  ;;  %v2842_v53 = vpop.f32.mrb[182].mxu1  ;;  %v5217_v38 = vpop.f32.mrb[138].mxu0 }
 0x446   : > { %v8010_v25 = vmax.f32 %v7498_v58, 0.0  ;;  %v5218_v52 = vadd.f32 %v5217_v38, %v2842_v53  ;;  %v2844_v51 = vpop.f32.mrb[183].mxu1  ;;  %9037 = vmatmul.mubr.msk.f32.gmra.mrb[182].mxu1 %vm820_vm1, %v811_v34  ;;  %v5219_v5 = vpop.f32.mrb[139].mxu0  ;;  %9295 = vmatmul.mubr.msk.f32.gmra.mrb[244].mxu0 %vm820_vm1, %v554_v13  ;;  %v816_v58 = vld [vmem:[%s14782_s3 + $0x7f8] sm:$0xff] }
 0x447   : > { %v8011_v21 = vmax.f32 %v7499_v47, 0.0  ;;  %v5220_v23 = vadd.f32 %v5219_v5, %v2844_v51  ;;  %3164 = vmatprep.mubr.f32.mxu1 %v14845_v60  ;;  %5539 = vmatprep.mubr.f32.mxu0 %v14845_v60  ;;  %v6834_v54 = vpop.permute.xlu1 %6833  ;;  %v559_v47 = vld [vmem:[%s14781_s2 + $0x7f8] sm:$0xff] }
 0x448   : > { %8522 = vst [vmem:[%s11204_s30 + $0xc40] sm:$0xff] %v8010_v25  ;;  %v7500_v63 = vadd.f32 %v6814_v61, %v5218_v52 }
 0x449   : > { %8523 = vst [vmem:[%s11204_s30 + $0xc48] sm:$0xff] %v8011_v21  ;;  %v7501_v29 = vadd.f32 %v6814_v61, %v5220_v23  ;;  %v2848_v8 = vpop.f32.mrb[184].mxu1  ;;  %v5223_v35 = vpop.f32.mrb[140].mxu0 }
 0x44a   : > { %v8012_v17 = vmax.f32 %v7500_v63, 0.0  ;;  %v5224_v56 = vadd.f32 %v5223_v35, %v2848_v8  ;;  %v2850_v32 = vpop.f32.mrb[185].mxu1  ;;  %9038 = vmatmul.mubr.msk.f32.gmra.mrb[184].mxu1 %vm820_vm1, %v812_v12  ;;  %v5225_v28 = vpop.f32.mrb[141].mxu0  ;;  %9296 = vmatmul.mubr.msk.f32.gmra.mrb[246].mxu0 %vm820_vm1, %v555_v3 }
 0x44b   : > { %v8013_v45 = vmax.f32 %v7501_v29, 0.0  ;;  %v5226_v39 = vadd.f32 %v5225_v28, %v2850_v32  ;;  %3170 = vmatprep.mubr.f32.mxu1 %v14845_v60  ;;  %5545 = vmatprep.mubr.f32.mxu0 %v14845_v60  ;;  %v6839_v21 = vpop.permute.xlu0 %6838  ;;  %v6844_v28 = vpop.permute.xlu1 %6843 }
 0x44c   : > { %8524 = vst [vmem:[%s11204_s30 + $0xc50] sm:$0xff] %v8012_v17  ;;  %v7502_v20 = vadd.f32 %v6819_v0, %v5224_v56 }
 0x44d   : > { %8525 = vst [vmem:[%s11204_s30 + $0xc58] sm:$0xff] %v8013_v45  ;;  %v7503_v19 = vadd.f32 %v6819_v0, %v5226_v39  ;;  %v2854_v50 = vpop.f32.mrb[186].mxu1  ;;  %v5229_v22 = vpop.f32.mrb[142].mxu0 }
 0x44e   : > { %v8014_v31 = vmax.f32 %v7502_v20, 0.0  ;;  %v5230_v37 = vadd.f32 %v5229_v22, %v2854_v50  ;;  %v2856_v42 = vpop.f32.mrb[187].mxu1  ;;  %9039 = vmatmul.mubr.msk.f32.gmra.mrb[186].mxu1 %vm820_vm1, %v813_v10  ;;  %v5231_v33 = vpop.f32.mrb[143].mxu0  ;;  %9297 = vmatmul.mubr.msk.f32.gmra.mrb[248].mxu0 %vm820_vm1, %v556_v7 }
 0x44f   : > { %v8015_v18 = vmax.f32 %v7503_v19, 0.0  ;;  %v5232_v2 = vadd.f32 %v5231_v33, %v2856_v42  ;;  %3176 = vmatprep.mubr.f32.mxu1 %v14845_v60  ;;  %5551 = vmatprep.mubr.f32.mxu0 %v14845_v60 }
 0x450   : > { %8526 = vst [vmem:[%s11204_s30 + $0xc60] sm:$0xff] %v8014_v31  ;;  %v7504_v36 = vadd.f32 %v6824_v24, %v5230_v37  ;;  %v6849_v37 = vpop.permute.xlu0 %6848 }
 0x451   : > { %8527 = vst [vmem:[%s11204_s30 + $0xc68] sm:$0xff] %v8015_v18  ;;  %v7505_v49 = vadd.f32 %v6824_v24, %v5232_v2  ;;  %v2860_v27 = vpop.f32.mrb[188].mxu1  ;;  %v5235_v40 = vpop.f32.mrb[144].mxu0 }
 0x452   : > { %v8016_v57 = vmax.f32 %v7504_v36, 0.0  ;;  %v5236_v14 = vadd.f32 %v5235_v40, %v2860_v27  ;;  %v2862_v15 = vpop.f32.mrb[189].mxu1  ;;  %9040 = vmatmul.mubr.msk.f32.gmra.mrb[188].mxu1 %vm820_vm1, %v814_v9  ;;  %v5237_v43 = vpop.f32.mrb[145].mxu0  ;;  %9298 = vmatmul.mubr.msk.f32.gmra.mrb[250].mxu0 %vm820_vm1, %v557_v11 }
 0x453   : > { %v8017_v26 = vmax.f32 %v7505_v49, 0.0  ;;  %v5238_v4 = vadd.f32 %v5237_v43, %v2862_v15  ;;  %3182 = vmatprep.mubr.f32.mxu1 %v14845_v60  ;;  %5557 = vmatprep.mubr.f32.mxu0 %v14845_v60  ;;  %v6854_v40 = vpop.permute.xlu1 %6853 }
 0x454   : > { %8528 = vst [vmem:[%s11204_s30 + $0xc70] sm:$0xff] %v8016_v57  ;;  %v7506_v6 = vadd.f32 %v6829_v1, %v5236_v14 }
 0x455   : > { %8529 = vst [vmem:[%s11204_s30 + $0xc78] sm:$0xff] %v8017_v26  ;;  %v7507_v44 = vadd.f32 %v6829_v1, %v5238_v4  ;;  %v2866_v55 = vpop.f32.mrb[190].mxu1  ;;  %v5241_v59 = vpop.f32.mrb[146].mxu0 }
 0x456   : > { %v8018_v62 = vmax.f32 %v7506_v6, 0.0  ;;  %v5242_v16 = vadd.f32 %v5241_v59, %v2866_v55  ;;  %v2868_v48 = vpop.f32.mrb[191].mxu1  ;;  %9041 = vmatmul.mubr.msk.f32.gmra.mrb[190].mxu1 %vm820_vm1, %v815_v41  ;;  %v5243_v46 = vpop.f32.mrb[147].mxu0  ;;  %9299 = vmatmul.mubr.msk.f32.gmra.mrb[252].mxu0 %vm820_vm1, %v558_v30 }
 0x457   : > { %v8019_v34 = vmax.f32 %v7507_v44, 0.0  ;;  %v5244_v13 = vadd.f32 %v5243_v46, %v2868_v48  ;;  %3188 = vmatprep.mubr.f32.mxu1 %v14845_v60  ;;  %5563 = vmatprep.mubr.f32.mxu0 %v14845_v60  ;;  %v6859_v44 = vpop.permute.xlu0 %6858 }
 0x458   : > { %8530 = vst [vmem:[%s11204_s30 + $0xc80] sm:$0xff] %v8018_v62  ;;  %v7508_v53 = vadd.f32 %v6834_v54, %v5242_v16 }
 0x459   : > { %8531 = vst [vmem:[%s11204_s30 + $0xc88] sm:$0xff] %v8019_v34  ;;  %v7509_v38 = vadd.f32 %v6834_v54, %v5244_v13  ;;  %v2872_v25 = vpop.f32.mrb[192].mxu1  ;;  %v5247_v52 = vpop.f32.mrb[148].mxu0 }
 0x45a   : > { %v8020_v51 = vmax.f32 %v7508_v53, 0.0  ;;  %v5248_v5 = vadd.f32 %v5247_v52, %v2872_v25  ;;  %v2874_v61 = vpop.f32.mrb[193].mxu1  ;;  %9042 = vmatmul.mubr.msk.f32.gmra.mrb[192].mxu1 %vm820_vm1, %v816_v58  ;;  %v5249_v60 = vpop.f32.mrb[149].mxu0  ;;  %9300 = vmatmul.mubr.msk.f32.gmra.mrb[254].mxu0 %vm820_vm1, %v559_v47 }
 0x45b   : > { %v8021_v23 = vmax.f32 %v7509_v38, 0.0  ;;  %v5250_v12 = vadd.f32 %v5249_v60, %v2874_v61  ;;  %v6864_v47 = vpop.permute.xlu1 %6863 }
 0x45c   : > { %8532 = vst [vmem:[%s11204_s30 + $0xc90] sm:$0xff] %v8020_v51  ;;  %v7510_v3 = vadd.f32 %v6839_v21, %v5248_v5 }
 0x45d   : > { %8533 = vst [vmem:[%s11204_s30 + $0xc98] sm:$0xff] %v8021_v23  ;;  %v7511_v63 = vadd.f32 %v6839_v21, %v5250_v12  ;;  %v2878_v29 = vpop.f32.mrb[194].mxu1  ;;  %v5253_v8 = vpop.f32.mrb[150].mxu0 }
 0x45e   : > { %v8022_v35 = vmax.f32 %v7510_v3, 0.0  ;;  %v5254_v17 = vadd.f32 %v5253_v8, %v2878_v29  ;;  %v2880_v56 = vpop.f32.mrb[195].mxu1  ;;  %v5255_v32 = vpop.f32.mrb[151].mxu0 }
 0x45f   : > { %v8023_v0 = vmax.f32 %v7511_v63, 0.0  ;;  %v5256_v45 = vadd.f32 %v5255_v32, %v2880_v56  ;;  %v6869_v12 = vpop.permute.xlu0 %6868 }
 0x460   : > { %8534 = vst [vmem:[%s11204_s30 + $0xca0] sm:$0xff] %v8022_v35  ;;  %v7512_v39 = vadd.f32 %v6844_v28, %v5254_v17 }
 0x461   : > { %8535 = vst [vmem:[%s11204_s30 + $0xca8] sm:$0xff] %v8023_v0  ;;  %v7513_v10 = vadd.f32 %v6844_v28, %v5256_v45  ;;  %v2884_v7 = vpop.f32.mrb[196].mxu1  ;;  %v5259_v20 = vpop.f32.mrb[152].mxu0 }
 0x462   : > { %v8024_v19 = vmax.f32 %v7512_v39, 0.0  ;;  %v5260_v50 = vadd.f32 %v5259_v20, %v2884_v7  ;;  %v2886_v22 = vpop.f32.mrb[197].mxu1  ;;  %v5261_v31 = vpop.f32.mrb[153].mxu0 }
 0x463   : > { %v8025_v42 = vmax.f32 %v7513_v10, 0.0  ;;  %v5262_v33 = vadd.f32 %v5261_v31, %v2886_v22  ;;  %v6874_v45 = vpop.permute.xlu1 %6873 }
 0x464   : > { %8536 = vst [vmem:[%s11204_s30 + $0xcb0] sm:$0xff] %v8024_v19  ;;  %v7514_v24 = vadd.f32 %v6849_v37, %v5260_v50 }
 0x465   : > { %8537 = vst [vmem:[%s11204_s30 + $0xcb8] sm:$0xff] %v8025_v42  ;;  %v7515_v18 = vadd.f32 %v6849_v37, %v5262_v33  ;;  %v2890_v2 = vpop.f32.mrb[198].mxu1  ;;  %v5265_v9 = vpop.f32.mrb[154].mxu0 }
 0x466   : > { %v8026_v11 = vmax.f32 %v7514_v24, 0.0  ;;  %v5266_v36 = vadd.f32 %v5265_v9, %v2890_v2  ;;  %v2892_v49 = vpop.f32.mrb[199].mxu1  ;;  %v5267_v27 = vpop.f32.mrb[155].mxu0 }
 0x467   : > { %v8027_v57 = vmax.f32 %v7515_v18, 0.0  ;;  %v5268_v14 = vadd.f32 %v5267_v27, %v2892_v49  ;;  %v6879_v33 = vpop.permute.xlu0 %6878 }
 0x468   : > { %8538 = vst [vmem:[%s11204_s30 + $0xcc0] sm:$0xff] %v8026_v11  ;;  %v7516_v15 = vadd.f32 %v6854_v40, %v5266_v36 }
 0x469   : > { %8539 = vst [vmem:[%s11204_s30 + $0xcc8] sm:$0xff] %v8027_v57  ;;  %v7517_v43 = vadd.f32 %v6854_v40, %v5268_v14  ;;  %v2896_v1 = vpop.f32.mrb[200].mxu1  ;;  %v5271_v26 = vpop.f32.mrb[156].mxu0 }
 0x46a   : > { %v8028_v4 = vmax.f32 %v7516_v15, 0.0  ;;  %v5272_v41 = vadd.f32 %v5271_v26, %v2896_v1  ;;  %v2898_v30 = vpop.f32.mrb[201].mxu1  ;;  %v5273_v6 = vpop.f32.mrb[157].mxu0 }
 0x46b   : > { %v8029_v55 = vmax.f32 %v7517_v43, 0.0  ;;  %v5274_v59 = vadd.f32 %v5273_v6, %v2898_v30  ;;  %v6884_v14 = vpop.permute.xlu1 %6883 }
 0x46c   : > { %8540 = vst [vmem:[%s11204_s30 + $0xcd0] sm:$0xff] %v8028_v4  ;;  %v7518_v62 = vadd.f32 %v6859_v44, %v5272_v41 }
 0x46d   : > { %8541 = vst [vmem:[%s11204_s30 + $0xcd8] sm:$0xff] %v8029_v55  ;;  %v7519_v16 = vadd.f32 %v6859_v44, %v5274_v59  ;;  %v2902_v48 = vpop.f32.mrb[202].mxu1  ;;  %v5277_v46 = vpop.f32.mrb[158].mxu0 }
 0x46e   : > { %v8030_v54 = vmax.f32 %v7518_v62, 0.0  ;;  %v5278_v34 = vadd.f32 %v5277_v46, %v2902_v48  ;;  %v2904_v13 = vpop.f32.mrb[203].mxu1  ;;  %v5279_v58 = vpop.f32.mrb[159].mxu0 }
 0x46f   : > { %v8031_v53 = vmax.f32 %v7519_v16, 0.0  ;;  %v5280_v38 = vadd.f32 %v5279_v58, %v2904_v13  ;;  %v6889_v59 = vpop.permute.xlu0 %6888 }
 0x470   : > { %8542 = vst [vmem:[%s11204_s30 + $0xce0] sm:$0xff] %v8030_v54  ;;  %v7520_v25 = vadd.f32 %v6864_v47, %v5278_v34 }
 0x471   : > { %8543 = vst [vmem:[%s11204_s30 + $0xce8] sm:$0xff] %v8031_v53  ;;  %v7521_v52 = vadd.f32 %v6864_v47, %v5280_v38  ;;  %v2908_v51 = vpop.f32.mrb[204].mxu1  ;;  %v5283_v5 = vpop.f32.mrb[160].mxu0 }
 0x472   : > { %v8032_v61 = vmax.f32 %v7520_v25, 0.0  ;;  %v5284_v60 = vadd.f32 %v5283_v5, %v2908_v51  ;;  %v2910_v21 = vpop.f32.mrb[205].mxu1  ;;  %v5285_v23 = vpop.f32.mrb[161].mxu0 }
 0x473   : > { %v8033_v3 = vmax.f32 %v7521_v52, 0.0  ;;  %v5286_v63 = vadd.f32 %v5285_v23, %v2910_v21  ;;  %v6894_v38 = vpop.permute.xlu1 %6893 }
 0x474   : > { %8544 = vst [vmem:[%s11204_s30 + $0xcf0] sm:$0xff] %v8032_v61  ;;  %v7522_v29 = vadd.f32 %v6869_v12, %v5284_v60 }
 0x475   : > { %8545 = vst [vmem:[%s11204_s30 + $0xcf8] sm:$0xff] %v8033_v3  ;;  %v7523_v8 = vadd.f32 %v6869_v12, %v5286_v63  ;;  %v2914_v35 = vpop.f32.mrb[206].mxu1  ;;  %v5289_v17 = vpop.f32.mrb[162].mxu0 }
 0x476   : > { %v8034_v56 = vmax.f32 %v7522_v29, 0.0  ;;  %v5290_v32 = vadd.f32 %v5289_v17, %v2914_v35  ;;  %v2916_v28 = vpop.f32.mrb[207].mxu1  ;;  %v5291_v0 = vpop.f32.mrb[163].mxu0 }
 0x477   : > { %v8035_v39 = vmax.f32 %v7523_v8, 0.0  ;;  %v5292_v10 = vadd.f32 %v5291_v0, %v2916_v28  ;;  %v6899_v63 = vpop.permute.xlu0 %6898 }
 0x478   : > { %8546 = vst [vmem:[%s11204_s30 + $0xd00] sm:$0xff] %v8034_v56  ;;  %v7524_v7 = vadd.f32 %v6874_v45, %v5290_v32 }
 0x479   : > { %8547 = vst [vmem:[%s11204_s30 + $0xd08] sm:$0xff] %v8035_v39  ;;  %v7525_v20 = vadd.f32 %v6874_v45, %v5292_v10  ;;  %v2920_v19 = vpop.f32.mrb[208].mxu1  ;;  %v5295_v50 = vpop.f32.mrb[164].mxu0 }
 0x47a   : > { %v8036_v22 = vmax.f32 %v7524_v7, 0.0  ;;  %v5296_v31 = vadd.f32 %v5295_v50, %v2920_v19  ;;  %v2922_v37 = vpop.f32.mrb[209].mxu1  ;;  %v5297_v42 = vpop.f32.mrb[165].mxu0 }
 0x47b   : > { %v8037_v24 = vmax.f32 %v7525_v20, 0.0  ;;  %v5298_v18 = vadd.f32 %v5297_v42, %v2922_v37  ;;  %v6904_v10 = vpop.permute.xlu1 %6903 }
 0x47c   : > { %8548 = vst [vmem:[%s11204_s30 + $0xd10] sm:$0xff] %v8036_v22  ;;  %v7526_v2 = vadd.f32 %v6879_v33, %v5296_v31 }
 0x47d   : > { %8549 = vst [vmem:[%s11204_s30 + $0xd18] sm:$0xff] %v8037_v24  ;;  %v7527_v9 = vadd.f32 %v6879_v33, %v5298_v18  ;;  %v2926_v11 = vpop.f32.mrb[210].mxu1  ;;  %v5301_v36 = vpop.f32.mrb[166].mxu0 }
 0x47e   : > { %v8038_v49 = vmax.f32 %v7526_v2, 0.0  ;;  %v5302_v27 = vadd.f32 %v5301_v36, %v2926_v11  ;;  %v2928_v40 = vpop.f32.mrb[211].mxu1  ;;  %v5303_v57 = vpop.f32.mrb[167].mxu0 }
 0x47f   : > { %v8039_v15 = vmax.f32 %v7527_v9, 0.0  ;;  %v5304_v43 = vadd.f32 %v5303_v57, %v2928_v40  ;;  %v6909_v18 = vpop.permute.xlu0 %6908 }
 0x480   : > { %8550 = vst [vmem:[%s11204_s30 + $0xd20] sm:$0xff] %v8038_v49  ;;  %v7528_v1 = vadd.f32 %v6884_v14, %v5302_v27 }
 0x481   : > { %8551 = vst [vmem:[%s11204_s30 + $0xd28] sm:$0xff] %v8039_v15  ;;  %v7529_v26 = vadd.f32 %v6884_v14, %v5304_v43  ;;  %v2932_v4 = vpop.f32.mrb[212].mxu1  ;;  %v5307_v41 = vpop.f32.mrb[168].mxu0 }
 0x482   : > { %v8040_v30 = vmax.f32 %v7528_v1, 0.0  ;;  %v5308_v6 = vadd.f32 %v5307_v41, %v2932_v4  ;;  %v2934_v44 = vpop.f32.mrb[213].mxu1  ;;  %v5309_v55 = vpop.f32.mrb[169].mxu0 }
 0x483   : > { %v8041_v62 = vmax.f32 %v7529_v26, 0.0  ;;  %v5310_v16 = vadd.f32 %v5309_v55, %v2934_v44  ;;  %v6914_v43 = vpop.permute.xlu1 %6913 }
 0x484   : > { %8552 = vst [vmem:[%s11204_s30 + $0xd30] sm:$0xff] %v8040_v30  ;;  %v7530_v48 = vadd.f32 %v6889_v59, %v5308_v6 }
 0x485   : > { %8553 = vst [vmem:[%s11204_s30 + $0xd38] sm:$0xff] %v8041_v62  ;;  %v7531_v46 = vadd.f32 %v6889_v59, %v5310_v16  ;;  %v2938_v54 = vpop.f32.mrb[214].mxu1  ;;  %v5313_v34 = vpop.f32.mrb[170].mxu0 }
 0x486   : > { %v8042_v13 = vmax.f32 %v7530_v48, 0.0  ;;  %v5314_v58 = vadd.f32 %v5313_v34, %v2938_v54  ;;  %v2940_v47 = vpop.f32.mrb[215].mxu1  ;;  %v5315_v53 = vpop.f32.mrb[171].mxu0 }
 0x487   : > { %v8043_v25 = vmax.f32 %v7531_v46, 0.0  ;;  %v5316_v52 = vadd.f32 %v5315_v53, %v2940_v47  ;;  %v6919_v16 = vpop.permute.xlu0 %6918 }
 0x488   : > { %8554 = vst [vmem:[%s11204_s30 + $0xd40] sm:$0xff] %v8042_v13  ;;  %v7532_v51 = vadd.f32 %v6894_v38, %v5314_v58 }
 0x489   : > { %8555 = vst [vmem:[%s11204_s30 + $0xd48] sm:$0xff] %v8043_v25  ;;  %v7533_v5 = vadd.f32 %v6894_v38, %v5316_v52  ;;  %v2944_v61 = vpop.f32.mrb[216].mxu1  ;;  %v5319_v60 = vpop.f32.mrb[172].mxu0 }
 0x48a   : > { %v8044_v21 = vmax.f32 %v7532_v51, 0.0  ;;  %v5320_v23 = vadd.f32 %v5319_v60, %v2944_v61  ;;  %v2946_v12 = vpop.f32.mrb[217].mxu1  ;;  %v5321_v3 = vpop.f32.mrb[173].mxu0 }
 0x48b   : > { %v8045_v29 = vmax.f32 %v7533_v5, 0.0  ;;  %v5322_v8 = vadd.f32 %v5321_v3, %v2946_v12  ;;  %v6924_v52 = vpop.permute.xlu1 %6923 }
 0x48c   : > { %8556 = vst [vmem:[%s11204_s30 + $0xd50] sm:$0xff] %v8044_v21  ;;  %v7534_v35 = vadd.f32 %v6899_v63, %v5320_v23 }
 0x48d   : > { %8557 = vst [vmem:[%s11204_s30 + $0xd58] sm:$0xff] %v8045_v29  ;;  %v7535_v17 = vadd.f32 %v6899_v63, %v5322_v8  ;;  %v2950_v56 = vpop.f32.mrb[218].mxu1  ;;  %v5325_v32 = vpop.f32.mrb[174].mxu0 }
 0x48e   : > { %v8046_v28 = vmax.f32 %v7534_v35, 0.0  ;;  %v5326_v0 = vadd.f32 %v5325_v32, %v2950_v56  ;;  %v2952_v45 = vpop.f32.mrb[219].mxu1  ;;  %v5327_v39 = vpop.f32.mrb[175].mxu0 }
 0x48f   : > { %v8047_v7 = vmax.f32 %v7535_v17, 0.0  ;;  %v5328_v20 = vadd.f32 %v5327_v39, %v2952_v45  ;;  %v6929_v8 = vpop.permute.xlu0 %6928 }
 0x490   : > { %8558 = vst [vmem:[%s11204_s30 + $0xd60] sm:$0xff] %v8046_v28  ;;  %v7536_v19 = vadd.f32 %v6904_v10, %v5326_v0 }
 0x491   : > { %8559 = vst [vmem:[%s11204_s30 + $0xd68] sm:$0xff] %v8047_v7  ;;  %v7537_v50 = vadd.f32 %v6904_v10, %v5328_v20  ;;  %v2956_v22 = vpop.f32.mrb[220].mxu1  ;;  %v5331_v31 = vpop.f32.mrb[176].mxu0 }
 0x492   : > { %v8048_v37 = vmax.f32 %v7536_v19, 0.0  ;;  %v5332_v42 = vadd.f32 %v5331_v31, %v2956_v22  ;;  %v2958_v33 = vpop.f32.mrb[221].mxu1  ;;  %v5333_v24 = vpop.f32.mrb[177].mxu0 }
 0x493   : > { %v8049_v2 = vmax.f32 %v7537_v50, 0.0  ;;  %v5334_v9 = vadd.f32 %v5333_v24, %v2958_v33  ;;  %v6934_v20 = vpop.permute.xlu1 %6933 }
 0x494   : > { %8560 = vst [vmem:[%s11204_s30 + $0xd70] sm:$0xff] %v8048_v37  ;;  %v7538_v11 = vadd.f32 %v6909_v18, %v5332_v42 }
 0x495   : > { %8561 = vst [vmem:[%s11204_s30 + $0xd78] sm:$0xff] %v8049_v2  ;;  %v7539_v36 = vadd.f32 %v6909_v18, %v5334_v9  ;;  %v2962_v49 = vpop.f32.mrb[222].mxu1  ;;  %v5337_v27 = vpop.f32.mrb[178].mxu0 }
 0x496   : > { %v8050_v40 = vmax.f32 %v7538_v11, 0.0  ;;  %v5338_v57 = vadd.f32 %v5337_v27, %v2962_v49  ;;  %v2964_v14 = vpop.f32.mrb[223].mxu1  ;;  %v5339_v15 = vpop.f32.mrb[179].mxu0 }
 0x497   : > { %v8051_v1 = vmax.f32 %v7539_v36, 0.0  ;;  %v5340_v26 = vadd.f32 %v5339_v15, %v2964_v14  ;;  %v6939_v9 = vpop.permute.xlu0 %6938 }
 0x498   : > { %8562 = vst [vmem:[%s11204_s30 + $0xd80] sm:$0xff] %v8050_v40  ;;  %v7540_v4 = vadd.f32 %v6914_v43, %v5338_v57 }
 0x499   : > { %8563 = vst [vmem:[%s11204_s30 + $0xd88] sm:$0xff] %v8051_v1  ;;  %v7541_v41 = vadd.f32 %v6914_v43, %v5340_v26  ;;  %v2968_v30 = vpop.f32.mrb[224].mxu1  ;;  %v5343_v6 = vpop.f32.mrb[180].mxu0 }
 0x49a   : > { %v8052_v44 = vmax.f32 %v7540_v4, 0.0  ;;  %v5344_v55 = vadd.f32 %v5343_v6, %v2968_v30  ;;  %v2970_v59 = vpop.f32.mrb[225].mxu1  ;;  %v5345_v62 = vpop.f32.mrb[181].mxu0 }
 0x49b   : > { %v8053_v48 = vmax.f32 %v7541_v41, 0.0  ;;  %v5346_v46 = vadd.f32 %v5345_v62, %v2970_v59  ;;  %v6944_v26 = vpop.permute.xlu1 %6943 }
 0x49c   : > { %8564 = vst [vmem:[%s11204_s30 + $0xd90] sm:$0xff] %v8052_v44  ;;  %v7542_v54 = vadd.f32 %v6919_v16, %v5344_v55 }
 0x49d   : > { %8565 = vst [vmem:[%s11204_s30 + $0xd98] sm:$0xff] %v8053_v48  ;;  %v7543_v34 = vadd.f32 %v6919_v16, %v5346_v46  ;;  %v2974_v13 = vpop.f32.mrb[226].mxu1  ;;  %v5349_v58 = vpop.f32.mrb[182].mxu0 }
 0x49e   : > { %v8054_v47 = vmax.f32 %v7542_v54, 0.0  ;;  %v5350_v53 = vadd.f32 %v5349_v58, %v2974_v13  ;;  %v2976_v38 = vpop.f32.mrb[227].mxu1  ;;  %v5351_v25 = vpop.f32.mrb[183].mxu0 }
 0x49f   : > { %v8055_v51 = vmax.f32 %v7543_v34, 0.0  ;;  %v5352_v5 = vadd.f32 %v5351_v25, %v2976_v38  ;;  %v6949_v46 = vpop.permute.xlu0 %6948 }
 0x4a0   : > { %8566 = vst [vmem:[%s11204_s30 + $0xda0] sm:$0xff] %v8054_v47  ;;  %v7544_v61 = vadd.f32 %v6924_v52, %v5350_v53 }
 0x4a1   : > { %8567 = vst [vmem:[%s11204_s30 + $0xda8] sm:$0xff] %v8055_v51  ;;  %v7545_v60 = vadd.f32 %v6924_v52, %v5352_v5  ;;  %v2980_v21 = vpop.f32.mrb[228].mxu1  ;;  %v5355_v23 = vpop.f32.mrb[184].mxu0 }
 0x4a2   : > { %v8056_v12 = vmax.f32 %v7544_v61, 0.0  ;;  %v5356_v3 = vadd.f32 %v5355_v23, %v2980_v21  ;;  %v2982_v63 = vpop.f32.mrb[229].mxu1  ;;  %v5357_v29 = vpop.f32.mrb[185].mxu0 }
 0x4a3   : > { %v8057_v35 = vmax.f32 %v7545_v60, 0.0  ;;  %v5358_v17 = vadd.f32 %v5357_v29, %v2982_v63  ;;  %v6954_v5 = vpop.permute.xlu1 %6953 }
 0x4a4   : > { %8568 = vst [vmem:[%s11204_s30 + $0xdb0] sm:$0xff] %v8056_v12  ;;  %v7546_v56 = vadd.f32 %v6929_v8, %v5356_v3 }
 0x4a5   : > { %8569 = vst [vmem:[%s11204_s30 + $0xdb8] sm:$0xff] %v8057_v35  ;;  %v7547_v32 = vadd.f32 %v6929_v8, %v5358_v17  ;;  %v2986_v28 = vpop.f32.mrb[230].mxu1  ;;  %v5361_v0 = vpop.f32.mrb[186].mxu0 }
 0x4a6   : > { %v8058_v45 = vmax.f32 %v7546_v56, 0.0  ;;  %v5362_v39 = vadd.f32 %v5361_v0, %v2986_v28  ;;  %v2988_v10 = vpop.f32.mrb[231].mxu1  ;;  %v5363_v7 = vpop.f32.mrb[187].mxu0 }
 0x4a7   : > { %v8059_v19 = vmax.f32 %v7547_v32, 0.0  ;;  %v5364_v50 = vadd.f32 %v5363_v7, %v2988_v10  ;;  %v6959_v17 = vpop.permute.xlu0 %6958 }
 0x4a8   : > { %8570 = vst [vmem:[%s11204_s30 + $0xdc0] sm:$0xff] %v8058_v45  ;;  %v7548_v22 = vadd.f32 %v6934_v20, %v5362_v39 }
 0x4a9   : > { %8571 = vst [vmem:[%s11204_s30 + $0xdc8] sm:$0xff] %v8059_v19  ;;  %v7549_v31 = vadd.f32 %v6934_v20, %v5364_v50  ;;  %v2992_v37 = vpop.f32.mrb[232].mxu1  ;;  %v5367_v42 = vpop.f32.mrb[188].mxu0 }
 0x4aa   : > { %v8060_v33 = vmax.f32 %v7548_v22, 0.0  ;;  %v5368_v24 = vadd.f32 %v5367_v42, %v2992_v37  ;;  %v2994_v18 = vpop.f32.mrb[233].mxu1  ;;  %v5369_v2 = vpop.f32.mrb[189].mxu0 }
 0x4ab   : > { %v8061_v11 = vmax.f32 %v7549_v31, 0.0  ;;  %v5370_v36 = vadd.f32 %v5369_v2, %v2994_v18  ;;  %v6964_v50 = vpop.permute.xlu1 %6963 }
 0x4ac   : > { %8572 = vst [vmem:[%s11204_s30 + $0xdd0] sm:$0xff] %v8060_v33  ;;  %v7550_v49 = vadd.f32 %v6939_v9, %v5368_v24 }
 0x4ad   : > { %8573 = vst [vmem:[%s11204_s30 + $0xdd8] sm:$0xff] %v8061_v11  ;;  %v7551_v27 = vadd.f32 %v6939_v9, %v5370_v36  ;;  %v2998_v40 = vpop.f32.mrb[234].mxu1  ;;  %v5373_v57 = vpop.f32.mrb[190].mxu0 }
 0x4ae   : > { %v8062_v14 = vmax.f32 %v7550_v49, 0.0  ;;  %v5374_v15 = vadd.f32 %v5373_v57, %v2998_v40  ;;  %v3000_v43 = vpop.f32.mrb[235].mxu1  ;;  %v5375_v1 = vpop.f32.mrb[191].mxu0 }
 0x4af   : > { %v8063_v4 = vmax.f32 %v7551_v27, 0.0  ;;  %v5376_v41 = vadd.f32 %v5375_v1, %v3000_v43  ;;  %v6969_v36 = vpop.permute.xlu0 %6968 }
 0x4b0   : > { %8574 = vst [vmem:[%s11204_s30 + $0xde0] sm:$0xff] %v8062_v14  ;;  %v7552_v30 = vadd.f32 %v6944_v26, %v5374_v15 }
 0x4b1   : > { %8575 = vst [vmem:[%s11204_s30 + $0xde8] sm:$0xff] %v8063_v4  ;;  %v7553_v6 = vadd.f32 %v6944_v26, %v5376_v41  ;;  %v3004_v44 = vpop.f32.mrb[236].mxu1  ;;  %v5379_v55 = vpop.f32.mrb[192].mxu0 }
 0x4b2   : > { %v8064_v59 = vmax.f32 %v7552_v30, 0.0  ;;  %v5380_v62 = vadd.f32 %v5379_v55, %v3004_v44  ;;  %v3006_v16 = vpop.f32.mrb[237].mxu1  ;;  %v5381_v48 = vpop.f32.mrb[193].mxu0 }
 0x4b3   : > { %v8065_v54 = vmax.f32 %v7553_v6, 0.0  ;;  %v5382_v34 = vadd.f32 %v5381_v48, %v3006_v16  ;;  %v6974_v41 = vpop.permute.xlu1 %6973 }
 0x4b4   : > { %8576 = vst [vmem:[%s11204_s30 + $0xdf0] sm:$0xff] %v8064_v59  ;;  %v7554_v13 = vadd.f32 %v6949_v46, %v5380_v62 }
 0x4b5   : > { %8577 = vst [vmem:[%s11204_s30 + $0xdf8] sm:$0xff] %v8065_v54  ;;  %v7555_v58 = vadd.f32 %v6949_v46, %v5382_v34  ;;  %v3010_v47 = vpop.f32.mrb[238].mxu1  ;;  %v5385_v53 = vpop.f32.mrb[194].mxu0 }
 0x4b6   : > { %v8066_v38 = vmax.f32 %v7554_v13, 0.0  ;;  %v5386_v25 = vadd.f32 %v5385_v53, %v3010_v47  ;;  %v3012_v52 = vpop.f32.mrb[239].mxu1  ;;  %v5387_v51 = vpop.f32.mrb[195].mxu0 }
 0x4b7   : > { %v8067_v61 = vmax.f32 %v7555_v58, 0.0  ;;  %v5388_v60 = vadd.f32 %v5387_v51, %v3012_v52  ;;  %v6979_v34 = vpop.permute.xlu0 %6978 }
 0x4b8   : > { %8578 = vst [vmem:[%s11204_s30 + $0xe00] sm:$0xff] %v8066_v38  ;;  %v7556_v21 = vadd.f32 %v6954_v5, %v5386_v25 }
 0x4b9   : > { %8579 = vst [vmem:[%s11204_s30 + $0xe08] sm:$0xff] %v8067_v61  ;;  %v7557_v23 = vadd.f32 %v6954_v5, %v5388_v60  ;;  %v3016_v12 = vpop.f32.mrb[240].mxu1  ;;  %v5391_v3 = vpop.f32.mrb[196].mxu0 }
 0x4ba   : > { %v8068_v63 = vmax.f32 %v7556_v21, 0.0  ;;  %v5392_v29 = vadd.f32 %v5391_v3, %v3016_v12  ;;  %v3018_v8 = vpop.f32.mrb[241].mxu1  ;;  %v5393_v35 = vpop.f32.mrb[197].mxu0 }
 0x4bb   : > { %v8069_v56 = vmax.f32 %v7557_v23, 0.0  ;;  %v5394_v32 = vadd.f32 %v5393_v35, %v3018_v8  ;;  %v6984_v60 = vpop.permute.xlu1 %6983 }
 0x4bc   : > { %8580 = vst [vmem:[%s11204_s30 + $0xe10] sm:$0xff] %v8068_v63  ;;  %v7558_v28 = vadd.f32 %v6959_v17, %v5392_v29 }
 0x4bd   : > { %8581 = vst [vmem:[%s11204_s30 + $0xe18] sm:$0xff] %v8069_v56  ;;  %v7559_v0 = vadd.f32 %v6959_v17, %v5394_v32  ;;  %v3022_v45 = vpop.f32.mrb[242].mxu1  ;;  %v5397_v39 = vpop.f32.mrb[198].mxu0 }
 0x4be   : > { %v8070_v10 = vmax.f32 %v7558_v28, 0.0  ;;  %v5398_v7 = vadd.f32 %v5397_v39, %v3022_v45  ;;  %v3024_v20 = vpop.f32.mrb[243].mxu1  ;;  %v5399_v19 = vpop.f32.mrb[199].mxu0 }
 0x4bf   : > { %v8071_v22 = vmax.f32 %v7559_v0, 0.0  ;;  %v5400_v31 = vadd.f32 %v5399_v19, %v3024_v20  ;;  %v6989_v32 = vpop.permute.xlu0 %6988 }
 0x4c0   : > { %8582 = vst [vmem:[%s11204_s30 + $0xe20] sm:$0xff] %v8070_v10  ;;  %v7560_v37 = vadd.f32 %v6964_v50, %v5398_v7 }
 0x4c1   : > { %8583 = vst [vmem:[%s11204_s30 + $0xe28] sm:$0xff] %v8071_v22  ;;  %v7561_v42 = vadd.f32 %v6964_v50, %v5400_v31  ;;  %v3028_v33 = vpop.f32.mrb[244].mxu1  ;;  %v5403_v24 = vpop.f32.mrb[200].mxu0 }
 0x4c2   : > { %v8072_v18 = vmax.f32 %v7560_v37, 0.0  ;;  %v5404_v2 = vadd.f32 %v5403_v24, %v3028_v33  ;;  %v3030_v9 = vpop.f32.mrb[245].mxu1  ;;  %v5405_v11 = vpop.f32.mrb[201].mxu0 }
 0x4c3   : > { %v8073_v49 = vmax.f32 %v7561_v42, 0.0  ;;  %v5406_v27 = vadd.f32 %v5405_v11, %v3030_v9  ;;  %v6994_v31 = vpop.permute.xlu1 %6993 }
 0x4c4   : > { %8584 = vst [vmem:[%s11204_s30 + $0xe30] sm:$0xff] %v8072_v18  ;;  %v7562_v40 = vadd.f32 %v6969_v36, %v5404_v2 }
 0x4c5   : > { %8585 = vst [vmem:[%s11204_s30 + $0xe38] sm:$0xff] %v8073_v49  ;;  %v7563_v57 = vadd.f32 %v6969_v36, %v5406_v27  ;;  %v3034_v14 = vpop.f32.mrb[246].mxu1  ;;  %v5409_v15 = vpop.f32.mrb[202].mxu0 }
 0x4c6   : > { %v8074_v43 = vmax.f32 %v7562_v40, 0.0  ;;  %v5410_v1 = vadd.f32 %v5409_v15, %v3034_v14  ;;  %v3036_v26 = vpop.f32.mrb[247].mxu1  ;;  %v5411_v4 = vpop.f32.mrb[203].mxu0 }
 0x4c7   : > { %v8075_v30 = vmax.f32 %v7563_v57, 0.0  ;;  %v5412_v6 = vadd.f32 %v5411_v4, %v3036_v26  ;;  %v6999_v27 = vpop.permute.xlu0 %6998 }
 0x4c8   : > { %8586 = vst [vmem:[%s11204_s30 + $0xe40] sm:$0xff] %v8074_v43  ;;  %v7564_v44 = vadd.f32 %v6974_v41, %v5410_v1 }
 0x4c9   : > { %8587 = vst [vmem:[%s11204_s30 + $0xe48] sm:$0xff] %v8075_v30  ;;  %v7565_v55 = vadd.f32 %v6974_v41, %v5412_v6  ;;  %v3040_v59 = vpop.f32.mrb[248].mxu1  ;;  %v5415_v62 = vpop.f32.mrb[204].mxu0 }
 0x4ca   : > { %v8076_v16 = vmax.f32 %v7564_v44, 0.0  ;;  %v5416_v48 = vadd.f32 %v5415_v62, %v3040_v59  ;;  %v3042_v46 = vpop.f32.mrb[249].mxu1  ;;  %v5417_v54 = vpop.f32.mrb[205].mxu0 }
 0x4cb   : > { %v8077_v13 = vmax.f32 %v7565_v55, 0.0  ;;  %v5418_v58 = vadd.f32 %v5417_v54, %v3042_v46  ;;  %v7004_v6 = vpop.permute.xlu1 %7003 }
 0x4cc   : > { %8588 = vst [vmem:[%s11204_s30 + $0xe50] sm:$0xff] %v8076_v16  ;;  %v7566_v47 = vadd.f32 %v6979_v34, %v5416_v48 }
 0x4cd   : > { %8589 = vst [vmem:[%s11204_s30 + $0xe58] sm:$0xff] %v8077_v13  ;;  %v7567_v53 = vadd.f32 %v6979_v34, %v5418_v58  ;;  %v3046_v38 = vpop.f32.mrb[250].mxu1  ;;  %v5421_v25 = vpop.f32.mrb[206].mxu0 }
 0x4ce   : > { %v8078_v52 = vmax.f32 %v7566_v47, 0.0  ;;  %v5422_v51 = vadd.f32 %v5421_v25, %v3046_v38  ;;  %v3048_v5 = vpop.f32.mrb[251].mxu1  ;;  %v5423_v61 = vpop.f32.mrb[207].mxu0 }
 0x4cf   : > { %v8079_v21 = vmax.f32 %v7567_v53, 0.0  ;;  %v5424_v23 = vadd.f32 %v5423_v61, %v3048_v5  ;;  %v7009_v58 = vpop.permute.xlu0 %7008 }
 0x4d0   : > { %8590 = vst [vmem:[%s11204_s30 + $0xe60] sm:$0xff] %v8078_v52  ;;  %v7568_v12 = vadd.f32 %v6984_v60, %v5422_v51 }
 0x4d1   : > { %8591 = vst [vmem:[%s11204_s30 + $0xe68] sm:$0xff] %v8079_v21  ;;  %v7569_v3 = vadd.f32 %v6984_v60, %v5424_v23  ;;  %v3052_v63 = vpop.f32.mrb[252].mxu1  ;;  %v5427_v29 = vpop.f32.mrb[208].mxu0 }
 0x4d2   : > { %v8080_v8 = vmax.f32 %v7568_v12, 0.0  ;;  %v5428_v35 = vadd.f32 %v5427_v29, %v3052_v63  ;;  %v3054_v17 = vpop.f32.mrb[253].mxu1  ;;  %v5429_v56 = vpop.f32.mrb[209].mxu0 }
 0x4d3   : > { %v8081_v28 = vmax.f32 %v7569_v3, 0.0  ;;  %v5430_v0 = vadd.f32 %v5429_v56, %v3054_v17  ;;  %v7014_v23 = vpop.permute.xlu1 %7013 }
 0x4d4   : > { %8592 = vst [vmem:[%s11204_s30 + $0xe70] sm:$0xff] %v8080_v8  ;;  %v7570_v45 = vadd.f32 %v6989_v32, %v5428_v35 }
 0x4d5   : > { %8593 = vst [vmem:[%s11204_s30 + $0xe78] sm:$0xff] %v8081_v28  ;;  %v7571_v39 = vadd.f32 %v6989_v32, %v5430_v0  ;;  %v3058_v10 = vpop.f32.mrb[254].mxu1  ;;  %v5433_v7 = vpop.f32.mrb[210].mxu0 }
 0x4d6   : > { %v8082_v20 = vmax.f32 %v7570_v45, 0.0  ;;  %v5434_v19 = vadd.f32 %v5433_v7, %v3058_v10  ;;  %v3060_v50 = vpop.f32.mrb[255].mxu1  ;;  %v5435_v22 = vpop.f32.mrb[211].mxu0 }
 0x4d7   : > { %v8083_v37 = vmax.f32 %v7571_v39, 0.0  ;;  %v5436_v42 = vadd.f32 %v5435_v22, %v3060_v50  ;;  %v7019_v0 = vpop.permute.xlu0 %7018 }
 0x4d8   : > { %8594 = vst [vmem:[%s11204_s30 + $0xe80] sm:$0xff] %v8082_v20  ;;  %v7572_v33 = vadd.f32 %v6994_v31, %v5434_v19 }
 0x4d9   : > { %8595 = vst [vmem:[%s11204_s30 + $0xe88] sm:$0xff] %v8083_v37  ;;  %v7573_v24 = vadd.f32 %v6994_v31, %v5436_v42  ;;  %v3064_v18 = vpop.f32.mrb[150].mxu1  ;;  %v5439_v2 = vpop.f32.mrb[212].mxu0 }
 0x4da   : > { %v8084_v9 = vmax.f32 %v7572_v33, 0.0  ;;  %v5440_v11 = vadd.f32 %v5439_v2, %v3064_v18  ;;  %v3066_v36 = vpop.f32.mrb[151].mxu1  ;;  %v5441_v49 = vpop.f32.mrb[213].mxu0 }
 0x4db   : > { %v8085_v40 = vmax.f32 %v7573_v24, 0.0  ;;  %v5442_v57 = vadd.f32 %v5441_v49, %v3066_v36  ;;  %v7024_v42 = vpop.permute.xlu1 %7023 }
 0x4dc   : > { %8596 = vst [vmem:[%s11204_s30 + $0xe90] sm:$0xff] %v8084_v9  ;;  %v7574_v14 = vadd.f32 %v6999_v27, %v5440_v11 }
 0x4dd   : > { %8597 = vst [vmem:[%s11204_s30 + $0xe98] sm:$0xff] %v8085_v40  ;;  %v7575_v15 = vadd.f32 %v6999_v27, %v5442_v57  ;;  %v3070_v43 = vpop.f32.mrb[152].mxu1  ;;  %v5445_v1 = vpop.f32.mrb[214].mxu0 }
 0x4de   : > { %v8086_v26 = vmax.f32 %v7574_v14, 0.0  ;;  %v5446_v4 = vadd.f32 %v5445_v1, %v3070_v43  ;;  %v3072_v41 = vpop.f32.mrb[153].mxu1  ;;  %v5447_v30 = vpop.f32.mrb[215].mxu0 }
 0x4df   : > { %v8087_v44 = vmax.f32 %v7575_v15, 0.0  ;;  %v5448_v55 = vadd.f32 %v5447_v30, %v3072_v41  ;;  %v7029_v57 = vpop.permute.xlu0 %7028 }
 0x4e0   : > { %8598 = vst [vmem:[%s11204_s30 + $0xea0] sm:$0xff] %v8086_v26  ;;  %v7576_v59 = vadd.f32 %v7004_v6, %v5446_v4 }
 0x4e1   : > { %8599 = vst [vmem:[%s11204_s30 + $0xea8] sm:$0xff] %v8087_v44  ;;  %v7577_v62 = vadd.f32 %v7004_v6, %v5448_v55  ;;  %v3076_v16 = vpop.f32.mrb[154].mxu1  ;;  %v5451_v48 = vpop.f32.mrb[216].mxu0 }
 0x4e2   : > { %v8088_v46 = vmax.f32 %v7576_v59, 0.0  ;;  %v5452_v54 = vadd.f32 %v5451_v48, %v3076_v16  ;;  %v3078_v34 = vpop.f32.mrb[155].mxu1  ;;  %v5453_v13 = vpop.f32.mrb[217].mxu0 }
 0x4e3   : > { %v8089_v47 = vmax.f32 %v7577_v62, 0.0  ;;  %v5454_v53 = vadd.f32 %v5453_v13, %v3078_v34  ;;  %v7034_v55 = vpop.permute.xlu1 %7033 }
 0x4e4   : > { %8600 = vst [vmem:[%s11204_s30 + $0xeb0] sm:$0xff] %v8088_v46  ;;  %v7578_v38 = vadd.f32 %v7009_v58, %v5452_v54 }
 0x4e5   : > { %8601 = vst [vmem:[%s11204_s30 + $0xeb8] sm:$0xff] %v8089_v47  ;;  %v7579_v25 = vadd.f32 %v7009_v58, %v5454_v53  ;;  %v3082_v52 = vpop.f32.mrb[156].mxu1  ;;  %v5457_v51 = vpop.f32.mrb[218].mxu0 }
 0x4e6   : > { %v8090_v5 = vmax.f32 %v7578_v38, 0.0  ;;  %v5458_v61 = vadd.f32 %v5457_v51, %v3082_v52  ;;  %v3084_v60 = vpop.f32.mrb[157].mxu1  ;;  %v5459_v21 = vpop.f32.mrb[219].mxu0 }
 0x4e7   : > { %v8091_v12 = vmax.f32 %v7579_v25, 0.0  ;;  %v5460_v3 = vadd.f32 %v5459_v21, %v3084_v60  ;;  %v7039_v53 = vpop.permute.xlu0 %7038 }
 0x4e8   : > { %8602 = vst [vmem:[%s11204_s30 + $0xec0] sm:$0xff] %v8090_v5  ;;  %v7580_v63 = vadd.f32 %v7014_v23, %v5458_v61 }
 0x4e9   : > { %8603 = vst [vmem:[%s11204_s30 + $0xec8] sm:$0xff] %v8091_v12  ;;  %v7581_v29 = vadd.f32 %v7014_v23, %v5460_v3  ;;  %v3088_v8 = vpop.f32.mrb[158].mxu1  ;;  %v5463_v35 = vpop.f32.mrb[220].mxu0 }
 0x4ea   : > { %v8092_v17 = vmax.f32 %v7580_v63, 0.0  ;;  %v5464_v56 = vadd.f32 %v5463_v35, %v3088_v8  ;;  %v3090_v32 = vpop.f32.mrb[159].mxu1  ;;  %v5465_v28 = vpop.f32.mrb[221].mxu0 }
 0x4eb   : > { %v8093_v45 = vmax.f32 %v7581_v29, 0.0  ;;  %v5466_v39 = vadd.f32 %v5465_v28, %v3090_v32  ;;  %v7044_v3 = vpop.permute.xlu1 %7043 }
 0x4ec   : > { %8604 = vst [vmem:[%s11204_s30 + $0xed0] sm:$0xff] %v8092_v17  ;;  %v7582_v10 = vadd.f32 %v7019_v0, %v5464_v56 }
 0x4ed   : > { %8605 = vst [vmem:[%s11204_s30 + $0xed8] sm:$0xff] %v8093_v45  ;;  %v7583_v7 = vadd.f32 %v7019_v0, %v5466_v39  ;;  %v3094_v20 = vpop.f32.mrb[160].mxu1  ;;  %v5469_v19 = vpop.f32.mrb[222].mxu0 }
 0x4ee   : > { %v8094_v50 = vmax.f32 %v7582_v10, 0.0  ;;  %v5470_v22 = vadd.f32 %v5469_v19, %v3094_v20  ;;  %v3096_v31 = vpop.f32.mrb[161].mxu1  ;;  %v5471_v37 = vpop.f32.mrb[223].mxu0 }
 0x4ef   : > { %v8095_v33 = vmax.f32 %v7583_v7, 0.0  ;;  %v5472_v24 = vadd.f32 %v5471_v37, %v3096_v31  ;;  %v7049_v39 = vpop.permute.xlu0 %7048 }
 0x4f0   : > { %8606 = vst [vmem:[%s11204_s30 + $0xee0] sm:$0xff] %v8094_v50  ;;  %v7584_v18 = vadd.f32 %v7024_v42, %v5470_v22 }
 0x4f1   : > { %8607 = vst [vmem:[%s11204_s30 + $0xee8] sm:$0xff] %v8095_v33  ;;  %v7585_v2 = vadd.f32 %v7024_v42, %v5472_v24  ;;  %v3100_v9 = vpop.f32.mrb[162].mxu1  ;;  %v5475_v11 = vpop.f32.mrb[224].mxu0 }
 0x4f2   : > { %v8096_v36 = vmax.f32 %v7584_v18, 0.0  ;;  %v5476_v49 = vadd.f32 %v5475_v11, %v3100_v9  ;;  %v3102_v27 = vpop.f32.mrb[163].mxu1  ;;  %v5477_v40 = vpop.f32.mrb[225].mxu0 }
 0x4f3   : > { %v8097_v14 = vmax.f32 %v7585_v2, 0.0  ;;  %v5478_v15 = vadd.f32 %v5477_v40, %v3102_v27  ;;  %v7054_v24 = vpop.permute.xlu1 %7053 }
 0x4f4   : > { %8608 = vst [vmem:[%s11204_s30 + $0xef0] sm:$0xff] %v8096_v36  ;;  %v7586_v43 = vadd.f32 %v7029_v57, %v5476_v49 }
 0x4f5   : > { %8609 = vst [vmem:[%s11204_s30 + $0xef8] sm:$0xff] %v8097_v14  ;;  %v7587_v1 = vadd.f32 %v7029_v57, %v5478_v15  ;;  %v3106_v26 = vpop.f32.mrb[164].mxu1  ;;  %v5481_v4 = vpop.f32.mrb[226].mxu0 }
 0x4f6   : > { %v8098_v41 = vmax.f32 %v7586_v43, 0.0  ;;  %v5482_v30 = vadd.f32 %v5481_v4, %v3106_v26  ;;  %v3108_v6 = vpop.f32.mrb[165].mxu1  ;;  %v5483_v44 = vpop.f32.mrb[227].mxu0 }
 0x4f7   : > { %v8099_v59 = vmax.f32 %v7587_v1, 0.0  ;;  %v5484_v62 = vadd.f32 %v5483_v44, %v3108_v6  ;;  %v7059_v15 = vpop.permute.xlu0 %7058 }
 0x4f8   : > { %8610 = vst [vmem:[%s11204_s30 + $0xf00] sm:$0xff] %v8098_v41  ;;  %v7588_v16 = vadd.f32 %v7034_v55, %v5482_v30 }
 0x4f9   : > { %8611 = vst [vmem:[%s11204_s30 + $0xf08] sm:$0xff] %v8099_v59  ;;  %v7589_v48 = vadd.f32 %v7034_v55, %v5484_v62  ;;  %v3112_v46 = vpop.f32.mrb[166].mxu1  ;;  %v5487_v54 = vpop.f32.mrb[228].mxu0 }
 0x4fa   : > { %v8100_v34 = vmax.f32 %v7588_v16, 0.0  ;;  %v5488_v13 = vadd.f32 %v5487_v54, %v3112_v46  ;;  %v3114_v58 = vpop.f32.mrb[167].mxu1  ;;  %v5489_v47 = vpop.f32.mrb[229].mxu0 }
 0x4fb   : > { %v8101_v38 = vmax.f32 %v7589_v48, 0.0  ;;  %v5490_v25 = vadd.f32 %v5489_v47, %v3114_v58  ;;  %v7064_v62 = vpop.permute.xlu1 %7063 }
 0x4fc   : > { %8612 = vst [vmem:[%s11204_s30 + $0xf10] sm:$0xff] %v8100_v34  ;;  %v7590_v52 = vadd.f32 %v7039_v53, %v5488_v13 }
 0x4fd   : > { %8613 = vst [vmem:[%s11204_s30 + $0xf18] sm:$0xff] %v8101_v38  ;;  %v7591_v51 = vadd.f32 %v7039_v53, %v5490_v25  ;;  %v3118_v5 = vpop.f32.mrb[168].mxu1  ;;  %v5493_v61 = vpop.f32.mrb[230].mxu0 }
 0x4fe   : > { %v8102_v60 = vmax.f32 %v7590_v52, 0.0  ;;  %v5494_v21 = vadd.f32 %v5493_v61, %v3118_v5  ;;  %v3120_v23 = vpop.f32.mrb[169].mxu1  ;;  %v5495_v12 = vpop.f32.mrb[231].mxu0 }
 0x4ff   : > { %v8103_v63 = vmax.f32 %v7591_v51, 0.0  ;;  %v5496_v29 = vadd.f32 %v5495_v12, %v3120_v23  ;;  %v7069_v25 = vpop.permute.xlu0 %7068 }
 0x500   : > { %8614 = vst [vmem:[%s11204_s30 + $0xf20] sm:$0xff] %v8102_v60  ;;  %v7592_v8 = vadd.f32 %v7044_v3, %v5494_v21 }
 0x501   : > { %8615 = vst [vmem:[%s11204_s30 + $0xf28] sm:$0xff] %v8103_v63  ;;  %v7593_v35 = vadd.f32 %v7044_v3, %v5496_v29  ;;  %v3124_v17 = vpop.f32.mrb[170].mxu1  ;;  %v5499_v56 = vpop.f32.mrb[232].mxu0 }
 0x502   : > { %v8104_v32 = vmax.f32 %v7592_v8, 0.0  ;;  %v5500_v28 = vadd.f32 %v5499_v56, %v3124_v17  ;;  %v3126_v0 = vpop.f32.mrb[171].mxu1  ;;  %v5501_v45 = vpop.f32.mrb[233].mxu0 }
 0x503   : > { %v8105_v10 = vmax.f32 %v7593_v35, 0.0  ;;  %v5502_v7 = vadd.f32 %v5501_v45, %v3126_v0  ;;  %v7074_v29 = vpop.permute.xlu1 %7073 }
 0x504   : > { %8616 = vst [vmem:[%s11204_s30 + $0xf30] sm:$0xff] %v8104_v32  ;;  %v7594_v20 = vadd.f32 %v7049_v39, %v5500_v28 }
 0x505   : > { %8617 = vst [vmem:[%s11204_s30 + $0xf38] sm:$0xff] %v8105_v10  ;;  %v7595_v19 = vadd.f32 %v7049_v39, %v5502_v7  ;;  %v3130_v50 = vpop.f32.mrb[172].mxu1  ;;  %v5505_v22 = vpop.f32.mrb[234].mxu0 }
 0x506   : > { %v8106_v31 = vmax.f32 %v7594_v20, 0.0  ;;  %v5506_v37 = vadd.f32 %v5505_v22, %v3130_v50  ;;  %v3132_v42 = vpop.f32.mrb[173].mxu1  ;;  %v5507_v33 = vpop.f32.mrb[235].mxu0 }
 0x507   : > { %v8107_v18 = vmax.f32 %v7595_v19, 0.0  ;;  %v5508_v2 = vadd.f32 %v5507_v33, %v3132_v42  ;;  %v7079_v7 = vpop.permute.xlu0 %7078 }
 0x508   : > { %8618 = vst [vmem:[%s11204_s30 + $0xf40] sm:$0xff] %v8106_v31  ;;  %v7596_v9 = vadd.f32 %v7054_v24, %v5506_v37 }
 0x509   : > { %8619 = vst [vmem:[%s11204_s30 + $0xf48] sm:$0xff] %v8107_v18  ;;  %v7597_v11 = vadd.f32 %v7054_v24, %v5508_v2  ;;  %v3136_v36 = vpop.f32.mrb[174].mxu1  ;;  %v5511_v49 = vpop.f32.mrb[236].mxu0 }
 0x50a   : > { %v8108_v27 = vmax.f32 %v7596_v9, 0.0  ;;  %v5512_v40 = vadd.f32 %v5511_v49, %v3136_v36  ;;  %v3138_v57 = vpop.f32.mrb[175].mxu1  ;;  %v5513_v14 = vpop.f32.mrb[237].mxu0 }
 0x50b   : > { %v8109_v43 = vmax.f32 %v7597_v11, 0.0  ;;  %v5514_v1 = vadd.f32 %v5513_v14, %v3138_v57  ;;  %v7084_v2 = vpop.permute.xlu1 %7083 }
 0x50c   : > { %8620 = vst [vmem:[%s11204_s30 + $0xf50] sm:$0xff] %v8108_v27  ;;  %v7598_v26 = vadd.f32 %v7059_v15, %v5512_v40 }
 0x50d   : > { %8621 = vst [vmem:[%s11204_s30 + $0xf58] sm:$0xff] %v8109_v43  ;;  %v7599_v4 = vadd.f32 %v7059_v15, %v5514_v1  ;;  %v3142_v41 = vpop.f32.mrb[176].mxu1  ;;  %v5517_v30 = vpop.f32.mrb[238].mxu0 }
 0x50e   : > { %v8110_v6 = vmax.f32 %v7598_v26, 0.0  ;;  %v5518_v44 = vadd.f32 %v5517_v30, %v3142_v41  ;;  %v3144_v55 = vpop.f32.mrb[177].mxu1  ;;  %v5519_v59 = vpop.f32.mrb[239].mxu0 }
 0x50f   : > { %v8111_v16 = vmax.f32 %v7599_v4, 0.0  ;;  %v5520_v48 = vadd.f32 %v5519_v59, %v3144_v55  ;;  %v7089_v1 = vpop.permute.xlu0 %7088 }
 0x510   : > { %8622 = vst [vmem:[%s11204_s30 + $0xf60] sm:$0xff] %v8110_v6  ;;  %v7600_v46 = vadd.f32 %v7064_v62, %v5518_v44 }
 0x511   : > { %8623 = vst [vmem:[%s11204_s30 + $0xf68] sm:$0xff] %v8111_v16  ;;  %v7601_v54 = vadd.f32 %v7064_v62, %v5520_v48  ;;  %v3148_v34 = vpop.f32.mrb[178].mxu1  ;;  %v5523_v13 = vpop.f32.mrb[240].mxu0 }
 0x512   : > { %v8112_v58 = vmax.f32 %v7600_v46, 0.0  ;;  %v5524_v47 = vadd.f32 %v5523_v13, %v3148_v34  ;;  %v3150_v53 = vpop.f32.mrb[179].mxu1  ;;  %v5525_v38 = vpop.f32.mrb[241].mxu0 }
 0x513   : > { %v8113_v52 = vmax.f32 %v7601_v54, 0.0  ;;  %v5526_v51 = vadd.f32 %v5525_v38, %v3150_v53  ;;  %v7094_v48 = vpop.permute.xlu1 %7093 }
 0x514   : > { %8624 = vst [vmem:[%s11204_s30 + $0xf70] sm:$0xff] %v8112_v58  ;;  %v7602_v5 = vadd.f32 %v7069_v25, %v5524_v47 }
 0x515   : > { %8625 = vst [vmem:[%s11204_s30 + $0xf78] sm:$0xff] %v8113_v52  ;;  %v7603_v61 = vadd.f32 %v7069_v25, %v5526_v51  ;;  %v3154_v60 = vpop.f32.mrb[180].mxu1  ;;  %v5529_v21 = vpop.f32.mrb[242].mxu0 }
 0x516   : > { %v8114_v23 = vmax.f32 %v7602_v5, 0.0  ;;  %v5530_v12 = vadd.f32 %v5529_v21, %v3154_v60  ;;  %v3156_v3 = vpop.f32.mrb[181].mxu1  ;;  %v5531_v63 = vpop.f32.mrb[243].mxu0 }
 0x517   : > { %v8115_v8 = vmax.f32 %v7603_v61, 0.0  ;;  %v5532_v35 = vadd.f32 %v5531_v63, %v3156_v3  ;;  %v7099_v51 = vpop.permute.xlu0 %7098 }
 0x518   : > { %8626 = vst [vmem:[%s11204_s30 + $0xf80] sm:$0xff] %v8114_v23  ;;  %v7604_v17 = vadd.f32 %v7074_v29, %v5530_v12 }
 0x519   : > { %8627 = vst [vmem:[%s11204_s30 + $0xf88] sm:$0xff] %v8115_v8  ;;  %v7605_v56 = vadd.f32 %v7074_v29, %v5532_v35  ;;  %v3160_v32 = vpop.f32.mrb[182].mxu1  ;;  %v5535_v28 = vpop.f32.mrb[244].mxu0 }
 0x51a   : > { %v8116_v0 = vmax.f32 %v7604_v17, 0.0  ;;  %v5536_v45 = vadd.f32 %v5535_v28, %v3160_v32  ;;  %v3162_v39 = vpop.f32.mrb[183].mxu1  ;;  %v5537_v10 = vpop.f32.mrb[245].mxu0 }
 0x51b   : > { %v8117_v20 = vmax.f32 %v7605_v56, 0.0  ;;  %v5538_v19 = vadd.f32 %v5537_v10, %v3162_v39  ;;  %v7104_v35 = vpop.permute.xlu1 %7103 }
 0x51c   : > { %8628 = vst [vmem:[%s11204_s30 + $0xf90] sm:$0xff] %v8116_v0  ;;  %v7606_v50 = vadd.f32 %v7079_v7, %v5536_v45 }
 0x51d   : > { %8629 = vst [vmem:[%s11204_s30 + $0xf98] sm:$0xff] %v8117_v20  ;;  %v7607_v22 = vadd.f32 %v7079_v7, %v5538_v19  ;;  %v3166_v31 = vpop.f32.mrb[184].mxu1  ;;  %v5541_v37 = vpop.f32.mrb[246].mxu0 }
 0x51e   : > { %v8118_v42 = vmax.f32 %v7606_v50, 0.0  ;;  %v5542_v33 = vadd.f32 %v5541_v37, %v3166_v31  ;;  %v3168_v24 = vpop.f32.mrb[185].mxu1  ;;  %v5543_v18 = vpop.f32.mrb[247].mxu0 }
 0x51f   : > { %v8119_v9 = vmax.f32 %v7607_v22, 0.0  ;;  %v5544_v11 = vadd.f32 %v5543_v18, %v3168_v24 }
 0x520   : > { %8630 = vst [vmem:[%s11204_s30 + $0xfa0] sm:$0xff] %v8118_v42  ;;  %v7608_v36 = vadd.f32 %v7084_v2, %v5542_v33 }
 0x521   : > { %8631 = vst [vmem:[%s11204_s30 + $0xfa8] sm:$0xff] %v8119_v9  ;;  %v7609_v49 = vadd.f32 %v7084_v2, %v5544_v11  ;;  %v3172_v27 = vpop.f32.mrb[186].mxu1  ;;  %v5547_v40 = vpop.f32.mrb[248].mxu0 }
 0x522   : > { %v8120_v57 = vmax.f32 %v7608_v36, 0.0  ;;  %v5548_v14 = vadd.f32 %v5547_v40, %v3172_v27  ;;  %v3174_v15 = vpop.f32.mrb[187].mxu1  ;;  %v5549_v43 = vpop.f32.mrb[249].mxu0 }
 0x523   : > { %v8121_v26 = vmax.f32 %v7609_v49, 0.0  ;;  %v5550_v4 = vadd.f32 %v5549_v43, %v3174_v15 }
 0x524   : > { %8632 = vst [vmem:[%s11204_s30 + $0xfb0] sm:$0xff] %v8120_v57  ;;  %v7610_v41 = vadd.f32 %v7089_v1, %v5548_v14 }
 0x525   : > { %8633 = vst [vmem:[%s11204_s30 + $0xfb8] sm:$0xff] %v8121_v26  ;;  %v7611_v30 = vadd.f32 %v7089_v1, %v5550_v4  ;;  %v3178_v6 = vpop.f32.mrb[188].mxu1  ;;  %v5553_v44 = vpop.f32.mrb[250].mxu0 }
 0x526   : > { %v8122_v55 = vmax.f32 %v7610_v41, 0.0  ;;  %v5554_v59 = vadd.f32 %v5553_v44, %v3178_v6  ;;  %v3180_v62 = vpop.f32.mrb[189].mxu1  ;;  %v5555_v16 = vpop.f32.mrb[251].mxu0 }
 0x527   : > { %v8123_v46 = vmax.f32 %v7611_v30, 0.0  ;;  %v5556_v54 = vadd.f32 %v5555_v16, %v3180_v62 }
 0x528   : > { %8634 = vst [vmem:[%s11204_s30 + $0xfc0] sm:$0xff] %v8122_v55  ;;  %v7612_v34 = vadd.f32 %v7094_v48, %v5554_v59 }
 0x529   : > { %8635 = vst [vmem:[%s11204_s30 + $0xfc8] sm:$0xff] %v8123_v46  ;;  %v7613_v13 = vadd.f32 %v7094_v48, %v5556_v54  ;;  %v3184_v58 = vpop.f32.mrb[190].mxu1  ;;  %v5559_v47 = vpop.f32.mrb[252].mxu0 }
 0x52a   : > { %v8124_v53 = vmax.f32 %v7612_v34, 0.0  ;;  %v5560_v38 = vadd.f32 %v5559_v47, %v3184_v58  ;;  %v3186_v25 = vpop.f32.mrb[191].mxu1  ;;  %v5561_v52 = vpop.f32.mrb[253].mxu0 }
 0x52b   : > { %v8125_v5 = vmax.f32 %v7613_v13, 0.0  ;;  %v5562_v61 = vadd.f32 %v5561_v52, %v3186_v25 }
 0x52c   : > { %8636 = vst [vmem:[%s11204_s30 + $0xfd0] sm:$0xff] %v8124_v53  ;;  %v7614_v60 = vadd.f32 %v7099_v51, %v5560_v38 }
 0x52d   : > { %8637 = vst [vmem:[%s11204_s30 + $0xfd8] sm:$0xff] %v8125_v5  ;;  %v7615_v21 = vadd.f32 %v7099_v51, %v5562_v61  ;;  %v3190_v23 = vpop.f32.mrb[192].mxu1  ;;  %v5565_v12 = vpop.f32.mrb[254].mxu0 }
 0x52e   : > { %v8126_v3 = vmax.f32 %v7614_v60, 0.0  ;;  %v5566_v63 = vadd.f32 %v5565_v12, %v3190_v23  ;;  %v3192_v29 = vpop.f32.mrb[193].mxu1  ;;  %v5567_v8 = vpop.f32.mrb[255].mxu0 }
 0x52f   : > { %v8127_v17 = vmax.f32 %v7615_v21, 0.0  ;;  %v5568_v56 = vadd.f32 %v5567_v8, %v3192_v29 }
 0x530   : > { %8638 = vst [vmem:[%s11204_s30 + $0xfe0] sm:$0xff] %v8126_v3  ;;  %v7616_v32 = vadd.f32 %v7104_v35, %v5566_v63 }
 0x531   : > { %8639 = vst [vmem:[%s11204_s30 + $0xfe8] sm:$0xff] %v8127_v17  ;;  %v7617_v28 = vadd.f32 %v7104_v35, %v5568_v56 }
 0x532   : > { %v8128_v0 = vmax.f32 %v7616_v32, 0.0 }
 0x533   : > { %v8129_v45 = vmax.f32 %v7617_v28, 0.0 }
 0x534   : > { %8640 = vst [vmem:[%s11204_s30 + $0xff0] sm:$0xff] %v8128_v0 }
 0x535   : > { %8641 = vst [vmem:[%s11204_s30 + $0xff8] sm:$0xff] %v8129_v45 }
 0x536   : > { %9969 = shalt.err (!%p9966_p2)
}
 0x537   : > { %s9970_s30 = scalar_lea.hbm %s14726_s13, 65536  ;;  %s9974_s11 = scalar_lea.hbm %s14784_s5, 131072 }
 0x538   : > { %p9971_p9 = scmp.ne.s32.totalorder %s14726_s13, %s9970_s30  ;;  %p9975_p6 = scmp.lt.u32.totalorder %s14726_s13, %s14784_s5 }
 0x539   : > { %p9976_p13 = scmp.lt.u32.totalorder %s9974_s11, %s9970_s30  ;;  %p9978_p8 = scmp.lt.u32.totalorder %s9970_s30, %s14726_s13 }
 0x53a   : > { %p9972_p11 = pnand %p9971_p9, %p14935_p0 }
 0x53b   : > { %p9977_p5 = por %p9976_p13, %p9975_p6 }
 0x53c   : > { %p9973_p3 = pneg %p9972_p11 }
 0x53d   : > { %p9979_p7 = por %p9978_p8, %p9977_p5 }
 0x53f   : > { %p9980_p4 = pnand %p9979_p7, %p9973_p3 }
 0x541   : > { %9983 = shalt.err (!%p9980_p4)
}
 0x542   : > { %s10049_s29 = smov 256   ;;  %s10050_s14 = smov 16  }
 0x543   : > { %9825 = dma.vmem_to_hbm [thread:$0]  (%p14935_p0), %s14728_s15, 65536, %s14726_s13, %s8643_s21, %s10049_s29, %s10049_s29, %s10050_s14  }
 0x544 PF: > { %s8673_s25 = sand.u32 1, %s10022_s18   ;;  %p14936_p10 = scmp.ne.s32.totalorder %s14837_s8, 0 }
 0x545   : > { %p14937_p12 = scmp.ge.s32.totalorder %s10042_s23, 2  ;;  %s8674_s9 = scalar_lea.sflag [#allocation4], %s8673_s25 }
 0x547   : > { %p9835_p1 = pnand %p14937_p12, %p14936_p10 }
 0x549   : > { %10017 = dma.done.wait (!%p9835_p1), %s8674_s9, 65536  }
 0x54a   : > { %10019 = vsyncadd (!%p9835_p1), %s8674_s9, 4294901760  ;;  %s24_s23 = sadd.s32 1, %s10042_s23   ;;  %s14938_s18 = smov %s10026_s19 }
 0x54b   : > { %p21_p2 = scmp.ge.s32.totalorder %s24_s23, 4   ;;  %s14939_s19 = smov %s10030_s20 }
 0x54c   : > { %s14940_s20 = smov %s10137_s7  ;;  %s14941_s21 = smov %s10038_s22 }
 0x54d   : > { %s14942_s22 = smov %s14944_s26  ;;  %23 = sbr.rel (!%p21_p2) target bundleno = 8 (0x8), region = 98 }
 0x554   :  { %8679 = vsyncpa [#allocation3], 1 }
 0x555   :  { %8681 = vsyncpa [#allocation3 + $0x1], 1 }
 0x556   :  { %8682 = vsyncpa [#allocation6], 1 }
 0x557   :  { %8684 = vsyncpa [#allocation6 + $0x1], 1 }
 0x558   :  { %8685 = vsyncpa [#allocation4], 1 }
 0x559   :  { %8687 = vsyncpa [#allocation4 + $0x1], 1 }

</bundles_post_ra>
